<compile_context>
chip_gen: v5e
topology: v5e:2x2
jax: 0.10.0
libtpu: 0.0.40
codegen_flags: <defaults>
</compile_context>

<pallas_src>
import functools

import numpy as np
import jax
import jax.numpy as jnp
from jax import lax
from jax.experimental import pallas as pl
from jax.experimental.pallas import tpu as pltpu


# --------------------------------------------------------------------------
# Fused kernel: the whole network in one invocation.
#
# Row layout for every activation: row = b*49 + m*7 + n  (a (B,7,7) "phase
# grid").  Only a prefix of the rows is ever valid for a given stage; the
# trailing rows are cheap "garbage-edge" filler that keeps every conv tap a
# contiguous slice.  Valid rows never read garbage rows (verified analytically).
# --------------------------------------------------------------------------
def _lenet_fused_kernel(x_ref, w1_ref, b1_ref, w2_ref, b2_ref,
                        wf1_ref, bf1_ref, wf2_ref, bf2_ref, wo_ref, bo_ref,
                        o_ref, *, batch):
    B = batch
    NP1 = 49 * B - 8     # rows carried through conv1+pool1
    NP2 = 49 * B - 24    # rows carried through conv2+pool2
    NH = 49 * B - 48     # rows carried through the fc stack

    X = x_ref[...]       # (49B, 16)  columns = mod-4 spatial phase (pr*4+ps)
    W1 = w1_ref[...]     # (16, 16, 24)  [corner*4+shift, phase, (r,s,cout)]
    W2 = w2_ref[...]     # (36, 24, 12)  [corner*9+shift, (r,s,cin), cout]
    WF1 = wf1_ref[...]   # (16, 12, 120) [h*4+w, cin, fout]

    # ---- conv1 (1->6, k=5) + bias + 2x2 max-pool + relu --------------------
    # 4 row-shifted views of the phase-packed input (shared by all 4 corners).
    xs = [X[7 * u + v: 7 * u + v + NP1, :] for u in range(2) for v in range(2)]
    pooled1 = None
    for corner in range(4):                       # pool-window corner (a, b)
        acc = None
        for shift in range(4):                    # phase-grid shift (u, v)
            t = jnp.dot(xs[shift], W1[corner * 4 + shift],
                        preferred_element_type=jnp.float32)
            acc = t if acc is None else acc + t
        pooled1 = acc if pooled1 is None else jnp.maximum(pooled1, acc)
    P1 = jnp.maximum(pooled1 + b1_ref[...], 0.0)  # (NP1, 24): (r,s) phase x 6 ch

    # ---- conv2 (6->12, k=5) + bias + 2x2 max-pool + relu -------------------
    p1s = [P1[7 * u + v: 7 * u + v + NP2, :] for u in range(3) for v in range(3)]
    pooled2 = None
    for corner in range(4):
        acc = None
        for shift in range(9):
            t = jnp.dot(p1s[shift], W2[corner * 9 + shift],
                        preferred_element_type=jnp.float32)
            acc = t if acc is None else acc + t
        pooled2 = acc if pooled2 is None else jnp.maximum(pooled2, acc)
    P2 = jnp.maximum(pooled2 + b2_ref[...], 0.0)  # (NP2, 12)

    # ---- flatten (folded into the weights) + fc1 + relu --------------------
    h1 = None
    for h in range(4):
        for w in range(4):
            off = 7 * h + w
            t = jnp.dot(P2[off: off + NH, :], WF1[h * 4 + w],
                        preferred_element_type=jnp.float32)
            h1 = t if h1 is None else h1 + t
    h1 = jnp.maximum(h1 + bf1_ref[...], 0.0)      # (NH, 120)

    # ---- fc2 + relu, output layer ------------------------------------------
    h2 = jnp.maximum(
        jnp.dot(h1, wf2_ref[...], preferred_element_type=jnp.float32)
        + bf2_ref[...], 0.0)                      # (NH, 60)
    logits = (jnp.dot(h2, wo_ref[...], preferred_element_type=jnp.float32)
              + bo_ref[...])                      # (NH, 10)

    # Valid logits for batch element b live at row b*49; everything else is
    # garbage-edge filler.
    for bb in range(B):
        o_ref[bb:bb + 1, :] = logits[49 * bb: 49 * bb + 1, :].astype(o_ref.dtype)


def _full_block(shape):
    nd = len(shape)
    return pl.BlockSpec(shape, lambda i, _nd=nd: (0,) * _nd)


# --------------------------------------------------------------------------
# One-time weight repacking (host / init time; never in the hot path).
# --------------------------------------------------------------------------
def prepare_params(params):
    """Repack PyTorch-layout weights into the phase-packed shift-matmul form."""
    w1, b1, w2, b2, wf1, bf1, wf2, bf2, wo, bo = [
        p.astype(jnp.float32) for p in params]

    # conv1 -> (16, 16, 24): [corner(a,b)*4 + shift(u,v), phase(pr,ps), (r,s,co)]
    w1p = jnp.pad(w1[:, 0], ((0, 0), (5, 5), (5, 5)))          # (6, 15, 15)
    shp = (2, 2, 2, 2, 4, 4, 2, 2, 6)                          # a,b,u,v,pr,ps,r,s,co
    a = np.arange(2).reshape(2, 1, 1, 1, 1, 1, 1, 1, 1)
    b_ = np.arange(2).reshape(1, 2, 1, 1, 1, 1, 1, 1, 1)
    u = np.arange(2).reshape(1, 1, 2, 1, 1, 1, 1, 1, 1)
    v = np.arange(2).reshape(1, 1, 1, 2, 1, 1, 1, 1, 1)
    pr = np.arange(4).reshape(1, 1, 1, 1, 4, 1, 1, 1, 1)
    ps = np.arange(4).reshape(1, 1, 1, 1, 1, 4, 1, 1, 1)
    r = np.arange(2).reshape(1, 1, 1, 1, 1, 1, 2, 1, 1)
    s = np.arange(2).reshape(1, 1, 1, 1, 1, 1, 1, 2, 1)
    co = np.arange(6).reshape(1, 1, 1, 1, 1, 1, 1, 1, 6)
    ki = 5 + 4 * u + pr - (2 * r + a)      # out-of-range taps land in the 0-pad
    kj = 5 + 4 * v + ps - (2 * s + b_)
    w1e = w1p[np.broadcast_to(co, shp),
              np.broadcast_to(ki, shp),
              np.broadcast_to(kj, shp)].reshape(16, 16, 24)

    # conv2 -> (36, 24, 12): [corner(a,b)*9 + shift(u,v), (r,s,ci), co]
    w2p = jnp.pad(w2, ((0, 0), (0, 0), (5, 5), (5, 5)))        # (12, 6, 15, 15)
    shp = (2, 2, 3, 3, 2, 2, 6, 12)                            # a,b,u,v,r,s,ci,co
    a = np.arange(2).reshape(2, 1, 1, 1, 1, 1, 1, 1)
    b_ = np.arange(2).reshape(1, 2, 1, 1, 1, 1, 1, 1)
    u = np.arange(3).reshape(1, 1, 3, 1, 1, 1, 1, 1)
    v = np.arange(3).reshape(1, 1, 1, 3, 1, 1, 1, 1)
    r = np.arange(2).reshape(1, 1, 1, 1, 2, 1, 1, 1)
    s = np.arange(2).reshape(1, 1, 1, 1, 1, 2, 1, 1)
    ci = np.arange(6).reshape(1, 1, 1, 1, 1, 1, 6, 1)
    co = np.arange(12).reshape(1, 1, 1, 1, 1, 1, 1, 12)
    ki = 5 + 2 * u + r - a
    kj = 5 + 2 * v + s - b_
    w2e = w2p[np.broadcast_to(co, shp), np.broadcast_to(ci, shp),
              np.broadcast_to(ki, shp), np.broadcast_to(kj, shp)].reshape(36, 24, 12)

    # fc1: PyTorch (C,H,W) flatten folded into 16 per-position (12,120) blocks.
    wf1e = wf1.reshape(120, 12, 4, 4).transpose(2, 3, 1, 0).reshape(16, 12, 120)

    return (w1e, jnp.tile(b1, 4).reshape(1, 24),
            w2e, b2.reshape(1, 12),
            wf1e, bf1.reshape(1, 120),
            wf2.T, bf2.reshape(1, 60),
            wo.T, bo.reshape(1, 10))


# --------------------------------------------------------------------------
# Forward pass: one cheap input repack + a single fused pallas_call.
# --------------------------------------------------------------------------
def network_forward(x, prepped):
    """x: (B, 1, 28, 28) -> logits (B, 10).  `prepped` from prepare_params."""
    B = x.shape[0]
    # Phase-pack the input: (B,1,28,28) -> (B*49, 16); row = b*49 + m*7 + n,
    # column = (row%4)*4 + (col%4).  Same byte count as the input, no expansion.
    xph = (x[:, 0].astype(jnp.float32)
           .reshape(B, 7, 4, 7, 4)
           .transpose(0, 1, 3, 2, 4)
           .reshape(B * 49, 16))

    operands = (xph,) + tuple(prepped)
    out = pl.pallas_call(
        functools.partial(_lenet_fused_kernel, batch=B),
        out_shape=jax.ShapeDtypeStruct((B, 10), jnp.float32),
        grid=(1,),
        in_specs=[_full_block(op.shape) for op in operands],
        out_specs=_full_block((B, 10)),
        compiler_params=pltpu.CompilerParams(
            dimension_semantics=("arbitrary",)),
    )(*operands)
    return out


# --------------------------------------------------------------------------
# Reference + init (pure JAX / XLA, same semantics as the PyTorch module).
# --------------------------------------------------------------------------
def init_params(key):
    def uni(k, shape, fan_in):
        bound = 1.0 / (fan_in ** 0.5)
        return jax.random.uniform(k, shape, jnp.float32, -bound, bound)
    ks = jax.random.split(key, 10)
    w1 = uni(ks[0], (6, 1, 5, 5), 25);    b1 = uni(ks[1], (6,), 25)
    w2 = uni(ks[2], (12, 6, 5, 5), 150);  b2 = uni(ks[3], (12,), 150)
    wf1 = uni(ks[4], (120, 192), 192);    bf1 = uni(ks[5], (120,), 192)
    wf2 = uni(ks[6], (60, 120), 120);     bf2 = uni(ks[7], (60,), 120)
    wo = uni(ks[8], (10, 60), 60);        bo = uni(ks[9], (10,), 60)
    return (w1, b1, w2, b2, wf1, bf1, wf2, bf2, wo, bo)


def network_reference(x, params):
    w1, b1, w2, b2, wf1, bf1, wf2, bf2, wo, bo = params

    def conv_relu_pool(y, w, b):
        dn = lax.conv_dimension_numbers(y.shape, w.shape,
                                        ('NCHW', 'OIHW', 'NCHW'))
        y = lax.conv_general_dilated(y, w, (1, 1), 'VALID',
                                     dimension_numbers=dn)
        y = jax.nn.relu(y + b[None, :, None, None])
        return lax.reduce_window(y, -jnp.inf, lax.max,
                                 (1, 1, 2, 2), (1, 1, 2, 2), 'VALID')

    y = conv_relu_pool(x, w1, b1)
    y = conv_relu_pool(y, w2, b2)
    f = y.reshape(y.shape[0], -1)
    f = jax.nn.relu(f @ wf1.T + bf1)
    f = jax.nn.relu(f @ wf2.T + bf2)
    return f @ wo.T + bo


if __name__ == "__main__":
    key = jax.random.PRNGKey(0)
    k_x, k_p = jax.random.split(key)
    # Input implied by the module (fc1 expects 12*4*4 => 28x28, single channel).
    x = jax.random.normal(k_x, (2, 1, 28, 28), dtype=jnp.float32)
    params = init_params(k_p)

    prepped = prepare_params(params)          # one-time weight repacking
    fwd = jax.jit(network_forward)

    out = jax.block_until_ready(fwd(x, prepped))
    ref = jax.block_until_ready(network_reference(x, params))

    assert out.shape == (2, 10), out.shape
    assert bool(jnp.all(jnp.isfinite(out)))
    # Loose tolerance: MXU f32 matmul precision differs slightly from XLA conv.
    assert bool(jnp.allclose(out, ref, rtol=5e-2, atol=5e-2)), (out, ref)

    print("KERNEL_OK")
</pallas_src>

<mosaic_0001>
module attributes {stable_mosaic.version = 11 : i64} {
  func.func @_lenet_fused_kernel(%arg0: i32, %arg1: memref<98x16xf32, #tpu.memory_space<vmem>>, %arg2: memref<16x16x24xf32, #tpu.memory_space<vmem>>, %arg3: memref<1x24xf32, #tpu.memory_space<vmem>>, %arg4: memref<36x24x12xf32, #tpu.memory_space<vmem>>, %arg5: memref<1x12xf32, #tpu.memory_space<vmem>>, %arg6: memref<16x12x120xf32, #tpu.memory_space<vmem>>, %arg7: memref<1x120xf32, #tpu.memory_space<vmem>>, %arg8: memref<120x60xf32, #tpu.memory_space<vmem>>, %arg9: memref<1x60xf32, #tpu.memory_space<vmem>>, %arg10: memref<60x10xf32, #tpu.memory_space<vmem>>, %arg11: memref<1x10xf32, #tpu.memory_space<vmem>>, %arg12: memref<2x10xf32, #tpu.memory_space<vmem>>) attributes {dimension_semantics = [#tpu.dimension_semantics<arbitrary>], iteration_bounds = array<i64: 1>, scalar_prefetch = 0 : i64, scratch_operands = 0 : i64, tpu.core_type = #tpu.core_type<tc>, window_params = [{pipeline_mode = #tpu.pipeline_mode<synchronous>, transform_indices = @transform_0, window_bounds = array<i64: 98, 16>}, {pipeline_mode = #tpu.pipeline_mode<synchronous>, transform_indices = @transform_1, window_bounds = array<i64: 16, 16, 24>}, {pipeline_mode = #tpu.pipeline_mode<synchronous>, transform_indices = @transform_2, window_bounds = array<i64: 1, 24>}, {pipeline_mode = #tpu.pipeline_mode<synchronous>, transform_indices = @transform_3, window_bounds = array<i64: 36, 24, 12>}, {pipeline_mode = #tpu.pipeline_mode<synchronous>, transform_indices = @transform_4, window_bounds = array<i64: 1, 12>}, {pipeline_mode = #tpu.pipeline_mode<synchronous>, transform_indices = @transform_5, window_bounds = array<i64: 16, 12, 120>}, {pipeline_mode = #tpu.pipeline_mode<synchronous>, transform_indices = @transform_6, window_bounds = array<i64: 1, 120>}, {pipeline_mode = #tpu.pipeline_mode<synchronous>, transform_indices = @transform_7, window_bounds = array<i64: 120, 60>}, {pipeline_mode = #tpu.pipeline_mode<synchronous>, transform_indices = @transform_8, window_bounds = array<i64: 1, 60>}, {pipeline_mode = #tpu.pipeline_mode<synchronous>, transform_indices = @transform_9, window_bounds = array<i64: 60, 10>}, {pipeline_mode = #tpu.pipeline_mode<synchronous>, transform_indices = @transform_10, window_bounds = array<i64: 1, 10>}, {pipeline_mode = #tpu.pipeline_mode<synchronous>, transform_indices = @transform_11, window_bounds = array<i64: 2, 10>}]} {
    %c0 = arith.constant 0 : index
    %c0_0 = arith.constant 0 : index
    %0 = vector.load %arg1[%c0, %c0_0] : memref<98x16xf32, #tpu.memory_space<vmem>>, vector<98x16xf32>
    %c0_1 = arith.constant 0 : index
    %c0_2 = arith.constant 0 : index
    %c0_3 = arith.constant 0 : index
    %1 = vector.load %arg2[%c0_1, %c0_2, %c0_3] : memref<16x16x24xf32, #tpu.memory_space<vmem>>, vector<16x16x24xf32>
    %c0_4 = arith.constant 0 : index
    %c0_5 = arith.constant 0 : index
    %c0_6 = arith.constant 0 : index
    %2 = vector.load %arg4[%c0_4, %c0_5, %c0_6] : memref<36x24x12xf32, #tpu.memory_space<vmem>>, vector<36x24x12xf32>
    %c0_7 = arith.constant 0 : index
    %c0_8 = arith.constant 0 : index
    %c0_9 = arith.constant 0 : index
    %3 = vector.load %arg6[%c0_7, %c0_8, %c0_9] : memref<16x12x120xf32, #tpu.memory_space<vmem>>, vector<16x12x120xf32>
    %4 = vector.extract_strided_slice %0 {offsets = [0, 0], sizes = [90, 16], strides = [1, 1]} : vector<98x16xf32> to vector<90x16xf32>
    %5 = vector.extract_strided_slice %0 {offsets = [1, 0], sizes = [90, 16], strides = [1, 1]} : vector<98x16xf32> to vector<90x16xf32>
    %6 = vector.extract_strided_slice %0 {offsets = [7, 0], sizes = [90, 16], strides = [1, 1]} : vector<98x16xf32> to vector<90x16xf32>
    %7 = vector.extract_strided_slice %0 {offsets = [8, 0], sizes = [90, 16], strides = [1, 1]} : vector<98x16xf32> to vector<90x16xf32>
    %8 = vector.extract_strided_slice %1 {offsets = [0, 0, 0], sizes = [1, 16, 24], strides = [1, 1, 1]} : vector<16x16x24xf32> to vector<1x16x24xf32>
    %9 = vector.shape_cast %8 : vector<1x16x24xf32> to vector<16x24xf32>
    %cst = arith.constant dense<0.000000e+00> : vector<90x24xf32>
    %10 = tpu.matmul %4, %9, %cst {dimension_numbers = #tpu.dot_dimension_numbers<[1], [0], [0], [1], [0, 0, 1, 1], [], []>} : vector<90x16xf32>, vector<16x24xf32>, vector<90x24xf32> -> vector<90x24xf32>
    %11 = vector.extract_strided_slice %1 {offsets = [1, 0, 0], sizes = [1, 16, 24], strides = [1, 1, 1]} : vector<16x16x24xf32> to vector<1x16x24xf32>
    %12 = vector.shape_cast %11 : vector<1x16x24xf32> to vector<16x24xf32>
    %cst_10 = arith.constant dense<0.000000e+00> : vector<90x24xf32>
    %13 = tpu.matmul %5, %12, %cst_10 {dimension_numbers = #tpu.dot_dimension_numbers<[1], [0], [0], [1], [0, 0, 1, 1], [], []>} : vector<90x16xf32>, vector<16x24xf32>, vector<90x24xf32> -> vector<90x24xf32>
    %14 = arith.addf %10, %13 : vector<90x24xf32>
    %15 = vector.extract_strided_slice %1 {offsets = [2, 0, 0], sizes = [1, 16, 24], strides = [1, 1, 1]} : vector<16x16x24xf32> to vector<1x16x24xf32>
    %16 = vector.shape_cast %15 : vector<1x16x24xf32> to vector<16x24xf32>
    %cst_11 = arith.constant dense<0.000000e+00> : vector<90x24xf32>
    %17 = tpu.matmul %6, %16, %cst_11 {dimension_numbers = #tpu.dot_dimension_numbers<[1], [0], [0], [1], [0, 0, 1, 1], [], []>} : vector<90x16xf32>, vector<16x24xf32>, vector<90x24xf32> -> vector<90x24xf32>
    %18 = arith.addf %14, %17 : vector<90x24xf32>
    %19 = vector.extract_strided_slice %1 {offsets = [3, 0, 0], sizes = [1, 16, 24], strides = [1, 1, 1]} : vector<16x16x24xf32> to vector<1x16x24xf32>
    %20 = vector.shape_cast %19 : vector<1x16x24xf32> to vector<16x24xf32>
    %cst_12 = arith.constant dense<0.000000e+00> : vector<90x24xf32>
    %21 = tpu.matmul %7, %20, %cst_12 {dimension_numbers = #tpu.dot_dimension_numbers<[1], [0], [0], [1], [0, 0, 1, 1], [], []>} : vector<90x16xf32>, vector<16x24xf32>, vector<90x24xf32> -> vector<90x24xf32>
    %22 = arith.addf %18, %21 : vector<90x24xf32>
    %23 = vector.extract_strided_slice %1 {offsets = [4, 0, 0], sizes = [1, 16, 24], strides = [1, 1, 1]} : vector<16x16x24xf32> to vector<1x16x24xf32>
    %24 = vector.shape_cast %23 : vector<1x16x24xf32> to vector<16x24xf32>
    %cst_13 = arith.constant dense<0.000000e+00> : vector<90x24xf32>
    %25 = tpu.matmul %4, %24, %cst_13 {dimension_numbers = #tpu.dot_dimension_numbers<[1], [0], [0], [1], [0, 0, 1, 1], [], []>} : vector<90x16xf32>, vector<16x24xf32>, vector<90x24xf32> -> vector<90x24xf32>
    %26 = vector.extract_strided_slice %1 {offsets = [5, 0, 0], sizes = [1, 16, 24], strides = [1, 1, 1]} : vector<16x16x24xf32> to vector<1x16x24xf32>
    %27 = vector.shape_cast %26 : vector<1x16x24xf32> to vector<16x24xf32>
    %cst_14 = arith.constant dense<0.000000e+00> : vector<90x24xf32>
    %28 = tpu.matmul %5, %27, %cst_14 {dimension_numbers = #tpu.dot_dimension_numbers<[1], [0], [0], [1], [0, 0, 1, 1], [], []>} : vector<90x16xf32>, vector<16x24xf32>, vector<90x24xf32> -> vector<90x24xf32>
    %29 = arith.addf %25, %28 : vector<90x24xf32>
    %30 = vector.extract_strided_slice %1 {offsets = [6, 0, 0], sizes = [1, 16, 24], strides = [1, 1, 1]} : vector<16x16x24xf32> to vector<1x16x24xf32>
    %31 = vector.shape_cast %30 : vector<1x16x24xf32> to vector<16x24xf32>
    %cst_15 = arith.constant dense<0.000000e+00> : vector<90x24xf32>
    %32 = tpu.matmul %6, %31, %cst_15 {dimension_numbers = #tpu.dot_dimension_numbers<[1], [0], [0], [1], [0, 0, 1, 1], [], []>} : vector<90x16xf32>, vector<16x24xf32>, vector<90x24xf32> -> vector<90x24xf32>
    %33 = arith.addf %29, %32 : vector<90x24xf32>
    %34 = vector.extract_strided_slice %1 {offsets = [7, 0, 0], sizes = [1, 16, 24], strides = [1, 1, 1]} : vector<16x16x24xf32> to vector<1x16x24xf32>
    %35 = vector.shape_cast %34 : vector<1x16x24xf32> to vector<16x24xf32>
    %cst_16 = arith.constant dense<0.000000e+00> : vector<90x24xf32>
    %36 = tpu.matmul %7, %35, %cst_16 {dimension_numbers = #tpu.dot_dimension_numbers<[1], [0], [0], [1], [0, 0, 1, 1], [], []>} : vector<90x16xf32>, vector<16x24xf32>, vector<90x24xf32> -> vector<90x24xf32>
    %37 = arith.addf %33, %36 : vector<90x24xf32>
    %38 = arith.maximumf %22, %37 : vector<90x24xf32>
    %39 = vector.extract_strided_slice %1 {offsets = [8, 0, 0], sizes = [1, 16, 24], strides = [1, 1, 1]} : vector<16x16x24xf32> to vector<1x16x24xf32>
    %40 = vector.shape_cast %39 : vector<1x16x24xf32> to vector<16x24xf32>
    %cst_17 = arith.constant dense<0.000000e+00> : vector<90x24xf32>
    %41 = tpu.matmul %4, %40, %cst_17 {dimension_numbers = #tpu.dot_dimension_numbers<[1], [0], [0], [1], [0, 0, 1, 1], [], []>} : vector<90x16xf32>, vector<16x24xf32>, vector<90x24xf32> -> vector<90x24xf32>
    %42 = vector.extract_strided_slice %1 {offsets = [9, 0, 0], sizes = [1, 16, 24], strides = [1, 1, 1]} : vector<16x16x24xf32> to vector<1x16x24xf32>
    %43 = vector.shape_cast %42 : vector<1x16x24xf32> to vector<16x24xf32>
    %cst_18 = arith.constant dense<0.000000e+00> : vector<90x24xf32>
    %44 = tpu.matmul %5, %43, %cst_18 {dimension_numbers = #tpu.dot_dimension_numbers<[1], [0], [0], [1], [0, 0, 1, 1], [], []>} : vector<90x16xf32>, vector<16x24xf32>, vector<90x24xf32> -> vector<90x24xf32>
    %45 = arith.addf %41, %44 : vector<90x24xf32>
    %46 = vector.extract_strided_slice %1 {offsets = [10, 0, 0], sizes = [1, 16, 24], strides = [1, 1, 1]} : vector<16x16x24xf32> to vector<1x16x24xf32>
    %47 = vector.shape_cast %46 : vector<1x16x24xf32> to vector<16x24xf32>
    %cst_19 = arith.constant dense<0.000000e+00> : vector<90x24xf32>
    %48 = tpu.matmul %6, %47, %cst_19 {dimension_numbers = #tpu.dot_dimension_numbers<[1], [0], [0], [1], [0, 0, 1, 1], [], []>} : vector<90x16xf32>, vector<16x24xf32>, vector<90x24xf32> -> vector<90x24xf32>
    %49 = arith.addf %45, %48 : vector<90x24xf32>
    %50 = vector.extract_strided_slice %1 {offsets = [11, 0, 0], sizes = [1, 16, 24], strides = [1, 1, 1]} : vector<16x16x24xf32> to vector<1x16x24xf32>
    %51 = vector.shape_cast %50 : vector<1x16x24xf32> to vector<16x24xf32>
    %cst_20 = arith.constant dense<0.000000e+00> : vector<90x24xf32>
    %52 = tpu.matmul %7, %51, %cst_20 {dimension_numbers = #tpu.dot_dimension_numbers<[1], [0], [0], [1], [0, 0, 1, 1], [], []>} : vector<90x16xf32>, vector<16x24xf32>, vector<90x24xf32> -> vector<90x24xf32>
    %53 = arith.addf %49, %52 : vector<90x24xf32>
    %54 = arith.maximumf %38, %53 : vector<90x24xf32>
    %55 = vector.extract_strided_slice %1 {offsets = [12, 0, 0], sizes = [1, 16, 24], strides = [1, 1, 1]} : vector<16x16x24xf32> to vector<1x16x24xf32>
    %56 = vector.shape_cast %55 : vector<1x16x24xf32> to vector<16x24xf32>
    %cst_21 = arith.constant dense<0.000000e+00> : vector<90x24xf32>
    %57 = tpu.matmul %4, %56, %cst_21 {dimension_numbers = #tpu.dot_dimension_numbers<[1], [0], [0], [1], [0, 0, 1, 1], [], []>} : vector<90x16xf32>, vector<16x24xf32>, vector<90x24xf32> -> vector<90x24xf32>
    %58 = vector.extract_strided_slice %1 {offsets = [13, 0, 0], sizes = [1, 16, 24], strides = [1, 1, 1]} : vector<16x16x24xf32> to vector<1x16x24xf32>
    %59 = vector.shape_cast %58 : vector<1x16x24xf32> to vector<16x24xf32>
    %cst_22 = arith.constant dense<0.000000e+00> : vector<90x24xf32>
    %60 = tpu.matmul %5, %59, %cst_22 {dimension_numbers = #tpu.dot_dimension_numbers<[1], [0], [0], [1], [0, 0, 1, 1], [], []>} : vector<90x16xf32>, vector<16x24xf32>, vector<90x24xf32> -> vector<90x24xf32>
    %61 = arith.addf %57, %60 : vector<90x24xf32>
    %62 = vector.extract_strided_slice %1 {offsets = [14, 0, 0], sizes = [1, 16, 24], strides = [1, 1, 1]} : vector<16x16x24xf32> to vector<1x16x24xf32>
    %63 = vector.shape_cast %62 : vector<1x16x24xf32> to vector<16x24xf32>
    %cst_23 = arith.constant dense<0.000000e+00> : vector<90x24xf32>
    %64 = tpu.matmul %6, %63, %cst_23 {dimension_numbers = #tpu.dot_dimension_numbers<[1], [0], [0], [1], [0, 0, 1, 1], [], []>} : vector<90x16xf32>, vector<16x24xf32>, vector<90x24xf32> -> vector<90x24xf32>
    %65 = arith.addf %61, %64 : vector<90x24xf32>
    %66 = vector.extract_strided_slice %1 {offsets = [15, 0, 0], sizes = [1, 16, 24], strides = [1, 1, 1]} : vector<16x16x24xf32> to vector<1x16x24xf32>
    %67 = vector.shape_cast %66 : vector<1x16x24xf32> to vector<16x24xf32>
    %cst_24 = arith.constant dense<0.000000e+00> : vector<90x24xf32>
    %68 = tpu.matmul %7, %67, %cst_24 {dimension_numbers = #tpu.dot_dimension_numbers<[1], [0], [0], [1], [0, 0, 1, 1], [], []>} : vector<90x16xf32>, vector<16x24xf32>, vector<90x24xf32> -> vector<90x24xf32>
    %69 = arith.addf %65, %68 : vector<90x24xf32>
    %70 = arith.maximumf %54, %69 : vector<90x24xf32>
    %c0_25 = arith.constant 0 : index
    %c0_26 = arith.constant 0 : index
    %71 = vector.load %arg3[%c0_25, %c0_26] : memref<1x24xf32, #tpu.memory_space<vmem>>, vector<1x24xf32>
    %72 = vector.broadcast %71 : vector<1x24xf32> to vector<90x24xf32>
    %73 = arith.addf %70, %72 : vector<90x24xf32>
    %cst_27 = arith.constant 0.000000e+00 : f32
    %74 = vector.broadcast %cst_27 : f32 to vector<90x24xf32>
    %75 = arith.maximumf %73, %74 : vector<90x24xf32>
    %76 = vector.extract_strided_slice %75 {offsets = [0, 0], sizes = [74, 24], strides = [1, 1]} : vector<90x24xf32> to vector<74x24xf32>
    %77 = vector.extract_strided_slice %75 {offsets = [1, 0], sizes = [74, 24], strides = [1, 1]} : vector<90x24xf32> to vector<74x24xf32>
    %78 = vector.extract_strided_slice %75 {offsets = [2, 0], sizes = [74, 24], strides = [1, 1]} : vector<90x24xf32> to vector<74x24xf32>
    %79 = vector.extract_strided_slice %75 {offsets = [7, 0], sizes = [74, 24], strides = [1, 1]} : vector<90x24xf32> to vector<74x24xf32>
    %80 = vector.extract_strided_slice %75 {offsets = [8, 0], sizes = [74, 24], strides = [1, 1]} : vector<90x24xf32> to vector<74x24xf32>
    %81 = vector.extract_strided_slice %75 {offsets = [9, 0], sizes = [74, 24], strides = [1, 1]} : vector<90x24xf32> to vector<74x24xf32>
    %82 = vector.extract_strided_slice %75 {offsets = [14, 0], sizes = [74, 24], strides = [1, 1]} : vector<90x24xf32> to vector<74x24xf32>
    %83 = vector.extract_strided_slice %75 {offsets = [15, 0], sizes = [74, 24], strides = [1, 1]} : vector<90x24xf32> to vector<74x24xf32>
    %84 = vector.extract_strided_slice %75 {offsets = [16, 0], sizes = [74, 24], strides = [1, 1]} : vector<90x24xf32> to vector<74x24xf32>
    %85 = vector.extract_strided_slice %2 {offsets = [0, 0, 0], sizes = [1, 24, 12], strides = [1, 1, 1]} : vector<36x24x12xf32> to vector<1x24x12xf32>
    %86 = vector.shape_cast %85 : vector<1x24x12xf32> to vector<24x12xf32>
    %cst_28 = arith.constant dense<0.000000e+00> : vector<74x12xf32>
    %87 = tpu.matmul %76, %86, %cst_28 {dimension_numbers = #tpu.dot_dimension_numbers<[1], [0], [0], [1], [0, 0, 1, 1], [], []>} : vector<74x24xf32>, vector<24x12xf32>, vector<74x12xf32> -> vector<74x12xf32>
    %88 = vector.extract_strided_slice %2 {offsets = [1, 0, 0], sizes = [1, 24, 12], strides = [1, 1, 1]} : vector<36x24x12xf32> to vector<1x24x12xf32>
    %89 = vector.shape_cast %88 : vector<1x24x12xf32> to vector<24x12xf32>
    %cst_29 = arith.constant dense<0.000000e+00> : vector<74x12xf32>
    %90 = tpu.matmul %77, %89, %cst_29 {dimension_numbers = #tpu.dot_dimension_numbers<[1], [0], [0], [1], [0, 0, 1, 1], [], []>} : vector<74x24xf32>, vector<24x12xf32>, vector<74x12xf32> -> vector<74x12xf32>
    %91 = arith.addf %87, %90 : vector<74x12xf32>
    %92 = vector.extract_strided_slice %2 {offsets = [2, 0, 0], sizes = [1, 24, 12], strides = [1, 1, 1]} : vector<36x24x12xf32> to vector<1x24x12xf32>
    %93 = vector.shape_cast %92 : vector<1x24x12xf32> to vector<24x12xf32>
    %cst_30 = arith.constant dense<0.000000e+00> : vector<74x12xf32>
    %94 = tpu.matmul %78, %93, %cst_30 {dimension_numbers = #tpu.dot_dimension_numbers<[1], [0], [0], [1], [0, 0, 1, 1], [], []>} : vector<74x24xf32>, vector<24x12xf32>, vector<74x12xf32> -> vector<74x12xf32>
    %95 = arith.addf %91, %94 : vector<74x12xf32>
    %96 = vector.extract_strided_slice %2 {offsets = [3, 0, 0], sizes = [1, 24, 12], strides = [1, 1, 1]} : vector<36x24x12xf32> to vector<1x24x12xf32>
    %97 = vector.shape_cast %96 : vector<1x24x12xf32> to vector<24x12xf32>
    %cst_31 = arith.constant dense<0.000000e+00> : vector<74x12xf32>
    %98 = tpu.matmul %79, %97, %cst_31 {dimension_numbers = #tpu.dot_dimension_numbers<[1], [0], [0], [1], [0, 0, 1, 1], [], []>} : vector<74x24xf32>, vector<24x12xf32>, vector<74x12xf32> -> vector<74x12xf32>
    %99 = arith.addf %95, %98 : vector<74x12xf32>
    %100 = vector.extract_strided_slice %2 {offsets = [4, 0, 0], sizes = [1, 24, 12], strides = [1, 1, 1]} : vector<36x24x12xf32> to vector<1x24x12xf32>
    %101 = vector.shape_cast %100 : vector<1x24x12xf32> to vector<24x12xf32>
    %cst_32 = arith.constant dense<0.000000e+00> : vector<74x12xf32>
    %102 = tpu.matmul %80, %101, %cst_32 {dimension_numbers = #tpu.dot_dimension_numbers<[1], [0], [0], [1], [0, 0, 1, 1], [], []>} : vector<74x24xf32>, vector<24x12xf32>, vector<74x12xf32> -> vector<74x12xf32>
    %103 = arith.addf %99, %102 : vector<74x12xf32>
    %104 = vector.extract_strided_slice %2 {offsets = [5, 0, 0], sizes = [1, 24, 12], strides = [1, 1, 1]} : vector<36x24x12xf32> to vector<1x24x12xf32>
    %105 = vector.shape_cast %104 : vector<1x24x12xf32> to vector<24x12xf32>
    %cst_33 = arith.constant dense<0.000000e+00> : vector<74x12xf32>
    %106 = tpu.matmul %81, %105, %cst_33 {dimension_numbers = #tpu.dot_dimension_numbers<[1], [0], [0], [1], [0, 0, 1, 1], [], []>} : vector<74x24xf32>, vector<24x12xf32>, vector<74x12xf32> -> vector<74x12xf32>
    %107 = arith.addf %103, %106 : vector<74x12xf32>
    %108 = vector.extract_strided_slice %2 {offsets = [6, 0, 0], sizes = [1, 24, 12], strides = [1, 1, 1]} : vector<36x24x12xf32> to vector<1x24x12xf32>
    %109 = vector.shape_cast %108 : vector<1x24x12xf32> to vector<24x12xf32>
    %cst_34 = arith.constant dense<0.000000e+00> : vector<74x12xf32>
    %110 = tpu.matmul %82, %109, %cst_34 {dimension_numbers = #tpu.dot_dimension_numbers<[1], [0], [0], [1], [0, 0, 1, 1], [], []>} : vector<74x24xf32>, vector<24x12xf32>, vector<74x12xf32> -> vector<74x12xf32>
    %111 = arith.addf %107, %110 : vector<74x12xf32>
    %112 = vector.extract_strided_slice %2 {offsets = [7, 0, 0], sizes = [1, 24, 12], strides = [1, 1, 1]} : vector<36x24x12xf32> to vector<1x24x12xf32>
    %113 = vector.shape_cast %112 : vector<1x24x12xf32> to vector<24x12xf32>
    %cst_35 = arith.constant dense<0.000000e+00> : vector<74x12xf32>
    %114 = tpu.matmul %83, %113, %cst_35 {dimension_numbers = #tpu.dot_dimension_numbers<[1], [0], [0], [1], [0, 0, 1, 1], [], []>} : vector<74x24xf32>, vector<24x12xf32>, vector<74x12xf32> -> vector<74x12xf32>
    %115 = arith.addf %111, %114 : vector<74x12xf32>
    %116 = vector.extract_strided_slice %2 {offsets = [8, 0, 0], sizes = [1, 24, 12], strides = [1, 1, 1]} : vector<36x24x12xf32> to vector<1x24x12xf32>
    %117 = vector.shape_cast %116 : vector<1x24x12xf32> to vector<24x12xf32>
    %cst_36 = arith.constant dense<0.000000e+00> : vector<74x12xf32>
    %118 = tpu.matmul %84, %117, %cst_36 {dimension_numbers = #tpu.dot_dimension_numbers<[1], [0], [0], [1], [0, 0, 1, 1], [], []>} : vector<74x24xf32>, vector<24x12xf32>, vector<74x12xf32> -> vector<74x12xf32>
    %119 = arith.addf %115, %118 : vector<74x12xf32>
    %120 = vector.extract_strided_slice %2 {offsets = [9, 0, 0], sizes = [1, 24, 12], strides = [1, 1, 1]} : vector<36x24x12xf32> to vector<1x24x12xf32>
    %121 = vector.shape_cast %120 : vector<1x24x12xf32> to vector<24x12xf32>
    %cst_37 = arith.constant dense<0.000000e+00> : vector<74x12xf32>
    %122 = tpu.matmul %76, %121, %cst_37 {dimension_numbers = #tpu.dot_dimension_numbers<[1], [0], [0], [1], [0, 0, 1, 1], [], []>} : vector<74x24xf32>, vector<24x12xf32>, vector<74x12xf32> -> vector<74x12xf32>
    %123 = vector.extract_strided_slice %2 {offsets = [10, 0, 0], sizes = [1, 24, 12], strides = [1, 1, 1]} : vector<36x24x12xf32> to vector<1x24x12xf32>
    %124 = vector.shape_cast %123 : vector<1x24x12xf32> to vector<24x12xf32>
    %cst_38 = arith.constant dense<0.000000e+00> : vector<74x12xf32>
    %125 = tpu.matmul %77, %124, %cst_38 {dimension_numbers = #tpu.dot_dimension_numbers<[1], [0], [0], [1], [0, 0, 1, 1], [], []>} : vector<74x24xf32>, vector<24x12xf32>, vector<74x12xf32> -> vector<74x12xf32>
    %126 = arith.addf %122, %125 : vector<74x12xf32>
    %127 = vector.extract_strided_slice %2 {offsets = [11, 0, 0], sizes = [1, 24, 12], strides = [1, 1, 1]} : vector<36x24x12xf32> to vector<1x24x12xf32>
    %128 = vector.shape_cast %127 : vector<1x24x12xf32> to vector<24x12xf32>
    %cst_39 = arith.constant dense<0.000000e+00> : vector<74x12xf32>
    %129 = tpu.matmul %78, %128, %cst_39 {dimension_numbers = #tpu.dot_dimension_numbers<[1], [0], [0], [1], [0, 0, 1, 1], [], []>} : vector<74x24xf32>, vector<24x12xf32>, vector<74x12xf32> -> vector<74x12xf32>
    %130 = arith.addf %126, %129 : vector<74x12xf32>
    %131 = vector.extract_strided_slice %2 {offsets = [12, 0, 0], sizes = [1, 24, 12], strides = [1, 1, 1]} : vector<36x24x12xf32> to vector<1x24x12xf32>
    %132 = vector.shape_cast %131 : vector<1x24x12xf32> to vector<24x12xf32>
    %cst_40 = arith.constant dense<0.000000e+00> : vector<74x12xf32>
    %133 = tpu.matmul %79, %132, %cst_40 {dimension_numbers = #tpu.dot_dimension_numbers<[1], [0], [0], [1], [0, 0, 1, 1], [], []>} : vector<74x24xf32>, vector<24x12xf32>, vector<74x12xf32> -> vector<74x12xf32>
    %134 = arith.addf %130, %133 : vector<74x12xf32>
    %135 = vector.extract_strided_slice %2 {offsets = [13, 0, 0], sizes = [1, 24, 12], strides = [1, 1, 1]} : vector<36x24x12xf32> to vector<1x24x12xf32>
    %136 = vector.shape_cast %135 : vector<1x24x12xf32> to vector<24x12xf32>
    %cst_41 = arith.constant dense<0.000000e+00> : vector<74x12xf32>
    %137 = tpu.matmul %80, %136, %cst_41 {dimension_numbers = #tpu.dot_dimension_numbers<[1], [0], [0], [1], [0, 0, 1, 1], [], []>} : vector<74x24xf32>, vector<24x12xf32>, vector<74x12xf32> -> vector<74x12xf32>
    %138 = arith.addf %134, %137 : vector<74x12xf32>
    %139 = vector.extract_strided_slice %2 {offsets = [14, 0, 0], sizes = [1, 24, 12], strides = [1, 1, 1]} : vector<36x24x12xf32> to vector<1x24x12xf32>
    %140 = vector.shape_cast %139 : vector<1x24x12xf32> to vector<24x12xf32>
    %cst_42 = arith.constant dense<0.000000e+00> : vector<74x12xf32>
    %141 = tpu.matmul %81, %140, %cst_42 {dimension_numbers = #tpu.dot_dimension_numbers<[1], [0], [0], [1], [0, 0, 1, 1], [], []>} : vector<74x24xf32>, vector<24x12xf32>, vector<74x12xf32> -> vector<74x12xf32>
    %142 = arith.addf %138, %141 : vector<74x12xf32>
    %143 = vector.extract_strided_slice %2 {offsets = [15, 0, 0], sizes = [1, 24, 12], strides = [1, 1, 1]} : vector<36x24x12xf32> to vector<1x24x12xf32>
    %144 = vector.shape_cast %143 : vector<1x24x12xf32> to vector<24x12xf32>
    %cst_43 = arith.constant dense<0.000000e+00> : vector<74x12xf32>
    %145 = tpu.matmul %82, %144, %cst_43 {dimension_numbers = #tpu.dot_dimension_numbers<[1], [0], [0], [1], [0, 0, 1, 1], [], []>} : vector<74x24xf32>, vector<24x12xf32>, vector<74x12xf32> -> vector<74x12xf32>
    %146 = arith.addf %142, %145 : vector<74x12xf32>
    %147 = vector.extract_strided_slice %2 {offsets = [16, 0, 0], sizes = [1, 24, 12], strides = [1, 1, 1]} : vector<36x24x12xf32> to vector<1x24x12xf32>
    %148 = vector.shape_cast %147 : vector<1x24x12xf32> to vector<24x12xf32>
    %cst_44 = arith.constant dense<0.000000e+00> : vector<74x12xf32>
    %149 = tpu.matmul %83, %148, %cst_44 {dimension_numbers = #tpu.dot_dimension_numbers<[1], [0], [0], [1], [0, 0, 1, 1], [], []>} : vector<74x24xf32>, vector<24x12xf32>, vector<74x12xf32> -> vector<74x12xf32>
    %150 = arith.addf %146, %149 : vector<74x12xf32>
    %151 = vector.extract_strided_slice %2 {offsets = [17, 0, 0], sizes = [1, 24, 12], strides = [1, 1, 1]} : vector<36x24x12xf32> to vector<1x24x12xf32>
    %152 = vector.shape_cast %151 : vector<1x24x12xf32> to vector<24x12xf32>
    %cst_45 = arith.constant dense<0.000000e+00> : vector<74x12xf32>
    %153 = tpu.matmul %84, %152, %cst_45 {dimension_numbers = #tpu.dot_dimension_numbers<[1], [0], [0], [1], [0, 0, 1, 1], [], []>} : vector<74x24xf32>, vector<24x12xf32>, vector<74x12xf32> -> vector<74x12xf32>
    %154 = arith.addf %150, %153 : vector<74x12xf32>
    %155 = arith.maximumf %119, %154 : vector<74x12xf32>
    %156 = vector.extract_strided_slice %2 {offsets = [18, 0, 0], sizes = [1, 24, 12], strides = [1, 1, 1]} : vector<36x24x12xf32> to vector<1x24x12xf32>
    %157 = vector.shape_cast %156 : vector<1x24x12xf32> to vector<24x12xf32>
    %cst_46 = arith.constant dense<0.000000e+00> : vector<74x12xf32>
    %158 = tpu.matmul %76, %157, %cst_46 {dimension_numbers = #tpu.dot_dimension_numbers<[1], [0], [0], [1], [0, 0, 1, 1], [], []>} : vector<74x24xf32>, vector<24x12xf32>, vector<74x12xf32> -> vector<74x12xf32>
    %159 = vector.extract_strided_slice %2 {offsets = [19, 0, 0], sizes = [1, 24, 12], strides = [1, 1, 1]} : vector<36x24x12xf32> to vector<1x24x12xf32>
    %160 = vector.shape_cast %159 : vector<1x24x12xf32> to vector<24x12xf32>
    %cst_47 = arith.constant dense<0.000000e+00> : vector<74x12xf32>
    %161 = tpu.matmul %77, %160, %cst_47 {dimension_numbers = #tpu.dot_dimension_numbers<[1], [0], [0], [1], [0, 0, 1, 1], [], []>} : vector<74x24xf32>, vector<24x12xf32>, vector<74x12xf32> -> vector<74x12xf32>
    %162 = arith.addf %158, %161 : vector<74x12xf32>
    %163 = vector.extract_strided_slice %2 {offsets = [20, 0, 0], sizes = [1, 24, 12], strides = [1, 1, 1]} : vector<36x24x12xf32> to vector<1x24x12xf32>
    %164 = vector.shape_cast %163 : vector<1x24x12xf32> to vector<24x12xf32>
    %cst_48 = arith.constant dense<0.000000e+00> : vector<74x12xf32>
    %165 = tpu.matmul %78, %164, %cst_48 {dimension_numbers = #tpu.dot_dimension_numbers<[1], [0], [0], [1], [0, 0, 1, 1], [], []>} : vector<74x24xf32>, vector<24x12xf32>, vector<74x12xf32> -> vector<74x12xf32>
    %166 = arith.addf %162, %165 : vector<74x12xf32>
    %167 = vector.extract_strided_slice %2 {offsets = [21, 0, 0], sizes = [1, 24, 12], strides = [1, 1, 1]} : vector<36x24x12xf32> to vector<1x24x12xf32>
    %168 = vector.shape_cast %167 : vector<1x24x12xf32> to vector<24x12xf32>
    %cst_49 = arith.constant dense<0.000000e+00> : vector<74x12xf32>
    %169 = tpu.matmul %79, %168, %cst_49 {dimension_numbers = #tpu.dot_dimension_numbers<[1], [0], [0], [1], [0, 0, 1, 1], [], []>} : vector<74x24xf32>, vector<24x12xf32>, vector<74x12xf32> -> vector<74x12xf32>
    %170 = arith.addf %166, %169 : vector<74x12xf32>
    %171 = vector.extract_strided_slice %2 {offsets = [22, 0, 0], sizes = [1, 24, 12], strides = [1, 1, 1]} : vector<36x24x12xf32> to vector<1x24x12xf32>
    %172 = vector.shape_cast %171 : vector<1x24x12xf32> to vector<24x12xf32>
    %cst_50 = arith.constant dense<0.000000e+00> : vector<74x12xf32>
    %173 = tpu.matmul %80, %172, %cst_50 {dimension_numbers = #tpu.dot_dimension_numbers<[1], [0], [0], [1], [0, 0, 1, 1], [], []>} : vector<74x24xf32>, vector<24x12xf32>, vector<74x12xf32> -> vector<74x12xf32>
    %174 = arith.addf %170, %173 : vector<74x12xf32>
    %175 = vector.extract_strided_slice %2 {offsets = [23, 0, 0], sizes = [1, 24, 12], strides = [1, 1, 1]} : vector<36x24x12xf32> to vector<1x24x12xf32>
    %176 = vector.shape_cast %175 : vector<1x24x12xf32> to vector<24x12xf32>
    %cst_51 = arith.constant dense<0.000000e+00> : vector<74x12xf32>
    %177 = tpu.matmul %81, %176, %cst_51 {dimension_numbers = #tpu.dot_dimension_numbers<[1], [0], [0], [1], [0, 0, 1, 1], [], []>} : vector<74x24xf32>, vector<24x12xf32>, vector<74x12xf32> -> vector<74x12xf32>
    %178 = arith.addf %174, %177 : vector<74x12xf32>
    %179 = vector.extract_strided_slice %2 {offsets = [24, 0, 0], sizes = [1, 24, 12], strides = [1, 1, 1]} : vector<36x24x12xf32> to vector<1x24x12xf32>
    %180 = vector.shape_cast %179 : vector<1x24x12xf32> to vector<24x12xf32>
    %cst_52 = arith.constant dense<0.000000e+00> : vector<74x12xf32>
    %181 = tpu.matmul %82, %180, %cst_52 {dimension_numbers = #tpu.dot_dimension_numbers<[1], [0], [0], [1], [0, 0, 1, 1], [], []>} : vector<74x24xf32>, vector<24x12xf32>, vector<74x12xf32> -> vector<74x12xf32>
    %182 = arith.addf %178, %181 : vector<74x12xf32>
    %183 = vector.extract_strided_slice %2 {offsets = [25, 0, 0], sizes = [1, 24, 12], strides = [1, 1, 1]} : vector<36x24x12xf32> to vector<1x24x12xf32>
    %184 = vector.shape_cast %183 : vector<1x24x12xf32> to vector<24x12xf32>
    %cst_53 = arith.constant dense<0.000000e+00> : vector<74x12xf32>
    %185 = tpu.matmul %83, %184, %cst_53 {dimension_numbers = #tpu.dot_dimension_numbers<[1], [0], [0], [1], [0, 0, 1, 1], [], []>} : vector<74x24xf32>, vector<24x12xf32>, vector<74x12xf32> -> vector<74x12xf32>
    %186 = arith.addf %182, %185 : vector<74x12xf32>
    %187 = vector.extract_strided_slice %2 {offsets = [26, 0, 0], sizes = [1, 24, 12], strides = [1, 1, 1]} : vector<36x24x12xf32> to vector<1x24x12xf32>
    %188 = vector.shape_cast %187 : vector<1x24x12xf32> to vector<24x12xf32>
    %cst_54 = arith.constant dense<0.000000e+00> : vector<74x12xf32>
    %189 = tpu.matmul %84, %188, %cst_54 {dimension_numbers = #tpu.dot_dimension_numbers<[1], [0], [0], [1], [0, 0, 1, 1], [], []>} : vector<74x24xf32>, vector<24x12xf32>, vector<74x12xf32> -> vector<74x12xf32>
    %190 = arith.addf %186, %189 : vector<74x12xf32>
    %191 = arith.maximumf %155, %190 : vector<74x12xf32>
    %192 = vector.extract_strided_slice %2 {offsets = [27, 0, 0], sizes = [1, 24, 12], strides = [1, 1, 1]} : vector<36x24x12xf32> to vector<1x24x12xf32>
    %193 = vector.shape_cast %192 : vector<1x24x12xf32> to vector<24x12xf32>
    %cst_55 = arith.constant dense<0.000000e+00> : vector<74x12xf32>
    %194 = tpu.matmul %76, %193, %cst_55 {dimension_numbers = #tpu.dot_dimension_numbers<[1], [0], [0], [1], [0, 0, 1, 1], [], []>} : vector<74x24xf32>, vector<24x12xf32>, vector<74x12xf32> -> vector<74x12xf32>
    %195 = vector.extract_strided_slice %2 {offsets = [28, 0, 0], sizes = [1, 24, 12], strides = [1, 1, 1]} : vector<36x24x12xf32> to vector<1x24x12xf32>
    %196 = vector.shape_cast %195 : vector<1x24x12xf32> to vector<24x12xf32>
    %cst_56 = arith.constant dense<0.000000e+00> : vector<74x12xf32>
    %197 = tpu.matmul %77, %196, %cst_56 {dimension_numbers = #tpu.dot_dimension_numbers<[1], [0], [0], [1], [0, 0, 1, 1], [], []>} : vector<74x24xf32>, vector<24x12xf32>, vector<74x12xf32> -> vector<74x12xf32>
    %198 = arith.addf %194, %197 : vector<74x12xf32>
    %199 = vector.extract_strided_slice %2 {offsets = [29, 0, 0], sizes = [1, 24, 12], strides = [1, 1, 1]} : vector<36x24x12xf32> to vector<1x24x12xf32>
    %200 = vector.shape_cast %199 : vector<1x24x12xf32> to vector<24x12xf32>
    %cst_57 = arith.constant dense<0.000000e+00> : vector<74x12xf32>
    %201 = tpu.matmul %78, %200, %cst_57 {dimension_numbers = #tpu.dot_dimension_numbers<[1], [0], [0], [1], [0, 0, 1, 1], [], []>} : vector<74x24xf32>, vector<24x12xf32>, vector<74x12xf32> -> vector<74x12xf32>
    %202 = arith.addf %198, %201 : vector<74x12xf32>
    %203 = vector.extract_strided_slice %2 {offsets = [30, 0, 0], sizes = [1, 24, 12], strides = [1, 1, 1]} : vector<36x24x12xf32> to vector<1x24x12xf32>
    %204 = vector.shape_cast %203 : vector<1x24x12xf32> to vector<24x12xf32>
    %cst_58 = arith.constant dense<0.000000e+00> : vector<74x12xf32>
    %205 = tpu.matmul %79, %204, %cst_58 {dimension_numbers = #tpu.dot_dimension_numbers<[1], [0], [0], [1], [0, 0, 1, 1], [], []>} : vector<74x24xf32>, vector<24x12xf32>, vector<74x12xf32> -> vector<74x12xf32>
    %206 = arith.addf %202, %205 : vector<74x12xf32>
    %207 = vector.extract_strided_slice %2 {offsets = [31, 0, 0], sizes = [1, 24, 12], strides = [1, 1, 1]} : vector<36x24x12xf32> to vector<1x24x12xf32>
    %208 = vector.shape_cast %207 : vector<1x24x12xf32> to vector<24x12xf32>
    %cst_59 = arith.constant dense<0.000000e+00> : vector<74x12xf32>
    %209 = tpu.matmul %80, %208, %cst_59 {dimension_numbers = #tpu.dot_dimension_numbers<[1], [0], [0], [1], [0, 0, 1, 1], [], []>} : vector<74x24xf32>, vector<24x12xf32>, vector<74x12xf32> -> vector<74x12xf32>
    %210 = arith.addf %206, %209 : vector<74x12xf32>
    %211 = vector.extract_strided_slice %2 {offsets = [32, 0, 0], sizes = [1, 24, 12], strides = [1, 1, 1]} : vector<36x24x12xf32> to vector<1x24x12xf32>
    %212 = vector.shape_cast %211 : vector<1x24x12xf32> to vector<24x12xf32>
    %cst_60 = arith.constant dense<0.000000e+00> : vector<74x12xf32>
    %213 = tpu.matmul %81, %212, %cst_60 {dimension_numbers = #tpu.dot_dimension_numbers<[1], [0], [0], [1], [0, 0, 1, 1], [], []>} : vector<74x24xf32>, vector<24x12xf32>, vector<74x12xf32> -> vector<74x12xf32>
    %214 = arith.addf %210, %213 : vector<74x12xf32>
    %215 = vector.extract_strided_slice %2 {offsets = [33, 0, 0], sizes = [1, 24, 12], strides = [1, 1, 1]} : vector<36x24x12xf32> to vector<1x24x12xf32>
    %216 = vector.shape_cast %215 : vector<1x24x12xf32> to vector<24x12xf32>
    %cst_61 = arith.constant dense<0.000000e+00> : vector<74x12xf32>
    %217 = tpu.matmul %82, %216, %cst_61 {dimension_numbers = #tpu.dot_dimension_numbers<[1], [0], [0], [1], [0, 0, 1, 1], [], []>} : vector<74x24xf32>, vector<24x12xf32>, vector<74x12xf32> -> vector<74x12xf32>
    %218 = arith.addf %214, %217 : vector<74x12xf32>
    %219 = vector.extract_strided_slice %2 {offsets = [34, 0, 0], sizes = [1, 24, 12], strides = [1, 1, 1]} : vector<36x24x12xf32> to vector<1x24x12xf32>
    %220 = vector.shape_cast %219 : vector<1x24x12xf32> to vector<24x12xf32>
    %cst_62 = arith.constant dense<0.000000e+00> : vector<74x12xf32>
    %221 = tpu.matmul %83, %220, %cst_62 {dimension_numbers = #tpu.dot_dimension_numbers<[1], [0], [0], [1], [0, 0, 1, 1], [], []>} : vector<74x24xf32>, vector<24x12xf32>, vector<74x12xf32> -> vector<74x12xf32>
    %222 = arith.addf %218, %221 : vector<74x12xf32>
    %223 = vector.extract_strided_slice %2 {offsets = [35, 0, 0], sizes = [1, 24, 12], strides = [1, 1, 1]} : vector<36x24x12xf32> to vector<1x24x12xf32>
    %224 = vector.shape_cast %223 : vector<1x24x12xf32> to vector<24x12xf32>
    %cst_63 = arith.constant dense<0.000000e+00> : vector<74x12xf32>
    %225 = tpu.matmul %84, %224, %cst_63 {dimension_numbers = #tpu.dot_dimension_numbers<[1], [0], [0], [1], [0, 0, 1, 1], [], []>} : vector<74x24xf32>, vector<24x12xf32>, vector<74x12xf32> -> vector<74x12xf32>
    %226 = arith.addf %222, %225 : vector<74x12xf32>
    %227 = arith.maximumf %191, %226 : vector<74x12xf32>
    %c0_64 = arith.constant 0 : index
    %c0_65 = arith.constant 0 : index
    %228 = vector.load %arg5[%c0_64, %c0_65] : memref<1x12xf32, #tpu.memory_space<vmem>>, vector<1x12xf32>
    %229 = vector.broadcast %228 : vector<1x12xf32> to vector<74x12xf32>
    %230 = arith.addf %227, %229 : vector<74x12xf32>
    %cst_66 = arith.constant 0.000000e+00 : f32
    %231 = vector.broadcast %cst_66 : f32 to vector<74x12xf32>
    %232 = arith.maximumf %230, %231 : vector<74x12xf32>
    %233 = vector.extract_strided_slice %232 {offsets = [0, 0], sizes = [50, 12], strides = [1, 1]} : vector<74x12xf32> to vector<50x12xf32>
    %234 = vector.extract_strided_slice %3 {offsets = [0, 0, 0], sizes = [1, 12, 120], strides = [1, 1, 1]} : vector<16x12x120xf32> to vector<1x12x120xf32>
    %235 = vector.shape_cast %234 : vector<1x12x120xf32> to vector<12x120xf32>
    %cst_67 = arith.constant dense<0.000000e+00> : vector<50x120xf32>
    %236 = tpu.matmul %233, %235, %cst_67 {dimension_numbers = #tpu.dot_dimension_numbers<[1], [0], [0], [1], [0, 0, 1, 1], [], []>} : vector<50x12xf32>, vector<12x120xf32>, vector<50x120xf32> -> vector<50x120xf32>
    %237 = vector.extract_strided_slice %232 {offsets = [1, 0], sizes = [50, 12], strides = [1, 1]} : vector<74x12xf32> to vector<50x12xf32>
    %238 = vector.extract_strided_slice %3 {offsets = [1, 0, 0], sizes = [1, 12, 120], strides = [1, 1, 1]} : vector<16x12x120xf32> to vector<1x12x120xf32>
    %239 = vector.shape_cast %238 : vector<1x12x120xf32> to vector<12x120xf32>
    %cst_68 = arith.constant dense<0.000000e+00> : vector<50x120xf32>
    %240 = tpu.matmul %237, %239, %cst_68 {dimension_numbers = #tpu.dot_dimension_numbers<[1], [0], [0], [1], [0, 0, 1, 1], [], []>} : vector<50x12xf32>, vector<12x120xf32>, vector<50x120xf32> -> vector<50x120xf32>
    %241 = arith.addf %236, %240 : vector<50x120xf32>
    %242 = vector.extract_strided_slice %232 {offsets = [2, 0], sizes = [50, 12], strides = [1, 1]} : vector<74x12xf32> to vector<50x12xf32>
    %243 = vector.extract_strided_slice %3 {offsets = [2, 0, 0], sizes = [1, 12, 120], strides = [1, 1, 1]} : vector<16x12x120xf32> to vector<1x12x120xf32>
    %244 = vector.shape_cast %243 : vector<1x12x120xf32> to vector<12x120xf32>
    %cst_69 = arith.constant dense<0.000000e+00> : vector<50x120xf32>
    %245 = tpu.matmul %242, %244, %cst_69 {dimension_numbers = #tpu.dot_dimension_numbers<[1], [0], [0], [1], [0, 0, 1, 1], [], []>} : vector<50x12xf32>, vector<12x120xf32>, vector<50x120xf32> -> vector<50x120xf32>
    %246 = arith.addf %241, %245 : vector<50x120xf32>
    %247 = vector.extract_strided_slice %232 {offsets = [3, 0], sizes = [50, 12], strides = [1, 1]} : vector<74x12xf32> to vector<50x12xf32>
    %248 = vector.extract_strided_slice %3 {offsets = [3, 0, 0], sizes = [1, 12, 120], strides = [1, 1, 1]} : vector<16x12x120xf32> to vector<1x12x120xf32>
    %249 = vector.shape_cast %248 : vector<1x12x120xf32> to vector<12x120xf32>
    %cst_70 = arith.constant dense<0.000000e+00> : vector<50x120xf32>
    %250 = tpu.matmul %247, %249, %cst_70 {dimension_numbers = #tpu.dot_dimension_numbers<[1], [0], [0], [1], [0, 0, 1, 1], [], []>} : vector<50x12xf32>, vector<12x120xf32>, vector<50x120xf32> -> vector<50x120xf32>
    %251 = arith.addf %246, %250 : vector<50x120xf32>
    %252 = vector.extract_strided_slice %232 {offsets = [7, 0], sizes = [50, 12], strides = [1, 1]} : vector<74x12xf32> to vector<50x12xf32>
    %253 = vector.extract_strided_slice %3 {offsets = [4, 0, 0], sizes = [1, 12, 120], strides = [1, 1, 1]} : vector<16x12x120xf32> to vector<1x12x120xf32>
    %254 = vector.shape_cast %253 : vector<1x12x120xf32> to vector<12x120xf32>
    %cst_71 = arith.constant dense<0.000000e+00> : vector<50x120xf32>
    %255 = tpu.matmul %252, %254, %cst_71 {dimension_numbers = #tpu.dot_dimension_numbers<[1], [0], [0], [1], [0, 0, 1, 1], [], []>} : vector<50x12xf32>, vector<12x120xf32>, vector<50x120xf32> -> vector<50x120xf32>
    %256 = arith.addf %251, %255 : vector<50x120xf32>
    %257 = vector.extract_strided_slice %232 {offsets = [8, 0], sizes = [50, 12], strides = [1, 1]} : vector<74x12xf32> to vector<50x12xf32>
    %258 = vector.extract_strided_slice %3 {offsets = [5, 0, 0], sizes = [1, 12, 120], strides = [1, 1, 1]} : vector<16x12x120xf32> to vector<1x12x120xf32>
    %259 = vector.shape_cast %258 : vector<1x12x120xf32> to vector<12x120xf32>
    %cst_72 = arith.constant dense<0.000000e+00> : vector<50x120xf32>
    %260 = tpu.matmul %257, %259, %cst_72 {dimension_numbers = #tpu.dot_dimension_numbers<[1], [0], [0], [1], [0, 0, 1, 1], [], []>} : vector<50x12xf32>, vector<12x120xf32>, vector<50x120xf32> -> vector<50x120xf32>
    %261 = arith.addf %256, %260 : vector<50x120xf32>
    %262 = vector.extract_strided_slice %232 {offsets = [9, 0], sizes = [50, 12], strides = [1, 1]} : vector<74x12xf32> to vector<50x12xf32>
    %263 = vector.extract_strided_slice %3 {offsets = [6, 0, 0], sizes = [1, 12, 120], strides = [1, 1, 1]} : vector<16x12x120xf32> to vector<1x12x120xf32>
    %264 = vector.shape_cast %263 : vector<1x12x120xf32> to vector<12x120xf32>
    %cst_73 = arith.constant dense<0.000000e+00> : vector<50x120xf32>
    %265 = tpu.matmul %262, %264, %cst_73 {dimension_numbers = #tpu.dot_dimension_numbers<[1], [0], [0], [1], [0, 0, 1, 1], [], []>} : vector<50x12xf32>, vector<12x120xf32>, vector<50x120xf32> -> vector<50x120xf32>
    %266 = arith.addf %261, %265 : vector<50x120xf32>
    %267 = vector.extract_strided_slice %232 {offsets = [10, 0], sizes = [50, 12], strides = [1, 1]} : vector<74x12xf32> to vector<50x12xf32>
    %268 = vector.extract_strided_slice %3 {offsets = [7, 0, 0], sizes = [1, 12, 120], strides = [1, 1, 1]} : vector<16x12x120xf32> to vector<1x12x120xf32>
    %269 = vector.shape_cast %268 : vector<1x12x120xf32> to vector<12x120xf32>
    %cst_74 = arith.constant dense<0.000000e+00> : vector<50x120xf32>
    %270 = tpu.matmul %267, %269, %cst_74 {dimension_numbers = #tpu.dot_dimension_numbers<[1], [0], [0], [1], [0, 0, 1, 1], [], []>} : vector<50x12xf32>, vector<12x120xf32>, vector<50x120xf32> -> vector<50x120xf32>
    %271 = arith.addf %266, %270 : vector<50x120xf32>
    %272 = vector.extract_strided_slice %232 {offsets = [14, 0], sizes = [50, 12], strides = [1, 1]} : vector<74x12xf32> to vector<50x12xf32>
    %273 = vector.extract_strided_slice %3 {offsets = [8, 0, 0], sizes = [1, 12, 120], strides = [1, 1, 1]} : vector<16x12x120xf32> to vector<1x12x120xf32>
    %274 = vector.shape_cast %273 : vector<1x12x120xf32> to vector<12x120xf32>
    %cst_75 = arith.constant dense<0.000000e+00> : vector<50x120xf32>
    %275 = tpu.matmul %272, %274, %cst_75 {dimension_numbers = #tpu.dot_dimension_numbers<[1], [0], [0], [1], [0, 0, 1, 1], [], []>} : vector<50x12xf32>, vector<12x120xf32>, vector<50x120xf32> -> vector<50x120xf32>
    %276 = arith.addf %271, %275 : vector<50x120xf32>
    %277 = vector.extract_strided_slice %232 {offsets = [15, 0], sizes = [50, 12], strides = [1, 1]} : vector<74x12xf32> to vector<50x12xf32>
    %278 = vector.extract_strided_slice %3 {offsets = [9, 0, 0], sizes = [1, 12, 120], strides = [1, 1, 1]} : vector<16x12x120xf32> to vector<1x12x120xf32>
    %279 = vector.shape_cast %278 : vector<1x12x120xf32> to vector<12x120xf32>
    %cst_76 = arith.constant dense<0.000000e+00> : vector<50x120xf32>
    %280 = tpu.matmul %277, %279, %cst_76 {dimension_numbers = #tpu.dot_dimension_numbers<[1], [0], [0], [1], [0, 0, 1, 1], [], []>} : vector<50x12xf32>, vector<12x120xf32>, vector<50x120xf32> -> vector<50x120xf32>
    %281 = arith.addf %276, %280 : vector<50x120xf32>
    %282 = vector.extract_strided_slice %232 {offsets = [16, 0], sizes = [50, 12], strides = [1, 1]} : vector<74x12xf32> to vector<50x12xf32>
    %283 = vector.extract_strided_slice %3 {offsets = [10, 0, 0], sizes = [1, 12, 120], strides = [1, 1, 1]} : vector<16x12x120xf32> to vector<1x12x120xf32>
    %284 = vector.shape_cast %283 : vector<1x12x120xf32> to vector<12x120xf32>
    %cst_77 = arith.constant dense<0.000000e+00> : vector<50x120xf32>
    %285 = tpu.matmul %282, %284, %cst_77 {dimension_numbers = #tpu.dot_dimension_numbers<[1], [0], [0], [1], [0, 0, 1, 1], [], []>} : vector<50x12xf32>, vector<12x120xf32>, vector<50x120xf32> -> vector<50x120xf32>
    %286 = arith.addf %281, %285 : vector<50x120xf32>
    %287 = vector.extract_strided_slice %232 {offsets = [17, 0], sizes = [50, 12], strides = [1, 1]} : vector<74x12xf32> to vector<50x12xf32>
    %288 = vector.extract_strided_slice %3 {offsets = [11, 0, 0], sizes = [1, 12, 120], strides = [1, 1, 1]} : vector<16x12x120xf32> to vector<1x12x120xf32>
    %289 = vector.shape_cast %288 : vector<1x12x120xf32> to vector<12x120xf32>
    %cst_78 = arith.constant dense<0.000000e+00> : vector<50x120xf32>
    %290 = tpu.matmul %287, %289, %cst_78 {dimension_numbers = #tpu.dot_dimension_numbers<[1], [0], [0], [1], [0, 0, 1, 1], [], []>} : vector<50x12xf32>, vector<12x120xf32>, vector<50x120xf32> -> vector<50x120xf32>
    %291 = arith.addf %286, %290 : vector<50x120xf32>
    %292 = vector.extract_strided_slice %232 {offsets = [21, 0], sizes = [50, 12], strides = [1, 1]} : vector<74x12xf32> to vector<50x12xf32>
    %293 = vector.extract_strided_slice %3 {offsets = [12, 0, 0], sizes = [1, 12, 120], strides = [1, 1, 1]} : vector<16x12x120xf32> to vector<1x12x120xf32>
    %294 = vector.shape_cast %293 : vector<1x12x120xf32> to vector<12x120xf32>
    %cst_79 = arith.constant dense<0.000000e+00> : vector<50x120xf32>
    %295 = tpu.matmul %292, %294, %cst_79 {dimension_numbers = #tpu.dot_dimension_numbers<[1], [0], [0], [1], [0, 0, 1, 1], [], []>} : vector<50x12xf32>, vector<12x120xf32>, vector<50x120xf32> -> vector<50x120xf32>
    %296 = arith.addf %291, %295 : vector<50x120xf32>
    %297 = vector.extract_strided_slice %232 {offsets = [22, 0], sizes = [50, 12], strides = [1, 1]} : vector<74x12xf32> to vector<50x12xf32>
    %298 = vector.extract_strided_slice %3 {offsets = [13, 0, 0], sizes = [1, 12, 120], strides = [1, 1, 1]} : vector<16x12x120xf32> to vector<1x12x120xf32>
    %299 = vector.shape_cast %298 : vector<1x12x120xf32> to vector<12x120xf32>
    %cst_80 = arith.constant dense<0.000000e+00> : vector<50x120xf32>
    %300 = tpu.matmul %297, %299, %cst_80 {dimension_numbers = #tpu.dot_dimension_numbers<[1], [0], [0], [1], [0, 0, 1, 1], [], []>} : vector<50x12xf32>, vector<12x120xf32>, vector<50x120xf32> -> vector<50x120xf32>
    %301 = arith.addf %296, %300 : vector<50x120xf32>
    %302 = vector.extract_strided_slice %232 {offsets = [23, 0], sizes = [50, 12], strides = [1, 1]} : vector<74x12xf32> to vector<50x12xf32>
    %303 = vector.extract_strided_slice %3 {offsets = [14, 0, 0], sizes = [1, 12, 120], strides = [1, 1, 1]} : vector<16x12x120xf32> to vector<1x12x120xf32>
    %304 = vector.shape_cast %303 : vector<1x12x120xf32> to vector<12x120xf32>
    %cst_81 = arith.constant dense<0.000000e+00> : vector<50x120xf32>
    %305 = tpu.matmul %302, %304, %cst_81 {dimension_numbers = #tpu.dot_dimension_numbers<[1], [0], [0], [1], [0, 0, 1, 1], [], []>} : vector<50x12xf32>, vector<12x120xf32>, vector<50x120xf32> -> vector<50x120xf32>
    %306 = arith.addf %301, %305 : vector<50x120xf32>
    %307 = vector.extract_strided_slice %232 {offsets = [24, 0], sizes = [50, 12], strides = [1, 1]} : vector<74x12xf32> to vector<50x12xf32>
    %308 = vector.extract_strided_slice %3 {offsets = [15, 0, 0], sizes = [1, 12, 120], strides = [1, 1, 1]} : vector<16x12x120xf32> to vector<1x12x120xf32>
    %309 = vector.shape_cast %308 : vector<1x12x120xf32> to vector<12x120xf32>
    %cst_82 = arith.constant dense<0.000000e+00> : vector<50x120xf32>
    %310 = tpu.matmul %307, %309, %cst_82 {dimension_numbers = #tpu.dot_dimension_numbers<[1], [0], [0], [1], [0, 0, 1, 1], [], []>} : vector<50x12xf32>, vector<12x120xf32>, vector<50x120xf32> -> vector<50x120xf32>
    %311 = arith.addf %306, %310 : vector<50x120xf32>
    %c0_83 = arith.constant 0 : index
    %c0_84 = arith.constant 0 : index
    %312 = vector.load %arg7[%c0_83, %c0_84] : memref<1x120xf32, #tpu.memory_space<vmem>>, vector<1x120xf32>
    %313 = vector.broadcast %312 : vector<1x120xf32> to vector<50x120xf32>
    %314 = arith.addf %311, %313 : vector<50x120xf32>
    %cst_85 = arith.constant 0.000000e+00 : f32
    %315 = vector.broadcast %cst_85 : f32 to vector<50x120xf32>
    %316 = arith.maximumf %314, %315 : vector<50x120xf32>
    %c0_86 = arith.constant 0 : index
    %c0_87 = arith.constant 0 : index
    %317 = vector.load %arg8[%c0_86, %c0_87] : memref<120x60xf32, #tpu.memory_space<vmem>>, vector<120x60xf32>
    %cst_88 = arith.constant dense<0.000000e+00> : vector<50x60xf32>
    %318 = tpu.matmul %316, %317, %cst_88 {dimension_numbers = #tpu.dot_dimension_numbers<[1], [0], [0], [1], [0, 0, 1, 1], [], []>} : vector<50x120xf32>, vector<120x60xf32>, vector<50x60xf32> -> vector<50x60xf32>
    %c0_89 = arith.constant 0 : index
    %c0_90 = arith.constant 0 : index
    %319 = vector.load %arg9[%c0_89, %c0_90] : memref<1x60xf32, #tpu.memory_space<vmem>>, vector<1x60xf32>
    %320 = vector.broadcast %319 : vector<1x60xf32> to vector<50x60xf32>
    %321 = arith.addf %318, %320 : vector<50x60xf32>
    %cst_91 = arith.constant 0.000000e+00 : f32
    %322 = vector.broadcast %cst_91 : f32 to vector<50x60xf32>
    %323 = arith.maximumf %321, %322 : vector<50x60xf32>
    %c0_92 = arith.constant 0 : index
    %c0_93 = arith.constant 0 : index
    %324 = vector.load %arg10[%c0_92, %c0_93] : memref<60x10xf32, #tpu.memory_space<vmem>>, vector<60x10xf32>
    %cst_94 = arith.constant dense<0.000000e+00> : vector<50x10xf32>
    %325 = tpu.matmul %323, %324, %cst_94 {dimension_numbers = #tpu.dot_dimension_numbers<[1], [0], [0], [1], [0, 0, 1, 1], [], []>} : vector<50x60xf32>, vector<60x10xf32>, vector<50x10xf32> -> vector<50x10xf32>
    %c0_95 = arith.constant 0 : index
    %c0_96 = arith.constant 0 : index
    %326 = vector.load %arg11[%c0_95, %c0_96] : memref<1x10xf32, #tpu.memory_space<vmem>>, vector<1x10xf32>
    %327 = vector.broadcast %326 : vector<1x10xf32> to vector<50x10xf32>
    %328 = arith.addf %325, %327 : vector<50x10xf32>
    %329 = vector.extract_strided_slice %328 {offsets = [0, 0], sizes = [1, 10], strides = [1, 1]} : vector<50x10xf32> to vector<1x10xf32>
    %c0_97 = arith.constant 0 : index
    %c0_98 = arith.constant 0 : index
    %330 = vector.load %arg12[%c0_97, %c0_98] : memref<2x10xf32, #tpu.memory_space<vmem>>, vector<1x10xf32>
    tpu.vector_store %arg12[%c0_97, %c0_98], %329 {strides = array<i32>} : memref<2x10xf32, #tpu.memory_space<vmem>>, vector<1x10xf32>,
    %331 = vector.extract_strided_slice %328 {offsets = [49, 0], sizes = [1, 10], strides = [1, 1]} : vector<50x10xf32> to vector<1x10xf32>
    %c1 = arith.constant 1 : index
    %c0_99 = arith.constant 0 : index
    %332 = vector.load %arg12[%c1, %c0_99] : memref<2x10xf32, #tpu.memory_space<vmem>>, vector<1x10xf32>
    tpu.vector_store %arg12[%c1, %c0_99], %331 {strides = array<i32>} : memref<2x10xf32, #tpu.memory_space<vmem>>, vector<1x10xf32>,
    return
  }
  func.func @transform_0(%arg0: i32) -> (i32, i32) {
    %c0_i32 = arith.constant 0 : i32
    %c0_i32_0 = arith.constant 0 : i32
    %c0_i32_1 = arith.constant 0 : i32
    return %c0_i32, %c0_i32_0 : i32, i32
  }
  func.func @transform_1(%arg0: i32) -> (i32, i32, i32) {
    %c0_i32 = arith.constant 0 : i32
    %c0_i32_0 = arith.constant 0 : i32
    %c0_i32_1 = arith.constant 0 : i32
    %c0_i32_2 = arith.constant 0 : i32
    return %c0_i32, %c0_i32_0, %c0_i32_1 : i32, i32, i32
  }
  func.func @transform_2(%arg0: i32) -> (i32, i32) {
    %c0_i32 = arith.constant 0 : i32
    %c0_i32_0 = arith.constant 0 : i32
    %c0_i32_1 = arith.constant 0 : i32
    return %c0_i32, %c0_i32_0 : i32, i32
  }
  func.func @transform_3(%arg0: i32) -> (i32, i32, i32) {
    %c0_i32 = arith.constant 0 : i32
    %c0_i32_0 = arith.constant 0 : i32
    %c0_i32_1 = arith.constant 0 : i32
    %c0_i32_2 = arith.constant 0 : i32
    return %c0_i32, %c0_i32_0, %c0_i32_1 : i32, i32, i32
  }
  func.func @transform_4(%arg0: i32) -> (i32, i32) {
    %c0_i32 = arith.constant 0 : i32
    %c0_i32_0 = arith.constant 0 : i32
    %c0_i32_1 = arith.constant 0 : i32
    return %c0_i32, %c0_i32_0 : i32, i32
  }
  func.func @transform_5(%arg0: i32) -> (i32, i32, i32) {
    %c0_i32 = arith.constant 0 : i32
    %c0_i32_0 = arith.constant 0 : i32
    %c0_i32_1 = arith.constant 0 : i32
    %c0_i32_2 = arith.constant 0 : i32
    return %c0_i32, %c0_i32_0, %c0_i32_1 : i32, i32, i32
  }
  func.func @transform_6(%arg0: i32) -> (i32, i32) {
    %c0_i32 = arith.constant 0 : i32
    %c0_i32_0 = arith.constant 0 : i32
    %c0_i32_1 = arith.constant 0 : i32
    return %c0_i32, %c0_i32_0 : i32, i32
  }
  func.func @transform_7(%arg0: i32) -> (i32, i32) {
    %c0_i32 = arith.constant 0 : i32
    %c0_i32_0 = arith.constant 0 : i32
    %c0_i32_1 = arith.constant 0 : i32
    return %c0_i32, %c0_i32_0 : i32, i32
  }
  func.func @transform_8(%arg0: i32) -> (i32, i32) {
    %c0_i32 = arith.constant 0 : i32
    %c0_i32_0 = arith.constant 0 : i32
    %c0_i32_1 = arith.constant 0 : i32
    return %c0_i32, %c0_i32_0 : i32, i32
  }
  func.func @transform_9(%arg0: i32) -> (i32, i32) {
    %c0_i32 = arith.constant 0 : i32
    %c0_i32_0 = arith.constant 0 : i32
    %c0_i32_1 = arith.constant 0 : i32
    return %c0_i32, %c0_i32_0 : i32, i32
  }
  func.func @transform_10(%arg0: i32) -> (i32, i32) {
    %c0_i32 = arith.constant 0 : i32
    %c0_i32_0 = arith.constant 0 : i32
    %c0_i32_1 = arith.constant 0 : i32
    return %c0_i32, %c0_i32_0 : i32, i32
  }
  func.func @transform_11(%arg0: i32) -> (i32, i32) {
    %c0_i32 = arith.constant 0 : i32
    %c0_i32_0 = arith.constant 0 : i32
    %c0_i32_1 = arith.constant 0 : i32
    return %c0_i32, %c0_i32_0 : i32, i32
  }
}

</mosaic_0001>

<bundles_post_ra>
// kernel: squeeze.1
= control target key start
LH: loop header
LB: loop body
LE: loop exit
PB: predicated region body
PF: predicated region fallthrough
CT: control target
= control target key end

     0   :  { %vm115_vm0 = vcmask 31744   ;;  %vm255_vm1 = vcmask 1047556   ;;  %s936_s30 = smov 124   ;;  %s937_s3 = smov 120   ;;  %s1546_s0 = inlined_call_operand.vmem [shape: f32[2,1,28,28], index: 0, kind: input, shape index: {}]   ;;  %s1547_s1 = inlined_call_operand.vmem [shape: f32[2,7,4,7,4], index: 1, kind: output, shape index: {}]  }
   0x1   :  { %v816_v0 = vld [vmem:[%s1546_s0 + $0x6] sm:$0x3]  ;;  %v817_v1 = vld [vmem:[%s1546_s0 + $0x4] sm:$0x3]  ;;  %v818_v2 = vld [vmem:[%s1546_s0 + $0x2] sm:$0x3] }
   0x2   :  { %103 = vst [vmem:[#allocation0 + $0x18] sm:$0x3] %v816_v0  ;;  %v112_v3 = vld [vmem:[%s1546_s0] sm:$0x3]  ;;  %v808_v4 = vld [vmem:[%s1546_s0 + $0x16] sm:$0x3] }
   0x3   :  { %107 = vst [vmem:[#allocation0 + $0x10] sm:$0x3] %v817_v1  ;;  %v809_v5 = vld [vmem:[%s1546_s0 + $0x14] sm:$0x3]  ;;  %v810_v6 = vld [vmem:[%s1546_s0 + $0x12] sm:$0x3] }
   0x4   :  { %111 = vst [vmem:[#allocation0 + $0x8] sm:$0x3] %v818_v2  ;;  %v811_v7 = vld [vmem:[%s1546_s0 + $0x10] sm:$0x3]  ;;  %v812_v17 = vld [vmem:[%s1546_s0 + $0xe] sm:$0x3] }
   0x5   :  { %113 = vst [vmem:[#allocation0] sm:$0x3] %v112_v3  ;;  %v813_v19 = vld [vmem:[%s1546_s0 + $0xc] sm:$0x3]  ;;  %v814_v24 = vld [vmem:[%s1546_s0 + $0xa] sm:$0x3] }
   0x6   :  { %71 = vst [vmem:[#allocation0 + $0x58] sm:$0x3] %v808_v4  ;;  %v815_v25 = vld [vmem:[%s1546_s0 + $0x8] sm:$0x3]  ;;  %v804_v26 = vld [vmem:[%s1546_s0 + $0x1e] sm:$0x3] }
   0x7   :  { %75 = vst [vmem:[#allocation0 + $0x50] sm:$0x3] %v809_v5  ;;  %v805_v27 = vld [vmem:[%s1546_s0 + $0x1c] sm:$0x3]  ;;  %v806_v28 = vld [vmem:[%s1546_s0 + $0x1a] sm:$0x3] }
   0x8   :  { %79 = vst [vmem:[#allocation0 + $0x48] sm:$0x3] %v810_v6  ;;  %v807_v29 = vld [vmem:[%s1546_s0 + $0x18] sm:$0x3]  ;;  %v792_v30 = vld [vmem:[%s1546_s0 + $0x36] sm:$0x3] }
   0x9   :  { %v128_v8 = vld [vmem:[#allocation0 + $0x18] sm:$0x3]   ;;  %83 = vst [vmem:[#allocation0 + $0x40] sm:$0x3] %v811_v7  ;;  %v793_v31 = vld [vmem:[%s1546_s0 + $0x34] sm:$0x3] }
   0xa   :  { %v123_v9 = vld [vmem:[#allocation0 + $0x10] sm:$0x3]   ;;  %821 = vst.msk [vmem:[%s1547_s1 + $0x30] ss:$8 sm:$0x3] %vm115_vm0, %v128_v8   ;;  %s939_s26 = smov 112  }
   0xb   :  { %v254_v10 = vld.sshfl [vmem:[#allocation0 + $0x10] sm:$0xff pattern:$0x98100000]   ;;  %v118_v11 = vld [vmem:[#allocation0 + $0x8] sm:$0x3]   ;;  %s940_s2 = smov 108  }
   0xc   :  { %820 = vst.msk [vmem:[%s1547_s1 + $0x20] ss:$8 sm:$0x3] %vm115_vm0, %v123_v9   ;;  %v114_v12 = vld [vmem:[#allocation0] sm:$0x3]   ;;  %s941_s7 = smov 104  }
   0xd   :  { %819 = vst.msk [vmem:[%s1547_s1 + $0x10] ss:$8 sm:$0x3] %vm115_vm0, %v118_v11   ;;  %v252_v13 = vld.sshfl [vmem:[#allocation0] sm:$0xff pattern:$0x99999810]  }
   0xe   :  { %116 = vst.msk [vmem:[%s1547_s1] ss:$8 sm:$0x3] %vm115_vm0, %v114_v12   ;;  %v989_v14 = vsel %vm255_vm1, %v254_v10, %v252_v13  ;;  %v163_v15 = vld [vmem:[#allocation0 + $0x50] sm:$0x3]  }
   0xf   :  { %257 = vrot.lane.b32.xlu0 %v989_v14, %s936_s30  ;;  %v158_v16 = vld [vmem:[#allocation0 + $0x48] sm:$0x3]   ;;  %828 = vst.msk [vmem:[%s1547_s1 + $0xa0] ss:$8 sm:$0x3] %vm115_vm0, %v163_v15  }
  0x10   :  { %v153_v18 = vld [vmem:[#allocation0 + $0x40] sm:$0x3]   ;;  %827 = vst.msk [vmem:[%s1547_s1 + $0x90] ss:$8 sm:$0x3] %vm115_vm0, %v158_v16  }
  0x11   :  { %826 = vst.msk [vmem:[%s1547_s1 + $0x80] ss:$8 sm:$0x3] %vm115_vm0, %v153_v18   ;;  %v278_v20 = vld.sshfl [vmem:[#allocation0 + $0x40] sm:$0xff pattern:$0x99999810]  }
  0x12   :  { %v280_v21 = vld.sshfl [vmem:[#allocation0 + $0x50] sm:$0xff pattern:$0x98100000]   ;;  %87 = vst [vmem:[#allocation0 + $0x38] sm:$0x3] %v812_v17 }
  0x13   :  { %v168_v22 = vld [vmem:[#allocation0 + $0x58] sm:$0x3]   ;;  %v1016_v23 = vsel %vm255_vm1, %v280_v21, %v278_v20  ;;  %91 = vst [vmem:[#allocation0 + $0x30] sm:$0x3] %v813_v19  ;;  %v794_v32 = vld [vmem:[%s1546_s0 + $0x32] sm:$0x3] }
  0x14   :  { %829 = vst.msk [vmem:[%s1547_s1 + $0xb0] ss:$8 sm:$0x3] %vm115_vm0, %v168_v22   ;;  %283 = vrot.lane.b32.xlu1 %v1016_v23, %s936_s30  ;;  %v795_v33 = vld [vmem:[%s1546_s0 + $0x30] sm:$0x3] }
  0x15   :  { %95 = vst [vmem:[#allocation0 + $0x28] sm:$0x3] %v814_v24  ;;  %v800_v35 = vld [vmem:[%s1546_s0 + $0x26] sm:$0x3]  ;;  %v801_v36 = vld [vmem:[%s1546_s0 + $0x24] sm:$0x3] }
  0x16   :  { %99 = vst [vmem:[#allocation0 + $0x20] sm:$0x3] %v815_v25  ;;  %v802_v39 = vld [vmem:[%s1546_s0 + $0x22] sm:$0x3]  ;;  %v803_v41 = vld [vmem:[%s1546_s0 + $0x20] sm:$0x3] }
  0x17   :  { %55 = vst [vmem:[#allocation0 + $0x78] sm:$0x3] %v804_v26  ;;  %v796_v43 = vld [vmem:[%s1546_s0 + $0x2e] sm:$0x3]  ;;  %v797_v45 = vld [vmem:[%s1546_s0 + $0x2c] sm:$0x3] }
  0x18   :  { %59 = vst [vmem:[#allocation0 + $0x70] sm:$0x3] %v805_v27  ;;  %v798_v53 = vld [vmem:[%s1546_s0 + $0x2a] sm:$0x3]  ;;  %v799_v54 = vld [vmem:[%s1546_s0 + $0x28] sm:$0x3] }
  0x19   :  { %63 = vst [vmem:[#allocation0 + $0x68] sm:$0x3] %v806_v28  ;;  %v148_v63 = vld [vmem:[#allocation0 + $0x38] sm:$0x3]  }
  0x1a   :  { %67 = vst [vmem:[#allocation0 + $0x60] sm:$0x3] %v807_v29  ;;  %v267_v34 = vld.sshfl [vmem:[#allocation0 + $0x30] sm:$0xff pattern:$0x98100000]  }
  0x1b   :  { %7 = vst [vmem:[#allocation0 + $0xd8] sm:$0x3] %v792_v30  ;;  %v143_v62 = vld [vmem:[#allocation0 + $0x30] sm:$0x3]  }
  0x1c   :  { %11 = vst [vmem:[#allocation0 + $0xd0] sm:$0x3] %v793_v31  ;;  %v138_v58 = vld [vmem:[#allocation0 + $0x28] sm:$0x3]  }
  0x1d   :  { %v265_v37 = vld.sshfl [vmem:[#allocation0 + $0x20] sm:$0xff pattern:$0x99999810]   ;;  %15 = vst [vmem:[#allocation0 + $0xc8] sm:$0x3] %v794_v32 }
  0x1e   :  { %v1061_v38 = vsel %vm255_vm1, %v267_v34, %v265_v37  ;;  %19 = vst [vmem:[#allocation0 + $0xc0] sm:$0x3] %v795_v33  ;;  %v133_v56 = vld [vmem:[#allocation0 + $0x20] sm:$0x3]   ;;  %v188_v12 = vld [vmem:[#allocation0 + $0x78] sm:$0x3]  }
  0x1f   :  { %270 = vrot.lane.b32.xlu0 %v1061_v38, %s936_s30  ;;  %v293_v40 = vld.sshfl [vmem:[#allocation0 + $0x70] sm:$0xff pattern:$0x98100000]   ;;  %39 = vst [vmem:[#allocation0 + $0x98] sm:$0x3] %v800_v35 }
  0x20   :  { %v178_v42 = vld [vmem:[#allocation0 + $0x68] sm:$0x3]   ;;  %43 = vst [vmem:[#allocation0 + $0x90] sm:$0x3] %v801_v36  ;;  %v183_v11 = vld [vmem:[#allocation0 + $0x70] sm:$0x3]  }
  0x21   :  { %v173_v44 = vld [vmem:[#allocation0 + $0x60] sm:$0x3]   ;;  %831 = vst.msk [vmem:[%s1547_s1 + $0xd0] ss:$8 sm:$0x3] %vm115_vm0, %v178_v42  }
  0x22   :  { %830 = vst.msk [vmem:[%s1547_s1 + $0xc0] ss:$8 sm:$0x3] %vm115_vm0, %v173_v44   ;;  %v291_v46 = vld.sshfl [vmem:[#allocation0 + $0x60] sm:$0xff pattern:$0x99999810]  }
  0x23   :  { %v1086_v47 = vsel %vm255_vm1, %v293_v40, %v291_v46  ;;  %v332_v48 = vld.sshfl [vmem:[#allocation0 + $0xd0] sm:$0xff pattern:$0x98100000]   ;;  %47 = vst [vmem:[#allocation0 + $0x88] sm:$0x3] %v802_v39 }
  0x24   :  { %296 = vrot.lane.b32.xlu1 %v1086_v47, %s936_s30  ;;  %51 = vst [vmem:[#allocation0 + $0x80] sm:$0x3] %v803_v41  ;;  %v238_v4 = vld [vmem:[#allocation0 + $0xc8] sm:$0x3]   ;;  %v243_v5 = vld [vmem:[#allocation0 + $0xd0] sm:$0x3]  }
  0x25   :  { %v330_v49 = vld.sshfl [vmem:[#allocation0 + $0xc0] sm:$0xff pattern:$0x99999810]   ;;  %23 = vst [vmem:[#allocation0 + $0xb8] sm:$0x3] %v796_v43 }
  0x26   :  { %v1091_v50 = vsel %vm255_vm1, %v332_v48, %v330_v49  ;;  %v208_v51 = vld [vmem:[#allocation0 + $0x98] sm:$0x3]   ;;  %27 = vst [vmem:[#allocation0 + $0xb0] sm:$0x3] %v797_v45  ;;  %v233_v3 = vld [vmem:[#allocation0 + $0xc0] sm:$0x3]  }
  0x27   :  { %335 = vrot.lane.b32.xlu0 %v1091_v50, %s936_s30  ;;  %v203_v52 = vld [vmem:[#allocation0 + $0x90] sm:$0x3]   ;;  %837 = vst.msk [vmem:[%s1547_s1 + $0x130] ss:$8 sm:$0x3] %vm115_vm0, %v208_v51  }
  0x28   :  { %836 = vst.msk [vmem:[%s1547_s1 + $0x120] ss:$8 sm:$0x3] %vm115_vm0, %v203_v52   ;;  %v306_v55 = vld.sshfl [vmem:[#allocation0 + $0x90] sm:$0xff pattern:$0x98100000]  }
  0x29   :  { %31 = vst [vmem:[#allocation0 + $0xa8] sm:$0x3] %v798_v53  ;;  %v248_v6 = vld [vmem:[#allocation0 + $0xd8] sm:$0x3]  }
  0x2a   :  { %v198_v57 = vld [vmem:[#allocation0 + $0x88] sm:$0x3]   ;;  %35 = vst [vmem:[#allocation0 + $0xa0] sm:$0x3] %v799_v54 }
  0x2b   :  { %v193_v59 = vld [vmem:[#allocation0 + $0x80] sm:$0x3]   ;;  %835 = vst.msk [vmem:[%s1547_s1 + $0x110] ss:$8 sm:$0x3] %vm115_vm0, %v198_v57  }
  0x2c   :  { %347 = vrot.lane.b32.xlu1 %v989_v14, %s937_s3  ;;  %834 = vst.msk [vmem:[%s1547_s1 + $0x100] ss:$8 sm:$0x3] %vm115_vm0, %v193_v59   ;;  %v304_v60 = vld.sshfl [vmem:[#allocation0 + $0x80] sm:$0xff pattern:$0x99999810]  }
  0x2d   :  { %v1119_v61 = vsel %vm255_vm1, %v306_v55, %v304_v60  ;;  %822 = vst.msk [vmem:[%s1547_s1 + $0x40] ss:$8 sm:$0x3] %vm115_vm0, %v133_v56   ;;  %v319_v0 = vld.sshfl [vmem:[#allocation0 + $0xb0] sm:$0xff pattern:$0x98100000]  }
  0x2e   :  { %309 = vrot.lane.b32.xlu2 %v1119_v61, %s936_s30  ;;  %823 = vst.msk [vmem:[%s1547_s1 + $0x50] ss:$8 sm:$0x3] %vm115_vm0, %v138_v58   ;;  %v223_v9 = vld [vmem:[#allocation0 + $0xb0] sm:$0x3]  }
  0x2f   :  { %373 = vrot.lane.b32.xlu0 %v1016_v23, %s937_s3  ;;  %824 = vst.msk [vmem:[%s1547_s1 + $0x60] ss:$8 sm:$0x3] %vm115_vm0, %v143_v62   ;;  %v228_v10 = vld [vmem:[#allocation0 + $0xb8] sm:$0x3]  }
  0x30   :  { %825 = vst.msk [vmem:[%s1547_s1 + $0x70] ss:$8 sm:$0x3] %vm115_vm0, %v148_v63   ;;  %v218_v8 = vld [vmem:[#allocation0 + $0xa8] sm:$0x3]  }
  0x31   :  { %v317_v1 = vld.sshfl [vmem:[#allocation0 + $0xa0] sm:$0xff pattern:$0x99999810]   ;;  %842 = vst.msk [vmem:[%s1547_s1 + $0x180] ss:$8 sm:$0x3] %vm115_vm0, %v233_v3  }
  0x32   :  { %v321_v2 = vsel %vm255_vm1, %v319_v0, %v317_v1  ;;  %843 = vst.msk [vmem:[%s1547_s1 + $0x190] ss:$8 sm:$0x3] %vm115_vm0, %v238_v4   ;;  %v213_v7 = vld [vmem:[#allocation0 + $0xa0] sm:$0x3]  }
  0x33   :  { %844 = vst.msk [vmem:[%s1547_s1 + $0x1a0] ss:$8 sm:$0x3] %vm115_vm0, %v243_v5  }
  0x34   :  { %386 = vrot.lane.b32.xlu1 %v1086_v47, %s937_s3  ;;  %845 = vst.msk [vmem:[%s1547_s1 + $0x1b0] ss:$8 sm:$0x3] %vm115_vm0, %v248_v6  }
  0x35   :  { %838 = vst.msk [vmem:[%s1547_s1 + $0x140] ss:$8 sm:$0x3] %vm115_vm0, %v213_v7  }
  0x36   :  { %322 = vrot.lane.b32.xlu2 %v321_v2, %s936_s30  ;;  %s938_s30 = smov 116   ;;  %839 = vst.msk [vmem:[%s1547_s1 + $0x150] ss:$8 sm:$0x3] %vm115_vm0, %v218_v8  }
  0x37   :  { %412 = vrot.lane.b32.xlu0 %v321_v2, %s937_s3  ;;  %840 = vst.msk [vmem:[%s1547_s1 + $0x160] ss:$8 sm:$0x3] %vm115_vm0, %v223_v9  }
  0x38   :  { %841 = vst.msk [vmem:[%s1547_s1 + $0x170] ss:$8 sm:$0x3] %vm115_vm0, %v228_v10  }
  0x39   :  { %832 = vst.msk [vmem:[%s1547_s1 + $0xe0] ss:$8 sm:$0x3] %vm115_vm0, %v183_v11  }
  0x3a   :  { %833 = vst.msk [vmem:[%s1547_s1 + $0xf0] ss:$8 sm:$0x3] %vm115_vm0, %v188_v12  }
  0x3c   :  { %425 = vrot.lane.b32.xlu1 %v1091_v50, %s937_s3 }
  0x3e   :  { %360 = vrot.lane.b32.xlu2 %v1061_v38, %s937_s3 }
  0x3f   :  { %450 = vrot.lane.b32.xlu0 %v1061_v38, %s938_s30 }
  0x44   :  { %463 = vrot.lane.b32.xlu1 %v1016_v23, %s938_s30 }
  0x46   :  { %399 = vrot.lane.b32.xlu2 %v1119_v61, %s937_s3 }
  0x47   :  { %489 = vrot.lane.b32.xlu0 %v1119_v61, %s938_s30 }
  0x4c   :  { %502 = vrot.lane.b32.xlu1 %v321_v2, %s938_s30 }
  0x4e   :  { %437 = vrot.lane.b32.xlu2 %v989_v14, %s938_s30 }
  0x4f   :  { %527 = vrot.lane.b32.xlu0 %v989_v14, %s939_s26 }
  0x54   :  { %540 = vrot.lane.b32.xlu1 %v1061_v38, %s939_s26 }
  0x56   :  { %476 = vrot.lane.b32.xlu2 %v1086_v47, %s938_s30 }
  0x57   :  { %566 = vrot.lane.b32.xlu0 %v1086_v47, %s939_s26 }
  0x5c   :  { %579 = vrot.lane.b32.xlu1 %v1119_v61, %s939_s26 }
  0x5e   :  { %515 = vrot.lane.b32.xlu2 %v1091_v50, %s938_s30 }
  0x5f   :  { %605 = vrot.lane.b32.xlu0 %v1091_v50, %s939_s26 }
  0x64   :  { %617 = vrot.lane.b32.xlu1 %v989_v14, %s940_s2 }
  0x66   :  { %553 = vrot.lane.b32.xlu2 %v1016_v23, %s939_s26 }
  0x67   :  { %643 = vrot.lane.b32.xlu0 %v1016_v23, %s940_s2 }
  0x6c   :  { %656 = vrot.lane.b32.xlu1 %v1086_v47, %s940_s2 }
  0x6e   :  { %592 = vrot.lane.b32.xlu2 %v321_v2, %s939_s26 }
  0x6f   :  { %682 = vrot.lane.b32.xlu0 %v321_v2, %s940_s2 }
  0x74   :  { %695 = vrot.lane.b32.xlu1 %v1091_v50, %s940_s2 }
  0x76   :  { %630 = vrot.lane.b32.xlu2 %v1061_v38, %s940_s2 }
  0x77   :  { %720 = vrot.lane.b32.xlu0 %v1061_v38, %s941_s7 }
  0x7c   :  { %733 = vrot.lane.b32.xlu1 %v1016_v23, %s941_s7 }
  0x7e   :  { %669 = vrot.lane.b32.xlu2 %v1119_v61, %s940_s2 }
  0x7f   :  { %759 = vrot.lane.b32.xlu0 %v1119_v61, %s941_s7 }
  0x81   :  { %v258_v13 = vpop.permute.xlu0 %257  }
  0x82   :  { %846 = vst.msk [vmem:[%s1547_s1 + $0x1] ss:$8 sm:$0xf] %vm115_vm0, %v258_v13  }
  0x83   :  { %847 = vst.msk [vmem:[%s1547_s1 + $0x1] ss:$8 sm:$0xf0] %vm115_vm0, %v258_v13  }
  0x84   :  { %772 = vrot.lane.b32.xlu1 %v321_v2, %s941_s7 }
  0x86   :  { %v284_v15 = vpop.permute.xlu1 %283   ;;  %707 = vrot.lane.b32.xlu2 %v989_v14, %s941_s7 }
  0x87   :  { %850 = vst.msk [vmem:[%s1547_s1 + $0x81] ss:$8 sm:$0xf] %vm115_vm0, %v284_v15  }
  0x88   :  { %851 = vst.msk [vmem:[%s1547_s1 + $0x81] ss:$8 sm:$0xf0] %vm115_vm0, %v284_v15   ;;  %v310_v14 = vpop.permute.xlu2 %309  }
  0x89   :  { %854 = vst.msk [vmem:[%s1547_s1 + $0x101] ss:$8 sm:$0xf] %vm115_vm0, %v310_v14  }
  0x8a   :  { %855 = vst.msk [vmem:[%s1547_s1 + $0x101] ss:$8 sm:$0xf0] %vm115_vm0, %v310_v14  }
  0x8e   :  { %746 = vrot.lane.b32.xlu2 %v1086_v47, %s941_s7 }
  0x90   :  { %v323_v16 = vpop.permute.xlu2 %322  }
  0x91   :  { %v271_v17 = vpop.permute.xlu0 %270   ;;  %856 = vst.msk [vmem:[%s1547_s1 + $0x141] ss:$8 sm:$0xf] %vm115_vm0, %v323_v16  }
  0x92   :  { %848 = vst.msk [vmem:[%s1547_s1 + $0x41] ss:$8 sm:$0xf] %vm115_vm0, %v271_v17  }
  0x93   :  { %849 = vst.msk [vmem:[%s1547_s1 + $0x41] ss:$8 sm:$0xf0] %vm115_vm0, %v271_v17  }
  0x94   :  { %857 = vst.msk [vmem:[%s1547_s1 + $0x141] ss:$8 sm:$0xf0] %vm115_vm0, %v323_v16  }
  0x96   :  { %v297_v18 = vpop.permute.xlu1 %296   ;;  %785 = vrot.lane.b32.xlu2 %v1091_v50, %s941_s7 }
  0x97   :  { %852 = vst.msk [vmem:[%s1547_s1 + $0xc1] ss:$8 sm:$0xf] %vm115_vm0, %v297_v18  }
  0x98   :  { %853 = vst.msk [vmem:[%s1547_s1 + $0xc1] ss:$8 sm:$0xf0] %vm115_vm0, %v297_v18   ;;  %v361_v19 = vpop.permute.xlu2 %360  }
  0x99   :  { %862 = vst.msk [vmem:[%s1547_s1 + $0x42] ss:$8 sm:$0xf] %vm115_vm0, %v361_v19   ;;  %v336_v20 = vpop.permute.xlu0 %335  }
  0x9a   :  { %863 = vst.msk [vmem:[%s1547_s1 + $0x42] ss:$8 sm:$0xf0] %vm115_vm0, %v361_v19  }
  0x9b   :  { %858 = vst.msk [vmem:[%s1547_s1 + $0x181] ss:$8 sm:$0xf] %vm115_vm0, %v336_v20  }
  0x9c   :  { %859 = vst.msk [vmem:[%s1547_s1 + $0x181] ss:$8 sm:$0xf0] %vm115_vm0, %v336_v20  }
  0x9e   :  { %v348_v21 = vpop.permute.xlu1 %347  }
  0x9f   :  { %860 = vst.msk [vmem:[%s1547_s1 + $0x2] ss:$8 sm:$0xf] %vm115_vm0, %v348_v21  }
  0xa0   :  { %861 = vst.msk [vmem:[%s1547_s1 + $0x2] ss:$8 sm:$0xf0] %vm115_vm0, %v348_v21   ;;  %v400_v22 = vpop.permute.xlu2 %399  }
  0xa1   :  { %868 = vst.msk [vmem:[%s1547_s1 + $0x102] ss:$8 sm:$0xf] %vm115_vm0, %v400_v22   ;;  %v374_v23 = vpop.permute.xlu0 %373  }
  0xa2   :  { %869 = vst.msk [vmem:[%s1547_s1 + $0x102] ss:$8 sm:$0xf0] %vm115_vm0, %v400_v22  }
  0xa3   :  { %864 = vst.msk [vmem:[%s1547_s1 + $0x82] ss:$8 sm:$0xf] %vm115_vm0, %v374_v23  }
  0xa4   :  { %865 = vst.msk [vmem:[%s1547_s1 + $0x82] ss:$8 sm:$0xf0] %vm115_vm0, %v374_v23  }
  0xa6   :  { %v387_v24 = vpop.permute.xlu1 %386  }
  0xa7   :  { %866 = vst.msk [vmem:[%s1547_s1 + $0xc2] ss:$8 sm:$0xf] %vm115_vm0, %v387_v24  }
  0xa8   :  { %867 = vst.msk [vmem:[%s1547_s1 + $0xc2] ss:$8 sm:$0xf0] %vm115_vm0, %v387_v24   ;;  %v438_v25 = vpop.permute.xlu2 %437  }
  0xa9   :  { %874 = vst.msk [vmem:[%s1547_s1 + $0x3] ss:$8 sm:$0xf] %vm115_vm0, %v438_v25   ;;  %v413_v26 = vpop.permute.xlu0 %412  }
  0xaa   :  { %875 = vst.msk [vmem:[%s1547_s1 + $0x3] ss:$8 sm:$0xf0] %vm115_vm0, %v438_v25  }
  0xab   :  { %870 = vst.msk [vmem:[%s1547_s1 + $0x142] ss:$8 sm:$0xf] %vm115_vm0, %v413_v26  }
  0xac   :  { %871 = vst.msk [vmem:[%s1547_s1 + $0x142] ss:$8 sm:$0xf0] %vm115_vm0, %v413_v26  }
  0xae   :  { %v426_v27 = vpop.permute.xlu1 %425  }
  0xaf   :  { %872 = vst.msk [vmem:[%s1547_s1 + $0x182] ss:$8 sm:$0xf] %vm115_vm0, %v426_v27  }
  0xb0   :  { %873 = vst.msk [vmem:[%s1547_s1 + $0x182] ss:$8 sm:$0xf0] %vm115_vm0, %v426_v27   ;;  %v477_v28 = vpop.permute.xlu2 %476  }
  0xb1   :  { %880 = vst.msk [vmem:[%s1547_s1 + $0xc3] ss:$8 sm:$0xf] %vm115_vm0, %v477_v28   ;;  %v451_v29 = vpop.permute.xlu0 %450  }
  0xb2   :  { %881 = vst.msk [vmem:[%s1547_s1 + $0xc3] ss:$8 sm:$0xf0] %vm115_vm0, %v477_v28  }
  0xb3   :  { %876 = vst.msk [vmem:[%s1547_s1 + $0x43] ss:$8 sm:$0xf] %vm115_vm0, %v451_v29  }
  0xb4   :  { %877 = vst.msk [vmem:[%s1547_s1 + $0x43] ss:$8 sm:$0xf0] %vm115_vm0, %v451_v29  }
  0xb6   :  { %v464_v30 = vpop.permute.xlu1 %463  }
  0xb7   :  { %878 = vst.msk [vmem:[%s1547_s1 + $0x83] ss:$8 sm:$0xf] %vm115_vm0, %v464_v30  }
  0xb8   :  { %879 = vst.msk [vmem:[%s1547_s1 + $0x83] ss:$8 sm:$0xf0] %vm115_vm0, %v464_v30   ;;  %v516_v31 = vpop.permute.xlu2 %515  }
  0xb9   :  { %886 = vst.msk [vmem:[%s1547_s1 + $0x183] ss:$8 sm:$0xf] %vm115_vm0, %v516_v31   ;;  %v490_v32 = vpop.permute.xlu0 %489  }
  0xba   :  { %887 = vst.msk [vmem:[%s1547_s1 + $0x183] ss:$8 sm:$0xf0] %vm115_vm0, %v516_v31  }
  0xbb   :  { %882 = vst.msk [vmem:[%s1547_s1 + $0x103] ss:$8 sm:$0xf] %vm115_vm0, %v490_v32  }
  0xbc   :  { %883 = vst.msk [vmem:[%s1547_s1 + $0x103] ss:$8 sm:$0xf0] %vm115_vm0, %v490_v32  }
  0xbe   :  { %v503_v33 = vpop.permute.xlu1 %502  }
  0xbf   :  { %884 = vst.msk [vmem:[%s1547_s1 + $0x143] ss:$8 sm:$0xf] %vm115_vm0, %v503_v33  }
  0xc0   :  { %885 = vst.msk [vmem:[%s1547_s1 + $0x143] ss:$8 sm:$0xf0] %vm115_vm0, %v503_v33   ;;  %v554_v34 = vpop.permute.xlu2 %553  }
  0xc1   :  { %892 = vst.msk [vmem:[%s1547_s1 + $0x84] ss:$8 sm:$0xf] %vm115_vm0, %v554_v34   ;;  %v528_v35 = vpop.permute.xlu0 %527  }
  0xc2   :  { %893 = vst.msk [vmem:[%s1547_s1 + $0x84] ss:$8 sm:$0xf0] %vm115_vm0, %v554_v34  }
  0xc3   :  { %888 = vst.msk [vmem:[%s1547_s1 + $0x4] ss:$8 sm:$0xf] %vm115_vm0, %v528_v35  }
  0xc4   :  { %889 = vst.msk [vmem:[%s1547_s1 + $0x4] ss:$8 sm:$0xf0] %vm115_vm0, %v528_v35  }
  0xc6   :  { %v541_v36 = vpop.permute.xlu1 %540  }
  0xc7   :  { %890 = vst.msk [vmem:[%s1547_s1 + $0x44] ss:$8 sm:$0xf] %vm115_vm0, %v541_v36  }
  0xc8   :  { %891 = vst.msk [vmem:[%s1547_s1 + $0x44] ss:$8 sm:$0xf0] %vm115_vm0, %v541_v36   ;;  %v593_v37 = vpop.permute.xlu2 %592  }
  0xc9   :  { %898 = vst.msk [vmem:[%s1547_s1 + $0x144] ss:$8 sm:$0xf] %vm115_vm0, %v593_v37   ;;  %v567_v38 = vpop.permute.xlu0 %566  }
  0xca   :  { %899 = vst.msk [vmem:[%s1547_s1 + $0x144] ss:$8 sm:$0xf0] %vm115_vm0, %v593_v37  }
  0xcb   :  { %894 = vst.msk [vmem:[%s1547_s1 + $0xc4] ss:$8 sm:$0xf] %vm115_vm0, %v567_v38  }
  0xcc   :  { %895 = vst.msk [vmem:[%s1547_s1 + $0xc4] ss:$8 sm:$0xf0] %vm115_vm0, %v567_v38  }
  0xce   :  { %v580_v39 = vpop.permute.xlu1 %579  }
  0xcf   :  { %896 = vst.msk [vmem:[%s1547_s1 + $0x104] ss:$8 sm:$0xf] %vm115_vm0, %v580_v39  }
  0xd0   :  { %897 = vst.msk [vmem:[%s1547_s1 + $0x104] ss:$8 sm:$0xf0] %vm115_vm0, %v580_v39   ;;  %v631_v40 = vpop.permute.xlu2 %630  }
  0xd1   :  { %904 = vst.msk [vmem:[%s1547_s1 + $0x45] ss:$8 sm:$0xf] %vm115_vm0, %v631_v40   ;;  %v606_v41 = vpop.permute.xlu0 %605  }
  0xd2   :  { %905 = vst.msk [vmem:[%s1547_s1 + $0x45] ss:$8 sm:$0xf0] %vm115_vm0, %v631_v40  }
  0xd3   :  { %900 = vst.msk [vmem:[%s1547_s1 + $0x184] ss:$8 sm:$0xf] %vm115_vm0, %v606_v41  }
  0xd4   :  { %901 = vst.msk [vmem:[%s1547_s1 + $0x184] ss:$8 sm:$0xf0] %vm115_vm0, %v606_v41  }
  0xd6   :  { %v618_v42 = vpop.permute.xlu1 %617  }
  0xd7   :  { %902 = vst.msk [vmem:[%s1547_s1 + $0x5] ss:$8 sm:$0xf] %vm115_vm0, %v618_v42  }
  0xd8   :  { %903 = vst.msk [vmem:[%s1547_s1 + $0x5] ss:$8 sm:$0xf0] %vm115_vm0, %v618_v42   ;;  %v670_v43 = vpop.permute.xlu2 %669  }
  0xd9   :  { %910 = vst.msk [vmem:[%s1547_s1 + $0x105] ss:$8 sm:$0xf] %vm115_vm0, %v670_v43   ;;  %v644_v44 = vpop.permute.xlu0 %643  }
  0xda   :  { %911 = vst.msk [vmem:[%s1547_s1 + $0x105] ss:$8 sm:$0xf0] %vm115_vm0, %v670_v43  }
  0xdb   :  { %906 = vst.msk [vmem:[%s1547_s1 + $0x85] ss:$8 sm:$0xf] %vm115_vm0, %v644_v44  }
  0xdc   :  { %907 = vst.msk [vmem:[%s1547_s1 + $0x85] ss:$8 sm:$0xf0] %vm115_vm0, %v644_v44  }
  0xde   :  { %v657_v45 = vpop.permute.xlu1 %656  }
  0xdf   :  { %908 = vst.msk [vmem:[%s1547_s1 + $0xc5] ss:$8 sm:$0xf] %vm115_vm0, %v657_v45  }
  0xe0   :  { %909 = vst.msk [vmem:[%s1547_s1 + $0xc5] ss:$8 sm:$0xf0] %vm115_vm0, %v657_v45   ;;  %v708_v46 = vpop.permute.xlu2 %707  }
  0xe1   :  { %916 = vst.msk [vmem:[%s1547_s1 + $0x6] ss:$8 sm:$0xf] %vm115_vm0, %v708_v46   ;;  %v683_v47 = vpop.permute.xlu0 %682  }
  0xe2   :  { %917 = vst.msk [vmem:[%s1547_s1 + $0x6] ss:$8 sm:$0xf0] %vm115_vm0, %v708_v46  }
  0xe3   :  { %912 = vst.msk [vmem:[%s1547_s1 + $0x145] ss:$8 sm:$0xf] %vm115_vm0, %v683_v47  }
  0xe4   :  { %913 = vst.msk [vmem:[%s1547_s1 + $0x145] ss:$8 sm:$0xf0] %vm115_vm0, %v683_v47  }
  0xe6   :  { %v696_v48 = vpop.permute.xlu1 %695  }
  0xe7   :  { %914 = vst.msk [vmem:[%s1547_s1 + $0x185] ss:$8 sm:$0xf] %vm115_vm0, %v696_v48  }
  0xe8   :  { %915 = vst.msk [vmem:[%s1547_s1 + $0x185] ss:$8 sm:$0xf0] %vm115_vm0, %v696_v48   ;;  %v747_v49 = vpop.permute.xlu2 %746  }
  0xe9   :  { %922 = vst.msk [vmem:[%s1547_s1 + $0xc6] ss:$8 sm:$0xf] %vm115_vm0, %v747_v49   ;;  %v721_v50 = vpop.permute.xlu0 %720  }
  0xea   :  { %923 = vst.msk [vmem:[%s1547_s1 + $0xc6] ss:$8 sm:$0xf0] %vm115_vm0, %v747_v49  }
  0xeb   :  { %918 = vst.msk [vmem:[%s1547_s1 + $0x46] ss:$8 sm:$0xf] %vm115_vm0, %v721_v50  }
  0xec   :  { %919 = vst.msk [vmem:[%s1547_s1 + $0x46] ss:$8 sm:$0xf0] %vm115_vm0, %v721_v50  }
  0xee   :  { %v734_v51 = vpop.permute.xlu1 %733  }
  0xef   :  { %920 = vst.msk [vmem:[%s1547_s1 + $0x86] ss:$8 sm:$0xf] %vm115_vm0, %v734_v51  }
  0xf0   :  { %921 = vst.msk [vmem:[%s1547_s1 + $0x86] ss:$8 sm:$0xf0] %vm115_vm0, %v734_v51   ;;  %v786_v52 = vpop.permute.xlu2 %785  }
  0xf1   :  { %928 = vst.msk [vmem:[%s1547_s1 + $0x186] ss:$8 sm:$0xf] %vm115_vm0, %v786_v52   ;;  %v760_v53 = vpop.permute.xlu0 %759  }
  0xf2   :  { %929 = vst.msk [vmem:[%s1547_s1 + $0x186] ss:$8 sm:$0xf0] %vm115_vm0, %v786_v52  }
  0xf3   :  { %924 = vst.msk [vmem:[%s1547_s1 + $0x106] ss:$8 sm:$0xf] %vm115_vm0, %v760_v53  }
  0xf4   :  { %925 = vst.msk [vmem:[%s1547_s1 + $0x106] ss:$8 sm:$0xf0] %vm115_vm0, %v760_v53  }
  0xf6   :  { %v773_v54 = vpop.permute.xlu1 %772  }
  0xf7   :  { %926 = vst.msk [vmem:[%s1547_s1 + $0x146] ss:$8 sm:$0xf] %vm115_vm0, %v773_v54  }
  0xf8   :  { %927 = vst.msk [vmem:[%s1547_s1 + $0x146] ss:$8 sm:$0xf0] %vm115_vm0, %v773_v54  }

// kernel: network_forward.1
= control target key start
LH: loop header
LB: loop body
LE: loop exit
PB: predicated region body
PF: predicated region fallthrough
CT: control target
= control target key end

     0   :  { %vm236_vm0 = vcmask 1046528   ;;  %vm260_vm1 = vcmask 130048   ;;  %s8917_s0 = inlined_call_operand.vmem [shape: f32[98,16], index: 0, kind: input, shape index: {}]   ;;  %s8918_s1 = inlined_call_operand.vmem [shape: f32[16,16,24], index: 1, kind: input, shape index: {}]   ;;  %s8919_s2 = inlined_call_operand.vmem [shape: f32[1,24], index: 2, kind: input, shape index: {}]   ;;  %s8920_s3 = inlined_call_operand.vmem [shape: f32[36,24,12], index: 3, kind: input, shape index: {}]   ;;  %s8921_s4 = inlined_call_operand.vmem [shape: f32[1,12], index: 4, kind: input, shape index: {}]   ;;  %s8922_s5 = inlined_call_operand.vmem [shape: f32[16,12,120], index: 5, kind: input, shape index: {}]   ;;  %s8923_s6 = inlined_call_operand.vmem [shape: f32[1,120], index: 6, kind: input, shape index: {}]   ;;  %s8924_s7 = inlined_call_operand.vmem [shape: f32[120,60], index: 7, kind: input, shape index: {}]   ;;  %s8925_s8 = inlined_call_operand.vmem [shape: f32[1,60], index: 8, kind: input, shape index: {}]   ;;  %s8926_s9 = inlined_call_operand.vmem [shape: f32[60,10], index: 9, kind: input, shape index: {}]   ;;  %s8927_s10 = inlined_call_operand.vmem [shape: f32[1,10], index: 10, kind: input, shape index: {}]   ;;  %s8928_s11 = inlined_call_operand.hbm [shape: f32[2,10], index: 11, kind: output, shape index: {}]  }
   0x1   :  { %v55_v0 = vld [vmem:[%s8918_s1 + $0x18] sm:$0xff]  ;;  %v53_v1 = vld [vmem:[%s8918_s1 + $0x8] sm:$0xff]  ;;  %v54_v2 = vld [vmem:[%s8918_s1 + $0x10] sm:$0xff] }
   0x2   :  { %5476 = vmatpush.msra.mxu2 %v55_v0  ;;  %5478 = vmatpush.msra.mxu3 %v53_v1  ;;  %v52_v3 = vld [vmem:[%s8918_s1] sm:$0xff]  ;;  %v5591_v4 = vld [vmem:[%s8917_s0 + $0x48] sm:$0xff]  ;;  %v5596_v5 = vld [vmem:[%s8917_s0 + $0x50] sm:$0xff] }
   0x3   :  { %v254_v6 = vrot.slane %v5591_v4, 1  ;;  %v256_v7 = vrot.slane %v5596_v5, 1  ;;  %v57_v8 = vld [vmem:[%s8918_s1 + $0x28] sm:$0xff]  ;;  %v59_v9 = vld [vmem:[%s8918_s1 + $0x38] sm:$0xff]  ;;  %299 = vmatpush.msra.mxu0 %v55_v0  ;;  %376 = vmatpush.msra.mxu1 %v53_v1  ;;  %v56_v11 = vld [vmem:[%s8918_s1 + $0x20] sm:$0xff] }
   0x4   :  { %5477 = vmatpush.msra.mxu2 %v54_v2  ;;  %5479 = vmatpush.msra.mxu3 %v52_v3  ;;  %v5609_v10 = vld [vmem:[%s8917_s0 + $0x58] sm:$0xff]  ;;  %v5617_v12 = vld [vmem:[%s8917_s0] sm:$0xff]  ;;  %v58_v14 = vld [vmem:[%s8918_s1 + $0x30] sm:$0xff] }
   0x5   :  { %v5622_v13 = vsel %vm236_vm0, %v254_v6, %v256_v7  ;;  %4802 = vmatmul.msk.f32.vlgmr.msra.gmra.mxu3 %vm260_vm1, %v5591_v4  ;;  %v5632_v15 = vld [vmem:[%s8917_s0 + $0x8] sm:$0xff]  ;;  %v237_v17 = vrot.slane %v5617_v12, 1  ;;  %v67_v18 = vld [vmem:[%s8918_s1 + $0x78] sm:$0xff]  ;;  %v5645_v20 = vrot.slane %v5609_v10, 1  ;;  %300 = vmatpush.msra.mxu0 %v54_v2 }
   0x6   :  { %480 = vmatpush.msrb.mxu2 %v57_v8  ;;  %v65_v16 = vld [vmem:[%s8918_s1 + $0x68] sm:$0xff]  ;;  %547 = vmatpush.msrb.mxu3 %v59_v9  ;;  %v238_v19 = vrot.slane %v5632_v15, 1 }
   0x7   :  { %4790 = vmatmul.msk.f32.vlgmr.msra.gmra.mxu2 %vm260_vm1, %v5622_v13  ;;  %377 = vmatpush.msra.mxu1 %v52_v3 }
   0x8   :  { %481 = vmatpush.msrb.mxu2 %v56_v11  ;;  %548 = vmatpush.msrb.mxu3 %v58_v14  ;;  %v5648_v21 = vsel %vm236_vm0, %v237_v17, %v238_v19 }
   0xa   :  { %718 = vmatpush.msra.mxu2 %v65_v16  ;;  %783 = vmatpush.msra.mxu3 %v67_v18 }
   0xb   :  { %16 = vsyncpa [#allocation3], 0  ;;  %4781 = vmatmul.msk.f32.vlgmr.msra.gmra.mxu0 %vm260_vm1, %v5648_v21  ;;  %4793 = vmatmul.msk.f32.vlgmr.msra.gmra.mxu1 %vm260_vm1, %v5617_v12  ;;  %v5657_v22 = vld [vmem:[%s8917_s0 + $0x10] sm:$0xff]  ;;  %v5661_v23 = vsel %vm236_vm0, %v256_v7, %v5645_v20  ;;  %v5678_v26 = vld [vmem:[%s8917_s0 + $0x18] sm:$0xff]  ;;  %v417_v30 = vrot.slane %v5617_v12, 7  ;;  %v418_v31 = vrot.slane %v5632_v15, 7 }
   0xc   :  { %v240_v24 = vrot.slane %v5657_v22, 1  ;;  %v242_v27 = vrot.slane %v5678_v26, 1  ;;  %v63_v28 = vld [vmem:[%s8918_s1 + $0x58] sm:$0xff]  ;;  %v61_v29 = vld [vmem:[%s8918_s1 + $0x48] sm:$0xff]  ;;  %vm416_vm2 = vcmask 1040384   ;;  %v5703_v33 = vld [vmem:[%s8917_s0 + $0x20] sm:$0xff] }
   0xd   :  { %4803 = vmatmul.msk.f32.gmra.mxu3 %vm260_vm1, %v5596_v5  ;;  %612 = vmatpush.msrb.mxu0 %v63_v28  ;;  %v5706_v34 = vsel %vm416_vm2, %v417_v30, %v418_v31  ;;  %v244_v35 = vrot.slane %v5703_v33, 1  ;;  %v420_v36 = vrot.slane %v5657_v22, 7  ;;  %v5724_v38 = vld [vmem:[%s8917_s0 + $0x28] sm:$0xff]  ;;  %v422_v41 = vrot.slane %v5678_v26, 7  ;;  %v5745_v43 = vld [vmem:[%s8917_s0 + $0x30] sm:$0xff]  ;;  %v64_v46 = vld [vmem:[%s8918_s1 + $0x60] sm:$0xff] }
   0xe   :  { %v5669_v25 = vsel %vm236_vm0, %v238_v19, %v240_v24  ;;  %v5694_v32 = vsel %vm236_vm0, %v240_v24, %v242_v27  ;;  %665 = vmatpush.msrb.mxu1 %v61_v29  ;;  %v246_v40 = vrot.slane %v5724_v38, 1  ;;  %v248_v45 = vrot.slane %v5745_v43, 1  ;;  %v66_v47 = vld [vmem:[%s8918_s1 + $0x70] sm:$0xff]  ;;  %719 = vmatpush.msra.mxu2 %v64_v46  ;;  %v5772_v50 = vld [vmem:[%s8917_s0 + $0x38] sm:$0xff]  ;;  %v5793_v55 = vld [vmem:[%s8917_s0 + $0x40] sm:$0xff]  ;;  %s5515_s30 = smov [#allocation2]  }
   0xf   :  { %4791 = vmatmul.msk.f32.gmra.mxu2 %vm260_vm1, %v5661_v23  ;;  %v5715_v37 = vsel %vm236_vm0, %v242_v27, %v244_v35  ;;  %v5727_v39 = vsel %vm416_vm2, %v418_v31, %v420_v36  ;;  %v5748_v44 = vsel %vm416_vm2, %v420_v36, %v422_v41  ;;  %v424_v48 = vrot.slane %v5703_v33, 7  ;;  %784 = vmatpush.msra.mxu3 %v66_v47  ;;  %v62_v58 = vld [vmem:[%s8918_s1 + $0x50] sm:$0xff]  ;;  %v60_v59 = vld [vmem:[%s8918_s1 + $0x40] sm:$0xff]  ;;  %v73_v8 = vld [vmem:[%s8918_s1 + $0xa8] sm:$0xff] }
  0x10   :  { %v5736_v42 = vsel %vm236_vm0, %v244_v35, %v246_v40  ;;  %v5763_v49 = vsel %vm236_vm0, %v246_v40, %v248_v45  ;;  %v250_v52 = vrot.slane %v5772_v50, 1  ;;  %v426_v53 = vrot.slane %v5724_v38, 7  ;;  %613 = vmatpush.msrb.mxu0 %v62_v58  ;;  %666 = vmatpush.msrb.mxu1 %v60_v59  ;;  %v75_v9 = vld [vmem:[%s8918_s1 + $0xb8] sm:$0xff]  ;;  %v69_v16 = vld [vmem:[%s8918_s1 + $0x88] sm:$0xff]  ;;  %v5900_v24 = vld [vmem:[%s8917_s0 + $0x60] sm:$0x3] }
  0x11   :  { %v5775_v51 = vsel %vm416_vm2, %v422_v41, %v424_v48  ;;  %v252_v57 = vrot.slane %v5793_v55, 1  ;;  %v428_v60 = vrot.slane %v5745_v43, 7  ;;  %v430_v63 = vrot.slane %v5772_v50, 7  ;;  %v71_v11 = vld [vmem:[%s8918_s1 + $0x98] sm:$0xff]  ;;  %v72_v40 = vld [vmem:[%s8918_s1 + $0xa0] sm:$0xff]  ;;  %v74_v41 = vld [vmem:[%s8918_s1 + $0xb0] sm:$0xff] }
  0x12   :  { %v5784_v54 = vsel %vm236_vm0, %v248_v45, %v250_v52  ;;  %v5796_v56 = vsel %vm416_vm2, %v424_v48, %v426_v53  ;;  %v432_v2 = vrot.slane %v5793_v55, 7  ;;  %v436_v14 = vrot.slane %v5596_v5, 7  ;;  %860 = vmatpush.msra.mxu0 %v71_v11  ;;  %913 = vmatpush.msra.mxu1 %v69_v16 }
  0x13   :  { %4782 = vmatmul.msk.f32.gmra.mxu0 %vm260_vm1, %v5669_v25  ;;  %4794 = vmatmul.msk.f32.gmra.mxu1 %vm260_vm1, %v5632_v15  ;;  %v5811_v61 = vsel %vm236_vm0, %v250_v52, %v252_v57  ;;  %v5818_v62 = vsel %vm416_vm2, %v426_v53, %v428_v60  ;;  %v5828_v0 = vsel %vm236_vm0, %v252_v57, %v254_v6  ;;  %v434_v6 = vrot.slane %v5591_v4, 7  ;;  %v70_v53 = vld [vmem:[%s8918_s1 + $0x90] sm:$0xff]  ;;  %v68_v57 = vld [vmem:[%s8918_s1 + $0x80] sm:$0xff] }
  0x14   :  { %v5835_v1 = vsel %vm416_vm2, %v428_v60, %v430_v63  ;;  %v5847_v3 = vsel %vm416_vm2, %v430_v63, %v432_v2  ;;  %v438_v18 = vrot.slane %v5609_v10, 7  ;;  %v440_v27 = vrot.slane %v5900_v24, 7  ;;  %861 = vmatpush.msra.mxu0 %v70_v53  ;;  %914 = vmatpush.msra.mxu1 %v68_v57 }
  0x15   :  { %4804 = vmatmul.msk.f32.gmra.mxu3 %vm260_vm1, %v5609_v10  ;;  %v5859_v7 = vsel %vm416_vm2, %v432_v2, %v434_v6  ;;  %v5883_v17 = vsel %vm416_vm2, %v434_v6, %v436_v14  ;;  %vm1399_vm3 = vcmask 195584   ;;  %vm1534_vm4 = vcmask 1045504  }
  0x16   :  { %v5895_v19 = vsel %vm416_vm2, %v436_v14, %v438_v18  ;;  %v5912_v28 = vsel %vm416_vm2, %v438_v18, %v440_v27  ;;  %vm1852_vm5 = vcmask 1041408   ;;  %vm3638_vm6 = vcmask 1043456  }
  0x17   :  { %4792 = vmatmul.msk.f32.gmra.mxu2 %vm260_vm1, %v5645_v20  ;;  %vm3623_vm7 = vcmask 97280   ;;  %vm3810_vm8 = vcmask 1044480   ;;  %vm4354_vm9 = vcmask 1042432   ;;  %vm4624_vm10 = vcmask 982016  }
  0x18   :  { %vm4703_vm11 = vcmask 490496   ;;  %vm4761_vm12 = vcmask 73728   ;;  %vm4763_vm13 = vcmask 74753  }
  0x1b   :  { %4783 = vmatmul.msk.f32.gmra.mxu0 %vm260_vm1, %v5694_v32  ;;  %4795 = vmatmul.msk.f32.gmra.mxu1 %vm260_vm1, %v5657_v22 }
  0x1d   :  { %4817 = vmatmul.msk.f32.vlgmr.msrb.gmra.mxu3 %vm260_vm1, %v5632_v15 }
  0x1e   :  { %1031 = vmatpush.msrb.mxu3 %v75_v9 }
  0x1f   :  { %4805 = vmatmul.msk.f32.vlgmr.msrb.gmra.mxu2 %vm260_vm1, %v5706_v34 }
  0x20   :  { %966 = vmatpush.msrb.mxu2 %v73_v8  ;;  %1032 = vmatpush.msrb.mxu3 %v74_v41 }
  0x22   :  { %967 = vmatpush.msrb.mxu2 %v72_v40 }
  0x23   :  { %4784 = vmatmul.msk.f32.gmra.mxu0 %vm260_vm1, %v5715_v37  ;;  %4796 = vmatmul.msk.f32.gmra.mxu1 %vm260_vm1, %v5678_v26 }
  0x25   :  { %4818 = vmatmul.msk.f32.gmra.mxu3 %vm260_vm1, %v5657_v22 }
  0x27   :  { %4806 = vmatmul.msk.f32.gmra.mxu2 %vm260_vm1, %v5727_v39 }
  0x2b   :  { %4785 = vmatmul.msk.f32.gmra.mxu0 %vm260_vm1, %v5736_v42  ;;  %4797 = vmatmul.msk.f32.gmra.mxu1 %vm260_vm1, %v5703_v33 }
  0x2d   :  { %4819 = vmatmul.msk.f32.gmra.mxu3 %vm260_vm1, %v5678_v26 }
  0x2f   :  { %4807 = vmatmul.msk.f32.gmra.mxu2 %vm260_vm1, %v5748_v44 }
  0x33   :  { %4786 = vmatmul.msk.f32.gmra.mxu0 %vm260_vm1, %v5763_v49  ;;  %4798 = vmatmul.msk.f32.gmra.mxu1 %vm260_vm1, %v5724_v38 }
  0x35   :  { %4820 = vmatmul.msk.f32.gmra.mxu3 %vm260_vm1, %v5703_v33 }
  0x37   :  { %4808 = vmatmul.msk.f32.gmra.mxu2 %vm260_vm1, %v5775_v51 }
  0x3b   :  { %4787 = vmatmul.msk.f32.gmra.mxu0 %vm260_vm1, %v5784_v54  ;;  %4799 = vmatmul.msk.f32.gmra.mxu1 %vm260_vm1, %v5745_v43 }
  0x3d   :  { %4821 = vmatmul.msk.f32.gmra.mxu3 %vm260_vm1, %v5724_v38 }
  0x3f   :  { %4809 = vmatmul.msk.f32.gmra.mxu2 %vm260_vm1, %v5796_v56 }
  0x43   :  { %4788 = vmatmul.msk.f32.gmra.mxu0 %vm260_vm1, %v5811_v61  ;;  %4800 = vmatmul.msk.f32.gmra.mxu1 %vm260_vm1, %v5772_v50 }
  0x45   :  { %4822 = vmatmul.msk.f32.gmra.mxu3 %vm260_vm1, %v5745_v43 }
  0x47   :  { %4810 = vmatmul.msk.f32.gmra.mxu2 %vm260_vm1, %v5818_v62 }
  0x4b   :  { %4789 = vmatmul.msk.f32.gmra.mxu0 %vm260_vm1, %v5828_v0  ;;  %4801 = vmatmul.msk.f32.gmra.mxu1 %vm260_vm1, %v5793_v55 }
  0x4d   :  { %4823 = vmatmul.msk.f32.gmra.mxu3 %vm260_vm1, %v5772_v50 }
  0x4f   :  { %4811 = vmatmul.msk.f32.gmra.mxu2 %vm260_vm1, %v5835_v1 }
  0x53   :  { %4829 = vmatmul.msk.f32.vlgmr.msrb.gmra.mxu0 %vm260_vm1, %v5648_v21  ;;  %4841 = vmatmul.msk.f32.vlgmr.msrb.gmra.mxu1 %vm260_vm1, %v5617_v12 }
  0x55   :  { %4824 = vmatmul.msk.f32.gmra.mxu3 %vm260_vm1, %v5793_v55 }
  0x57   :  { %4812 = vmatmul.msk.f32.gmra.mxu2 %vm260_vm1, %v5847_v3 }
  0x5b   :  { %4830 = vmatmul.msk.f32.gmra.mxu0 %vm260_vm1, %v5669_v25  ;;  %4842 = vmatmul.msk.f32.gmra.mxu1 %vm260_vm1, %v5632_v15 }
  0x5d   :  { %4825 = vmatmul.msk.f32.gmra.mxu3 %vm260_vm1, %v5591_v4 }
  0x5f   :  { %4813 = vmatmul.msk.f32.gmra.mxu2 %vm260_vm1, %v5859_v7 }
  0x63   :  { %4831 = vmatmul.msk.f32.gmra.mxu0 %vm260_vm1, %v5694_v32  ;;  %4843 = vmatmul.msk.f32.gmra.mxu1 %vm260_vm1, %v5657_v22 }
  0x65   :  { %4826 = vmatmul.msk.f32.gmra.mxu3 %vm260_vm1, %v5596_v5 }
  0x67   :  { %4814 = vmatmul.msk.f32.gmra.mxu2 %vm260_vm1, %v5883_v17 }
  0x6b   :  { %4832 = vmatmul.msk.f32.gmra.mxu0 %vm260_vm1, %v5715_v37  ;;  %4844 = vmatmul.msk.f32.gmra.mxu1 %vm260_vm1, %v5678_v26 }
  0x6d   :  { %4827 = vmatmul.msk.f32.gmra.mxu3 %vm260_vm1, %v5609_v10 }
  0x6f   :  { %4815 = vmatmul.msk.f32.gmra.mxu2 %vm260_vm1, %v5895_v19 }
  0x73   :  { %4833 = vmatmul.msk.f32.gmra.mxu0 %vm260_vm1, %v5736_v42  ;;  %4845 = vmatmul.msk.f32.gmra.mxu1 %vm260_vm1, %v5703_v33 }
  0x75   :  { %4828 = vmatmul.msk.f32.gmra.mxu3 %vm260_vm1, %v5900_v24 }
  0x77   :  { %4816 = vmatmul.msk.f32.gmra.mxu2 %vm260_vm1, %v5912_v28 }
  0x7b   :  { %4834 = vmatmul.msk.f32.gmra.mxu0 %vm260_vm1, %v5763_v49  ;;  %4846 = vmatmul.msk.f32.gmra.mxu1 %vm260_vm1, %v5724_v38 }
  0x7d   :  { %4865 = vmatmul.msk.f32.vlgmr.msra.gmra.mxu3 %vm260_vm1, %v5632_v15 }
  0x7f   :  { %4853 = vmatmul.msk.f32.vlgmr.msra.gmra.mxu2 %vm260_vm1, %v5706_v34 }
  0x83   :  { %4835 = vmatmul.msk.f32.gmra.mxu0 %vm260_vm1, %v5784_v54  ;;  %4847 = vmatmul.msk.f32.gmra.mxu1 %vm260_vm1, %v5745_v43 }
  0x85   :  { %4866 = vmatmul.msk.f32.gmra.mxu3 %vm260_vm1, %v5657_v22 }
  0x87   :  { %4854 = vmatmul.msk.f32.gmra.mxu2 %vm260_vm1, %v5727_v39 }
  0x88   :  { %v302_v29 = vpop.f32.mrf.mxu0  ;;  %v379_v30 = vpop.f32.mrf.mxu1 }
  0x89   :  { %v406_v31 = vpop.f32.mrf.mxu3  ;;  %v380_v6 = vadd.f32 %v379_v30, %v302_v29 }
  0x8a   :  { %v329_v35 = vpop.f32.mrf.mxu2 }
  0x8b   :  { %v5934_v36 = vadd.f32 %v406_v31, %v329_v35  ;;  %4836 = vmatmul.msk.f32.gmra.mxu0 %vm260_vm1, %v5811_v61  ;;  %4848 = vmatmul.msk.f32.gmra.mxu1 %vm260_vm1, %v5772_v50 }
  0x8d   :  { %4867 = vmatmul.msk.f32.gmra.mxu3 %vm260_vm1, %v5678_v26 }
  0x8f   :  { %4855 = vmatmul.msk.f32.gmra.mxu2 %vm260_vm1, %v5748_v44 }
  0x90   :  { %v305_v45 = vpop.f32.mrf.mxu0  ;;  %v382_v47 = vpop.f32.mrf.mxu1 }
  0x91   :  { %v409_v46 = vpop.f32.mrf.mxu3  ;;  %v383_v27 = vadd.f32 %v382_v47, %v305_v45 }
  0x92   :  { %v332_v48 = vpop.f32.mrf.mxu2 }
  0x93   :  { %v5950_v52 = vadd.f32 %v409_v46, %v332_v48  ;;  %4837 = vmatmul.msk.f32.gmra.mxu0 %vm260_vm1, %v5828_v0  ;;  %4849 = vmatmul.msk.f32.gmra.mxu1 %vm260_vm1, %v5793_v55 }
  0x95   :  { %4868 = vmatmul.msk.f32.gmra.mxu3 %vm260_vm1, %v5703_v33 }
  0x97   :  { %4856 = vmatmul.msk.f32.gmra.mxu2 %vm260_vm1, %v5775_v51 }
  0x98   :  { %v308_v60 = vpop.f32.mrf.mxu0  ;;  %v385_v2 = vpop.f32.mrf.mxu1 }
  0x99   :  { %v412_v58 = vpop.f32.mrf.mxu3  ;;  %v386_v41 = vadd.f32 %v385_v2, %v308_v60 }
  0x9a   :  { %v335_v59 = vpop.f32.mrf.mxu2 }
  0x9b   :  { %v5966_v63 = vadd.f32 %v412_v58, %v335_v59  ;;  %4838 = vmatmul.msk.f32.gmra.mxu0 %vm260_vm1, %v5622_v13  ;;  %4850 = vmatmul.msk.f32.gmra.mxu1 %vm260_vm1, %v5591_v4 }
  0x9d   :  { %4869 = vmatmul.msk.f32.gmra.mxu3 %vm260_vm1, %v5724_v38 }
  0x9f   :  { %4857 = vmatmul.msk.f32.gmra.mxu2 %vm260_vm1, %v5796_v56 }
  0xa0   :  { %v311_v14 = vpop.f32.mrf.mxu0  ;;  %v388_v18 = vpop.f32.mrf.mxu1 }
  0xa1   :  { %v550_v8 = vpop.f32.mrf.mxu3  ;;  %v389_v57 = vadd.f32 %v388_v18, %v311_v14  ;;  %v83_v14 = vld [vmem:[%s8918_s1 + $0xf8] sm:$0xff] }
  0xa2   :  { %v483_v9 = vpop.f32.mrf.mxu2  ;;  %1279 = vmatpush.msra.mxu3 %v83_v14 }
  0xa3   :  { %v519_v11 = vadd.f32 %v483_v9, %v380_v6  ;;  %4839 = vmatmul.msk.f32.gmra.mxu0 %vm260_vm1, %v5661_v23  ;;  %4851 = vmatmul.msk.f32.gmra.mxu1 %vm260_vm1, %v5596_v5 }
  0xa5   :  { %v5980_v16 = vadd.f32 %v550_v8, %v519_v11  ;;  %4870 = vmatmul.msk.f32.gmra.mxu3 %vm260_vm1, %v5745_v43  ;;  %v81_v11 = vld [vmem:[%s8918_s1 + $0xe8] sm:$0xff] }
  0xa6   :  { %1214 = vmatpush.msra.mxu2 %v81_v11 }
  0xa7   :  { %4858 = vmatmul.msk.f32.gmra.mxu2 %vm260_vm1, %v5818_v62 }
  0xa8   :  { %v314_v40 = vpop.f32.mrf.mxu0  ;;  %v391_v45 = vpop.f32.mrf.mxu1 }
  0xa9   :  { %v553_v29 = vpop.f32.mrf.mxu3  ;;  %v392_v9 = vadd.f32 %v391_v45, %v314_v40  ;;  %v77_v40 = vld [vmem:[%s8918_s1 + $0xc8] sm:$0xff] }
  0xaa   :  { %v486_v30 = vpop.f32.mrf.mxu2  ;;  %1161 = vmatpush.msrb.mxu1 %v77_v40 }
  0xab   :  { %v520_v31 = vadd.f32 %v486_v30, %v383_v27  ;;  %4840 = vmatmul.msk.f32.gmra.mxu0 %vm260_vm1, %v5645_v20  ;;  %4852 = vmatmul.msk.f32.gmra.mxu1 %vm260_vm1, %v5609_v10 }
  0xad   :  { %v5990_v35 = vadd.f32 %v553_v29, %v520_v31  ;;  %4871 = vmatmul.msk.f32.gmra.mxu3 %vm260_vm1, %v5772_v50 }
  0xaf   :  { %4859 = vmatmul.msk.f32.gmra.mxu2 %vm260_vm1, %v5835_v1 }
  0xb0   :  { %v317_v58 = vpop.f32.mrf.mxu0  ;;  %v394_v60 = vpop.f32.mrf.mxu1 }
  0xb1   :  { %v556_v46 = vpop.f32.mrf.mxu3 }
  0xb2   :  { %v489_v47 = vpop.f32.mrf.mxu2 }
  0xb3   :  { %v521_v48 = vadd.f32 %v489_v47, %v386_v41  ;;  %4877 = vmatmul.msk.f32.vlgmr.msra.gmra.mxu0 %vm260_vm1, %v5648_v21  ;;  %4889 = vmatmul.msk.f32.vlgmr.msra.gmra.mxu1 %vm260_vm1, %v5617_v12  ;;  %v79_v41 = vld [vmem:[%s8918_s1 + $0xd8] sm:$0xff] }
  0xb4   :  { %1108 = vmatpush.msrb.mxu0 %v79_v41 }
  0xb5   :  { %v6000_v53 = vadd.f32 %v556_v46, %v521_v48  ;;  %4872 = vmatmul.msk.f32.gmra.mxu3 %vm260_vm1, %v5793_v55  ;;  %v395_v46 = vadd.f32 %v394_v60, %v317_v58 }
  0xb7   :  { %4860 = vmatmul.msk.f32.gmra.mxu2 %vm260_vm1, %v5847_v3 }
  0xb8   :  { %v320_v30 = vpop.f32.mrf.mxu0  ;;  %v397_v31 = vpop.f32.mrf.mxu1 }
  0xb9   :  { %v559_v59 = vpop.f32.mrf.mxu3  ;;  %v398_v58 = vadd.f32 %v397_v31, %v320_v30 }
  0xba   :  { %v492_v2 = vpop.f32.mrf.mxu2 }
  0xbb   :  { %v522_v6 = vadd.f32 %v492_v2, %v389_v57  ;;  %4878 = vmatmul.msk.f32.gmra.mxu0 %vm260_vm1, %v5669_v25  ;;  %4890 = vmatmul.msk.f32.gmra.mxu1 %vm260_vm1, %v5632_v15 }
  0xbd   :  { %v6010_v8 = vadd.f32 %v559_v59, %v522_v6  ;;  %4873 = vmatmul.msk.f32.gmra.mxu3 %vm260_vm1, %v5591_v4 }
  0xbf   :  { %4861 = vmatmul.msk.f32.gmra.mxu2 %vm260_vm1, %v5859_v7 }
  0xc0   :  { %v323_v2 = vpop.f32.mrf.mxu0  ;;  %v400_v6 = vpop.f32.mrf.mxu1 }
  0xc1   :  { %v562_v18 = vpop.f32.mrf.mxu3 }
  0xc2   :  { %v495_v27 = vpop.f32.mrf.mxu2 }
  0xc3   :  { %v523_v29 = vadd.f32 %v495_v27, %v392_v9  ;;  %4879 = vmatmul.msk.f32.gmra.mxu0 %vm260_vm1, %v5694_v32  ;;  %4891 = vmatmul.msk.f32.gmra.mxu1 %vm260_vm1, %v5657_v22 }
  0xc5   :  { %v6032_v45 = vadd.f32 %v562_v18, %v523_v29  ;;  %4874 = vmatmul.msk.f32.gmra.mxu3 %vm260_vm1, %v5596_v5  ;;  %v401_v18 = vadd.f32 %v400_v6, %v323_v2 }
  0xc7   :  { %4862 = vmatmul.msk.f32.gmra.mxu2 %vm260_vm1, %v5883_v17 }
  0xc8   :  { %v326_v27 = vpop.f32.mrf.mxu0  ;;  %v403_v29 = vpop.f32.mrf.mxu1 }
  0xc9   :  { %v565_v47 = vpop.f32.mrf.mxu3 }
  0xca   :  { %v498_v48 = vpop.f32.mrf.mxu2 }
  0xcb   :  { %v524_v57 = vadd.f32 %v498_v48, %v395_v46  ;;  %4880 = vmatmul.msk.f32.gmra.mxu0 %vm260_vm1, %v5715_v37  ;;  %4892 = vmatmul.msk.f32.gmra.mxu1 %vm260_vm1, %v5678_v26  ;;  %v404_v46 = vadd.f32 %v403_v29, %v326_v27 }
  0xcd   :  { %v6042_v59 = vadd.f32 %v565_v47, %v524_v57  ;;  %4875 = vmatmul.msk.f32.gmra.mxu3 %vm260_vm1, %v5609_v10 }
  0xcf   :  { %4863 = vmatmul.msk.f32.gmra.mxu2 %vm260_vm1, %v5895_v19 }
  0xd0   :  { %v615_v47 = vpop.f32.mrf.mxu0  ;;  %v668_v48 = vpop.f32.mrf.mxu1 }
  0xd1   :  { %v568_v60 = vpop.f32.mrf.mxu3  ;;  %v669_v57 = vadd.f32 %v668_v48, %v615_v47  ;;  %v82_v47 = vld [vmem:[%s8918_s1 + $0xf0] sm:$0xff] }
  0xd2   :  { %v501_v9 = vpop.f32.mrf.mxu2  ;;  %1280 = vmatpush.msra.mxu3 %v82_v47 }
  0xd3   :  { %v525_v11 = vadd.f32 %v501_v9, %v398_v58  ;;  %4881 = vmatmul.msk.f32.gmra.mxu0 %vm260_vm1, %v5736_v42  ;;  %4893 = vmatmul.msk.f32.gmra.mxu1 %vm260_vm1, %v5703_v33 }
  0xd5   :  { %v6052_v14 = vadd.f32 %v568_v60, %v525_v11  ;;  %4876 = vmatmul.msk.f32.gmra.mxu3 %vm260_vm1, %v5900_v24 }
  0xd7   :  { %4864 = vmatmul.msk.f32.gmra.mxu2 %vm260_vm1, %v5912_v28 }
  0xd8   :  { %v618_v9 = vpop.f32.mrf.mxu0  ;;  %v671_v11 = vpop.f32.mrf.mxu1 }
  0xd9   :  { %v571_v30 = vpop.f32.mrf.mxu3 }
  0xda   :  { %v504_v31 = vpop.f32.mrf.mxu2 }
  0xdb   :  { %v526_v41 = vadd.f32 %v504_v31, %v401_v18  ;;  %4882 = vmatmul.msk.f32.gmra.mxu0 %vm260_vm1, %v5763_v49  ;;  %4894 = vmatmul.msk.f32.gmra.mxu1 %vm260_vm1, %v5724_v38  ;;  %v672_v18 = vadd.f32 %v671_v11, %v618_v9  ;;  %v78_v9 = vld [vmem:[%s8918_s1 + $0xd0] sm:$0xff]  ;;  %v76_v11 = vld [vmem:[%s8918_s1 + $0xc0] sm:$0xff] }
  0xdc   :  { %1109 = vmatpush.msrb.mxu0 %v78_v9  ;;  %1162 = vmatpush.msrb.mxu1 %v76_v11 }
  0xdd   :  { %v6062_v40 = vadd.f32 %v571_v30, %v526_v41  ;;  %4913 = vmatmul.msk.f32.vlgmr.msrb.gmra.mxu3 %vm260_vm1, %v5632_v15  ;;  %v80_v41 = vld [vmem:[%s8918_s1 + $0xe0] sm:$0xff]  ;;  %s4770_s1 = sshll.u32 %s5515_s30, 4  ;;  %s4771_s1 = int_to_ptr.vmem [resolvable:$true] %s4770_s1 }
  0xde   :  { %1215 = vmatpush.msra.mxu2 %v80_v41 }
  0xdf   :  { %9016 = vst [vmem:[#allocation5_spill] sm:$0xff] %v6062_v40  ;;  %4901 = vmatmul.msk.f32.vlgmr.msrb.gmra.mxu2 %vm260_vm1, %v5706_v34  ;;  %v101_v40 = vld [vmem:[%s8920_s3 + $0x88] sm:$0xff] }
  0xe1   :  { %v574_v2 = vpop.f32.mrf.mxu3 }
  0xe2   :  { %v507_v6 = vpop.f32.mrf.mxu2 }
  0xe3   :  { %v527_v58 = vadd.f32 %v507_v6, %v404_v46  ;;  %4883 = vmatmul.msk.f32.gmra.mxu0 %vm260_vm1, %v5784_v54  ;;  %4895 = vmatmul.msk.f32.gmra.mxu1 %vm260_vm1, %v5745_v43  ;;  %v621_v46 = vpop.f32.mrf.mxu0 }
  0xe5   :  { %v6072_v60 = vadd.f32 %v574_v2, %v527_v58  ;;  %4914 = vmatmul.msk.f32.gmra.mxu3 %vm260_vm1, %v5657_v22 }
  0xe7   :  { %9017 = vst [vmem:[#allocation6_spill] sm:$0xff] %v6072_v60  ;;  %4902 = vmatmul.msk.f32.gmra.mxu2 %vm260_vm1, %v5727_v39 }
  0xe9   :  { %v577_v27 = vpop.f32.mrf.mxu3 }
  0xea   :  { %v510_v29 = vpop.f32.mrf.mxu2 }
  0xeb   :  { %v528_v30 = vadd.f32 %v510_v29, %v5934_v36  ;;  %4884 = vmatmul.msk.f32.gmra.mxu0 %vm260_vm1, %v5811_v61  ;;  %4896 = vmatmul.msk.f32.gmra.mxu1 %vm260_vm1, %v5772_v50  ;;  %v674_v36 = vpop.f32.mrf.mxu1 }
  0xec   :  { %v675_v48 = vadd.f32 %v674_v36, %v621_v46 }
  0xed   :  { %v6083_v31 = vadd.f32 %v577_v27, %v528_v30  ;;  %4915 = vmatmul.msk.f32.gmra.mxu3 %vm260_vm1, %v5678_v26 }
  0xef   :  { %9018 = vst [vmem:[#allocation7_spill] sm:$0xff] %v6083_v31  ;;  %4903 = vmatmul.msk.f32.gmra.mxu2 %vm260_vm1, %v5748_v44 }
  0xf1   :  { %v580_v2 = vpop.f32.mrf.mxu3 }
  0xf2   :  { %v513_v6 = vpop.f32.mrf.mxu2 }
  0xf3   :  { %v529_v58 = vadd.f32 %v513_v6, %v5950_v52  ;;  %4885 = vmatmul.msk.f32.gmra.mxu0 %vm260_vm1, %v5828_v0  ;;  %4897 = vmatmul.msk.f32.gmra.mxu1 %vm260_vm1, %v5793_v55  ;;  %v624_v52 = vpop.f32.mrf.mxu0  ;;  %v677_v29 = vpop.f32.mrf.mxu1 }
  0xf4   :  { %v678_v30 = vadd.f32 %v677_v29, %v624_v52 }
  0xf5   :  { %v6106_v27 = vadd.f32 %v580_v2, %v529_v58  ;;  %4916 = vmatmul.msk.f32.gmra.mxu3 %vm260_vm1, %v5703_v33 }
  0xf7   :  { %9019 = vst [vmem:[#allocation8_spill] sm:$0xff] %v6106_v27  ;;  %4904 = vmatmul.msk.f32.gmra.mxu2 %vm260_vm1, %v5775_v51 }
  0xf9   :  { %v583_v41 = vpop.f32.mrf.mxu3 }
  0xfa   :  { %v516_v46 = vpop.f32.mrf.mxu2 }
  0xfb   :  { %v530_v36 = vadd.f32 %v516_v46, %v5966_v63  ;;  %4886 = vmatmul.msk.f32.gmra.mxu0 %vm260_vm1, %v5622_v13  ;;  %4898 = vmatmul.msk.f32.gmra.mxu1 %vm260_vm1, %v5591_v4  ;;  %v627_v2 = vpop.f32.mrf.mxu0  ;;  %v680_v6 = vpop.f32.mrf.mxu1 }
  0xfc   :  { %v681_v58 = vadd.f32 %v680_v6, %v627_v2 }
  0xfd   :  { %v6117_v47 = vadd.f32 %v583_v41, %v530_v36  ;;  %4917 = vmatmul.msk.f32.gmra.mxu3 %vm260_vm1, %v5724_v38 }
  0xff   :  { %9020 = vst [vmem:[#allocation9_spill] sm:$0xff] %v6117_v47  ;;  %4905 = vmatmul.msk.f32.gmra.mxu2 %vm260_vm1, %v5796_v56  ;;  %v87_v47 = vld [vmem:[%s8920_s3 + $0x18] sm:$0xff] }
 0x101   :  { %v786_v9 = vpop.f32.mrf.mxu3 }
 0x102   :  { %v721_v11 = vpop.f32.mrf.mxu2 }
 0x103   :  { %v757_v63 = vadd.f32 %v721_v11, %v669_v57  ;;  %4887 = vmatmul.msk.f32.gmra.mxu0 %vm260_vm1, %v5661_v23  ;;  %4899 = vmatmul.msk.f32.gmra.mxu1 %vm260_vm1, %v5596_v5  ;;  %v630_v41 = vpop.f32.mrf.mxu0  ;;  %v683_v46 = vpop.f32.mrf.mxu1 }
 0x104   :  { %v684_v57 = vadd.f32 %v683_v46, %v630_v41 }
 0x105   :  { %v6127_v52 = vadd.f32 %v786_v9, %v757_v63  ;;  %4918 = vmatmul.msk.f32.gmra.mxu3 %vm260_vm1, %v5745_v43 }
 0x107   :  { %4906 = vmatmul.msk.f32.gmra.mxu2 %vm260_vm1, %v5818_v62 }
 0x109   :  { %v789_v36 = vpop.f32.mrf.mxu3 }
 0x10a   :  { %v724_v2 = vpop.f32.mrf.mxu2 }
 0x10b   :  { %v758_v6 = vadd.f32 %v724_v2, %v672_v18  ;;  %4888 = vmatmul.msk.f32.gmra.mxu0 %vm260_vm1, %v5645_v20  ;;  %4900 = vmatmul.msk.f32.gmra.mxu1 %vm260_vm1, %v5609_v10  ;;  %v633_v63 = vpop.f32.mrf.mxu0  ;;  %v686_v41 = vpop.f32.mrf.mxu1 }
 0x10c   :  { %v687_v18 = vadd.f32 %v686_v41, %v633_v63 }
 0x10d   :  { %v6139_v9 = vadd.f32 %v789_v36, %v758_v6  ;;  %4919 = vmatmul.msk.f32.gmra.mxu3 %vm260_vm1, %v5772_v50 }
 0x10f   :  { %4907 = vmatmul.msk.f32.gmra.mxu2 %vm260_vm1, %v5835_v1 }
 0x111   :  { %v792_v46 = vpop.f32.mrf.mxu3 }
 0x112   :  { %v727_v2 = vpop.f32.mrf.mxu2 }
 0x113   :  { %v759_v29 = vadd.f32 %v727_v2, %v675_v48  ;;  %4925 = vmatmul.msk.f32.vlgmr.msrb.gmra.mxu0 %vm260_vm1, %v5648_v21  ;;  %4937 = vmatmul.msk.f32.vlgmr.msrb.gmra.mxu1 %vm260_vm1, %v5617_v12  ;;  %v636_v63 = vpop.f32.mrf.mxu0  ;;  %v689_v41 = vpop.f32.mrf.mxu1 }
 0x114   :  { %v690_v48 = vadd.f32 %v689_v41, %v636_v63 }
 0x115   :  { %v6151_v36 = vadd.f32 %v792_v46, %v759_v29  ;;  %4920 = vmatmul.msk.f32.gmra.mxu3 %vm260_vm1, %v5793_v55 }
 0x117   :  { %4908 = vmatmul.msk.f32.gmra.mxu2 %vm260_vm1, %v5847_v3 }
 0x119   :  { %v795_v2 = vpop.f32.mrf.mxu3 }
 0x11a   :  { %v730_v11 = vpop.f32.mrf.mxu2 }
 0x11b   :  { %v760_v21 = vadd.f32 %v730_v11, %v678_v30  ;;  %4926 = vmatmul.msk.f32.gmra.mxu0 %vm260_vm1, %v5669_v25  ;;  %4938 = vmatmul.msk.f32.gmra.mxu1 %vm260_vm1, %v5632_v15  ;;  %v639_v46 = vpop.f32.mrf.mxu0  ;;  %v692_v63 = vpop.f32.mrf.mxu1 }
 0x11c   :  { %v693_v30 = vadd.f32 %v692_v63, %v639_v46 }
 0x11d   :  { %v6163_v12 = vadd.f32 %v795_v2, %v760_v21  ;;  %4921 = vmatmul.msk.f32.gmra.mxu3 %vm260_vm1, %v5591_v4 }
 0x11f   :  { %4909 = vmatmul.msk.f32.gmra.mxu2 %vm260_vm1, %v5859_v7 }
 0x121   :  { %v798_v11 = vpop.f32.mrf.mxu3 }
 0x122   :  { %v733_v41 = vpop.f32.mrf.mxu2 }
 0x123   :  { %v761_v25 = vadd.f32 %v733_v41, %v681_v58  ;;  %4927 = vmatmul.msk.f32.gmra.mxu0 %vm260_vm1, %v5694_v32  ;;  %4939 = vmatmul.msk.f32.gmra.mxu1 %vm260_vm1, %v5657_v22  ;;  %v642_v46 = vpop.f32.mrf.mxu0  ;;  %v695_v63 = vpop.f32.mrf.mxu1 }
 0x124   :  { %v696_v58 = vadd.f32 %v695_v63, %v642_v46 }
 0x125   :  { %v6175_v2 = vadd.f32 %v798_v11, %v761_v25  ;;  %4922 = vmatmul.msk.f32.gmra.mxu3 %vm260_vm1, %v5596_v5 }
 0x127   :  { %4910 = vmatmul.msk.f32.gmra.mxu2 %vm260_vm1, %v5883_v17 }
 0x129   :  { %v801_v41 = vpop.f32.mrf.mxu3 }
 0x12a   :  { %v736_v29 = vpop.f32.mrf.mxu2 }
 0x12b   :  { %v762_v32 = vadd.f32 %v736_v29, %v684_v57  ;;  %4928 = vmatmul.msk.f32.gmra.mxu0 %vm260_vm1, %v5715_v37  ;;  %4940 = vmatmul.msk.f32.gmra.mxu1 %vm260_vm1, %v5678_v26  ;;  %v645_v46 = vpop.f32.mrf.mxu0  ;;  %v698_v63 = vpop.f32.mrf.mxu1 }
 0x12c   :  { %v699_v57 = vadd.f32 %v698_v63, %v645_v46 }
 0x12d   :  { %v6187_v11 = vadd.f32 %v801_v41, %v762_v32  ;;  %4923 = vmatmul.msk.f32.gmra.mxu3 %vm260_vm1, %v5609_v10 }
 0x12f   :  { %4911 = vmatmul.msk.f32.gmra.mxu2 %vm260_vm1, %v5895_v19 }
 0x131   :  { %v804_v29 = vpop.f32.mrf.mxu3 }
 0x132   :  { %v739_v21 = vpop.f32.mrf.mxu2 }
 0x133   :  { %v763_v37 = vadd.f32 %v739_v21, %v687_v18  ;;  %4929 = vmatmul.msk.f32.gmra.mxu0 %vm260_vm1, %v5736_v42  ;;  %4941 = vmatmul.msk.f32.gmra.mxu1 %vm260_vm1, %v5703_v33  ;;  %v648_v46 = vpop.f32.mrf.mxu0  ;;  %v701_v63 = vpop.f32.mrf.mxu1 }
 0x134   :  { %v702_v18 = vadd.f32 %v701_v63, %v648_v46 }
 0x135   :  { %v6199_v41 = vadd.f32 %v804_v29, %v763_v37  ;;  %4924 = vmatmul.msk.f32.gmra.mxu3 %vm260_vm1, %v5900_v24  ;;  %v5488_v37 = vld [vmem:[%s8917_s0 + $0x58] sm:$0xff] }
 0x137   :  { %4912 = vmatmul.msk.f32.gmra.mxu2 %vm260_vm1, %v5912_v28 }
 0x139   :  { %v807_v21 = vpop.f32.mrf.mxu3 }
 0x13a   :  { %v742_v25 = vpop.f32.mrf.mxu2 }
 0x13b   :  { %v764_v42 = vadd.f32 %v742_v25, %v690_v48  ;;  %4930 = vmatmul.msk.f32.gmra.mxu0 %vm260_vm1, %v5763_v49  ;;  %4942 = vmatmul.msk.f32.gmra.mxu1 %vm260_vm1, %v5724_v38  ;;  %v6219_v46 = vpop.f32.mrf.mxu0  ;;  %v6221_v48 = vpop.f32.mrf.mxu1 }
 0x13c   :  { %v917_v60 = vadd.f32 %v6221_v48, %v6219_v46 }
 0x13d   :  { %v6211_v29 = vadd.f32 %v807_v21, %v764_v42  ;;  %4961 = vmatmul.msk.f32.vlgmr.msra.gmra.mxu3 %vm260_vm1, %v5632_v15 }
 0x13f   :  { %9021 = vst [vmem:[#allocation10_spill] sm:$0xff] %v6211_v29  ;;  %4949 = vmatmul.msk.f32.vlgmr.msra.gmra.mxu2 %vm260_vm1, %v5706_v34 }
 0x141   :  { %v810_v25 = vpop.f32.mrf.mxu3 }
 0x142   :  { %v745_v49 = vpop.f32.mrf.mxu2 }
 0x143   :  { %v765_v63 = vadd.f32 %v745_v49, %v693_v30  ;;  %4931 = vmatmul.msk.f32.gmra.mxu0 %vm260_vm1, %v5784_v54  ;;  %4943 = vmatmul.msk.f32.gmra.mxu1 %vm260_vm1, %v5745_v43  ;;  %v6235_v21 = vpop.f32.mrf.mxu0  ;;  %v6237_v30 = vpop.f32.mrf.mxu1 }
 0x145   :  { %v6227_v15 = vadd.f32 %v810_v25, %v765_v63  ;;  %4962 = vmatmul.msk.f32.gmra.mxu3 %vm260_vm1, %v5657_v22 }
 0x147   :  { %9022 = vst [vmem:[#allocation11_spill] sm:$0xff] %v6227_v15  ;;  %4950 = vmatmul.msk.f32.gmra.mxu2 %vm260_vm1, %v5727_v39 }
 0x149   :  { %v813_v42 = vpop.f32.mrf.mxu3 }
 0x14a   :  { %v748_v54 = vpop.f32.mrf.mxu2 }
 0x14b   :  { %v766_v49 = vadd.f32 %v748_v54, %v696_v58  ;;  %4932 = vmatmul.msk.f32.gmra.mxu0 %vm260_vm1, %v5811_v61  ;;  %4944 = vmatmul.msk.f32.gmra.mxu1 %vm260_vm1, %v5772_v50  ;;  %v6251_v25 = vpop.f32.mrf.mxu0  ;;  %v6253_v58 = vpop.f32.mrf.mxu1 }
 0x14d   :  { %v6243_v22 = vadd.f32 %v813_v42, %v766_v49  ;;  %4963 = vmatmul.msk.f32.gmra.mxu3 %vm260_vm1, %v5678_v26 }
 0x14f   :  { %9023 = vst [vmem:[#allocation12_spill] sm:$0xff] %v6243_v22  ;;  %4951 = vmatmul.msk.f32.gmra.mxu2 %vm260_vm1, %v5748_v44 }
 0x151   :  { %v816_v63 = vpop.f32.mrf.mxu3 }
 0x152   :  { %v751_v61 = vpop.f32.mrf.mxu2 }
 0x153   :  { %v767_v54 = vadd.f32 %v751_v61, %v699_v57  ;;  %4933 = vmatmul.msk.f32.gmra.mxu0 %vm260_vm1, %v5828_v0  ;;  %4945 = vmatmul.msk.f32.gmra.mxu1 %vm260_vm1, %v5793_v55  ;;  %v6267_v42 = vpop.f32.mrf.mxu0  ;;  %v6269_v57 = vpop.f32.mrf.mxu1  ;;  %v92_v0 = vld [vmem:[%s8920_s3 + $0x40] sm:$0xff] }
 0x154   :  { %1587 = vmatpush.msrb.mxu2 %v92_v0 }
 0x155   :  { %v6259_v26 = vadd.f32 %v816_v63, %v767_v54  ;;  %4964 = vmatmul.msk.f32.gmra.mxu3 %vm260_vm1, %v5703_v33  ;;  %v89_v33 = vld [vmem:[%s8920_s3 + $0x28] sm:$0xff] }
 0x156   :  { %1433 = vmatpush.msra.mxu0 %v89_v33 }
 0x157   :  { %9024 = vst [vmem:[#allocation13_spill] sm:$0xff] %v6259_v26  ;;  %4952 = vmatmul.msk.f32.gmra.mxu2 %vm260_vm1, %v5775_v51  ;;  %v95_v51 = vld [vmem:[%s8920_s3 + $0x58] sm:$0xff] }
 0x158   :  { %1686 = vmatpush.msrb.mxu3 %v95_v51 }
 0x159   :  { %v819_v49 = vpop.f32.mrf.mxu3 }
 0x15a   :  { %v754_v63 = vpop.f32.mrf.mxu2 }
 0x15b   :  { %v768_v61 = vadd.f32 %v754_v63, %v702_v18  ;;  %4934 = vmatmul.msk.f32.gmra.mxu0 %vm260_vm1, %v5622_v13  ;;  %4946 = vmatmul.msk.f32.gmra.mxu1 %vm260_vm1, %v5591_v4  ;;  %v86_v13 = vld [vmem:[%s8920_s3 + $0x10] sm:$0xff]  ;;  %v6295_v0 = vpop.f32.mrf.mxu0  ;;  %v6297_v4 = vpop.f32.mrf.mxu1 }
 0x15c   :  { %1500 = vmatpush.msra.mxu1 %v86_v13  ;;  %v5486_v13 = vld [vmem:[%s8917_s0 + $0x48] sm:$0xff] }
 0x15d   :  { %v6284_v54 = vadd.f32 %v819_v49, %v768_v61  ;;  %4965 = vmatmul.msk.f32.gmra.mxu3 %vm260_vm1, %v5724_v38 }
 0x15f   :  { %9025 = vst [vmem:[#allocation14_spill] sm:$0xff] %v6284_v54  ;;  %4953 = vmatmul.msk.f32.gmra.mxu2 %vm260_vm1, %v5796_v56 }
 0x161   :  { %v6299_v49 = vpop.f32.mrf.mxu3 }
 0x162   :  { %v6301_v63 = vpop.f32.mrf.mxu2 }
 0x163   :  { %4935 = vmatmul.msk.f32.gmra.mxu0 %vm260_vm1, %v5661_v23  ;;  %4947 = vmatmul.msk.f32.gmra.mxu1 %vm260_vm1, %v5596_v5  ;;  %v6311_v38 = vpop.f32.mrf.mxu0  ;;  %v6313_v56 = vpop.f32.mrf.mxu1  ;;  %v1005_v46 = vadd.f32 %v6301_v63, %v917_v60 }
 0x165   :  { %4966 = vmatmul.msk.f32.gmra.mxu3 %vm260_vm1, %v5745_v43 }
 0x167   :  { %4954 = vmatmul.msk.f32.gmra.mxu2 %vm260_vm1, %v5818_v62 }
 0x169   :  { %v6315_v61 = vpop.f32.mrf.mxu3 }
 0x16a   :  { %v6317_v33 = vpop.f32.mrf.mxu2 }
 0x16b   :  { %4936 = vmatmul.msk.f32.gmra.mxu0 %vm260_vm1, %v5645_v20  ;;  %4948 = vmatmul.msk.f32.gmra.mxu1 %vm260_vm1, %v5609_v10  ;;  %v6327_v5 = vpop.f32.mrf.mxu0  ;;  %v6329_v23 = vpop.f32.mrf.mxu1 }
 0x16d   :  { %4967 = vmatmul.msk.f32.gmra.mxu3 %vm260_vm1, %v5772_v50  ;;  %v91_v50 = vld [vmem:[%s8920_s3 + $0x38] sm:$0xff] }
 0x16e   :  { %1588 = vmatpush.msrb.mxu2 %v91_v50  ;;  %v85_v50 = vld [vmem:[%s8920_s3 + $0x8] sm:$0xff] }
 0x16f   :  { %4955 = vmatmul.msk.f32.gmra.mxu2 %vm260_vm1, %v5835_v1  ;;  %1501 = vmatpush.msra.mxu1 %v85_v50 }
 0x171   :  { %v6331_v43 = vpop.f32.mrf.mxu3 }
 0x172   :  { %v6333_v62 = vpop.f32.mrf.mxu2 }
 0x173   :  { %v6339_v10 = vpop.f32.mrf.mxu0  ;;  %v6341_v20 = vpop.f32.mrf.mxu1 }
 0x175   :  { %4968 = vmatmul.msk.f32.gmra.mxu3 %vm260_vm1, %v5793_v55  ;;  %v88_v55 = vld [vmem:[%s8920_s3 + $0x20] sm:$0xff] }
 0x176   :  { %1434 = vmatpush.msra.mxu0 %v88_v55 }
 0x177   :  { %4956 = vmatmul.msk.f32.gmra.mxu2 %vm260_vm1, %v5847_v3  ;;  %v94_v3 = vld [vmem:[%s8920_s3 + $0x50] sm:$0xff] }
 0x178   :  { %1687 = vmatpush.msrb.mxu3 %v94_v3  ;;  %1435 = vmatpush.msra.mxu0 %v87_v47 }
 0x179   :  { %v6346_v1 = vpop.f32.mrf.mxu3 }
 0x17a   :  { %v6348_v51 = vpop.f32.mrf.mxu2 }
 0x17b   :  { %v6365_v18 = vpop.f32.mrf.mxu0  ;;  %v6367_v44 = vpop.f32.mrf.mxu1 }
 0x17c   :  { %9026 = vst [vmem:[#allocation15_spill] sm:$0xff] %v6367_v44 }
 0x17d   :  { %4969 = vmatmul.msk.f32.gmra.mxu3 %vm260_vm1, %v5486_v13  ;;  %v5487_v13 = vld [vmem:[%s8917_s0 + $0x50] sm:$0xff]  ;;  %s4772_s0 = sshll.u32 %s8928_s11, 4  ;;  %s4773_s0 = int_to_ptr.hbm [resolvable:$true] %s4772_s0 }
 0x17f   :  { %4957 = vmatmul.msk.f32.gmra.mxu2 %vm260_vm1, %v5859_v7 }
 0x181   :  { %v6369_v55 = vpop.f32.mrf.mxu3 }
 0x182   :  { %v6371_v3 = vpop.f32.mrf.mxu2 }
 0x183   :  { %v6379_v7 = vpop.f32.mrf.mxu0  ;;  %v6383_v34 = vpop.f32.mrf.mxu1 }
 0x184   :  { %9027 = vst [vmem:[#allocation16_spill] sm:$0xff] %v6379_v7 }
 0x185   :  { %4970 = vmatmul.msk.f32.gmra.mxu3 %vm260_vm1, %v5487_v13  ;;  %9028 = vst [vmem:[#allocation17_spill] sm:$0xff] %v6383_v34 }
 0x187   :  { %4958 = vmatmul.msk.f32.gmra.mxu2 %vm260_vm1, %v5883_v17 }
 0x189   :  { %v6381_v39 = vpop.f32.mrf.mxu3 }
 0x18a   :  { %v6385_v50 = vpop.f32.mrf.mxu2 }
 0x18b   :  { %v6397_v32 = vpop.f32.mrf.mxu0  ;;  %v6399_v6 = vpop.f32.mrf.mxu1 }
 0x18c   :  { %9029 = vst [vmem:[#allocation18_spill] sm:$0xff] %v6397_v32 }
 0x18d   :  { %4971 = vmatmul.msk.f32.gmra.mxu3 %vm260_vm1, %v5488_v37  ;;  %9030 = vst [vmem:[#allocation19_spill] sm:$0xff] %v6399_v6  ;;  %v90_v37 = vld [vmem:[%s8920_s3 + $0x30] sm:$0xff] }
 0x18e   :  { %1589 = vmatpush.msrb.mxu2 %v90_v37  ;;  %v84_v37 = vld [vmem:[%s8920_s3] sm:$0xff] }
 0x18f   :  { %4959 = vmatmul.msk.f32.gmra.mxu2 %vm260_vm1, %v5895_v19  ;;  %1502 = vmatpush.msra.mxu1 %v84_v37 }
 0x191   :  { %v6393_v13 = vpop.f32.mrf.mxu3  ;;  %1808 = vmatpush.msrb.mxu1 %v101_v40 }
 0x192   :  { %v6395_v17 = vpop.f32.mrf.mxu2 }
 0x193   :  { %v6418_v26 = vpop.f32.mrf.mxu0 }
 0x194   :  { %9031 = vst [vmem:[#allocation20_spill] sm:$0xff] %v6418_v26 }
 0x195   :  { %4972 = vmatmul.msk.f32.gmra.mxu3 %vm260_vm1, %v5900_v24  ;;  %v93_v24 = vld [vmem:[%s8920_s3 + $0x48] sm:$0xff] }
 0x196   :  { %1688 = vmatpush.msrb.mxu3 %v93_v24 }
 0x197   :  { %4960 = vmatmul.msk.f32.gmra.mxu2 %vm260_vm1, %v5912_v28  ;;  %v6420_v28 = vpop.f32.mrf.mxu1 }
 0x198   :  { %9032 = vst [vmem:[#allocation21_spill] sm:$0xff] %v6420_v28 }
 0x199   :  { %v6408_v19 = vpop.f32.mrf.mxu3 }
 0x19a   :  { %v6410_v54 = vpop.f32.mrf.mxu2 }
 0x19b   :  { %v1111_v31 = vpop.f32.mrf.mxu0 }
 0x19f   :  { %v1164_v6 = vpop.f32.mrf.mxu1 }
 0x1a0   :  { %v1165_v48 = vadd.f32 %v1164_v6, %v1111_v31 }
 0x1a1   :  { %v6425_v27 = vpop.f32.mrf.mxu3 }
 0x1a2   :  { %9033 = vst [vmem:[#allocation22_spill] sm:$0xff] %v6425_v27  ;;  %v6427_v22 = vpop.f32.mrf.mxu2 }
 0x1a3   :  { %9034 = vst [vmem:[#allocation23_spill] sm:$0xff] %v6427_v22  ;;  %v1114_v26 = vpop.f32.mrf.mxu0 }
 0x1a7   :  { %v1167_v24 = vpop.f32.mrf.mxu1 }
 0x1a8   :  { %v1168_v63 = vadd.f32 %v1167_v24, %v1114_v26  ;;  %v926_v26 = vadd.f32 %v6269_v57, %v6267_v42  ;;  %v103_v42 = vld [vmem:[%s8920_s3 + $0x98] sm:$0xff] }
 0x1a9   :  { %v6429_v32 = vpop.f32.mrf.mxu3 }
 0x1aa   :  { %9035 = vst [vmem:[#allocation24_spill] sm:$0xff] %v6429_v32  ;;  %v6431_v15 = vpop.f32.mrf.mxu2  ;;  %v104_v32 = vld [vmem:[%s8920_s3 + $0xa0] sm:$0xff] }
 0x1ab   :  { %9036 = vst [vmem:[#allocation25_spill] sm:$0xff] %v6431_v15  ;;  %v1117_v7 = vpop.f32.mrf.mxu0  ;;  %1905 = vmatpush.msra.mxu2 %v104_v32  ;;  %v9041_v32 = vmax.f32 %v5980_v16, %v6127_v52 }
 0x1ad   :  { %1906 = vmatpush.msra.mxu2 %v103_v42 }
 0x1af   :  { %v1170_v27 = vpop.f32.mrf.mxu1 }
 0x1b0   :  { %v1171_v24 = vadd.f32 %v1170_v27, %v1117_v7 }
 0x1b1   :  { %v6433_v47 = vpop.f32.mrf.mxu3 }
 0x1b2   :  { %9037 = vst [vmem:[#allocation26_spill] sm:$0xff] %v6433_v47  ;;  %v6435_v28 = vpop.f32.mrf.mxu2  ;;  %v98_v47 = vld [vmem:[%s8920_s3 + $0x70] sm:$0xff] }
 0x1b3   :  { %9038 = vst [vmem:[#allocation27_spill] sm:$0xff] %v6435_v28  ;;  %v107_v28 = vld [vmem:[%s8920_s3 + $0xb8] sm:$0xff]  ;;  %1745 = vmatpush.msrb.mxu0 %v98_v47  ;;  %v1120_v44 = vpop.f32.mrf.mxu0 }
 0x1b4   :  { %1967 = vmatpush.msra.mxu3 %v107_v28 }
 0x1b9   :  { %v6439_v37 = vpop.f32.mrf.mxu3 }
 0x1ba   :  { %9039 = vst [vmem:[#allocation28_spill] sm:$0xff] %v6439_v37  ;;  %v6441_v34 = vpop.f32.mrf.mxu2  ;;  %v1070_v37 = vadd.f32 %v6299_v49, %v1005_v46 }
 0x1bb   :  { %9040 = vst [vmem:[#allocation29_spill] sm:$0xff] %v6441_v34  ;;  %v920_v34 = vadd.f32 %v6237_v30, %v6235_v21  ;;  %v6466_v21 = vld [vmem:[%s8919_s2] ss:$0 sm:$0xff]  ;;  %v1173_v30 = vpop.f32.mrf.mxu1 }
 0x1bc   :  { %v1082_v60 = vmax.f32 %v9041_v32, %v1070_v37 }
 0x1bd   :  { %v1006_v31 = vadd.f32 %v6317_v33, %v920_v34  ;;  %v9043_v33 = vmax.f32 %v5990_v35, %v6139_v9  ;;  %v9044_v35 = vmax.f32 %v6000_v53, %v6151_v36 }
 0x1bf   :  { %v1071_v40 = vadd.f32 %v6315_v61, %v1006_v31 }
 0x1c1   :  { %v1282_v15 = vpop.f32.mrf.mxu3  ;;  %v1083_v47 = vmax.f32 %v9043_v33, %v1071_v40 }
 0x1c2   :  { %v1217_v22 = vpop.f32.mrf.mxu2 }
 0x1c3   :  { %v1253_v29 = vadd.f32 %v1217_v22, %v1165_v48  ;;  %v923_v22 = vadd.f32 %v6253_v58, %v6251_v25  ;;  %v1123_v25 = vpop.f32.mrf.mxu0 }
 0x1c5   :  { %v1318_v6 = vadd.f32 %v1282_v15, %v1253_v29  ;;  %v1007_v29 = vadd.f32 %v6333_v62, %v923_v22  ;;  %v1176_v62 = vpop.f32.mrf.mxu1  ;;  %v1174_v22 = vadd.f32 %v1173_v30, %v1120_v44 }
 0x1c7   :  { %v1330_v49 = vmax.f32 %v1082_v60, %v1318_v6  ;;  %v1072_v58 = vadd.f32 %v6331_v43, %v1007_v29  ;;  %v1008_v60 = vadd.f32 %v6348_v51, %v926_v26 }
 0x1c9   :  { %v1346_v28 = vadd.f32 %v6466_v21, %v1330_v49  ;;  %v1285_v16 = vpop.f32.mrf.mxu3  ;;  %v1084_v9 = vmax.f32 %v9044_v35, %v1072_v58  ;;  %v9049_v58 = vmax.f32 %v6010_v8, %v6163_v12  ;;  %v1177_v35 = vadd.f32 %v1176_v62, %v1123_v25 }
 0x1ca   :  { %v1220_v52 = vpop.f32.mrf.mxu2 }
 0x1cb   :  { %v6473_v15 = vmax.f32 %v1346_v28, 0.0  ;;  %v1254_v34 = vadd.f32 %v1220_v52, %v1168_v63  ;;  %v929_v52 = vadd.f32 %v6297_v4, %v6295_v0  ;;  %v1126_v44 = vpop.f32.mrf.mxu0  ;;  %v97_v0 = vld [vmem:[%s8920_s3 + $0x68] sm:$0xff]  ;;  %v106_v4 = vld [vmem:[%s8920_s3 + $0xb0] sm:$0xff] }
 0x1cc   :  { %1746 = vmatpush.msrb.mxu0 %v97_v0  ;;  %1968 = vmatpush.msra.mxu3 %v106_v4 }
 0x1cd   :  { %9042 = vst [vmem:[#allocation30_spill] sm:$0xff] %v6473_v15  ;;  %v1319_v37 = vadd.f32 %v1285_v16, %v1254_v34  ;;  %4983 = vmatmul.msk.f32.vlgmr.msra.gmra.mxu1 %vm1399_vm3, %v6473_v15  ;;  %v1380_v27 = vrot.slane %v6473_v15, 1  ;;  %v1535_v57 = vrot.slane %v6473_v15, 2  ;;  %v1632_v43 = vrot.slane %v6473_v15, 7  ;;  %v1179_v34 = vpop.f32.mrf.mxu1 }
 0x1ce   :  { %v1073_v16 = vadd.f32 %v6346_v1, %v1008_v60 }
 0x1cf   :  { %v1331_v61 = vmax.f32 %v1083_v47, %v1319_v37  ;;  %v100_v37 = vld [vmem:[%s8920_s3 + $0x80] sm:$0xff] }
 0x1d0   :  { %v1085_v26 = vmax.f32 %v9049_v58, %v1073_v16  ;;  %1809 = vmatpush.msrb.mxu1 %v100_v37 }
 0x1d1   :  { %v1347_v46 = vadd.f32 %v6466_v21, %v1331_v61  ;;  %v1288_v48 = vpop.f32.mrf.mxu3  ;;  %v1009_v61 = vadd.f32 %v6371_v3, %v929_v52 }
 0x1d2   :  { %v1223_v32 = vpop.f32.mrf.mxu2 }
 0x1d3   :  { %v6488_v31 = vmax.f32 %v1347_v46, 0.0  ;;  %v1255_v6 = vadd.f32 %v1223_v32, %v1171_v24  ;;  %v1074_v60 = vadd.f32 %v6369_v55, %v1009_v61 }
 0x1d5   :  { %9045 = vst [vmem:[#allocation31_spill] sm:$0xff] %v6488_v31  ;;  %v1320_v7 = vadd.f32 %v1288_v48, %v1255_v6  ;;  %4984 = vmatmul.msk.f32.gmra.mxu1 %vm1399_vm3, %v6488_v31  ;;  %v1381_v53 = vrot.slane %v6488_v31, 1  ;;  %v1536_v36 = vrot.slane %v6488_v31, 2  ;;  %v1633_v51 = vrot.slane %v6488_v31, 7 }
 0x1d6   :  { %v932_v6 = vadd.f32 %v6313_v56, %v6311_v38  ;;  %v9051_v38 = vmax.f32 %v6032_v45, %v6175_v2 }
 0x1d7   :  { %v1332_v49 = vmax.f32 %v1084_v9, %v1320_v7  ;;  %v6502_v63 = vsel %vm236_vm0, %v1380_v27, %v1381_v53  ;;  %v6505_v40 = vsel %vm1534_vm4, %v1535_v57, %v1536_v36  ;;  %v6508_v28 = vsel %vm416_vm2, %v1632_v43, %v1633_v51  ;;  %v1129_v27 = vpop.f32.mrf.mxu0  ;;  %v1182_v43 = vpop.f32.mrf.mxu1 }
 0x1d8   :  { %9046 = vst [vmem:[#allocation32_spill] sm:$0xff] %v6502_v63  ;;  %4973 = vmatmul.msk.f32.vlgmr.msra.gmra.mxu0 %vm1399_vm3, %v6502_v63  ;;  %4993 = vmatmul.msk.f32.vlgmr.msrb.gmra.mxu2 %vm1399_vm3, %v6505_v40  ;;  %v1086_v56 = vmax.f32 %v9051_v38, %v1074_v60  ;;  %v1010_v7 = vadd.f32 %v6385_v50, %v932_v6 }
 0x1d9   :  { %9047 = vst [vmem:[#allocation33_spill] sm:$0xff] %v6505_v40  ;;  %v1348_v30 = vadd.f32 %v6466_v21, %v1332_v49  ;;  %5003 = vmatmul.msk.f32.vlgmr.msrb.gmra.mxu3 %vm1399_vm3, %v6508_v28  ;;  %v1291_v29 = vpop.f32.mrf.mxu3  ;;  %v1180_v49 = vadd.f32 %v1179_v34, %v1126_v44 }
 0x1da   :  { %9048 = vst [vmem:[#allocation34_spill] sm:$0xff] %v6508_v28  ;;  %v1226_v33 = vpop.f32.mrf.mxu2  ;;  %v1075_v50 = vadd.f32 %v6381_v39, %v1010_v7  ;;  %v9054_v39 = vmax.f32 %v6042_v59, %v6187_v11 }
 0x1db   :  { %v6520_v47 = vmax.f32 %v1348_v30, 0.0  ;;  %v1256_v1 = vadd.f32 %v1226_v33, %v1174_v22  ;;  %v935_v30 = vadd.f32 %v6329_v23, %v6327_v5 }
 0x1dc   :  { %v1087_v5 = vmax.f32 %v9054_v39, %v1075_v50  ;;  %v9062_v39 = vld [vmem:[#allocation10_spill] sm:$0xff] }
 0x1dd   :  { %v1321_v24 = vadd.f32 %v1291_v29, %v1256_v1  ;;  %4985 = vmatmul.msk.f32.gmra.mxu1 %vm1399_vm3, %v6520_v47  ;;  %v1383_v46 = vrot.slane %v6520_v47, 1  ;;  %v1538_v48 = vrot.slane %v6520_v47, 2  ;;  %v1635_v32 = vrot.slane %v6520_v47, 7 }
 0x1de   :  { %v1011_v23 = vadd.f32 %v6395_v17, %v935_v30 }
 0x1df   :  { %v1333_v9 = vmax.f32 %v1085_v26, %v1321_v24  ;;  %v6541_v8 = vsel %vm236_vm0, %v1381_v53, %v1383_v46  ;;  %v6544_v12 = vsel %vm1534_vm4, %v1536_v36, %v1538_v48  ;;  %v6547_v3 = vsel %vm416_vm2, %v1633_v51, %v1635_v32  ;;  %v1132_v0 = vpop.f32.mrf.mxu0  ;;  %v1185_v61 = vpop.f32.mrf.mxu1 }
 0x1e0   :  { %9050 = vst [vmem:[#allocation35_spill] sm:$0xff] %v6544_v12  ;;  %4974 = vmatmul.msk.f32.gmra.mxu0 %vm1399_vm3, %v6541_v8  ;;  %4994 = vmatmul.msk.f32.gmra.mxu2 %vm1399_vm3, %v6544_v12  ;;  %v1183_v24 = vadd.f32 %v1182_v43, %v1129_v27  ;;  %v1076_v17 = vadd.f32 %v6393_v13, %v1011_v23  ;;  %v105_v13 = vld [vmem:[%s8920_s3 + $0xa8] sm:$0xff]  ;;  %v9064_v23 = vld [vmem:[#allocation23_spill] sm:$0xff] }
 0x1e1   :  { %v1349_v25 = vadd.f32 %v6466_v21, %v1333_v9  ;;  %5004 = vmatmul.msk.f32.gmra.mxu3 %vm1399_vm3, %v6547_v3  ;;  %v1294_v62 = vpop.f32.mrf.mxu3 }
 0x1e2   :  { %v1229_v42 = vpop.f32.mrf.mxu2  ;;  %1969 = vmatpush.msra.mxu3 %v105_v13 }
 0x1e3   :  { %v6559_v57 = vmax.f32 %v1349_v25, 0.0  ;;  %v1257_v55 = vadd.f32 %v1229_v42, %v1177_v35 }
 0x1e5   :  { %v1322_v53 = vadd.f32 %v1294_v62, %v1257_v55  ;;  %4986 = vmatmul.msk.f32.gmra.mxu1 %vm1399_vm3, %v6559_v57  ;;  %v1385_v36 = vrot.slane %v6559_v57, 1  ;;  %v1540_v51 = vrot.slane %v6559_v57, 2  ;;  %v1637_v22 = vrot.slane %v6559_v57, 7  ;;  %v99_v55 = vld [vmem:[%s8920_s3 + $0x78] sm:$0xff] }
 0x1e6   :  { %v9057_v62 = vmax.f32 %v6052_v14, %v6199_v41  ;;  %v1186_v14 = vadd.f32 %v1185_v61, %v1132_v0  ;;  %1810 = vmatpush.msrb.mxu1 %v99_v55 }
 0x1e7   :  { %v1334_v16 = vmax.f32 %v1086_v56, %v1322_v53  ;;  %v6571_v52 = vsel %vm236_vm0, %v1383_v46, %v1385_v36  ;;  %v6574_v45 = vsel %vm1534_vm4, %v1538_v48, %v1540_v51  ;;  %v6577_v2 = vsel %vm416_vm2, %v1635_v32, %v1637_v22  ;;  %v1135_v41 = vpop.f32.mrf.mxu0 }
 0x1e8   :  { %9052 = vst [vmem:[#allocation36_spill] sm:$0xff] %v6571_v52  ;;  %4975 = vmatmul.msk.f32.gmra.mxu0 %vm1399_vm3, %v6571_v52  ;;  %4995 = vmatmul.msk.f32.gmra.mxu2 %vm1399_vm3, %v6574_v45  ;;  %v938_v32 = vadd.f32 %v6341_v20, %v6339_v10  ;;  %v102_v10 = vld [vmem:[%s8920_s3 + $0x90] sm:$0xff]  ;;  %v96_v20 = vld [vmem:[%s8920_s3 + $0x60] sm:$0xff]  ;;  %v1088_v42 = vmax.f32 %v9057_v62, %v1076_v17 }
 0x1e9   :  { %9053 = vst [vmem:[#allocation37_spill] sm:$0xff] %v6574_v45  ;;  %v1350_v44 = vadd.f32 %v6466_v21, %v1334_v16  ;;  %5005 = vmatmul.msk.f32.gmra.mxu3 %vm1399_vm3, %v6577_v2  ;;  %v1297_v29 = vpop.f32.mrf.mxu3  ;;  %1907 = vmatpush.msra.mxu2 %v102_v10  ;;  %v9060_v16 = vld [vmem:[#allocation15_spill] sm:$0xff] }
 0x1ea   :  { %v1232_v34 = vpop.f32.mrf.mxu2  ;;  %v1012_v27 = vadd.f32 %v6410_v54, %v938_v32  ;;  %1747 = vmatpush.msrb.mxu0 %v96_v20  ;;  %v941_v50 = vadd.f32 %v9060_v16, %v6365_v18 }
 0x1eb   :  { %v6589_v33 = vmax.f32 %v1350_v44, 0.0  ;;  %v1258_v1 = vadd.f32 %v1232_v34, %v1180_v49 }
 0x1ec   :  { %v1077_v49 = vadd.f32 %v6408_v19, %v1012_v27  ;;  %v9061_v19 = vld [vmem:[#allocation5_spill] sm:$0xff]  ;;  %v1013_v0 = vadd.f32 %v9064_v23, %v941_v50  ;;  %v9078_v23 = vld [vmem:[#allocation19_spill] sm:$0xff] }
 0x1ed   :  { %v1323_v4 = vadd.f32 %v1297_v29, %v1258_v1  ;;  %4987 = vmatmul.msk.f32.gmra.mxu1 %vm1399_vm3, %v6589_v33  ;;  %v1387_v37 = vrot.slane %v6589_v33, 1  ;;  %v1542_v58 = vrot.slane %v6589_v33, 2  ;;  %v1639_v26 = vrot.slane %v6589_v33, 7 }
 0x1ef   :  { %v1335_v46 = vmax.f32 %v1087_v5, %v1323_v4  ;;  %v6601_v48 = vsel %vm236_vm0, %v1385_v36, %v1387_v37  ;;  %v6604_v59 = vsel %vm1534_vm4, %v1540_v51, %v1542_v58  ;;  %v6607_v11 = vsel %vm416_vm2, %v1637_v22, %v1639_v26  ;;  %v1188_v22 = vpop.f32.mrf.mxu1  ;;  %v1138_v20 = vpop.f32.mrf.mxu0 }
 0x1f0   :  { %9055 = vst [vmem:[#allocation38_spill] sm:$0xff] %v6601_v48  ;;  %4976 = vmatmul.msk.f32.gmra.mxu0 %vm1399_vm3, %v6601_v48  ;;  %4996 = vmatmul.msk.f32.gmra.mxu2 %vm1399_vm3, %v6604_v59  ;;  %v9063_v5 = vmax.f32 %v9061_v19, %v9062_v39  ;;  %v1189_v61 = vadd.f32 %v1188_v22, %v1135_v41  ;;  %v9073_v41 = vld [vmem:[#allocation25_spill] sm:$0xff]  ;;  %v9076_v39 = vld [vmem:[#allocation24_spill] sm:$0xff] }
 0x1f1   :  { %9056 = vst [vmem:[#allocation39_spill] sm:$0xff] %v6604_v59  ;;  %v1351_v35 = vadd.f32 %v6466_v21, %v1335_v46  ;;  %5006 = vmatmul.msk.f32.gmra.mxu3 %vm1399_vm3, %v6607_v11  ;;  %v1300_v9 = vpop.f32.mrf.mxu3 }
 0x1f2   :  { %v1235_v60 = vpop.f32.mrf.mxu2  ;;  %v1089_v18 = vmax.f32 %v9063_v5, %v1077_v49 }
 0x1f3   :  { %v6619_v6 = vmax.f32 %v1351_v35, 0.0  ;;  %v1259_v25 = vadd.f32 %v1235_v60, %v1183_v24  ;;  %v9067_v35 = vld [vmem:[#allocation22_spill] sm:$0xff]  ;;  %v9068_v60 = vld [vmem:[#allocation16_spill] sm:$0xff] }
 0x1f5   :  { %v1324_v43 = vadd.f32 %v1300_v9, %v1259_v25  ;;  %4988 = vmatmul.msk.f32.gmra.mxu1 %vm1399_vm3, %v6619_v6  ;;  %v1389_v38 = vrot.slane %v6619_v6, 1  ;;  %v1544_v56 = vrot.slane %v6619_v6, 2  ;;  %v1641_v7 = vrot.slane %v6619_v6, 7  ;;  %v9069_v25 = vld [vmem:[#allocation17_spill] sm:$0xff] }
 0x1f6   :  { %v1078_v9 = vadd.f32 %v9067_v35, %v1013_v0  ;;  %v944_v10 = vadd.f32 %v9069_v25, %v9068_v60  ;;  %v116_v35 = vld [vmem:[%s8920_s3 + $0x100] sm:$0xff] }
 0x1f7   :  { %v1336_v54 = vmax.f32 %v1088_v42, %v1324_v43  ;;  %v6643_v53 = vsel %vm236_vm0, %v1387_v37, %v1389_v38  ;;  %v6646_v36 = vsel %vm1534_vm4, %v1542_v58, %v1544_v56  ;;  %v6649_v51 = vsel %vm416_vm2, %v1639_v26, %v1641_v7  ;;  %v1191_v42 = vpop.f32.mrf.mxu1  ;;  %v1141_v25 = vpop.f32.mrf.mxu0  ;;  %2083 = vmatpush.msra.mxu1 %v116_v35 }
 0x1f8   :  { %9058 = vst [vmem:[#allocation40_spill] sm:$0xff] %v6646_v36  ;;  %4977 = vmatmul.msk.f32.gmra.mxu0 %vm1399_vm3, %v6643_v53  ;;  %4997 = vmatmul.msk.f32.gmra.mxu2 %vm1399_vm3, %v6646_v36 }
 0x1f9   :  { %9059 = vst [vmem:[#allocation41_spill] sm:$0xff] %v6649_v51  ;;  %v1352_v30 = vadd.f32 %v6466_v21, %v1336_v54  ;;  %5007 = vmatmul.msk.f32.gmra.mxu3 %vm1399_vm3, %v6649_v51  ;;  %v1303_v44 = vpop.f32.mrf.mxu3  ;;  %v1014_v54 = vadd.f32 %v9073_v41, %v944_v10 }
 0x1fa   :  { %v1238_v29 = vpop.f32.mrf.mxu2 }
 0x1fb   :  { %v6661_v34 = vmax.f32 %v1352_v30, 0.0  ;;  %v1260_v1 = vadd.f32 %v1238_v29, %v1186_v14  ;;  %v1192_v30 = vadd.f32 %v1191_v42, %v1138_v20  ;;  %v1079_v5 = vadd.f32 %v9076_v39, %v1014_v54  ;;  %v9079_v20 = vld [vmem:[#allocation7_spill] sm:$0xff]  ;;  %v9086_v39 = vld [vmem:[#allocation26_spill] sm:$0xff] }
 0x1fd   :  { %v1325_v4 = vadd.f32 %v1303_v44, %v1260_v1  ;;  %4989 = vmatmul.msk.f32.gmra.mxu1 %vm1399_vm3, %v6661_v34  ;;  %v1391_v37 = vrot.slane %v6661_v34, 1  ;;  %v1546_v58 = vrot.slane %v6661_v34, 2  ;;  %v1643_v26 = vrot.slane %v6661_v34, 7 }
 0x1ff   :  { %v1337_v24 = vmax.f32 %v1089_v18, %v1325_v4  ;;  %v6673_v46 = vsel %vm236_vm0, %v1389_v38, %v1391_v37  ;;  %v6676_v17 = vsel %vm1534_vm4, %v1544_v56, %v1546_v58  ;;  %v6679_v32 = vsel %vm416_vm2, %v1641_v7, %v1643_v26  ;;  %v9070_v38 = vld [vmem:[#allocation6_spill] sm:$0xff]  ;;  %v9071_v56 = vld [vmem:[#allocation11_spill] sm:$0xff]  ;;  %v1194_v10 = vpop.f32.mrf.mxu1 }
 0x200   :  { %9065 = vst [vmem:[#allocation15_spill] sm:$0xff] %v6676_v17  ;;  %4978 = vmatmul.msk.f32.gmra.mxu0 %vm1399_vm3, %v6673_v46  ;;  %4998 = vmatmul.msk.f32.gmra.mxu2 %vm1399_vm3, %v6676_v17  ;;  %v9072_v7 = vmax.f32 %v9070_v38, %v9071_v56  ;;  %v9077_v18 = vld [vmem:[#allocation18_spill] sm:$0xff]  ;;  %v1195_v41 = vadd.f32 %v1194_v10, %v1141_v25 }
 0x201   :  { %9066 = vst [vmem:[#allocation5_spill] sm:$0xff] %v6679_v32  ;;  %v1353_v13 = vadd.f32 %v6466_v21, %v1337_v24  ;;  %5008 = vmatmul.msk.f32.gmra.mxu3 %vm1399_vm3, %v6679_v32  ;;  %v1306_v62 = vpop.f32.mrf.mxu3  ;;  %v947_v0 = vadd.f32 %v9078_v23, %v9077_v18 }
 0x202   :  { %v1241_v27 = vpop.f32.mrf.mxu2  ;;  %v1090_v14 = vmax.f32 %v9072_v7, %v1078_v9 }
 0x203   :  { %v6691_v55 = vmax.f32 %v1353_v13, 0.0  ;;  %v1261_v43 = vadd.f32 %v1241_v27, %v1189_v61  ;;  %v119_v61 = vld [vmem:[%s8920_s3 + $0x118] sm:$0xff] }
 0x204   :  { %2177 = vmatpush.msrb.mxu3 %v119_v61  ;;  %v9080_v13 = vld [vmem:[#allocation12_spill] sm:$0xff]  ;;  %v9082_v27 = vld [vmem:[#allocation27_spill] sm:$0xff] }
 0x205   :  { %v1326_v22 = vadd.f32 %v1306_v62, %v1261_v43  ;;  %4990 = vmatmul.msk.f32.gmra.mxu1 %vm1399_vm3, %v6691_v55  ;;  %v1393_v49 = vrot.slane %v6691_v55, 1  ;;  %v1548_v16 = vrot.slane %v6691_v55, 2  ;;  %v1645_v50 = vrot.slane %v6691_v55, 7 }
 0x206   :  { %v9081_v62 = vmax.f32 %v9079_v20, %v9080_v13  ;;  %v1015_v43 = vadd.f32 %v9082_v27, %v947_v0 }
 0x207   :  { %v1338_v44 = vmax.f32 %v1090_v14, %v1326_v22  ;;  %v6703_v29 = vsel %vm236_vm0, %v1391_v37, %v1393_v49  ;;  %v6706_v1 = vsel %vm1534_vm4, %v1546_v58, %v1548_v16  ;;  %v6709_v19 = vsel %vm416_vm2, %v1643_v26, %v1645_v50  ;;  %v113_v58 = vld [vmem:[%s8920_s3 + $0xe8] sm:$0xff]  ;;  %v110_v26 = vld [vmem:[%s8920_s3 + $0xd0] sm:$0xff] }
 0x208   :  { %9074 = vst [vmem:[#allocation10_spill] sm:$0xff] %v6703_v29  ;;  %4979 = vmatmul.msk.f32.gmra.mxu0 %vm1399_vm3, %v6703_v29  ;;  %4999 = vmatmul.msk.f32.gmra.mxu2 %vm1399_vm3, %v6706_v1  ;;  %v1091_v42 = vmax.f32 %v9081_v62, %v1079_v5  ;;  %v1080_v5 = vadd.f32 %v9086_v39, %v1015_v43  ;;  %v112_v43 = vld [vmem:[%s8920_s3 + $0xe0] sm:$0xff]  ;;  %v1856_v39 = vrot.slane %v6559_v57, 6 }
 0x209   :  { %9075 = vst [vmem:[#allocation23_spill] sm:$0xff] %v6709_v19  ;;  %v1354_v4 = vadd.f32 %v6466_v21, %v1338_v44  ;;  %5009 = vmatmul.msk.f32.gmra.mxu3 %vm1399_vm3, %v6709_v19  ;;  %v1309_v37 = vpop.f32.mrf.mxu3  ;;  %2130 = vmatpush.msrb.mxu2 %v113_v58 }
 0x20a   :  { %v1244_v24 = vpop.f32.mrf.mxu2  ;;  %2026 = vmatpush.msra.mxu0 %v110_v26 }
 0x20b   :  { %v6733_v9 = vmax.f32 %v1354_v4, 0.0  ;;  %v1262_v60 = vadd.f32 %v1244_v24, %v1192_v30  ;;  %v9088_v4 = vld [vmem:[#allocation13_spill] sm:$0xff]  ;;  %2131 = vmatpush.msrb.mxu2 %v112_v43  ;;  %v1864_v43 = vrot.slane %v6691_v55, 6 }
 0x20d   :  { %v1327_v38 = vadd.f32 %v1309_v37, %v1262_v60  ;;  %4991 = vmatmul.msk.f32.gmra.mxu1 %vm1399_vm3, %v6733_v9  ;;  %v1395_v56 = vrot.slane %v6733_v9, 1  ;;  %v1550_v7 = vrot.slane %v6733_v9, 2  ;;  %v1647_v14 = vrot.slane %v6733_v9, 7 }
 0x20f   :  { %v1339_v54 = vmax.f32 %v1091_v42, %v1327_v38  ;;  %v6745_v22 = vsel %vm236_vm0, %v1393_v49, %v1395_v56  ;;  %v6748_v30 = vsel %vm1534_vm4, %v1548_v16, %v1550_v7  ;;  %v6751_v44 = vsel %vm416_vm2, %v1645_v50, %v1647_v14  ;;  %v9087_v50 = vld [vmem:[#allocation8_spill] sm:$0xff] }
 0x210   :  { %9083 = vst [vmem:[#allocation22_spill] sm:$0xff] %v6745_v22  ;;  %4980 = vmatmul.msk.f32.gmra.mxu0 %vm1399_vm3, %v6745_v22  ;;  %5000 = vmatmul.msk.f32.gmra.mxu2 %vm1399_vm3, %v6748_v30  ;;  %v9089_v37 = vmax.f32 %v9087_v50, %v9088_v4  ;;  %v1854_v38 = vrot.slane %v6520_v47, 6  ;;  %v108_v4 = vld [vmem:[%s8920_s3 + $0xc0] sm:$0xff] }
 0x211   :  { %9084 = vst [vmem:[#allocation16_spill] sm:$0xff] %v6748_v30  ;;  %v1355_v18 = vadd.f32 %v6466_v21, %v1339_v54  ;;  %5010 = vmatmul.msk.f32.gmra.mxu3 %vm1399_vm3, %v6751_v44  ;;  %v1312_v23 = vpop.f32.mrf.mxu3 }
 0x212   :  { %9085 = vst [vmem:[#allocation17_spill] sm:$0xff] %v6751_v44  ;;  %v1247_v49 = vpop.f32.mrf.mxu2  ;;  %v1092_v58 = vmax.f32 %v9089_v37, %v1080_v5  ;;  %v6838_v5 = vsel %vm1852_vm5, %v1854_v38, %v1856_v39  ;;  %v117_v37 = vld [vmem:[%s8920_s3 + $0x108] sm:$0xff] }
 0x213   :  { %v6761_v16 = vmax.f32 %v1355_v18, 0.0  ;;  %v1263_v0 = vadd.f32 %v1247_v49, %v1195_v41  ;;  %v115_v41 = vld [vmem:[%s8920_s3 + $0xf8] sm:$0xff]  ;;  %9095 = vst [vmem:[#allocation19_spill] sm:$0xff] %v6838_v5  ;;  %v1858_v18 = vrot.slane %v6589_v33, 6 }
 0x214   :  { %2084 = vmatpush.msra.mxu1 %v115_v41 }
 0x215   :  { %v1328_v26 = vadd.f32 %v1312_v23, %v1263_v0  ;;  %4992 = vmatmul.msk.f32.gmra.mxu1 %vm1399_vm3, %v6761_v16  ;;  %v6769_v61 = vrot.slane %v6761_v16, 1  ;;  %v6772_v24 = vrot.slane %v6761_v16, 2  ;;  %v1649_v35 = vrot.slane %v6761_v16, 7  ;;  %v111_v0 = vld [vmem:[%s8920_s3 + $0xd8] sm:$0xff] }
 0x216   :  { %v6850_v49 = vsel %vm1852_vm5, %v1856_v39, %v1858_v18  ;;  %v1860_v23 = vrot.slane %v6619_v6, 6  ;;  %2132 = vmatpush.msrb.mxu2 %v111_v0 }
 0x217   :  { %9090 = vst [vmem:[#allocation6_spill] sm:$0xff] %v6769_v61  ;;  %v1340_v60 = vmax.f32 %v1092_v58, %v1328_v26  ;;  %v6777_v25 = vsel %vm236_vm0, %v1395_v56, %v6769_v61  ;;  %v6781_v10 = vsel %vm1534_vm4, %v1550_v7, %v6772_v24  ;;  %v6784_v20 = vsel %vm416_vm2, %v1647_v14, %v1649_v35  ;;  %v109_v7 = vld [vmem:[%s8920_s3 + $0xc8] sm:$0xff]  ;;  %v118_v14 = vld [vmem:[%s8920_s3 + $0x110] sm:$0xff]  ;;  %v1197_v58 = vpop.f32.mrf.mxu1 }
 0x218   :  { %9091 = vst [vmem:[#allocation11_spill] sm:$0xff] %v6772_v24  ;;  %4981 = vmatmul.msk.f32.gmra.mxu0 %vm1399_vm3, %v6777_v25  ;;  %5001 = vmatmul.msk.f32.gmra.mxu2 %vm1399_vm3, %v6781_v10  ;;  %v1853_v56 = vrot.slane %v6488_v31, 6  ;;  %v6865_v50 = vsel %vm1852_vm5, %v1858_v18, %v1860_v23  ;;  %v114_v26 = vld [vmem:[%s8920_s3 + $0xf0] sm:$0xff] }
 0x219   :  { %9092 = vst [vmem:[#allocation25_spill] sm:$0xff] %v6777_v25  ;;  %v1356_v13 = vadd.f32 %v6466_v21, %v1340_v60  ;;  %5011 = vmatmul.msk.f32.gmra.mxu3 %vm1399_vm3, %v6784_v20  ;;  %2027 = vmatpush.msra.mxu0 %v109_v7  ;;  %v9100_v7 = vld [vmem:[#allocation20_spill] sm:$0xff] }
 0x21a   :  { %2178 = vmatpush.msrb.mxu3 %v118_v14  ;;  %v6826_v54 = vsel %vm1852_vm5, %v1853_v56, %v1854_v38  ;;  %9096 = vst [vmem:[#allocation7_spill] sm:$0xff] %v6850_v49  ;;  %2085 = vmatpush.msra.mxu1 %v114_v26  ;;  %v1144_v38 = vpop.f32.mrf.mxu0  ;;  %v9101_v14 = vld [vmem:[#allocation21_spill] sm:$0xff]  ;;  %v1250_v18 = vpop.f32.mrf.mxu2 }
 0x21b   :  { %v6793_v62 = vmax.f32 %v1356_v13, 0.0  ;;  %9094 = vst [vmem:[#allocation18_spill] sm:$0xff] %v6826_v54  ;;  %2028 = vmatpush.msra.mxu0 %v108_v4  ;;  %v950_v41 = vadd.f32 %v9101_v14, %v9100_v7  ;;  %v1198_v0 = vadd.f32 %v1197_v58, %v1144_v38  ;;  %v1315_v4 = vpop.f32.mrf.mxu3  ;;  %v9102_v26 = vld [vmem:[#allocation29_spill] sm:$0xff]  ;;  %v9105_v38 = vld [vmem:[#allocation28_spill] sm:$0xff] }
 0x21c   :  { %9097 = vst [vmem:[#allocation12_spill] sm:$0xff] %v6865_v50  ;;  %2179 = vmatpush.msrb.mxu3 %v117_v37  ;;  %v128_v58 = vld [vmem:[%s8920_s3 + $0x160] sm:$0xff] }
 0x21d   :  { %9093 = vst [vmem:[#allocation24_spill] sm:$0xff] %v6793_v62  ;;  %5023 = vmatmul.msk.f32.vlgmr.msrb.gmra.mxu1 %vm1399_vm3, %v6541_v8  ;;  %v8939_v42 = vrot.slane %v6793_v62, 7  ;;  %v6920_v7 = vrot.slane %v6793_v62, 1 }
 0x21f   :  { %v6801_v27 = vsel %vm416_vm2, %v1649_v35, %v8939_v42  ;;  %v1862_v35 = vrot.slane %v6661_v34, 6  ;;  %9104 = vst [vmem:[#allocation13_spill] sm:$0xff] %v6920_v7 }
 0x220   :  { %4982 = vmatmul.msk.f32.gmra.mxu0 %vm1399_vm3, %v6769_v61  ;;  %5002 = vmatmul.msk.f32.gmra.mxu2 %vm1399_vm3, %v6772_v24 }
 0x221   :  { %5012 = vmatmul.msk.f32.gmra.mxu3 %vm1399_vm3, %v6801_v27  ;;  %v6886_v60 = vsel %vm1852_vm5, %v1860_v23, %v1862_v35  ;;  %v6898_v56 = vsel %vm1852_vm5, %v1862_v35, %v1864_v43  ;;  %v1866_v23 = vrot.slane %v6733_v9, 6  ;;  %v1016_v35 = vadd.f32 %v9102_v26, %v950_v41 }
 0x222   :  { %9098 = vst [vmem:[#allocation27_spill] sm:$0xff] %v6886_v60 }
 0x223   :  { %9099 = vst [vmem:[#allocation26_spill] sm:$0xff] %v6898_v56  ;;  %v6913_v42 = vsel %vm1852_vm5, %v1864_v43, %v1866_v23  ;;  %v1081_v43 = vadd.f32 %v9105_v38, %v1016_v35  ;;  %v9107_v35 = vld [vmem:[#allocation9_spill] sm:$0xff] }
 0x224   :  { %9103 = vst [vmem:[#allocation8_spill] sm:$0xff] %v6913_v42 }
 0x225   :  { %5024 = vmatmul.msk.f32.gmra.mxu1 %vm1399_vm3, %v6571_v52 }
 0x228   :  { %5013 = vmatmul.msk.f32.vlgmr.msrb.gmra.mxu0 %vm1399_vm3, %v6488_v31  ;;  %5033 = vmatmul.msk.f32.vlgmr.msra.gmra.mxu2 %vm1399_vm3, %v6826_v54 }
 0x229   :  { %5043 = vmatmul.msk.f32.vlgmr.msra.gmra.mxu3 %vm1399_vm3, %v6547_v3  ;;  %2348 = vmatpush.msra.mxu2 %v128_v58  ;;  %v9108_v58 = vld [vmem:[#allocation14_spill] sm:$0xff] }
 0x22a   :  { %v9109_v38 = vmax.f32 %v9107_v35, %v9108_v58 }
 0x22d   :  { %5025 = vmatmul.msk.f32.gmra.mxu1 %vm1399_vm3, %v6601_v48 }
 0x230   :  { %5014 = vmatmul.msk.f32.gmra.mxu0 %vm1399_vm3, %v6520_v47  ;;  %5034 = vmatmul.msk.f32.gmra.mxu2 %vm1399_vm3, %v6838_v5 }
 0x231   :  { %5044 = vmatmul.msk.f32.gmra.mxu3 %vm1399_vm3, %v6577_v2 }
 0x235   :  { %5026 = vmatmul.msk.f32.gmra.mxu1 %vm1399_vm3, %v6643_v53 }
 0x238   :  { %5015 = vmatmul.msk.f32.gmra.mxu0 %vm1399_vm3, %v6559_v57  ;;  %5035 = vmatmul.msk.f32.gmra.mxu2 %vm1399_vm3, %v6850_v49 }
 0x239   :  { %5045 = vmatmul.msk.f32.gmra.mxu3 %vm1399_vm3, %v6607_v11 }
 0x23d   :  { %5027 = vmatmul.msk.f32.gmra.mxu1 %vm1399_vm3, %v6673_v46 }
 0x240   :  { %5016 = vmatmul.msk.f32.gmra.mxu0 %vm1399_vm3, %v6589_v33  ;;  %5036 = vmatmul.msk.f32.gmra.mxu2 %vm1399_vm3, %v6865_v50 }
 0x241   :  { %5046 = vmatmul.msk.f32.gmra.mxu3 %vm1399_vm3, %v6649_v51 }
 0x245   :  { %5028 = vmatmul.msk.f32.gmra.mxu1 %vm1399_vm3, %v6703_v29 }
 0x248   :  { %5017 = vmatmul.msk.f32.gmra.mxu0 %vm1399_vm3, %v6619_v6  ;;  %5037 = vmatmul.msk.f32.gmra.mxu2 %vm1399_vm3, %v6886_v60  ;;  %v1093_v60 = vmax.f32 %v9109_v38, %v1081_v43 }
 0x249   :  { %5047 = vmatmul.msk.f32.gmra.mxu3 %vm1399_vm3, %v6679_v32 }
 0x24a   :  { %v1504_v13 = vpop.f32.mrf.mxu1 }
 0x24d   :  { %5029 = vmatmul.msk.f32.gmra.mxu1 %vm1399_vm3, %v6745_v22 }
 0x250   :  { %5018 = vmatmul.msk.f32.gmra.mxu0 %vm1399_vm3, %v6661_v34  ;;  %5038 = vmatmul.msk.f32.gmra.mxu2 %vm1399_vm3, %v6898_v56  ;;  %v1264_v56 = vadd.f32 %v1250_v18, %v1198_v0  ;;  %v122_v18 = vld [vmem:[%s8920_s3 + $0x130] sm:$0xff]  ;;  %v131_v0 = vld [vmem:[%s8920_s3 + $0x178] sm:$0xff] }
 0x251   :  { %5048 = vmatmul.msk.f32.gmra.mxu3 %vm1399_vm3, %v6709_v19  ;;  %2234 = vmatpush.msrb.mxu0 %v122_v18  ;;  %v6960_v18 = vrot.slane %v6793_v62, 6 }
 0x252   :  { %v1507_v39 = vpop.f32.mrf.mxu1  ;;  %2405 = vmatpush.msra.mxu3 %v131_v0 }
 0x253   :  { %9111 = vst [vmem:[#allocation29_spill] sm:$0xff] %v6960_v18 }
 0x255   :  { %v1437_v37 = vpop.f32.mrf.mxu0  ;;  %5030 = vmatmul.msk.f32.gmra.mxu1 %vm1399_vm3, %v6777_v25 }
 0x256   :  { %v1505_v14 = vadd.f32 %v1504_v13, %v1437_v37  ;;  %v6938_v13 = vsel %vm236_vm0, %v6769_v61, %v6920_v7 }
 0x257   :  { %9106 = vst [vmem:[#allocation20_spill] sm:$0xff] %v6938_v13 }
 0x258   :  { %5019 = vmatmul.msk.f32.gmra.mxu0 %vm1399_vm3, %v6691_v55  ;;  %5039 = vmatmul.msk.f32.gmra.mxu2 %vm1399_vm3, %v6913_v42  ;;  %v1329_v42 = vadd.f32 %v1315_v4, %v1264_v56  ;;  %v125_v56 = vld [vmem:[%s8920_s3 + $0x148] sm:$0xff] }
 0x259   :  { %5049 = vmatmul.msk.f32.gmra.mxu3 %vm1399_vm3, %v6751_v44  ;;  %v1868_v44 = vrot.slane %v6761_v16, 6  ;;  %2291 = vmatpush.msrb.mxu1 %v125_v56 }
 0x25a   :  { %v1510_v41 = vpop.f32.mrf.mxu1 }
 0x25b   :  { %v1591_v26 = vpop.f32.mrf.mxu2  ;;  %v6951_v4 = vsel %vm1852_vm5, %v1866_v23, %v1868_v44  ;;  %v6969_v35 = vsel %vm1852_vm5, %v1868_v44, %v6960_v18 }
 0x25c   :  { %v1621_v19 = vadd.f32 %v1591_v26, %v1505_v14  ;;  %v1690_v32 = vpop.f32.mrf.mxu3  ;;  %9110 = vst [vmem:[#allocation21_spill] sm:$0xff] %v6951_v4  ;;  %v1341_v14 = vmax.f32 %v1093_v60, %v1329_v42 }
 0x25d   :  { %v1440_v37 = vpop.f32.mrf.mxu0  ;;  %5031 = vmatmul.msk.f32.gmra.mxu1 %vm1399_vm3, %v6938_v13  ;;  %9112 = vst [vmem:[#allocation28_spill] sm:$0xff] %v6969_v35 }
 0x25e   :  { %v6945_v51 = vadd.f32 %v1690_v32, %v1621_v19  ;;  %v1508_v32 = vadd.f32 %v1507_v39, %v1440_v37  ;;  %v1357_v23 = vadd.f32 %v6466_v21, %v1341_v14 }
 0x260   :  { %5020 = vmatmul.msk.f32.gmra.mxu0 %vm1399_vm3, %v6733_v9  ;;  %5040 = vmatmul.msk.f32.gmra.mxu2 %vm1399_vm3, %v6951_v4  ;;  %v6971_v39 = vmax.f32 %v1357_v23, 0.0 }
 0x261   :  { %5050 = vmatmul.msk.f32.gmra.mxu3 %vm1399_vm3, %v6784_v20 }
 0x262   :  { %v1513_v19 = vpop.f32.mrf.mxu1  ;;  %v1950_v14 = vrot.slane %v6971_v39, 7 }
 0x263   :  { %v1594_v43 = vpop.f32.mrf.mxu2 }
 0x264   :  { %v1622_v0 = vadd.f32 %v1594_v43, %v1508_v32  ;;  %v1693_v26 = vpop.f32.mrf.mxu3 }
 0x265   :  { %v1443_v42 = vpop.f32.mrf.mxu0  ;;  %5032 = vmatmul.msk.f32.gmra.mxu1 %vm1399_vm3, %v6920_v7 }
 0x266   :  { %v6965_v60 = vadd.f32 %v1693_v26, %v1622_v0  ;;  %v1511_v21 = vadd.f32 %v1510_v41, %v1443_v42  ;;  %v9113_v41 = vrot.slane %v6793_v62, 7 }
 0x268   :  { %5021 = vmatmul.msk.f32.gmra.mxu0 %vm1399_vm3, %v6761_v16  ;;  %5041 = vmatmul.msk.f32.gmra.mxu2 %vm1399_vm3, %v6969_v35  ;;  %v6991_v43 = vsel %vm416_vm2, %v9113_v41, %v1950_v14  ;;  %v121_v14 = vld [vmem:[%s8920_s3 + $0x128] sm:$0xff] }
 0x269   :  { %5051 = vmatmul.msk.f32.gmra.mxu3 %vm1399_vm3, %v6801_v27  ;;  %9114 = vst [vmem:[#allocation9_spill] sm:$0xff] %v6991_v43  ;;  %2235 = vmatpush.msrb.mxu0 %v121_v14 }
 0x26a   :  { %v1516_v37 = vpop.f32.mrf.mxu1 }
 0x26b   :  { %v1597_v58 = vpop.f32.mrf.mxu2 }
 0x26c   :  { %v1623_v38 = vadd.f32 %v1597_v58, %v1511_v21  ;;  %v1696_v56 = vpop.f32.mrf.mxu3 }
 0x26d   :  { %v1446_v44 = vpop.f32.mrf.mxu0  ;;  %5063 = vmatmul.msk.f32.vlgmr.msra.gmra.mxu1 %vm1399_vm3, %v6502_v63 }
 0x26e   :  { %v6982_v32 = vadd.f32 %v1696_v56, %v1623_v38  ;;  %v1514_v23 = vadd.f32 %v1513_v19, %v1446_v44  ;;  %v127_v56 = vld [vmem:[%s8920_s3 + $0x158] sm:$0xff]  ;;  %v130_v19 = vld [vmem:[%s8920_s3 + $0x170] sm:$0xff]  ;;  %v124_v44 = vld [vmem:[%s8920_s3 + $0x140] sm:$0xff] }
 0x26f   :  { %2349 = vmatpush.msra.mxu2 %v127_v56  ;;  %2292 = vmatpush.msrb.mxu1 %v124_v44 }
 0x270   :  { %5022 = vmatmul.msk.f32.gmra.mxu0 %vm1399_vm3, %v6793_v62  ;;  %5042 = vmatmul.msk.f32.gmra.mxu2 %vm1399_vm3, %v6960_v18 }
 0x271   :  { %5052 = vmatmul.msk.f32.gmra.mxu3 %vm1399_vm3, %v6991_v43 }
 0x272   :  { %v1519_v0 = vpop.f32.mrf.mxu1  ;;  %2406 = vmatpush.msra.mxu3 %v130_v19 }
 0x273   :  { %v1600_v26 = vpop.f32.mrf.mxu2 }
 0x274   :  { %v1624_v42 = vadd.f32 %v1600_v26, %v1514_v23  ;;  %v1699_v21 = vpop.f32.mrf.mxu3 }
 0x275   :  { %v1449_v58 = vpop.f32.mrf.mxu0  ;;  %5064 = vmatmul.msk.f32.gmra.mxu1 %vm1399_vm3, %v6541_v8 }
 0x276   :  { %v6997_v38 = vadd.f32 %v1699_v21, %v1624_v42  ;;  %v1517_v41 = vadd.f32 %v1516_v37, %v1449_v58 }
 0x278   :  { %5053 = vmatmul.msk.f32.vlgmr.msra.gmra.mxu0 %vm1399_vm3, %v6520_v47  ;;  %5073 = vmatmul.msk.f32.vlgmr.msrb.gmra.mxu2 %vm1399_vm3, %v6473_v15 }
 0x279   :  { %5083 = vmatmul.msk.f32.vlgmr.msrb.gmra.mxu3 %vm1399_vm3, %v6505_v40 }
 0x27a   :  { %v1522_v23 = vpop.f32.mrf.mxu1 }
 0x27b   :  { %v1603_v26 = vpop.f32.mrf.mxu2 }
 0x27c   :  { %v1625_v42 = vadd.f32 %v1603_v26, %v1517_v41  ;;  %v1702_v21 = vpop.f32.mrf.mxu3 }
 0x27d   :  { %v1452_v56 = vpop.f32.mrf.mxu0  ;;  %5065 = vmatmul.msk.f32.gmra.mxu1 %vm1399_vm3, %v6571_v52 }
 0x27e   :  { %v7019_v14 = vadd.f32 %v1702_v21, %v1625_v42  ;;  %v1520_v37 = vadd.f32 %v1519_v0, %v1452_v56 }
 0x280   :  { %5054 = vmatmul.msk.f32.gmra.mxu0 %vm1399_vm3, %v6559_v57  ;;  %5074 = vmatmul.msk.f32.gmra.mxu2 %vm1399_vm3, %v6488_v31 }
 0x281   :  { %5084 = vmatmul.msk.f32.gmra.mxu3 %vm1399_vm3, %v6544_v12 }
 0x282   :  { %v1525_v58 = vpop.f32.mrf.mxu1 }
 0x283   :  { %v1606_v19 = vpop.f32.mrf.mxu2 }
 0x284   :  { %v1626_v44 = vadd.f32 %v1606_v19, %v1520_v37  ;;  %v1705_v41 = vpop.f32.mrf.mxu3 }
 0x285   :  { %v1455_v26 = vpop.f32.mrf.mxu0  ;;  %5066 = vmatmul.msk.f32.gmra.mxu1 %vm1399_vm3, %v6601_v48 }
 0x286   :  { %v7029_v42 = vadd.f32 %v1705_v41, %v1626_v44  ;;  %v1523_v0 = vadd.f32 %v1522_v23, %v1455_v26  ;;  %v126_v41 = vld [vmem:[%s8920_s3 + $0x150] sm:$0xff]  ;;  %v120_v23 = vld [vmem:[%s8920_s3 + $0x120] sm:$0xff]  ;;  %v129_v26 = vld [vmem:[%s8920_s3 + $0x168] sm:$0xff] }
 0x287   :  { %2350 = vmatpush.msra.mxu2 %v126_v41  ;;  %2236 = vmatpush.msrb.mxu0 %v120_v23 }
 0x288   :  { %5055 = vmatmul.msk.f32.gmra.mxu0 %vm1399_vm3, %v6589_v33  ;;  %5075 = vmatmul.msk.f32.gmra.mxu2 %vm1399_vm3, %v6520_v47 }
 0x289   :  { %5085 = vmatmul.msk.f32.gmra.mxu3 %vm1399_vm3, %v6574_v45 }
 0x28a   :  { %v1528_v21 = vpop.f32.mrf.mxu1  ;;  %2407 = vmatpush.msra.mxu3 %v129_v26 }
 0x28b   :  { %v1609_v56 = vpop.f32.mrf.mxu2 }
 0x28c   :  { %v1627_v37 = vadd.f32 %v1609_v56, %v1523_v0  ;;  %v1708_v19 = vpop.f32.mrf.mxu3 }
 0x28d   :  { %v1458_v12 = vpop.f32.mrf.mxu0  ;;  %5067 = vmatmul.msk.f32.gmra.mxu1 %vm1399_vm3, %v6643_v53 }
 0x28e   :  { %v7039_v44 = vadd.f32 %v1708_v19, %v1627_v37  ;;  %v1526_v0 = vadd.f32 %v1525_v58, %v1458_v12  ;;  %v123_v37 = vld [vmem:[%s8920_s3 + $0x138] sm:$0xff] }
 0x28f   :  { %2293 = vmatpush.msrb.mxu1 %v123_v37 }
 0x290   :  { %5056 = vmatmul.msk.f32.gmra.mxu0 %vm1399_vm3, %v6619_v6  ;;  %5076 = vmatmul.msk.f32.gmra.mxu2 %vm1399_vm3, %v6559_v57 }
 0x291   :  { %5086 = vmatmul.msk.f32.gmra.mxu3 %vm1399_vm3, %v6604_v59 }
 0x292   :  { %v1531_v56 = vpop.f32.mrf.mxu1 }
 0x293   :  { %v1612_v19 = vpop.f32.mrf.mxu2 }
 0x294   :  { %v1628_v41 = vadd.f32 %v1612_v19, %v1526_v0  ;;  %v1711_v59 = vpop.f32.mrf.mxu3 }
 0x295   :  { %v1461_v45 = vpop.f32.mrf.mxu0  ;;  %5068 = vmatmul.msk.f32.gmra.mxu1 %vm1399_vm3, %v6673_v46 }
 0x296   :  { %v7061_v40 = vadd.f32 %v1711_v59, %v1628_v41  ;;  %v1529_v12 = vadd.f32 %v1528_v21, %v1461_v45 }
 0x298   :  { %5057 = vmatmul.msk.f32.gmra.mxu0 %vm1399_vm3, %v6661_v34  ;;  %5077 = vmatmul.msk.f32.gmra.mxu2 %vm1399_vm3, %v6589_v33 }
 0x299   :  { %5087 = vmatmul.msk.f32.gmra.mxu3 %vm1399_vm3, %v6646_v36 }
 0x29a   :  { %v1812_v58 = vpop.f32.mrf.mxu1 }
 0x29b   :  { %v1615_v23 = vpop.f32.mrf.mxu2 }
 0x29c   :  { %v1629_v26 = vadd.f32 %v1615_v23, %v1529_v12  ;;  %v1714_v0 = vpop.f32.mrf.mxu3 }
 0x29d   :  { %v1464_v37 = vpop.f32.mrf.mxu0  ;;  %5069 = vmatmul.msk.f32.gmra.mxu1 %vm1399_vm3, %v6703_v29 }
 0x29e   :  { %v7071_v59 = vadd.f32 %v1714_v0, %v1629_v26  ;;  %v1532_v45 = vadd.f32 %v1531_v56, %v1464_v37  ;;  %v143_v56 = vld [vmem:[%s8920_s3 + $0x1d8] sm:$0xff] }
 0x29f   :  { %2586 = vmatpush.msrb.mxu2 %v143_v56  ;;  %v137_v56 = vld [vmem:[%s8920_s3 + $0x1a8] sm:$0xff] }
 0x2a0   :  { %5058 = vmatmul.msk.f32.gmra.mxu0 %vm1399_vm3, %v6691_v55  ;;  %5078 = vmatmul.msk.f32.gmra.mxu2 %vm1399_vm3, %v6619_v6 }
 0x2a1   :  { %5088 = vmatmul.msk.f32.gmra.mxu3 %vm1399_vm3, %v6676_v17  ;;  %2519 = vmatpush.msra.mxu1 %v137_v56 }
 0x2a2   :  { %v1815_v21 = vpop.f32.mrf.mxu1 }
 0x2a3   :  { %v1618_v19 = vpop.f32.mrf.mxu2 }
 0x2a4   :  { %v1630_v41 = vadd.f32 %v1618_v19, %v1532_v45  ;;  %v1717_v12 = vpop.f32.mrf.mxu3  ;;  %v140_v45 = vld [vmem:[%s8920_s3 + $0x1c0] sm:$0xff] }
 0x2a5   :  { %v1749_v23 = vpop.f32.mrf.mxu0  ;;  %5070 = vmatmul.msk.f32.gmra.mxu1 %vm1399_vm3, %v6745_v22  ;;  %2633 = vmatpush.msrb.mxu3 %v140_v45 }
 0x2a6   :  { %v7081_v26 = vadd.f32 %v1717_v12, %v1630_v41  ;;  %v1779_v0 = vadd.f32 %v1749_v23, %v6945_v51  ;;  %v134_v51 = vld [vmem:[%s8920_s3 + $0x190] sm:$0xff] }
 0x2a7   :  { %2462 = vmatpush.msra.mxu0 %v134_v51 }
 0x2a8   :  { %5059 = vmatmul.msk.f32.gmra.mxu0 %vm1399_vm3, %v6733_v9  ;;  %5079 = vmatmul.msk.f32.gmra.mxu2 %vm1399_vm3, %v6661_v34  ;;  %v1842_v17 = vadd.f32 %v1812_v58, %v1779_v0 }
 0x2a9   :  { %5089 = vmatmul.msk.f32.gmra.mxu3 %vm1399_vm3, %v6706_v1 }
 0x2aa   :  { %v1818_v37 = vpop.f32.mrf.mxu1 }
 0x2ab   :  { %v1909_v19 = vpop.f32.mrf.mxu2 }
 0x2ac   :  { %v1939_v58 = vadd.f32 %v1909_v19, %v1842_v17  ;;  %v1971_v41 = vpop.f32.mrf.mxu3 }
 0x2ad   :  { %v1752_v12 = vpop.f32.mrf.mxu0  ;;  %5071 = vmatmul.msk.f32.gmra.mxu1 %vm1399_vm3, %v6777_v25 }
 0x2ae   :  { %v7101_v23 = vadd.f32 %v1971_v41, %v1939_v58  ;;  %v1780_v0 = vadd.f32 %v1752_v12, %v6965_v60 }
 0x2b0   :  { %5060 = vmatmul.msk.f32.gmra.mxu0 %vm1399_vm3, %v6761_v16  ;;  %5080 = vmatmul.msk.f32.gmra.mxu2 %vm1399_vm3, %v6691_v55  ;;  %v1843_v17 = vadd.f32 %v1815_v21, %v1780_v0 }
 0x2b1   :  { %5090 = vmatmul.msk.f32.gmra.mxu3 %vm1399_vm3, %v6748_v30 }
 0x2b2   :  { %v1821_v51 = vpop.f32.mrf.mxu1 }
 0x2b3   :  { %v1912_v45 = vpop.f32.mrf.mxu2 }
 0x2b4   :  { %v1940_v19 = vadd.f32 %v1912_v45, %v1843_v17  ;;  %v1974_v58 = vpop.f32.mrf.mxu3 }
 0x2b5   :  { %v1755_v60 = vpop.f32.mrf.mxu0  ;;  %5072 = vmatmul.msk.f32.gmra.mxu1 %vm1399_vm3, %v6769_v61 }
 0x2b6   :  { %v7115_v41 = vadd.f32 %v1974_v58, %v1940_v19  ;;  %v1781_v12 = vadd.f32 %v1755_v60, %v6982_v32 }
 0x2b8   :  { %5061 = vmatmul.msk.f32.gmra.mxu0 %vm1399_vm3, %v6793_v62  ;;  %5081 = vmatmul.msk.f32.gmra.mxu2 %vm1399_vm3, %v6733_v9  ;;  %v1844_v21 = vadd.f32 %v1818_v37, %v1781_v12 }
 0x2b9   :  { %5091 = vmatmul.msk.f32.gmra.mxu3 %vm1399_vm3, %v6781_v10 }
 0x2ba   :  { %v1824_v0 = vpop.f32.mrf.mxu1 }
 0x2bb   :  { %v1915_v56 = vpop.f32.mrf.mxu2 }
 0x2bc   :  { %v1941_v17 = vadd.f32 %v1915_v56, %v1844_v21  ;;  %v1977_v45 = vpop.f32.mrf.mxu3 }
 0x2bd   :  { %v1758_v30 = vpop.f32.mrf.mxu0  ;;  %5103 = vmatmul.msk.f32.vlgmr.msrb.gmra.mxu1 %vm1399_vm3, %v6488_v31 }
 0x2be   :  { %v7126_v19 = vadd.f32 %v1977_v45, %v1941_v17  ;;  %v1782_v32 = vadd.f32 %v1758_v30, %v6997_v38  ;;  %v142_v38 = vld [vmem:[%s8920_s3 + $0x1d0] sm:$0xff]  ;;  %v139_v45 = vld [vmem:[%s8920_s3 + $0x1b8] sm:$0xff] }
 0x2bf   :  { %2587 = vmatpush.msrb.mxu2 %v142_v38  ;;  %2634 = vmatpush.msrb.mxu3 %v139_v45 }
 0x2c0   :  { %5062 = vmatmul.msk.f32.gmra.mxu0 %vm1399_vm3, %v6971_v39  ;;  %5082 = vmatmul.msk.f32.gmra.mxu2 %vm1399_vm3, %v6761_v16  ;;  %v1845_v37 = vadd.f32 %v1821_v51, %v1782_v32  ;;  %v133_v51 = vld [vmem:[%s8920_s3 + $0x188] sm:$0xff]  ;;  %v136_v32 = vld [vmem:[%s8920_s3 + $0x1a0] sm:$0xff] }
 0x2c1   :  { %5092 = vmatmul.msk.f32.gmra.mxu3 %vm1399_vm3, %v6772_v24  ;;  %2463 = vmatpush.msra.mxu0 %v133_v51  ;;  %v161_v24 = vld [vmem:[%s8920_s3 + $0x268] sm:$0xff] }
 0x2c2   :  { %v1827_v58 = vpop.f32.mrf.mxu1  ;;  %2520 = vmatpush.msra.mxu1 %v136_v32 }
 0x2c3   :  { %v1918_v60 = vpop.f32.mrf.mxu2 }
 0x2c4   :  { %v1942_v12 = vadd.f32 %v1918_v60, %v1845_v37  ;;  %v1980_v21 = vpop.f32.mrf.mxu3 }
 0x2c5   :  { %v1761_v56 = vpop.f32.mrf.mxu0  ;;  %5104 = vmatmul.msk.f32.gmra.mxu1 %vm1399_vm3, %v6520_v47 }
 0x2c6   :  { %v7137_v17 = vadd.f32 %v1980_v21, %v1942_v12  ;;  %v1783_v30 = vadd.f32 %v1761_v56, %v7019_v14 }
 0x2c8   :  { %5093 = vmatmul.msk.f32.vlgmr.msrb.gmra.mxu0 %vm1399_vm3, %v6508_v28  ;;  %5113 = vmatmul.msk.f32.vlgmr.msra.gmra.mxu2 %vm1399_vm3, %v6541_v8  ;;  %v1846_v14 = vadd.f32 %v1824_v0, %v1783_v30 }
 0x2c9   :  { %5123 = vmatmul.msk.f32.vlgmr.msra.gmra.mxu3 %vm1399_vm3, %v6826_v54 }
 0x2ca   :  { %v1830_v37 = vpop.f32.mrf.mxu1 }
 0x2cb   :  { %v1921_v60 = vpop.f32.mrf.mxu2 }
 0x2cc   :  { %v1943_v12 = vadd.f32 %v1921_v60, %v1846_v14  ;;  %v1983_v21 = vpop.f32.mrf.mxu3 }
 0x2cd   :  { %v1764_v56 = vpop.f32.mrf.mxu0  ;;  %5105 = vmatmul.msk.f32.gmra.mxu1 %vm1399_vm3, %v6559_v57 }
 0x2ce   :  { %v7160_v38 = vadd.f32 %v1983_v21, %v1943_v12  ;;  %v1784_v51 = vadd.f32 %v1764_v56, %v7029_v42 }
 0x2d0   :  { %9115 = vst [vmem:[#allocation14_spill] sm:$0xff] %v7160_v38  ;;  %5094 = vmatmul.msk.f32.gmra.mxu0 %vm1399_vm3, %v6547_v3  ;;  %5114 = vmatmul.msk.f32.gmra.mxu2 %vm1399_vm3, %v6571_v52  ;;  %v1847_v0 = vadd.f32 %v1827_v58, %v1784_v51 }
 0x2d1   :  { %5124 = vmatmul.msk.f32.gmra.mxu3 %vm1399_vm3, %v6838_v5  ;;  %v145_v5 = vld [vmem:[%s8920_s3 + $0x1e8] sm:$0xff] }
 0x2d2   :  { %v1833_v30 = vpop.f32.mrf.mxu1 }
 0x2d3   :  { %v1924_v45 = vpop.f32.mrf.mxu2 }
 0x2d4   :  { %v1944_v32 = vadd.f32 %v1924_v45, %v1847_v0  ;;  %v1986_v14 = vpop.f32.mrf.mxu3 }
 0x2d5   :  { %v1767_v60 = vpop.f32.mrf.mxu0  ;;  %5106 = vmatmul.msk.f32.gmra.mxu1 %vm1399_vm3, %v6589_v33 }
 0x2d6   :  { %v7171_v12 = vadd.f32 %v1986_v14, %v1944_v32  ;;  %v1785_v42 = vadd.f32 %v1767_v60, %v7039_v44  ;;  %v141_v14 = vld [vmem:[%s8920_s3 + $0x1c8] sm:$0xff]  ;;  %v132_v60 = vld [vmem:[%s8920_s3 + $0x180] sm:$0xff] }
 0x2d7   :  { %2588 = vmatpush.msrb.mxu2 %v141_v14  ;;  %2464 = vmatpush.msra.mxu0 %v132_v60  ;;  %v9119_v14 = vld [vmem:[#allocation41_spill] sm:$0xff] }
 0x2d8   :  { %9116 = vst [vmem:[#allocation42_spill] sm:$0xff] %v7171_v12  ;;  %5095 = vmatmul.msk.f32.gmra.mxu0 %vm1399_vm3, %v6577_v2  ;;  %5115 = vmatmul.msk.f32.gmra.mxu2 %vm1399_vm3, %v6601_v48  ;;  %v1848_v58 = vadd.f32 %v1830_v37, %v1785_v42 }
 0x2d9   :  { %5125 = vmatmul.msk.f32.gmra.mxu3 %vm1399_vm3, %v6850_v49 }
 0x2da   :  { %v1836_v21 = vpop.f32.mrf.mxu1 }
 0x2db   :  { %v1927_v56 = vpop.f32.mrf.mxu2 }
 0x2dc   :  { %v1945_v51 = vadd.f32 %v1927_v56, %v1848_v58  ;;  %v1989_v0 = vpop.f32.mrf.mxu3  ;;  %v135_v58 = vld [vmem:[%s8920_s3 + $0x198] sm:$0xff] }
 0x2dd   :  { %v1770_v45 = vpop.f32.mrf.mxu0  ;;  %5107 = vmatmul.msk.f32.gmra.mxu1 %vm1399_vm3, %v6619_v6 }
 0x2de   :  { %v7182_v32 = vadd.f32 %v1989_v0, %v1945_v51  ;;  %v1786_v44 = vadd.f32 %v1770_v45, %v7061_v40  ;;  %v138_v40 = vld [vmem:[%s8920_s3 + $0x1b0] sm:$0xff]  ;;  %2521 = vmatpush.msra.mxu1 %v135_v58 }
 0x2df   :  { %2635 = vmatpush.msrb.mxu3 %v138_v40  ;;  %v9120_v40 = vld [vmem:[#allocation27_spill] sm:$0xff] }
 0x2e0   :  { %9117 = vst [vmem:[#allocation43_spill] sm:$0xff] %v7182_v32  ;;  %5096 = vmatmul.msk.f32.gmra.mxu0 %vm1399_vm3, %v6607_v11  ;;  %5116 = vmatmul.msk.f32.gmra.mxu2 %vm1399_vm3, %v6643_v53  ;;  %v1849_v37 = vadd.f32 %v1833_v30, %v1786_v44 }
 0x2e1   :  { %5126 = vmatmul.msk.f32.gmra.mxu3 %vm1399_vm3, %v6865_v50 }
 0x2e2   :  { %v1839_v42 = vpop.f32.mrf.mxu1 }
 0x2e3   :  { %v1930_v56 = vpop.f32.mrf.mxu2 }
 0x2e4   :  { %v1946_v30 = vadd.f32 %v1930_v56, %v1849_v37  ;;  %v1992_v51 = vpop.f32.mrf.mxu3 }
 0x2e5   :  { %v1773_v0 = vpop.f32.mrf.mxu0  ;;  %5108 = vmatmul.msk.f32.gmra.mxu1 %vm1399_vm3, %v6661_v34 }
 0x2e6   :  { %v7205_v45 = vadd.f32 %v1992_v51, %v1946_v30  ;;  %v1787_v44 = vadd.f32 %v1773_v0, %v7071_v59  ;;  %v9122_v51 = vld [vmem:[#allocation5_spill] sm:$0xff]  ;;  %v9123_v0 = vld [vmem:[#allocation26_spill] sm:$0xff] }
 0x2e8   :  { %9118 = vst [vmem:[#allocation44_spill] sm:$0xff] %v7205_v45  ;;  %5097 = vmatmul.msk.f32.gmra.mxu0 %vm1399_vm3, %v9119_v14  ;;  %5117 = vmatmul.msk.f32.gmra.mxu2 %vm1399_vm3, %v6673_v46  ;;  %v1850_v60 = vadd.f32 %v1836_v21, %v1787_v44 }
 0x2e9   :  { %5127 = vmatmul.msk.f32.gmra.mxu3 %vm1399_vm3, %v9120_v40 }
 0x2ea   :  { %v2087_v37 = vpop.f32.mrf.mxu1 }
 0x2eb   :  { %v1933_v58 = vpop.f32.mrf.mxu2 }
 0x2ec   :  { %v1947_v56 = vadd.f32 %v1933_v58, %v1850_v60  ;;  %v1995_v50 = vpop.f32.mrf.mxu3 }
 0x2ed   :  { %v1776_v49 = vpop.f32.mrf.mxu0  ;;  %5109 = vmatmul.msk.f32.gmra.mxu1 %vm1399_vm3, %v6691_v55 }
 0x2ee   :  { %v7216_v30 = vadd.f32 %v1995_v50, %v1947_v56  ;;  %v1788_v59 = vadd.f32 %v1776_v49, %v7081_v26  ;;  %v9125_v50 = vld [vmem:[#allocation23_spill] sm:$0xff]  ;;  %v9126_v26 = vld [vmem:[#allocation8_spill] sm:$0xff] }
 0x2f0   :  { %9121 = vst [vmem:[#allocation41_spill] sm:$0xff] %v7216_v30  ;;  %5098 = vmatmul.msk.f32.gmra.mxu0 %vm1399_vm3, %v9122_v51  ;;  %5118 = vmatmul.msk.f32.gmra.mxu2 %vm1399_vm3, %v6703_v29  ;;  %v1851_v21 = vadd.f32 %v1839_v42, %v1788_v59  ;;  %v152_v42 = vld [vmem:[%s8920_s3 + $0x220] sm:$0xff]  ;;  %v155_v59 = vld [vmem:[%s8920_s3 + $0x238] sm:$0xff] }
 0x2f1   :  { %5128 = vmatmul.msk.f32.gmra.mxu3 %vm1399_vm3, %v9123_v0  ;;  %2794 = vmatpush.msra.mxu2 %v152_v42  ;;  %v149_v42 = vld [vmem:[%s8920_s3 + $0x208] sm:$0xff] }
 0x2f2   :  { %v2090_v44 = vpop.f32.mrf.mxu1  ;;  %2851 = vmatpush.msra.mxu3 %v155_v59  ;;  %2737 = vmatpush.msrb.mxu1 %v149_v42 }
 0x2f3   :  { %v1936_v60 = vpop.f32.mrf.mxu2 }
 0x2f4   :  { %v1948_v58 = vadd.f32 %v1936_v60, %v1851_v21  ;;  %v1998_v40 = vpop.f32.mrf.mxu3 }
 0x2f5   :  { %v7225_v45 = vpop.f32.mrf.mxu0  ;;  %5110 = vmatmul.msk.f32.gmra.mxu1 %vm1399_vm3, %v6733_v9 }
 0x2f6   :  { %v7229_v49 = vadd.f32 %v1998_v40, %v1948_v58  ;;  %v146_v40 = vld [vmem:[%s8920_s3 + $0x1f0] sm:$0xff] }
 0x2f7   :  { %2680 = vmatpush.msrb.mxu0 %v146_v40 }
 0x2f8   :  { %9124 = vst [vmem:[#allocation5_spill] sm:$0xff] %v7229_v49  ;;  %5099 = vmatmul.msk.f32.gmra.mxu0 %vm1399_vm3, %v9125_v50  ;;  %5119 = vmatmul.msk.f32.gmra.mxu2 %vm1399_vm3, %v6745_v22  ;;  %v9127_v49 = vld [vmem:[#allocation17_spill] sm:$0xff] }
 0x2f9   :  { %5129 = vmatmul.msk.f32.gmra.mxu3 %vm1399_vm3, %v9126_v26  ;;  %2681 = vmatpush.msrb.mxu0 %v145_v5 }
 0x2fa   :  { %v2093_v56 = vpop.f32.mrf.mxu1 }
 0x2fb   :  { %v2134_v21 = vpop.f32.mrf.mxu2 }
 0x2fc   :  { %v2135_v60 = vadd.f32 %v2134_v21, %v2087_v37  ;;  %v2181_v58 = vpop.f32.mrf.mxu3 }
 0x2fd   :  { %v7246_v26 = vpop.f32.mrf.mxu0  ;;  %5111 = vmatmul.msk.f32.gmra.mxu1 %vm1399_vm3, %v6761_v16 }
 0x2fe   :  { %v7250_v0 = vadd.f32 %v2181_v58, %v2135_v60 }
 0x300   :  { %5100 = vmatmul.msk.f32.gmra.mxu0 %vm1399_vm3, %v9127_v49  ;;  %5120 = vmatmul.msk.f32.gmra.mxu2 %vm1399_vm3, %v6777_v25 }
 0x301   :  { %5130 = vmatmul.msk.f32.gmra.mxu3 %vm1399_vm3, %v6951_v4 }
 0x302   :  { %v2096_v37 = vpop.f32.mrf.mxu1 }
 0x303   :  { %v2137_v40 = vpop.f32.mrf.mxu2 }
 0x304   :  { %v2138_v59 = vadd.f32 %v2137_v40, %v2090_v44  ;;  %v2184_v21 = vpop.f32.mrf.mxu3 }
 0x305   :  { %v7261_v60 = vpop.f32.mrf.mxu0  ;;  %5112 = vmatmul.msk.f32.gmra.mxu1 %vm1399_vm3, %v6793_v62 }
 0x306   :  { %v7265_v58 = vadd.f32 %v2184_v21, %v2138_v59 }
 0x308   :  { %5101 = vmatmul.msk.f32.gmra.mxu0 %vm1399_vm3, %v6784_v20  ;;  %5121 = vmatmul.msk.f32.gmra.mxu2 %vm1399_vm3, %v6938_v13 }
 0x309   :  { %5131 = vmatmul.msk.f32.gmra.mxu3 %vm1399_vm3, %v6969_v35 }
 0x30a   :  { %v2099_v42 = vpop.f32.mrf.mxu1 }
 0x30b   :  { %v2140_v4 = vpop.f32.mrf.mxu2 }
 0x30c   :  { %v2141_v44 = vadd.f32 %v2140_v4, %v2093_v56  ;;  %v2187_v40 = vpop.f32.mrf.mxu3 }
 0x30d   :  { %v7273_v30 = vpop.f32.mrf.mxu0  ;;  %5143 = vmatmul.msk.f32.vlgmr.msra.gmra.mxu1 %vm1399_vm3, %v6520_v47 }
 0x30e   :  { %v7277_v59 = vadd.f32 %v2187_v40, %v2141_v44  ;;  %v151_v40 = vld [vmem:[%s8920_s3 + $0x218] sm:$0xff] }
 0x30f   :  { %2795 = vmatpush.msra.mxu2 %v151_v40 }
 0x310   :  { %5102 = vmatmul.msk.f32.gmra.mxu0 %vm1399_vm3, %v6801_v27  ;;  %5122 = vmatmul.msk.f32.gmra.mxu2 %vm1399_vm3, %v6920_v7 }
 0x311   :  { %5132 = vmatmul.msk.f32.gmra.mxu3 %vm1399_vm3, %v6960_v18 }
 0x312   :  { %v2102_v21 = vpop.f32.mrf.mxu1 }
 0x313   :  { %v2143_v35 = vpop.f32.mrf.mxu2 }
 0x314   :  { %v2144_v4 = vadd.f32 %v2143_v35, %v2096_v37  ;;  %v2190_v56 = vpop.f32.mrf.mxu3  ;;  %v154_v35 = vld [vmem:[%s8920_s3 + $0x230] sm:$0xff]  ;;  %v148_v37 = vld [vmem:[%s8920_s3 + $0x200] sm:$0xff] }
 0x315   :  { %v7285_v32 = vpop.f32.mrf.mxu0  ;;  %5144 = vmatmul.msk.f32.gmra.mxu1 %vm1399_vm3, %v6559_v57  ;;  %2852 = vmatpush.msra.mxu3 %v154_v35 }
 0x316   :  { %9128 = vst [vmem:[#allocation23_spill] sm:$0xff] %v7285_v32  ;;  %v7289_v44 = vadd.f32 %v2190_v56, %v2144_v4  ;;  %2738 = vmatpush.msrb.mxu1 %v148_v37 }
 0x318   :  { %5133 = vmatmul.msk.f32.vlgmr.msra.gmra.mxu0 %vm1399_vm3, %v6547_v3  ;;  %5153 = vmatmul.msk.f32.vlgmr.msrb.gmra.mxu2 %vm1399_vm3, %v6502_v63 }
 0x319   :  { %5163 = vmatmul.msk.f32.vlgmr.msrb.gmra.mxu3 %vm1399_vm3, %v6473_v15 }
 0x31a   :  { %v2105_v4 = vpop.f32.mrf.mxu1 }
 0x31b   :  { %v2146_v5 = vpop.f32.mrf.mxu2 }
 0x31c   :  { %v2147_v56 = vadd.f32 %v2146_v5, %v2099_v42  ;;  %v2193_v40 = vpop.f32.mrf.mxu3 }
 0x31d   :  { %v7309_v18 = vpop.f32.mrf.mxu0  ;;  %5145 = vmatmul.msk.f32.gmra.mxu1 %vm1399_vm3, %v6589_v33 }
 0x31e   :  { %9129 = vst [vmem:[#allocation17_spill] sm:$0xff] %v7309_v18  ;;  %v7313_v12 = vadd.f32 %v2193_v40, %v2147_v56 }
 0x320   :  { %5134 = vmatmul.msk.f32.gmra.mxu0 %vm1399_vm3, %v6577_v2  ;;  %5154 = vmatmul.msk.f32.gmra.mxu2 %vm1399_vm3, %v6541_v8 }
 0x321   :  { %5164 = vmatmul.msk.f32.gmra.mxu3 %vm1399_vm3, %v6488_v31 }
 0x322   :  { %v2108_v35 = vpop.f32.mrf.mxu1 }
 0x323   :  { %v2149_v37 = vpop.f32.mrf.mxu2 }
 0x324   :  { %v2150_v42 = vadd.f32 %v2149_v37, %v2102_v21  ;;  %v2196_v5 = vpop.f32.mrf.mxu3 }
 0x325   :  { %v7321_v15 = vpop.f32.mrf.mxu0  ;;  %5146 = vmatmul.msk.f32.gmra.mxu1 %vm1399_vm3, %v6619_v6 }
 0x326   :  { %9130 = vst [vmem:[#allocation45_spill] sm:$0xff] %v7321_v15  ;;  %v7325_v56 = vadd.f32 %v2196_v5, %v2150_v42  ;;  %v150_v5 = vld [vmem:[%s8920_s3 + $0x210] sm:$0xff] }
 0x327   :  { %2796 = vmatpush.msra.mxu2 %v150_v5 }
 0x328   :  { %5135 = vmatmul.msk.f32.gmra.mxu0 %vm1399_vm3, %v6607_v11  ;;  %5155 = vmatmul.msk.f32.gmra.mxu2 %vm1399_vm3, %v6571_v52 }
 0x329   :  { %5165 = vmatmul.msk.f32.gmra.mxu3 %vm1399_vm3, %v6520_v47 }
 0x32a   :  { %v2111_v40 = vpop.f32.mrf.mxu1 }
 0x32b   :  { %v2152_v18 = vpop.f32.mrf.mxu2 }
 0x32c   :  { %v2153_v21 = vadd.f32 %v2152_v18, %v2105_v4  ;;  %v2199_v37 = vpop.f32.mrf.mxu3  ;;  %v144_v18 = vld [vmem:[%s8920_s3 + $0x1e0] sm:$0xff]  ;;  %v153_v4 = vld [vmem:[%s8920_s3 + $0x228] sm:$0xff] }
 0x32d   :  { %v7333_v63 = vpop.f32.mrf.mxu0  ;;  %5147 = vmatmul.msk.f32.gmra.mxu1 %vm1399_vm3, %v6661_v34  ;;  %2682 = vmatpush.msrb.mxu0 %v144_v18 }
 0x32e   :  { %9131 = vst [vmem:[#allocation46_spill] sm:$0xff] %v7333_v63  ;;  %v7337_v42 = vadd.f32 %v2199_v37, %v2153_v21  ;;  %2853 = vmatpush.msra.mxu3 %v153_v4  ;;  %v147_v37 = vld [vmem:[%s8920_s3 + $0x1f8] sm:$0xff] }
 0x32f   :  { %2739 = vmatpush.msrb.mxu1 %v147_v37 }
 0x330   :  { %5136 = vmatmul.msk.f32.gmra.mxu0 %vm1399_vm3, %v9119_v14  ;;  %5156 = vmatmul.msk.f32.gmra.mxu2 %vm1399_vm3, %v6601_v48 }
 0x331   :  { %5166 = vmatmul.msk.f32.gmra.mxu3 %vm1399_vm3, %v6559_v57  ;;  %2965 = vmatpush.msra.mxu1 %v161_v24 }
 0x332   :  { %v2114_v21 = vpop.f32.mrf.mxu1 }
 0x333   :  { %v2155_v5 = vpop.f32.mrf.mxu2 }
 0x334   :  { %v2156_v63 = vadd.f32 %v2155_v5, %v2108_v35  ;;  %v2202_v15 = vpop.f32.mrf.mxu3 }
 0x335   :  { %v7357_v54 = vpop.f32.mrf.mxu0  ;;  %5148 = vmatmul.msk.f32.gmra.mxu1 %vm1399_vm3, %v6691_v55 }
 0x336   :  { %9132 = vst [vmem:[#allocation47_spill] sm:$0xff] %v7357_v54  ;;  %v7361_v32 = vadd.f32 %v2202_v15, %v2156_v63 }
 0x338   :  { %5137 = vmatmul.msk.f32.gmra.mxu0 %vm1399_vm3, %v9122_v51  ;;  %5157 = vmatmul.msk.f32.gmra.mxu2 %vm1399_vm3, %v6643_v53 }
 0x339   :  { %5167 = vmatmul.msk.f32.gmra.mxu3 %vm1399_vm3, %v6589_v33 }
 0x33a   :  { %v2295_v18 = vpop.f32.mrf.mxu1 }
 0x33b   :  { %v2158_v4 = vpop.f32.mrf.mxu2 }
 0x33c   :  { %v2159_v35 = vadd.f32 %v2158_v4, %v2111_v40  ;;  %v2205_v37 = vpop.f32.mrf.mxu3 }
 0x33d   :  { %v7369_v5 = vpop.f32.mrf.mxu0  ;;  %5149 = vmatmul.msk.f32.gmra.mxu1 %vm1399_vm3, %v6733_v9 }
 0x33e   :  { %9133 = vst [vmem:[#allocation48_spill] sm:$0xff] %v7369_v5  ;;  %v7373_v15 = vadd.f32 %v2205_v37, %v2159_v35 }
 0x340   :  { %5138 = vmatmul.msk.f32.gmra.mxu0 %vm1399_vm3, %v9125_v50  ;;  %5158 = vmatmul.msk.f32.gmra.mxu2 %vm1399_vm3, %v6673_v46 }
 0x341   :  { %5168 = vmatmul.msk.f32.gmra.mxu3 %vm1399_vm3, %v6619_v6 }
 0x342   :  { %v2298_v63 = vpop.f32.mrf.mxu1 }
 0x343   :  { %v2161_v54 = vpop.f32.mrf.mxu2 }
 0x344   :  { %v2162_v40 = vadd.f32 %v2161_v54, %v2114_v21  ;;  %v2208_v4 = vpop.f32.mrf.mxu3  ;;  %v164_v54 = vld [vmem:[%s8920_s3 + $0x280] sm:$0xff] }
 0x345   :  { %v2238_v38 = vpop.f32.mrf.mxu0  ;;  %5150 = vmatmul.msk.f32.gmra.mxu1 %vm1399_vm3, %v6761_v16  ;;  %3022 = vmatpush.msrb.mxu2 %v164_v54 }
 0x346   :  { %v7383_v5 = vadd.f32 %v2208_v4, %v2162_v40  ;;  %v2268_v35 = vadd.f32 %v2238_v38, %v7250_v0  ;;  %v158_v38 = vld [vmem:[%s8920_s3 + $0x250] sm:$0xff] }
 0x347   :  { %v170_v0 = vld [vmem:[%s8920_s3 + $0x2b0] sm:$0xff]  ;;  %2908 = vmatpush.msra.mxu0 %v158_v38 }
 0x348   :  { %5139 = vmatmul.msk.f32.gmra.mxu0 %vm1399_vm3, %v9127_v49  ;;  %5159 = vmatmul.msk.f32.gmra.mxu2 %vm1399_vm3, %v6703_v29  ;;  %v2325_v37 = vadd.f32 %v2295_v18, %v2268_v35 }
 0x349   :  { %5169 = vmatmul.msk.f32.gmra.mxu3 %vm1399_vm3, %v6661_v34 }
 0x34a   :  { %v2301_v21 = vpop.f32.mrf.mxu1  ;;  %3089 = vmatpush.msrb.mxu3 %v170_v0 }
 0x34b   :  { %v2352_v40 = vpop.f32.mrf.mxu2 }
 0x34c   :  { %v2382_v18 = vadd.f32 %v2352_v40, %v2325_v37  ;;  %v2409_v4 = vpop.f32.mrf.mxu3 }
 0x34d   :  { %v2241_v35 = vpop.f32.mrf.mxu0  ;;  %5151 = vmatmul.msk.f32.gmra.mxu1 %vm1399_vm3, %v6793_v62 }
 0x34e   :  { %v7403_v7 = vadd.f32 %v2409_v4, %v2382_v18  ;;  %v2269_v54 = vadd.f32 %v2241_v35, %v7265_v58 }
 0x350   :  { %5140 = vmatmul.msk.f32.gmra.mxu0 %vm1399_vm3, %v6784_v20  ;;  %5160 = vmatmul.msk.f32.gmra.mxu2 %vm1399_vm3, %v6745_v22  ;;  %v2326_v37 = vadd.f32 %v2298_v63, %v2269_v54 }
 0x351   :  { %5170 = vmatmul.msk.f32.gmra.mxu3 %vm1399_vm3, %v6691_v55 }
 0x352   :  { %v2304_v38 = vpop.f32.mrf.mxu1 }
 0x353   :  { %v2355_v0 = vpop.f32.mrf.mxu2 }
 0x354   :  { %v2383_v40 = vadd.f32 %v2355_v0, %v2326_v37  ;;  %v2412_v18 = vpop.f32.mrf.mxu3 }
 0x355   :  { %v2244_v58 = vpop.f32.mrf.mxu0  ;;  %5152 = vmatmul.msk.f32.gmra.mxu1 %vm1399_vm3, %v6971_v39 }
 0x356   :  { %v7417_v4 = vadd.f32 %v2412_v18, %v2383_v40  ;;  %v2270_v24 = vadd.f32 %v2244_v58, %v7277_v59 }
 0x358   :  { %5141 = vmatmul.msk.f32.gmra.mxu0 %vm1399_vm3, %v6801_v27  ;;  %5161 = vmatmul.msk.f32.gmra.mxu2 %vm1399_vm3, %v6777_v25  ;;  %v2327_v63 = vadd.f32 %v2301_v21, %v2270_v24 }
 0x359   :  { %5171 = vmatmul.msk.f32.gmra.mxu3 %vm1399_vm3, %v6733_v9 }
 0x35a   :  { %v2307_v35 = vpop.f32.mrf.mxu1 }
 0x35b   :  { %v2358_v54 = vpop.f32.mrf.mxu2 }
 0x35c   :  { %v2384_v37 = vadd.f32 %v2358_v54, %v2327_v63  ;;  %v2415_v0 = vpop.f32.mrf.mxu3 }
 0x35d   :  { %v2247_v62 = vpop.f32.mrf.mxu0  ;;  %5183 = vmatmul.msk.f32.vlgmr.msrb.gmra.mxu1 %vm1399_vm3, %v6508_v28 }
 0x35e   :  { %v7428_v40 = vadd.f32 %v2415_v0, %v2384_v37  ;;  %v2271_v59 = vadd.f32 %v2247_v62, %v7289_v44  ;;  %v163_v44 = vld [vmem:[%s8920_s3 + $0x278] sm:$0xff]  ;;  %v169_v0 = vld [vmem:[%s8920_s3 + $0x2a8] sm:$0xff] }
 0x35f   :  { %3023 = vmatpush.msrb.mxu2 %v163_v44  ;;  %3090 = vmatpush.msrb.mxu3 %v169_v0 }
 0x360   :  { %5142 = vmatmul.msk.f32.gmra.mxu0 %vm1399_vm3, %v6991_v43  ;;  %5162 = vmatmul.msk.f32.gmra.mxu2 %vm1399_vm3, %v6769_v61  ;;  %v2328_v21 = vadd.f32 %v2304_v38, %v2271_v59  ;;  %v157_v38 = vld [vmem:[%s8920_s3 + $0x248] sm:$0xff]  ;;  %v160_v59 = vld [vmem:[%s8920_s3 + $0x260] sm:$0xff]  ;;  %v9135_v61 = vld [vmem:[#allocation35_spill] sm:$0xff] }
 0x361   :  { %5172 = vmatmul.msk.f32.gmra.mxu3 %vm1399_vm3, %v6761_v16  ;;  %2909 = vmatpush.msra.mxu0 %v157_v38 }
 0x362   :  { %v2310_v18 = vpop.f32.mrf.mxu1  ;;  %2966 = vmatpush.msra.mxu1 %v160_v59 }
 0x363   :  { %v2361_v58 = vpop.f32.mrf.mxu2 }
 0x364   :  { %v2385_v24 = vadd.f32 %v2361_v58, %v2328_v21  ;;  %v2418_v63 = vpop.f32.mrf.mxu3  ;;  %v9134_v21 = vld [vmem:[#allocation33_spill] sm:$0xff] }
 0x365   :  { %v2250_v54 = vpop.f32.mrf.mxu0  ;;  %5184 = vmatmul.msk.f32.gmra.mxu1 %vm1399_vm3, %v6547_v3 }
 0x366   :  { %v7439_v37 = vadd.f32 %v2418_v63, %v2385_v24  ;;  %v2272_v62 = vadd.f32 %v2250_v54, %v7313_v12 }
 0x368   :  { %5173 = vmatmul.msk.f32.vlgmr.msrb.gmra.mxu0 %vm1399_vm3, %v9134_v21  ;;  %5193 = vmatmul.msk.f32.vlgmr.msra.gmra.mxu2 %vm1399_vm3, %v6488_v31  ;;  %v2329_v12 = vadd.f32 %v2307_v35, %v2272_v62 }
 0x369   :  { %5203 = vmatmul.msk.f32.vlgmr.msra.gmra.mxu3 %vm1399_vm3, %v6541_v8 }
 0x36a   :  { %v2313_v58 = vpop.f32.mrf.mxu1 }
 0x36b   :  { %v2364_v24 = vpop.f32.mrf.mxu2 }
 0x36c   :  { %v2386_v63 = vadd.f32 %v2364_v24, %v2329_v12  ;;  %v2421_v54 = vpop.f32.mrf.mxu3 }
 0x36d   :  { %v2253_v44 = vpop.f32.mrf.mxu0  ;;  %5185 = vmatmul.msk.f32.gmra.mxu1 %vm1399_vm3, %v6577_v2 }
 0x36e   :  { %v7462_v38 = vadd.f32 %v2421_v54, %v2386_v63  ;;  %v2273_v28 = vadd.f32 %v2253_v44, %v7325_v56  ;;  %v9136_v54 = vld [vmem:[#allocation37_spill] sm:$0xff] }
 0x370   :  { %5174 = vmatmul.msk.f32.gmra.mxu0 %vm1399_vm3, %v9135_v61  ;;  %5194 = vmatmul.msk.f32.gmra.mxu2 %vm1399_vm3, %v6520_v47  ;;  %v2330_v35 = vadd.f32 %v2310_v18, %v2273_v28 }
 0x371   :  { %5204 = vmatmul.msk.f32.gmra.mxu3 %vm1399_vm3, %v6571_v52 }
 0x372   :  { %v2316_v62 = vpop.f32.mrf.mxu1 }
 0x373   :  { %v2367_v0 = vpop.f32.mrf.mxu2 }
 0x374   :  { %v2387_v59 = vadd.f32 %v2367_v0, %v2330_v35  ;;  %v2424_v12 = vpop.f32.mrf.mxu3 }
 0x375   :  { %v2256_v24 = vpop.f32.mrf.mxu0  ;;  %5186 = vmatmul.msk.f32.gmra.mxu1 %vm1399_vm3, %v6607_v11 }
 0x376   :  { %v7473_v63 = vadd.f32 %v2424_v12, %v2387_v59  ;;  %v2274_v56 = vadd.f32 %v2256_v24, %v7337_v42  ;;  %v9137_v12 = vld [vmem:[#allocation39_spill] sm:$0xff] }
 0x377   :  { %v162_v24 = vld [vmem:[%s8920_s3 + $0x270] sm:$0xff] }
 0x378   :  { %5175 = vmatmul.msk.f32.gmra.mxu0 %vm1399_vm3, %v9136_v54  ;;  %5195 = vmatmul.msk.f32.gmra.mxu2 %vm1399_vm3, %v6559_v57  ;;  %v2331_v28 = vadd.f32 %v2313_v58, %v2274_v56  ;;  %v156_v56 = vld [vmem:[%s8920_s3 + $0x240] sm:$0xff] }
 0x379   :  { %5205 = vmatmul.msk.f32.gmra.mxu3 %vm1399_vm3, %v6601_v48  ;;  %3024 = vmatpush.msrb.mxu2 %v162_v24 }
 0x37a   :  { %v2319_v18 = vpop.f32.mrf.mxu1  ;;  %2910 = vmatpush.msra.mxu0 %v156_v56 }
 0x37b   :  { %v2370_v44 = vpop.f32.mrf.mxu2 }
 0x37c   :  { %v2388_v35 = vadd.f32 %v2370_v44, %v2331_v28  ;;  %v2427_v0 = vpop.f32.mrf.mxu3 }
 0x37d   :  { %v2259_v31 = vpop.f32.mrf.mxu0  ;;  %5187 = vmatmul.msk.f32.gmra.mxu1 %vm1399_vm3, %v9119_v14 }
 0x37e   :  { %v7484_v59 = vadd.f32 %v2427_v0, %v2388_v35  ;;  %v2275_v42 = vadd.f32 %v2259_v31, %v7361_v32  ;;  %v168_v31 = vld [vmem:[%s8920_s3 + $0x2a0] sm:$0xff] }
 0x37f   :  { %3091 = vmatpush.msrb.mxu3 %v168_v31 }
 0x380   :  { %5176 = vmatmul.msk.f32.gmra.mxu0 %vm1399_vm3, %v9137_v12  ;;  %5196 = vmatmul.msk.f32.gmra.mxu2 %vm1399_vm3, %v6589_v33  ;;  %v2332_v58 = vadd.f32 %v2316_v62, %v2275_v42  ;;  %v159_v62 = vld [vmem:[%s8920_s3 + $0x258] sm:$0xff] }
 0x381   :  { %5206 = vmatmul.msk.f32.gmra.mxu3 %vm1399_vm3, %v6643_v53  ;;  %2967 = vmatpush.msra.mxu1 %v159_v62 }
 0x382   :  { %v2322_v32 = vpop.f32.mrf.mxu1 }
 0x383   :  { %v2373_v28 = vpop.f32.mrf.mxu2 }
 0x384   :  { %v2389_v44 = vadd.f32 %v2373_v28, %v2332_v58  ;;  %v2430_v35 = vpop.f32.mrf.mxu3 }
 0x385   :  { %v2262_v0 = vpop.f32.mrf.mxu0  ;;  %5188 = vmatmul.msk.f32.gmra.mxu1 %vm1399_vm3, %v9122_v51 }
 0x386   :  { %v7507_v42 = vadd.f32 %v2430_v35, %v2389_v44  ;;  %v2276_v24 = vadd.f32 %v2262_v0, %v7373_v15  ;;  %v9138_v35 = vld [vmem:[#allocation15_spill] sm:$0xff] }
 0x388   :  { %5177 = vmatmul.msk.f32.gmra.mxu0 %vm1399_vm3, %v6646_v36  ;;  %5197 = vmatmul.msk.f32.gmra.mxu2 %vm1399_vm3, %v6619_v6  ;;  %v2333_v56 = vadd.f32 %v2319_v18, %v2276_v24 }
 0x389   :  { %5207 = vmatmul.msk.f32.gmra.mxu3 %vm1399_vm3, %v6673_v46 }
 0x38a   :  { %v2523_v58 = vpop.f32.mrf.mxu1 }
 0x38b   :  { %v2376_v31 = vpop.f32.mrf.mxu2 }
 0x38c   :  { %v2390_v62 = vadd.f32 %v2376_v31, %v2333_v56  ;;  %v2433_v28 = vpop.f32.mrf.mxu3 }
 0x38d   :  { %v2265_v12 = vpop.f32.mrf.mxu0  ;;  %5189 = vmatmul.msk.f32.gmra.mxu1 %vm1399_vm3, %v9125_v50 }
 0x38e   :  { %v7518_v44 = vadd.f32 %v2433_v28, %v2390_v62  ;;  %v2277_v15 = vadd.f32 %v2265_v12, %v7383_v5  ;;  %v7534_v12 = vadd.f32 %v7225_v45, %v7101_v23  ;;  %v176_v28 = vld [vmem:[%s8920_s3 + $0x2e0] sm:$0xff]  ;;  %v179_v23 = vld [vmem:[%s8920_s3 + $0x2f8] sm:$0xff] }
 0x38f   :  { %3240 = vmatpush.msra.mxu2 %v176_v28  ;;  %3297 = vmatpush.msra.mxu3 %v179_v23 }
 0x390   :  { %5178 = vmatmul.msk.f32.gmra.mxu0 %vm1399_vm3, %v9138_v35  ;;  %5198 = vmatmul.msk.f32.gmra.mxu2 %vm1399_vm3, %v6661_v34  ;;  %v2334_v18 = vadd.f32 %v2322_v32, %v2277_v15 }
 0x391   :  { %5208 = vmatmul.msk.f32.gmra.mxu3 %vm1399_vm3, %v6703_v29 }
 0x392   :  { %v2526_v0 = vpop.f32.mrf.mxu1 }
 0x393   :  { %v2379_v24 = vpop.f32.mrf.mxu2 }
 0x394   :  { %v2391_v56 = vadd.f32 %v2379_v24, %v2334_v18  ;;  %v2436_v31 = vpop.f32.mrf.mxu3 }
 0x395   :  { %v2466_v36 = vpop.f32.mrf.mxu0  ;;  %5190 = vmatmul.msk.f32.gmra.mxu1 %vm1399_vm3, %v9127_v49 }
 0x396   :  { %v7529_v62 = vadd.f32 %v2436_v31, %v2391_v56  ;;  %v2496_v5 = vadd.f32 %v2466_v36, %v7403_v7  ;;  %v167_v7 = vld [vmem:[%s8920_s3 + $0x298] sm:$0xff]  ;;  %v173_v56 = vld [vmem:[%s8920_s3 + $0x2c8] sm:$0xff] }
 0x397   :  { %3136 = vmatpush.msrb.mxu0 %v167_v7  ;;  %3183 = vmatpush.msrb.mxu1 %v173_v56  ;;  %v9140_v7 = vld [vmem:[#allocation16_spill] sm:$0xff] }
 0x398   :  { %v7536_v32 = vadd.f32 %v2523_v58, %v2496_v5  ;;  %5179 = vmatmul.msk.f32.gmra.mxu0 %vm1399_vm3, %v6706_v1  ;;  %5199 = vmatmul.msk.f32.gmra.mxu2 %vm1399_vm3, %v6691_v55  ;;  %v7565_v5 = vadd.f32 %v7246_v26, %v7115_v41 }
 0x399   :  { %5209 = vmatmul.msk.f32.gmra.mxu3 %vm1399_vm3, %v6745_v22 }
 0x39a   :  { %v2529_v36 = vpop.f32.mrf.mxu1 }
 0x39b   :  { %v2590_v58 = vpop.f32.mrf.mxu2 }
 0x39c   :  { %v2637_v15 = vpop.f32.mrf.mxu3 }
 0x39d   :  { %v7555_v18 = vadd.f32 %v2637_v15, %v2590_v58  ;;  %v2469_v24 = vpop.f32.mrf.mxu0  ;;  %5191 = vmatmul.msk.f32.gmra.mxu1 %vm1399_vm3, %v6784_v20 }
 0x39e   :  { %v2497_v31 = vadd.f32 %v2469_v24, %v7417_v4  ;;  %v9145_v4 = vld [vmem:[#allocation11_spill] sm:$0xff] }
 0x3a0   :  { %v7567_v28 = vadd.f32 %v2526_v0, %v2497_v31  ;;  %5180 = vmatmul.msk.f32.gmra.mxu0 %vm1399_vm3, %v9140_v7  ;;  %5200 = vmatmul.msk.f32.gmra.mxu2 %vm1399_vm3, %v6733_v9  ;;  %v7584_v0 = vadd.f32 %v7261_v60, %v7126_v19 }
 0x3a1   :  { %5210 = vmatmul.msk.f32.gmra.mxu3 %vm1399_vm3, %v6777_v25 }
 0x3a2   :  { %9139 = vst [vmem:[#allocation33_spill] sm:$0xff] %v7567_v28  ;;  %v2532_v23 = vpop.f32.mrf.mxu1  ;;  %v9155_v28 = vld [vmem:[#allocation17_spill] sm:$0xff] }
 0x3a3   :  { %v2593_v58 = vpop.f32.mrf.mxu2  ;;  %9141 = vst [vmem:[#allocation35_spill] sm:$0xff] %v7584_v0 }
 0x3a4   :  { %v2640_v15 = vpop.f32.mrf.mxu3 }
 0x3a5   :  { %v7577_v24 = vadd.f32 %v2640_v15, %v2593_v58  ;;  %v2472_v41 = vpop.f32.mrf.mxu0  ;;  %5192 = vmatmul.msk.f32.gmra.mxu1 %vm1399_vm3, %v6801_v27  ;;  %v9146_v58 = vld [vmem:[#allocation24_spill] sm:$0xff] }
 0x3a6   :  { %v2498_v26 = vadd.f32 %v2472_v41, %v7428_v40 }
 0x3a8   :  { %v7586_v56 = vadd.f32 %v2529_v36, %v2498_v26  ;;  %5181 = vmatmul.msk.f32.gmra.mxu0 %vm1399_vm3, %v6781_v10  ;;  %5201 = vmatmul.msk.f32.gmra.mxu2 %vm1399_vm3, %v6761_v16  ;;  %v7603_v36 = vadd.f32 %v7273_v30, %v7137_v17  ;;  %v175_v30 = vld [vmem:[%s8920_s3 + $0x2d8] sm:$0xff] }
 0x3a9   :  { %5211 = vmatmul.msk.f32.gmra.mxu3 %vm1399_vm3, %v6938_v13  ;;  %3241 = vmatpush.msra.mxu2 %v175_v30 }
 0x3aa   :  { %9142 = vst [vmem:[#allocation37_spill] sm:$0xff] %v7586_v56  ;;  %v2535_v31 = vpop.f32.mrf.mxu1 }
 0x3ab   :  { %v2596_v40 = vpop.f32.mrf.mxu2  ;;  %9143 = vst [vmem:[#allocation15_spill] sm:$0xff] %v7603_v36 }
 0x3ac   :  { %v2643_v15 = vpop.f32.mrf.mxu3 }
 0x3ad   :  { %v7596_v41 = vadd.f32 %v2643_v15, %v2596_v40  ;;  %v2475_v19 = vpop.f32.mrf.mxu0  ;;  %5223 = vmatmul.msk.f32.vlgmr.msra.gmra.mxu1 %vm1399_vm3, %v6547_v3  ;;  %v9147_v40 = vld [vmem:[#allocation13_spill] sm:$0xff] }
 0x3ae   :  { %v2499_v60 = vadd.f32 %v2475_v19, %v7439_v37 }
 0x3b0   :  { %v7605_v26 = vadd.f32 %v2532_v23, %v2499_v60  ;;  %5182 = vmatmul.msk.f32.gmra.mxu0 %vm1399_vm3, %v9145_v4  ;;  %5202 = vmatmul.msk.f32.gmra.mxu2 %vm1399_vm3, %v9146_v58  ;;  %v9148_v60 = vld [vmem:[#allocation14_spill] sm:$0xff] }
 0x3b1   :  { %5212 = vmatmul.msk.f32.gmra.mxu3 %vm1399_vm3, %v9147_v40  ;;  %v9149_v40 = vld [vmem:[#allocation23_spill] sm:$0xff] }
 0x3b2   :  { %9144 = vst [vmem:[#allocation16_spill] sm:$0xff] %v7605_v26  ;;  %v2538_v15 = vpop.f32.mrf.mxu1  ;;  %v7625_v56 = vadd.f32 %v9149_v40, %v9148_v60  ;;  %v9152_v26 = vld [vmem:[#allocation18_spill] sm:$0xff]  ;;  %v172_v40 = vld [vmem:[%s8920_s3 + $0x2c0] sm:$0xff] }
 0x3b3   :  { %v2599_v37 = vpop.f32.mrf.mxu2  ;;  %3184 = vmatpush.msrb.mxu1 %v172_v40 }
 0x3b4   :  { %v2646_v19 = vpop.f32.mrf.mxu3  ;;  %9150 = vst [vmem:[#allocation11_spill] sm:$0xff] %v7625_v56  ;;  %v9163_v56 = vld [vmem:[#allocation7_spill] sm:$0xff] }
 0x3b5   :  { %v7615_v13 = vadd.f32 %v2646_v19, %v2599_v37  ;;  %v2478_v17 = vpop.f32.mrf.mxu0  ;;  %5224 = vmatmul.msk.f32.gmra.mxu1 %vm1399_vm3, %v6577_v2  ;;  %v166_v37 = vld [vmem:[%s8920_s3 + $0x290] sm:$0xff] }
 0x3b6   :  { %v2500_v23 = vadd.f32 %v2478_v17, %v7462_v38  ;;  %v178_v38 = vld [vmem:[%s8920_s3 + $0x2f0] sm:$0xff]  ;;  %3137 = vmatpush.msrb.mxu0 %v166_v37 }
 0x3b7   :  { %3298 = vmatpush.msra.mxu3 %v178_v38  ;;  %v9158_v38 = vld [vmem:[#allocation19_spill] sm:$0xff] }
 0x3b8   :  { %v7627_v45 = vadd.f32 %v2535_v31, %v2500_v23  ;;  %5213 = vmatmul.msk.f32.vlgmr.msra.gmra.mxu0 %vm1399_vm3, %v9152_v26  ;;  %5233 = vmatmul.msk.f32.vlgmr.msrb.gmra.mxu2 %vm1399_vm3, %v6520_v47  ;;  %v9153_v31 = vld [vmem:[#allocation32_spill] sm:$0xff]  ;;  %v9154_v26 = vld [vmem:[#allocation42_spill] sm:$0xff] }
 0x3b9   :  { %5243 = vmatmul.msk.f32.vlgmr.msrb.gmra.mxu3 %vm1399_vm3, %v9153_v31  ;;  %v7653_v31 = vadd.f32 %v9155_v28, %v9154_v26  ;;  %v9159_v26 = vld [vmem:[#allocation43_spill] sm:$0xff] }
 0x3ba   :  { %9151 = vst [vmem:[#allocation24_spill] sm:$0xff] %v7627_v45  ;;  %v2541_v19 = vpop.f32.mrf.mxu1 }
 0x3bb   :  { %v2602_v30 = vpop.f32.mrf.mxu2  ;;  %9156 = vst [vmem:[#allocation14_spill] sm:$0xff] %v7653_v31 }
 0x3bc   :  { %v2649_v23 = vpop.f32.mrf.mxu3 }
 0x3bd   :  { %v7646_v60 = vadd.f32 %v2649_v23, %v2602_v30  ;;  %v2481_v36 = vpop.f32.mrf.mxu0  ;;  %5225 = vmatmul.msk.f32.gmra.mxu1 %vm1399_vm3, %v6607_v11 }
 0x3be   :  { %v2501_v0 = vadd.f32 %v2481_v36, %v7473_v63 }
 0x3c0   :  { %v7655_v37 = vadd.f32 %v2538_v15, %v2501_v0  ;;  %5214 = vmatmul.msk.f32.gmra.mxu0 %vm1399_vm3, %v9158_v38  ;;  %5234 = vmatmul.msk.f32.gmra.mxu2 %vm1399_vm3, %v6559_v57  ;;  %v9160_v15 = vld [vmem:[#allocation45_spill] sm:$0xff] }
 0x3c1   :  { %5244 = vmatmul.msk.f32.gmra.mxu3 %vm1399_vm3, %v6541_v8  ;;  %v7672_v17 = vadd.f32 %v9160_v15, %v9159_v26  ;;  %v9164_v15 = vld [vmem:[#allocation44_spill] sm:$0xff] }
 0x3c2   :  { %9157 = vst [vmem:[#allocation23_spill] sm:$0xff] %v7655_v37  ;;  %v2544_v40 = vpop.f32.mrf.mxu1  ;;  %v9165_v37 = vld [vmem:[#allocation46_spill] sm:$0xff] }
 0x3c3   :  { %v2605_v63 = vpop.f32.mrf.mxu2  ;;  %9161 = vst [vmem:[#allocation32_spill] sm:$0xff] %v7672_v17  ;;  %v7694_v31 = vadd.f32 %v9165_v37, %v9164_v15  ;;  %v177_v37 = vld [vmem:[%s8920_s3 + $0x2e8] sm:$0xff] }
 0x3c4   :  { %v2652_v36 = vpop.f32.mrf.mxu3  ;;  %3299 = vmatpush.msra.mxu3 %v177_v37  ;;  %v9170_v37 = vld [vmem:[#allocation47_spill] sm:$0xff] }
 0x3c5   :  { %v7665_v23 = vadd.f32 %v2652_v36, %v2605_v63  ;;  %v2484_v28 = vpop.f32.mrf.mxu0  ;;  %5226 = vmatmul.msk.f32.gmra.mxu1 %vm1399_vm3, %v9119_v14  ;;  %9166 = vst [vmem:[#allocation17_spill] sm:$0xff] %v7694_v31  ;;  %v9177_v31 = vld [vmem:[#allocation26_spill] sm:$0xff] }
 0x3c6   :  { %v2502_v0 = vadd.f32 %v2484_v28, %v7484_v59 }
 0x3c8   :  { %v7674_v45 = vadd.f32 %v2541_v19, %v2502_v0  ;;  %5215 = vmatmul.msk.f32.gmra.mxu0 %vm1399_vm3, %v9163_v56  ;;  %5235 = vmatmul.msk.f32.gmra.mxu2 %vm1399_vm3, %v6589_v33  ;;  %v174_v0 = vld [vmem:[%s8920_s3 + $0x2d0] sm:$0xff] }
 0x3c9   :  { %5245 = vmatmul.msk.f32.gmra.mxu3 %vm1399_vm3, %v6571_v52  ;;  %3242 = vmatpush.msra.mxu2 %v174_v0  ;;  %v9172_v52 = vld [vmem:[#allocation27_spill] sm:$0xff] }
 0x3ca   :  { %9162 = vst [vmem:[#allocation42_spill] sm:$0xff] %v7674_v45  ;;  %v2547_v63 = vpop.f32.mrf.mxu1  ;;  %v9168_v45 = vld [vmem:[#allocation12_spill] sm:$0xff] }
 0x3cb   :  { %v2608_v59 = vpop.f32.mrf.mxu2 }
 0x3cc   :  { %v2655_v28 = vpop.f32.mrf.mxu3 }
 0x3cd   :  { %v7684_v30 = vadd.f32 %v2655_v28, %v2608_v59  ;;  %v2487_v26 = vpop.f32.mrf.mxu0  ;;  %5227 = vmatmul.msk.f32.gmra.mxu1 %vm1399_vm3, %v9122_v51 }
 0x3ce   :  { %v2503_v19 = vadd.f32 %v2487_v26, %v7507_v42  ;;  %v165_v42 = vld [vmem:[%s8920_s3 + $0x288] sm:$0xff] }
 0x3cf   :  { %3138 = vmatpush.msrb.mxu0 %v165_v42  ;;  %v9169_v42 = vld [vmem:[#allocation41_spill] sm:$0xff] }
 0x3d0   :  { %v7696_v36 = vadd.f32 %v2544_v40, %v2503_v19  ;;  %5216 = vmatmul.msk.f32.gmra.mxu0 %vm1399_vm3, %v9168_v45  ;;  %5236 = vmatmul.msk.f32.gmra.mxu2 %vm1399_vm3, %v6619_v6  ;;  %v171_v40 = vld [vmem:[%s8920_s3 + $0x2b8] sm:$0xff] }
 0x3d1   :  { %5246 = vmatmul.msk.f32.gmra.mxu3 %vm1399_vm3, %v6601_v48  ;;  %3185 = vmatpush.msrb.mxu1 %v171_v40  ;;  %v7722_v48 = vadd.f32 %v9170_v37, %v9169_v42  ;;  %v9174_v37 = vld [vmem:[#allocation48_spill] sm:$0xff] }
 0x3d2   :  { %9167 = vst [vmem:[#allocation19_spill] sm:$0xff] %v7696_v36  ;;  %v2550_v59 = vpop.f32.mrf.mxu1 }
 0x3d3   :  { %v2611_v26 = vpop.f32.mrf.mxu2 }
 0x3d4   :  { %v2658_v19 = vpop.f32.mrf.mxu3 }
 0x3d5   :  { %v7715_v0 = vadd.f32 %v2658_v19, %v2611_v26  ;;  %v2490_v15 = vpop.f32.mrf.mxu0  ;;  %5228 = vmatmul.msk.f32.gmra.mxu1 %vm1399_vm3, %v9125_v50 }
 0x3d6   :  { %v2504_v17 = vadd.f32 %v2490_v15, %v7518_v44 }
 0x3d8   :  { %v7724_v45 = vadd.f32 %v2547_v63, %v2504_v17  ;;  %5217 = vmatmul.msk.f32.gmra.mxu0 %vm1399_vm3, %v9172_v52  ;;  %5237 = vmatmul.msk.f32.gmra.mxu2 %vm1399_vm3, %v6661_v34  ;;  %v9173_v63 = vld [vmem:[#allocation5_spill] sm:$0xff] }
 0x3d9   :  { %5247 = vmatmul.msk.f32.gmra.mxu3 %vm1399_vm3, %v6643_v53  ;;  %v7741_v28 = vadd.f32 %v9174_v37, %v9173_v63 }
 0x3da   :  { %9171 = vst [vmem:[#allocation43_spill] sm:$0xff] %v7724_v45  ;;  %v2741_v40 = vpop.f32.mrf.mxu1  ;;  %v9179_v45 = vld [vmem:[#allocation21_spill] sm:$0xff] }
 0x3db   :  { %v2614_v44 = vpop.f32.mrf.mxu2  ;;  %9175 = vst [vmem:[#allocation45_spill] sm:$0xff] %v7741_v28 }
 0x3dc   :  { %v2661_v19 = vpop.f32.mrf.mxu3 }
 0x3dd   :  { %v7734_v15 = vadd.f32 %v2661_v19, %v2614_v44  ;;  %v2493_v42 = vpop.f32.mrf.mxu0  ;;  %5229 = vmatmul.msk.f32.gmra.mxu1 %vm1399_vm3, %v9127_v49 }
 0x3de   :  { %v2505_v17 = vadd.f32 %v2493_v42, %v7529_v62 }
 0x3e0   :  { %v7743_v36 = vadd.f32 %v2550_v59, %v2505_v17  ;;  %5218 = vmatmul.msk.f32.gmra.mxu0 %vm1399_vm3, %v9177_v31  ;;  %5238 = vmatmul.msk.f32.gmra.mxu2 %vm1399_vm3, %v6691_v55  ;;  %v9178_v17 = vld [vmem:[#allocation8_spill] sm:$0xff] }
 0x3e1   :  { %5248 = vmatmul.msk.f32.gmra.mxu3 %vm1399_vm3, %v6673_v46 }
 0x3e2   :  { %9176 = vst [vmem:[#allocation7_spill] sm:$0xff] %v7743_v36  ;;  %v2744_v44 = vpop.f32.mrf.mxu1 }
 0x3e3   :  { %v2617_v62 = vpop.f32.mrf.mxu2 }
 0x3e4   :  { %v2664_v42 = vpop.f32.mrf.mxu3 }
 0x3e5   :  { %v7753_v26 = vadd.f32 %v2664_v42, %v2617_v62  ;;  %v2684_v63 = vpop.f32.mrf.mxu0  ;;  %5230 = vmatmul.msk.f32.gmra.mxu1 %vm1399_vm3, %v6784_v20  ;;  %v188_v62 = vld [vmem:[%s8920_s3 + $0x340] sm:$0xff] }
 0x3e6   :  { %v2714_v59 = vadd.f32 %v2684_v63, %v7555_v18  ;;  %3468 = vmatpush.msrb.mxu2 %v188_v62  ;;  %v182_v18 = vld [vmem:[%s8920_s3 + $0x310] sm:$0xff]  ;;  %v191_v63 = vld [vmem:[%s8920_s3 + $0x358] sm:$0xff] }
 0x3e7   :  { %3354 = vmatpush.msra.mxu0 %v182_v18  ;;  %3525 = vmatpush.msrb.mxu3 %v191_v63 }
 0x3e8   :  { %5219 = vmatmul.msk.f32.gmra.mxu0 %vm1399_vm3, %v9178_v17  ;;  %5239 = vmatmul.msk.f32.gmra.mxu2 %vm1399_vm3, %v6733_v9  ;;  %v2771_v37 = vadd.f32 %v2741_v40, %v2714_v59 }
 0x3e9   :  { %5249 = vmatmul.msk.f32.gmra.mxu3 %vm1399_vm3, %v6703_v29  ;;  %v185_v29 = vld [vmem:[%s8920_s3 + $0x328] sm:$0xff] }
 0x3ea   :  { %v2747_v42 = vpop.f32.mrf.mxu1  ;;  %3411 = vmatpush.msra.mxu1 %v185_v29 }
 0x3eb   :  { %v2798_v19 = vpop.f32.mrf.mxu2 }
 0x3ec   :  { %v2828_v40 = vadd.f32 %v2798_v19, %v2771_v37  ;;  %v2855_v59 = vpop.f32.mrf.mxu3 }
 0x3ed   :  { %v2687_v36 = vpop.f32.mrf.mxu0  ;;  %5231 = vmatmul.msk.f32.gmra.mxu1 %vm1399_vm3, %v6801_v27 }
 0x3ee   :  { %v7775_v28 = vadd.f32 %v2855_v59, %v2828_v40  ;;  %v2715_v62 = vadd.f32 %v2687_v36, %v7577_v24  ;;  %v9180_v59 = vld [vmem:[#allocation28_spill] sm:$0xff] }
 0x3f0   :  { %5220 = vmatmul.msk.f32.gmra.mxu0 %vm1399_vm3, %v9179_v45  ;;  %5240 = vmatmul.msk.f32.gmra.mxu2 %vm1399_vm3, %v6761_v16  ;;  %v2772_v19 = vadd.f32 %v2744_v44, %v2715_v62 }
 0x3f1   :  { %5250 = vmatmul.msk.f32.gmra.mxu3 %vm1399_vm3, %v6745_v22 }
 0x3f2   :  { %v2750_v37 = vpop.f32.mrf.mxu1 }
 0x3f3   :  { %v2801_v18 = vpop.f32.mrf.mxu2 }
 0x3f4   :  { %v2829_v63 = vadd.f32 %v2801_v18, %v2772_v19  ;;  %v2858_v40 = vpop.f32.mrf.mxu3 }
 0x3f5   :  { %v2690_v24 = vpop.f32.mrf.mxu0  ;;  %5232 = vmatmul.msk.f32.gmra.mxu1 %vm1399_vm3, %v6991_v43 }
 0x3f6   :  { %v7789_v36 = vadd.f32 %v2858_v40, %v2829_v63  ;;  %v2716_v29 = vadd.f32 %v2690_v24, %v7596_v41  ;;  %v9181_v40 = vld [vmem:[#allocation29_spill] sm:$0xff]  ;;  %v9182_v24 = vld [vmem:[#allocation6_spill] sm:$0xff] }
 0x3f8   :  { %5221 = vmatmul.msk.f32.gmra.mxu0 %vm1399_vm3, %v9180_v59  ;;  %5241 = vmatmul.msk.f32.gmra.mxu2 %vm1399_vm3, %v9146_v58  ;;  %v2773_v44 = vadd.f32 %v2747_v42, %v2716_v29 }
 0x3f9   :  { %5251 = vmatmul.msk.f32.gmra.mxu3 %vm1399_vm3, %v6777_v25 }
 0x3fa   :  { %v2753_v62 = vpop.f32.mrf.mxu1 }
 0x3fb   :  { %v2804_v19 = vpop.f32.mrf.mxu2 }
 0x3fc   :  { %v2830_v18 = vadd.f32 %v2804_v19, %v2773_v44  ;;  %v2861_v22 = vpop.f32.mrf.mxu3 }
 0x3fd   :  { %v2693_v45 = vpop.f32.mrf.mxu0  ;;  %5263 = vmatmul.msk.f32.vlgmr.msrb.gmra.mxu1 %vm1399_vm3, %v9134_v21  ;;  %v187_v21 = vld [vmem:[%s8920_s3 + $0x338] sm:$0xff] }
 0x3fe   :  { %v7800_v63 = vadd.f32 %v2861_v22, %v2830_v18  ;;  %v2717_v41 = vadd.f32 %v2693_v45, %v7615_v13  ;;  %v181_v45 = vld [vmem:[%s8920_s3 + $0x308] sm:$0xff]  ;;  %3469 = vmatpush.msrb.mxu2 %v187_v21  ;;  %v9185_v18 = vld [vmem:[#allocation31_spill] sm:$0xff] }
 0x3ff   :  { %3355 = vmatpush.msra.mxu0 %v181_v45 }
 0x400   :  { %5222 = vmatmul.msk.f32.gmra.mxu0 %vm1399_vm3, %v9181_v40  ;;  %5242 = vmatmul.msk.f32.gmra.mxu2 %vm1399_vm3, %v6971_v39  ;;  %v2774_v42 = vadd.f32 %v2750_v37, %v2717_v41  ;;  %v190_v37 = vld [vmem:[%s8920_s3 + $0x350] sm:$0xff] }
 0x401   :  { %5252 = vmatmul.msk.f32.gmra.mxu3 %vm1399_vm3, %v9182_v24 }
 0x402   :  { %v2756_v29 = vpop.f32.mrf.mxu1  ;;  %3526 = vmatpush.msrb.mxu3 %v190_v37 }
 0x403   :  { %v2807_v44 = vpop.f32.mrf.mxu2 }
 0x404   :  { %v2831_v19 = vadd.f32 %v2807_v44, %v2774_v42  ;;  %v2864_v43 = vpop.f32.mrf.mxu3 }
 0x405   :  { %v2696_v25 = vpop.f32.mrf.mxu0  ;;  %5264 = vmatmul.msk.f32.gmra.mxu1 %vm1399_vm3, %v9135_v61  ;;  %v184_v61 = vld [vmem:[%s8920_s3 + $0x320] sm:$0xff] }
 0x406   :  { %v7811_v22 = vadd.f32 %v2864_v43, %v2831_v19  ;;  %v2718_v13 = vadd.f32 %v2696_v25, %v7646_v60  ;;  %v9183_v43 = vld [vmem:[#allocation30_spill] sm:$0xff]  ;;  %3412 = vmatpush.msra.mxu1 %v184_v61 }
 0x407   :  { %v9184_v25 = vld [vmem:[#allocation34_spill] sm:$0xff] }
 0x408   :  { %5253 = vmatmul.msk.f32.vlgmr.msrb.gmra.mxu0 %vm1399_vm3, %v9183_v43  ;;  %5273 = vmatmul.msk.f32.vlgmr.msra.gmra.mxu2 %vm1399_vm3, %v9184_v25  ;;  %v2775_v60 = vadd.f32 %v2753_v62, %v2718_v13 }
 0x409   :  { %5283 = vmatmul.msk.f32.vlgmr.msra.gmra.mxu3 %vm1399_vm3, %v9185_v18 }
 0x40a   :  { %v2759_v41 = vpop.f32.mrf.mxu1 }
 0x40b   :  { %v2810_v42 = vpop.f32.mrf.mxu2 }
 0x40c   :  { %v2832_v24 = vadd.f32 %v2810_v42, %v2775_v60  ;;  %v2867_v44 = vpop.f32.mrf.mxu3 }
 0x40d   :  { %v2699_v19 = vpop.f32.mrf.mxu0  ;;  %5265 = vmatmul.msk.f32.gmra.mxu1 %vm1399_vm3, %v9136_v54  ;;  %v9186_v54 = vld [vmem:[#allocation39_spill] sm:$0xff] }
 0x40e   :  { %v7834_v21 = vadd.f32 %v2867_v44, %v2832_v24  ;;  %v2719_v45 = vadd.f32 %v2699_v19, %v7665_v23 }
 0x410   :  { %5254 = vmatmul.msk.f32.gmra.mxu0 %vm1399_vm3, %v9185_v18  ;;  %5274 = vmatmul.msk.f32.gmra.mxu2 %vm1399_vm3, %v6547_v3  ;;  %v2776_v62 = vadd.f32 %v2756_v29, %v2719_v45  ;;  %v9187_v45 = vld [vmem:[#allocation40_spill] sm:$0xff] }
 0x411   :  { %5284 = vmatmul.msk.f32.gmra.mxu3 %vm1399_vm3, %v6520_v47 }
 0x412   :  { %v2762_v13 = vpop.f32.mrf.mxu1 }
 0x413   :  { %v2813_v37 = vpop.f32.mrf.mxu2 }
 0x414   :  { %v2833_v61 = vadd.f32 %v2813_v37, %v2776_v62  ;;  %v2870_v43 = vpop.f32.mrf.mxu3  ;;  %v186_v37 = vld [vmem:[%s8920_s3 + $0x330] sm:$0xff] }
 0x415   :  { %v2702_v25 = vpop.f32.mrf.mxu0  ;;  %5266 = vmatmul.msk.f32.gmra.mxu1 %vm1399_vm3, %v9186_v54  ;;  %3470 = vmatpush.msrb.mxu2 %v186_v37 }
 0x416   :  { %v7845_v60 = vadd.f32 %v2870_v43, %v2833_v61  ;;  %v2720_v23 = vadd.f32 %v2702_v25, %v7684_v30  ;;  %v180_v61 = vld [vmem:[%s8920_s3 + $0x300] sm:$0xff]  ;;  %v183_v25 = vld [vmem:[%s8920_s3 + $0x318] sm:$0xff] }
 0x417   :  { %3356 = vmatpush.msra.mxu0 %v180_v61  ;;  %3413 = vmatpush.msra.mxu1 %v183_v25 }
 0x418   :  { %5255 = vmatmul.msk.f32.gmra.mxu0 %vm1399_vm3, %v6520_v47  ;;  %5275 = vmatmul.msk.f32.gmra.mxu2 %vm1399_vm3, %v6577_v2  ;;  %v2777_v29 = vadd.f32 %v2759_v41, %v2720_v23 }
 0x419   :  { %5285 = vmatmul.msk.f32.gmra.mxu3 %vm1399_vm3, %v6559_v57 }
 0x41a   :  { %v2765_v18 = vpop.f32.mrf.mxu1 }
 0x41b   :  { %v2816_v42 = vpop.f32.mrf.mxu2 }
 0x41c   :  { %v2834_v24 = vadd.f32 %v2816_v42, %v2777_v29  ;;  %v2873_v44 = vpop.f32.mrf.mxu3 }
 0x41d   :  { %v2705_v19 = vpop.f32.mrf.mxu0  ;;  %5267 = vmatmul.msk.f32.gmra.mxu1 %vm1399_vm3, %v9187_v45 }
 0x41e   :  { %v7856_v62 = vadd.f32 %v2873_v44, %v2834_v24  ;;  %v2721_v30 = vadd.f32 %v2705_v19, %v7715_v0  ;;  %v189_v0 = vld [vmem:[%s8920_s3 + $0x348] sm:$0xff] }
 0x41f   :  { %3527 = vmatpush.msrb.mxu3 %v189_v0 }
 0x420   :  { %5256 = vmatmul.msk.f32.gmra.mxu0 %vm1399_vm3, %v6559_v57  ;;  %5276 = vmatmul.msk.f32.gmra.mxu2 %vm1399_vm3, %v6607_v11  ;;  %v2778_v41 = vadd.f32 %v2762_v13, %v2721_v30 }
 0x421   :  { %5286 = vmatmul.msk.f32.gmra.mxu3 %vm1399_vm3, %v6589_v33 }
 0x422   :  { %v2768_v43 = vpop.f32.mrf.mxu1 }
 0x423   :  { %v2819_v54 = vpop.f32.mrf.mxu2 }
 0x424   :  { %v2835_v13 = vadd.f32 %v2819_v54, %v2778_v41  ;;  %v2876_v23 = vpop.f32.mrf.mxu3 }
 0x425   :  { %v2708_v29 = vpop.f32.mrf.mxu0  ;;  %5268 = vmatmul.msk.f32.gmra.mxu1 %vm1399_vm3, %v9138_v35 }
 0x426   :  { %v7879_v42 = vadd.f32 %v2876_v23, %v2835_v13  ;;  %v2722_v24 = vadd.f32 %v2708_v29, %v7734_v15 }
 0x428   :  { %5257 = vmatmul.msk.f32.gmra.mxu0 %vm1399_vm3, %v6589_v33  ;;  %5277 = vmatmul.msk.f32.gmra.mxu2 %vm1399_vm3, %v9119_v14  ;;  %v2779_v44 = vadd.f32 %v2765_v18, %v2722_v24 }
 0x429   :  { %5287 = vmatmul.msk.f32.gmra.mxu3 %vm1399_vm3, %v6619_v6 }
 0x42a   :  { %v2969_v19 = vpop.f32.mrf.mxu1 }
 0x42b   :  { %v2822_v45 = vpop.f32.mrf.mxu2 }
 0x42c   :  { %v2836_v30 = vadd.f32 %v2822_v45, %v2779_v44  ;;  %v2879_v37 = vpop.f32.mrf.mxu3 }
 0x42d   :  { %v2711_v41 = vpop.f32.mrf.mxu0  ;;  %5269 = vmatmul.msk.f32.gmra.mxu1 %vm1399_vm3, %v6706_v1 }
 0x42e   :  { %v7890_v35 = vadd.f32 %v2879_v37, %v2836_v30  ;;  %v2723_v15 = vadd.f32 %v2711_v41, %v7753_v26 }
 0x430   :  { %5258 = vmatmul.msk.f32.gmra.mxu0 %vm1399_vm3, %v6619_v6  ;;  %5278 = vmatmul.msk.f32.gmra.mxu2 %vm1399_vm3, %v9122_v51  ;;  %v2780_v18 = vadd.f32 %v2768_v43, %v2723_v15 }
 0x431   :  { %5288 = vmatmul.msk.f32.gmra.mxu3 %vm1399_vm3, %v6661_v34 }
 0x432   :  { %v2972_v61 = vpop.f32.mrf.mxu1 }
 0x433   :  { %v2825_v0 = vpop.f32.mrf.mxu2 }
 0x434   :  { %v2837_v25 = vadd.f32 %v2825_v0, %v2780_v18  ;;  %v2882_v54 = vpop.f32.mrf.mxu3 }
 0x435   :  { %v2912_v13 = vpop.f32.mrf.mxu0  ;;  %5270 = vmatmul.msk.f32.gmra.mxu1 %vm1399_vm3, %v9140_v7 }
 0x436   :  { %v7901_v1 = vadd.f32 %v2882_v54, %v2837_v25  ;;  %v2942_v26 = vadd.f32 %v2912_v13, %v7775_v28  ;;  %v9188_v28 = vmax.f32 %v7534_v12, %v7536_v32  ;;  %v9189_v32 = vld [vmem:[#allocation33_spill] sm:$0xff] }
 0x438   :  { %5259 = vmatmul.msk.f32.gmra.mxu0 %vm1399_vm3, %v6661_v34  ;;  %5279 = vmatmul.msk.f32.gmra.mxu2 %vm1399_vm3, %v9125_v50  ;;  %v2999_v43 = vadd.f32 %v2969_v19, %v2942_v26  ;;  %v9191_v26 = vld [vmem:[#allocation18_spill] sm:$0xff] }
 0x439   :  { %5289 = vmatmul.msk.f32.gmra.mxu3 %vm1399_vm3, %v6691_v55 }
 0x43a   :  { %v2975_v23 = vpop.f32.mrf.mxu1 }
 0x43b   :  { %v3026_v29 = vpop.f32.mrf.mxu2 }
 0x43c   :  { %v3056_v24 = vadd.f32 %v3026_v29, %v2999_v43  ;;  %v7910_v44 = vpop.f32.mrf.mxu3  ;;  %v9193_v43 = vld [vmem:[#allocation37_spill] sm:$0xff] }
 0x43d   :  { %v2915_v7 = vpop.f32.mrf.mxu0  ;;  %5271 = vmatmul.msk.f32.gmra.mxu1 %vm1399_vm3, %v6781_v10 }
 0x43e   :  { %v7917_v45 = vmax.f32 %v9188_v28, %v3056_v24  ;;  %v2943_v30 = vadd.f32 %v2915_v7, %v7789_v36  ;;  %v9190_v36 = vmax.f32 %v7565_v5, %v9189_v32 }
 0x440   :  { %5260 = vmatmul.msk.f32.gmra.mxu0 %vm1399_vm3, %v6691_v55  ;;  %5280 = vmatmul.msk.f32.gmra.mxu2 %vm1399_vm3, %v9127_v49  ;;  %v3000_v19 = vadd.f32 %v2972_v61, %v2943_v30 }
 0x441   :  { %5290 = vmatmul.msk.f32.gmra.mxu3 %vm1399_vm3, %v6733_v9 }
 0x442   :  { %v2978_v37 = vpop.f32.mrf.mxu1 }
 0x443   :  { %v3029_v41 = vpop.f32.mrf.mxu2 }
 0x444   :  { %v3057_v10 = vadd.f32 %v3029_v41, %v3000_v19  ;;  %v7926_v15 = vpop.f32.mrf.mxu3 }
 0x445   :  { %v2918_v12 = vpop.f32.mrf.mxu0  ;;  %5272 = vmatmul.msk.f32.gmra.mxu1 %vm1399_vm3, %v9145_v4 }
 0x446   :  { %v7933_v18 = vmax.f32 %v9190_v36, %v3057_v10  ;;  %v2944_v0 = vadd.f32 %v2918_v12, %v7800_v63  ;;  %v9192_v63 = vld [vmem:[#allocation35_spill] sm:$0xff]  ;;  %v9196_v12 = vld [vmem:[#allocation16_spill] sm:$0xff] }
 0x447   :  { %v9194_v29 = vmax.f32 %v9192_v63, %v9193_v43 }
 0x448   :  { %5261 = vmatmul.msk.f32.gmra.mxu0 %vm1399_vm3, %v6733_v9  ;;  %5281 = vmatmul.msk.f32.gmra.mxu2 %vm1399_vm3, %v6784_v20  ;;  %v3001_v61 = vadd.f32 %v2975_v23, %v2944_v0 }
 0x449   :  { %5291 = vmatmul.msk.f32.gmra.mxu3 %vm1399_vm3, %v6761_v16 }
 0x44a   :  { %v2981_v25 = vpop.f32.mrf.mxu1 }
 0x44b   :  { %v3032_v54 = vpop.f32.mrf.mxu2 }
 0x44c   :  { %v3058_v4 = vadd.f32 %v3032_v54, %v3001_v61  ;;  %v7942_v13 = vpop.f32.mrf.mxu3 }
 0x44d   :  { %v2921_v5 = vpop.f32.mrf.mxu0  ;;  %5303 = vmatmul.msk.f32.vlgmr.msra.gmra.mxu1 %vm1399_vm3, %v9191_v26  ;;  %v9199_v26 = vld [vmem:[#allocation24_spill] sm:$0xff] }
 0x44e   :  { %v7949_v24 = vmax.f32 %v9194_v29, %v3058_v4  ;;  %v2945_v7 = vadd.f32 %v2921_v5, %v7811_v22  ;;  %v9195_v22 = vld [vmem:[#allocation15_spill] sm:$0xff] }
 0x44f   :  { %v9197_v32 = vmax.f32 %v9195_v22, %v9196_v12 }
 0x450   :  { %5262 = vmatmul.msk.f32.gmra.mxu0 %vm1399_vm3, %v6761_v16  ;;  %5282 = vmatmul.msk.f32.gmra.mxu2 %vm1399_vm3, %v6801_v27  ;;  %v3002_v23 = vadd.f32 %v2978_v37, %v2945_v7 }
 0x451   :  { %5292 = vmatmul.msk.f32.gmra.mxu3 %vm1399_vm3, %v9146_v58 }
 0x452   :  { %v2984_v28 = vpop.f32.mrf.mxu1 }
 0x453   :  { %v3035_v30 = vpop.f32.mrf.mxu2 }
 0x454   :  { %v3059_v19 = vadd.f32 %v3035_v30, %v3002_v23  ;;  %v7958_v41 = vpop.f32.mrf.mxu3  ;;  %v9202_v30 = vld [vmem:[#allocation12_spill] sm:$0xff] }
 0x455   :  { %v2924_v10 = vpop.f32.mrf.mxu0  ;;  %5304 = vmatmul.msk.f32.gmra.mxu1 %vm1399_vm3, %v9158_v38 }
 0x456   :  { %v7965_v36 = vmax.f32 %v9197_v32, %v3059_v19  ;;  %v2946_v0 = vadd.f32 %v2924_v10, %v7834_v21  ;;  %v9198_v21 = vld [vmem:[#allocation11_spill] sm:$0xff] }
 0x457   :  { %v9200_v63 = vmax.f32 %v9198_v21, %v9199_v26  ;;  %v9204_v19 = vld [vmem:[#allocation23_spill] sm:$0xff] }
 0x458   :  { %5293 = vmatmul.msk.f32.vlgmr.msra.gmra.mxu0 %vm1399_vm3, %v6541_v8  ;;  %5313 = vmatmul.msk.f32.vlgmr.msrb.gmra.mxu2 %vm1399_vm3, %v6547_v3  ;;  %v3003_v37 = vadd.f32 %v2981_v25, %v2946_v0  ;;  %v9201_v25 = vld [vmem:[#allocation36_spill] sm:$0xff] }
 0x459   :  { %5323 = vmatmul.msk.f32.vlgmr.msrb.gmra.mxu3 %vm1399_vm3, %v6520_v47 }
 0x45a   :  { %v2987_v61 = vpop.f32.mrf.mxu1 }
 0x45b   :  { %v3038_v54 = vpop.f32.mrf.mxu2 }
 0x45c   :  { %v3060_v38 = vadd.f32 %v3038_v54, %v3003_v37  ;;  %v7974_v4 = vpop.f32.mrf.mxu3 }
 0x45d   :  { %v2927_v5 = vpop.f32.mrf.mxu0  ;;  %5305 = vmatmul.msk.f32.gmra.mxu1 %vm1399_vm3, %v9163_v56 }
 0x45e   :  { %v7981_v8 = vmax.f32 %v9200_v63, %v3060_v38  ;;  %v2947_v3 = vadd.f32 %v2927_v5, %v7845_v60  ;;  %v9203_v60 = vld [vmem:[#allocation14_spill] sm:$0xff] }
 0x45f   :  { %v9205_v10 = vmax.f32 %v9203_v60, %v9204_v19  ;;  %v9208_v38 = vld [vmem:[#allocation42_spill] sm:$0xff] }
 0x460   :  { %5294 = vmatmul.msk.f32.gmra.mxu0 %vm1399_vm3, %v9201_v25  ;;  %5314 = vmatmul.msk.f32.gmra.mxu2 %vm1399_vm3, %v6577_v2  ;;  %v3004_v47 = vadd.f32 %v2984_v28, %v2947_v3  ;;  %v9206_v28 = vld [vmem:[#allocation38_spill] sm:$0xff]  ;;  %v9211_v25 = vld [vmem:[#allocation19_spill] sm:$0xff] }
 0x461   :  { %5324 = vmatmul.msk.f32.gmra.mxu3 %vm1399_vm3, %v6559_v57  ;;  %v9216_v60 = vld [vmem:[#allocation10_spill] sm:$0xff] }
 0x462   :  { %v2990_v43 = vpop.f32.mrf.mxu1 }
 0x463   :  { %v3041_v29 = vpop.f32.mrf.mxu2 }
 0x464   :  { %v3061_v56 = vadd.f32 %v3041_v29, %v3004_v47  ;;  %v7990_v7 = vpop.f32.mrf.mxu3 }
 0x465   :  { %v2930_v23 = vpop.f32.mrf.mxu0  ;;  %5306 = vmatmul.msk.f32.gmra.mxu1 %vm1399_vm3, %v9202_v30 }
 0x466   :  { %v7997_v22 = vmax.f32 %v9205_v10, %v3061_v56  ;;  %v2948_v2 = vadd.f32 %v2930_v23, %v7856_v62  ;;  %v9207_v62 = vld [vmem:[#allocation32_spill] sm:$0xff] }
 0x467   :  { %v9209_v5 = vmax.f32 %v9207_v62, %v9208_v38  ;;  %v9222_v62 = vld [vmem:[#allocation22_spill] sm:$0xff] }
 0x468   :  { %5295 = vmatmul.msk.f32.gmra.mxu0 %vm1399_vm3, %v9206_v28  ;;  %5315 = vmatmul.msk.f32.gmra.mxu2 %vm1399_vm3, %v6607_v11  ;;  %v3005_v12 = vadd.f32 %v2987_v61, %v2948_v2  ;;  %v9219_v28 = vld [vmem:[#allocation7_spill] sm:$0xff] }
 0x469   :  { %5325 = vmatmul.msk.f32.gmra.mxu3 %vm1399_vm3, %v6589_v33 }
 0x46a   :  { %v2993_v57 = vpop.f32.mrf.mxu1 }
 0x46b   :  { %v3044_v32 = vpop.f32.mrf.mxu2 }
 0x46c   :  { %v3062_v0 = vadd.f32 %v3044_v32, %v3005_v12  ;;  %v8006_v37 = vpop.f32.mrf.mxu3  ;;  %v195_v32 = vld [vmem:[%s8922_s5 + $0x18] sm:$0xf] }
 0x46d   :  { %v2933_v54 = vpop.f32.mrf.mxu0  ;;  %5307 = vmatmul.msk.f32.gmra.mxu1 %vm1399_vm3, %v9172_v52  ;;  %5333 = vmatpush.msk.msrb.mxu0 %vm3638_vm6, %v195_v32 }
 0x46e   :  { %v8013_v21 = vmax.f32 %v9209_v5, %v3062_v0  ;;  %v2949_v11 = vadd.f32 %v2933_v54, %v7879_v42  ;;  %v9210_v42 = vld [vmem:[#allocation17_spill] sm:$0xff]  ;;  %v199_v0 = vld [vmem:[%s8922_s5 + $0x38] sm:$0xf] }
 0x46f   :  { %v9212_v47 = vmax.f32 %v9210_v42, %v9211_v25  ;;  %v193_v54 = vld [vmem:[%s8922_s5 + $0x8] sm:$0xf]  ;;  %5357 = vmatpush.msk.msra.mxu3 %vm3638_vm6, %v199_v0 }
 0x470   :  { %5296 = vmatmul.msk.f32.gmra.mxu0 %vm1399_vm3, %v6643_v53  ;;  %5316 = vmatmul.msk.f32.gmra.mxu2 %vm1399_vm3, %v9119_v14  ;;  %v3006_v61 = vadd.f32 %v2990_v43, %v2949_v11  ;;  %v9225_v25 = vld [vmem:[#allocation13_spill] sm:$0xff] }
 0x471   :  { %5326 = vmatmul.msk.f32.gmra.mxu3 %vm1399_vm3, %v6619_v6  ;;  %5341 = vmatpush.msk.msrb.mxu1 %vm3638_vm6, %v193_v54 }
 0x472   :  { %v2996_v33 = vpop.f32.mrf.mxu1 }
 0x473   :  { %v3047_v26 = vpop.f32.mrf.mxu2 }
 0x474   :  { %v3063_v52 = vadd.f32 %v3047_v26, %v3006_v61  ;;  %v8022_v63 = vpop.f32.mrf.mxu3  ;;  %v9223_v61 = vld [vmem:[#allocation25_spill] sm:$0xff] }
 0x475   :  { %v2936_v3 = vpop.f32.mrf.mxu0  ;;  %5308 = vmatmul.msk.f32.gmra.mxu1 %vm1399_vm3, %v9177_v31 }
 0x476   :  { %v8029_v53 = vmax.f32 %v9212_v47, %v3063_v52  ;;  %v2950_v14 = vadd.f32 %v2936_v3, %v7890_v35  ;;  %v9214_v35 = vld [vmem:[#allocation43_spill] sm:$0xff]  ;;  %v9224_v3 = vld [vmem:[#allocation20_spill] sm:$0xff] }
 0x478   :  { %9213 = vst [vmem:[#allocation44_spill] sm:$0xff] %v8029_v53  ;;  %5297 = vmatmul.msk.f32.gmra.mxu0 %vm1399_vm3, %v6673_v46  ;;  %5317 = vmatmul.msk.f32.gmra.mxu2 %vm1399_vm3, %v9122_v51  ;;  %v3007_v43 = vadd.f32 %v2993_v57, %v2950_v14  ;;  %v9215_v46 = vmax.f32 %v7722_v48, %v9214_v35  ;;  %v194_v35 = vld [vmem:[%s8922_s5 + $0x10] sm:$0xff] }
 0x479   :  { %5327 = vmatmul.msk.f32.gmra.mxu3 %vm1399_vm3, %v6661_v34  ;;  %v197_v34 = vld [vmem:[%s8922_s5 + $0x28] sm:$0xf]  ;;  %3657 = vmatpush.msrb.mxu0 %v194_v35 }
 0x47a   :  { %v8038_v6 = vpop.f32.mrf.mxu1  ;;  %5349 = vmatpush.msk.msra.mxu2 %vm3638_vm6, %v197_v34 }
 0x47b   :  { %v3050_v31 = vpop.f32.mrf.mxu2 }
 0x47c   :  { %v3064_v29 = vadd.f32 %v3050_v31, %v3007_v43  ;;  %v8040_v56 = vpop.f32.mrf.mxu3  ;;  %v196_v43 = vld [vmem:[%s8922_s5 + $0x20] sm:$0xff] }
 0x47d   :  { %v2939_v23 = vpop.f32.mrf.mxu0  ;;  %5309 = vmatmul.msk.f32.gmra.mxu1 %vm1399_vm3, %v9178_v17  ;;  %3780 = vmatpush.msra.mxu2 %v196_v43 }
 0x47e   :  { %v8047_v30 = vmax.f32 %v9215_v46, %v3064_v29  ;;  %v2951_v51 = vadd.f32 %v2939_v23, %v7901_v1  ;;  %v198_v46 = vld [vmem:[%s8922_s5 + $0x30] sm:$0xff] }
 0x47f   :  { %3856 = vmatpush.msra.mxu3 %v198_v46 }
 0x480   :  { %5298 = vmatmul.msk.f32.gmra.mxu0 %vm1399_vm3, %v9216_v60  ;;  %5318 = vmatmul.msk.f32.gmra.mxu2 %vm1399_vm3, %v9125_v50  ;;  %v3008_v48 = vadd.f32 %v2996_v33, %v2951_v51  ;;  %v9217_v50 = vld [vmem:[#allocation21_spill] sm:$0xff] }
 0x481   :  { %5328 = vmatmul.msk.f32.gmra.mxu3 %vm1399_vm3, %v6691_v55  ;;  %v9218_v55 = vld [vmem:[#allocation45_spill] sm:$0xff] }
 0x482   :  { %v8059_v17 = vpop.f32.mrf.mxu1  ;;  %v9220_v57 = vmax.f32 %v9218_v55, %v9219_v28  ;;  %v192_v51 = vld [vmem:[%s8922_s5] sm:$0xff] }
 0x483   :  { %v3053_v1 = vpop.f32.mrf.mxu2  ;;  %3712 = vmatpush.msrb.mxu1 %v192_v51 }
 0x484   :  { %v3065_v19 = vadd.f32 %v3053_v1, %v3008_v48  ;;  %v8062_v10 = vpop.f32.mrf.mxu3 }
 0x485   :  { %v8064_v2 = vpop.f32.mrf.mxu0  ;;  %5310 = vmatmul.msk.f32.gmra.mxu1 %vm1399_vm3, %v9217_v50 }
 0x486   :  { %v8071_v12 = vmax.f32 %v9220_v57, %v3065_v19 }
 0x488   :  { %9221 = vst [vmem:[#allocation46_spill] sm:$0xff] %v8071_v12  ;;  %5299 = vmatmul.msk.f32.gmra.mxu0 %vm1399_vm3, %v9222_v62  ;;  %5319 = vmatmul.msk.f32.gmra.mxu2 %vm1399_vm3, %v9127_v49  ;;  %v3141_v62 = vadd.f32 %v8064_v2, %v7910_v44  ;;  %v205_v44 = vld [vmem:[%s8922_s5 + $0x68] sm:$0xf] }
 0x489   :  { %5329 = vmatmul.msk.f32.gmra.mxu3 %vm1399_vm3, %v6733_v9  ;;  %5381 = vmatpush.msk.msrb.mxu2 %vm3638_vm6, %v205_v44  ;;  %v207_v44 = vld [vmem:[%s8922_s5 + $0x78] sm:$0xf] }
 0x48a   :  { %v8091_v38 = vpop.f32.mrf.mxu1  ;;  %v3217_v43 = vadd.f32 %v8038_v6, %v3141_v62  ;;  %5389 = vmatpush.msk.msrb.mxu3 %vm3638_vm6, %v207_v44 }
 0x48b   :  { %v3244_v5 = vpop.f32.mrf.mxu2 }
 0x48c   :  { %v3301_v11 = vpop.f32.mrf.mxu3  ;;  %v3274_v35 = vadd.f32 %v3244_v5, %v3217_v43 }
 0x48d   :  { %v3143_v33 = vpop.f32.mrf.mxu0  ;;  %5311 = vmatmul.msk.f32.gmra.mxu1 %vm1399_vm3, %v9180_v59 }
 0x48e   :  { %v3144_v46 = vadd.f32 %v3143_v33, %v7926_v15 }
 0x490   :  { %5300 = vmatmul.msk.f32.gmra.mxu0 %vm1399_vm3, %v9223_v61  ;;  %5320 = vmatmul.msk.f32.gmra.mxu2 %vm1399_vm3, %v6784_v20 }
 0x491   :  { %5330 = vmatmul.msk.f32.gmra.mxu3 %vm1399_vm3, %v6761_v16 }
 0x492   :  { %v8101_v9 = vpop.f32.mrf.mxu1 }
 0x493   :  { %v3247_v49 = vpop.f32.mrf.mxu2 }
 0x494   :  { %v8103_v26 = vpop.f32.mrf.mxu3 }
 0x495   :  { %v3146_v52 = vpop.f32.mrf.mxu0  ;;  %5312 = vmatmul.msk.f32.gmra.mxu1 %vm1399_vm3, %v9181_v40  ;;  %v9226_v40 = vld [vmem:[#allocation9_spill] sm:$0xff] }
 0x496   :  { %v3147_v5 = vadd.f32 %v3146_v52, %v7942_v13 }
 0x498   :  { %5301 = vmatmul.msk.f32.gmra.mxu0 %vm1399_vm3, %v9224_v3  ;;  %5321 = vmatmul.msk.f32.gmra.mxu2 %vm1399_vm3, %v6801_v27 }
 0x499   :  { %5331 = vmatmul.msk.f32.gmra.mxu3 %vm1399_vm3, %v9146_v58 }
 0x49a   :  { %v8113_v20 = vpop.f32.mrf.mxu1 }
 0x49b   :  { %v8115_v16 = vpop.f32.mrf.mxu2 }
 0x49c   :  { %v8117_v59 = vpop.f32.mrf.mxu3 }
 0x49d   :  { %v8119_v42 = vpop.f32.mrf.mxu0 }
 0x4a0   :  { %5302 = vmatmul.msk.f32.gmra.mxu0 %vm1399_vm3, %v9225_v25  ;;  %5322 = vmatmul.msk.f32.gmra.mxu2 %vm1399_vm3, %v9226_v40 }
 0x4a1   :  { %5332 = vmatmul.msk.f32.gmra.mxu3 %vm1399_vm3, %v6971_v39 }
 0x4a2   :  { %v8127_v27 = vpop.f32.mrf.mxu1 }
 0x4a3   :  { %v8129_v58 = vpop.f32.mrf.mxu2 }
 0x4a4   :  { %v8131_v47 = vpop.f32.mrf.mxu3 }
 0x4a5   :  { %v8133_v14 = vpop.f32.mrf.mxu0 }
 0x4aa   :  { %v8138_v31 = vpop.f32.mrf.mxu1 }
 0x4ab   :  { %v8140_v29 = vpop.f32.mrf.mxu2 }
 0x4ac   :  { %v8142_v23 = vpop.f32.mrf.mxu3 }
 0x4ad   :  { %v8144_v39 = vpop.f32.mrf.mxu0 }
 0x4b2   :  { %v8155_v60 = vpop.f32.mrf.mxu1 }
 0x4b3   :  { %9227 = vst [vmem:[#allocation41_spill] sm:$0xff] %v8155_v60  ;;  %v8157_v34 = vpop.f32.mrf.mxu2  ;;  %v3218_v60 = vadd.f32 %v8059_v17, %v3144_v46  ;;  %v203_v17 = vld [vmem:[%s8922_s5 + $0x58] sm:$0xf] }
 0x4b4   :  { %v8159_v48 = vpop.f32.mrf.mxu3  ;;  %5373 = vmatpush.msk.msra.mxu1 %vm3638_vm6, %v203_v17 }
 0x4b5   :  { %v8161_v1 = vpop.f32.mrf.mxu0  ;;  %v3275_v6 = vadd.f32 %v3247_v49, %v3218_v60 }
 0x4ba   :  { %v8163_v19 = vpop.f32.mrf.mxu1 }
 0x4bb   :  { %v8165_v50 = vpop.f32.mrf.mxu2 }
 0x4bc   :  { %v8167_v55 = vpop.f32.mrf.mxu3 }
 0x4bd   :  { %v8169_v28 = vpop.f32.mrf.mxu0 }
 0x4be   :  { %9228 = vst [vmem:[#allocation47_spill] sm:$0xff] %v8169_v28  ;;  %v201_v28 = vld [vmem:[%s8922_s5 + $0x48] sm:$0xf] }
 0x4bf   :  { %5365 = vmatpush.msk.msra.mxu0 %vm3638_vm6, %v201_v28  ;;  %v3150_v28 = vadd.f32 %v8119_v42, %v7958_v41  ;;  %v3153_v42 = vadd.f32 %v8133_v14, %v7974_v4 }
 0x4c2   :  { %v8171_v57 = vpop.f32.mrf.mxu1 }
 0x4c3   :  { %v8173_v32 = vpop.f32.mrf.mxu2 }
 0x4c4   :  { %9229 = vst [vmem:[#allocation27_spill] sm:$0xff] %v8173_v32  ;;  %v8175_v0 = vpop.f32.mrf.mxu3 }
 0x4c5   :  { %9230 = vst [vmem:[#allocation5_spill] sm:$0xff] %v8175_v0  ;;  %v8177_v54 = vpop.f32.mrf.mxu0  ;;  %v3331_v0 = vadd.f32 %v3301_v11, %v3274_v35  ;;  %v3332_v11 = vadd.f32 %v8103_v26, %v3275_v6  ;;  %v8215_v26 = vld [vmem:[%s8921_s4] ss:$0 sm:$0xff] }
 0x4ca   :  { %v3415_v61 = vpop.f32.mrf.mxu1 }
 0x4cb   :  { %v8181_v3 = vpop.f32.mrf.mxu2 }
 0x4cc   :  { %v8183_v25 = vpop.f32.mrf.mxu3 }
 0x4cd   :  { %v8185_v40 = vpop.f32.mrf.mxu0 }
 0x4d2   :  { %v3418_v51 = vpop.f32.mrf.mxu1 }
 0x4d3   :  { %v8189_v53 = vpop.f32.mrf.mxu2 }
 0x4d4   :  { %v8191_v32 = vpop.f32.mrf.mxu3 }
 0x4d5   :  { %v3358_v2 = vpop.f32.mrf.mxu0 }
 0x4d6   :  { %v3388_v12 = vadd.f32 %v3358_v2, %v3331_v0 }
 0x4d8   :  { %v3445_v15 = vadd.f32 %v3415_v61, %v3388_v12  ;;  %v3219_v12 = vadd.f32 %v8091_v38, %v3147_v5 }
 0x4da   :  { %v3421_v33 = vpop.f32.mrf.mxu1  ;;  %v3276_v60 = vadd.f32 %v8115_v16, %v3219_v12 }
 0x4db   :  { %v3472_v62 = vpop.f32.mrf.mxu2 }
 0x4dc   :  { %v3502_v43 = vadd.f32 %v3472_v62, %v3445_v15  ;;  %v3529_v35 = vpop.f32.mrf.mxu3  ;;  %v3333_v2 = vadd.f32 %v8117_v59, %v3276_v60 }
 0x4dd   :  { %v3361_v13 = vpop.f32.mrf.mxu0 }
 0x4de   :  { %v3559_v49 = vadd.f32 %v3529_v35, %v3502_v43  ;;  %v3389_v52 = vadd.f32 %v3361_v13, %v3332_v11  ;;  %v3220_v43 = vadd.f32 %v8101_v9, %v3150_v28 }
 0x4e0   :  { %v3569_v0 = vmax.f32 %v7917_v45, %v3559_v49  ;;  %v3446_v46 = vadd.f32 %v3418_v51, %v3389_v52  ;;  %v3277_v45 = vadd.f32 %v8129_v58, %v3220_v43  ;;  %v3221_v49 = vadd.f32 %v8113_v20, %v3153_v42  ;;  %v206_v42 = vld [vmem:[%s8922_s5 + $0x70] sm:$0xff] }
 0x4e1   :  { %4092 = vmatpush.msrb.mxu3 %v206_v42 }
 0x4e2   :  { %v3583_v61 = vadd.f32 %v8215_v26, %v3569_v0  ;;  %v3424_v62 = vpop.f32.mrf.mxu1  ;;  %v3334_v17 = vadd.f32 %v8131_v47, %v3277_v45  ;;  %v204_v45 = vld [vmem:[%s8922_s5 + $0x60] sm:$0xff] }
 0x4e3   :  { %v3475_v38 = vpop.f32.mrf.mxu2  ;;  %4038 = vmatpush.msrb.mxu2 %v204_v45 }
 0x4e4   :  { %v3593_v6 = vmax.f32 %v3583_v61, 0.0  ;;  %v3503_v5 = vadd.f32 %v3475_v38, %v3446_v46  ;;  %v3532_v15 = vpop.f32.mrf.mxu3  ;;  %v3278_v46 = vadd.f32 %v8140_v29, %v3221_v49 }
 0x4e5   :  { %v3364_v11 = vpop.f32.mrf.mxu0 }
 0x4e6   :  { %v3560_v16 = vadd.f32 %v3532_v15, %v3503_v5  ;;  %v3390_v35 = vadd.f32 %v3364_v11, %v3333_v2  ;;  %5342 = vmatmul.msk.f32.vlgmr.msrb.gmra.mxu1 %vm3623_vm7, %v3593_v6  ;;  %v3610_v60 = vrot.slane %v3593_v6, 1  ;;  %v3735_v58 = vrot.slane %v3593_v6, 2 }
 0x4e7   :  { %v3887_v61 = vrot.slane %v3593_v6, 7  ;;  %v3156_v15 = vadd.f32 %v8144_v39, %v7990_v7 }
 0x4e8   :  { %v3570_v41 = vmax.f32 %v7933_v18, %v3560_v16  ;;  %v3447_v51 = vadd.f32 %v3421_v33, %v3390_v35  ;;  %v3811_v33 = vrot.slane %v3593_v6, 3  ;;  %v3335_v16 = vadd.f32 %v8142_v23, %v3278_v46  ;;  %v202_v23 = vld [vmem:[%s8922_s5 + $0x50] sm:$0xff] }
 0x4e9   :  { %3984 = vmatpush.msra.mxu1 %v202_v23 }
 0x4ea   :  { %v3584_v59 = vadd.f32 %v8215_v26, %v3570_v41  ;;  %v3427_v47 = vpop.f32.mrf.mxu1  ;;  %v200_v41 = vld [vmem:[%s8922_s5 + $0x40] sm:$0xff] }
 0x4eb   :  { %v3478_v44 = vpop.f32.mrf.mxu2  ;;  %3934 = vmatpush.msra.mxu0 %v200_v41 }
 0x4ec   :  { %v8232_v13 = vmax.f32 %v3584_v59, 0.0  ;;  %v3504_v9 = vadd.f32 %v3478_v44, %v3447_v51  ;;  %v3535_v12 = vpop.f32.mrf.mxu3 }
 0x4ed   :  { %v3367_v52 = vpop.f32.mrf.mxu0 }
 0x4ee   :  { %v3561_v18 = vadd.f32 %v3535_v12, %v3504_v9  ;;  %v3391_v0 = vadd.f32 %v3367_v52, %v3334_v17  ;;  %5343 = vmatmul.msk.f32.gmra.mxu1 %vm3623_vm7, %v8232_v13  ;;  %v3611_v4 = vrot.slane %v8232_v13, 1  ;;  %v3736_v14 = vrot.slane %v8232_v13, 2 }
 0x4ef   :  { %v3812_v28 = vrot.slane %v8232_v13, 3  ;;  %v3888_v20 = vrot.slane %v8232_v13, 7 }
 0x4f0   :  { %v3571_v38 = vmax.f32 %v7949_v24, %v3561_v18  ;;  %v3612_v2 = vsel %vm236_vm0, %v3610_v60, %v3611_v4  ;;  %v3737_v5 = vsel %vm1534_vm4, %v3735_v58, %v3736_v14  ;;  %v3448_v29 = vadd.f32 %v3424_v62, %v3391_v0 }
 0x4f1   :  { %5334 = vmatmul.msk.f32.vlgmr.msrb.gmra.mxu0 %vm3623_vm7, %v3612_v2  ;;  %5350 = vmatmul.msk.f32.vlgmr.msra.gmra.mxu2 %vm3623_vm7, %v3737_v5  ;;  %v3813_v11 = vsel %vm3810_vm8, %v3811_v33, %v3812_v28  ;;  %v8253_v6 = vsel %vm416_vm2, %v3887_v61, %v3888_v20  ;;  %v3222_v62 = vadd.f32 %v8127_v27, %v3156_v15 }
 0x4f2   :  { %v3585_v24 = vadd.f32 %v8215_v26, %v3571_v38  ;;  %5358 = vmatmul.msk.f32.vlgmr.msra.gmra.mxu3 %vm3623_vm7, %v3813_v11  ;;  %v3159_v58 = vadd.f32 %v8161_v1, %v8006_v37  ;;  %v3430_v18 = vpop.f32.mrf.mxu1 }
 0x4f3   :  { %v3481_v43 = vpop.f32.mrf.mxu2  ;;  %v3279_v27 = vadd.f32 %v8157_v34, %v3222_v62 }
 0x4f4   :  { %v8258_v7 = vmax.f32 %v3585_v24, 0.0  ;;  %v3505_v39 = vadd.f32 %v3481_v43, %v3448_v29  ;;  %v3538_v35 = vpop.f32.mrf.mxu3  ;;  %v3223_v61 = vadd.f32 %v8138_v31, %v3159_v58 }
 0x4f5   :  { %v3370_v59 = vpop.f32.mrf.mxu0 }
 0x4f6   :  { %v3562_v51 = vadd.f32 %v3538_v35, %v3505_v39  ;;  %v3392_v44 = vadd.f32 %v3370_v59, %v3335_v16  ;;  %5344 = vmatmul.msk.f32.gmra.mxu1 %vm3623_vm7, %v8258_v7  ;;  %v3613_v17 = vrot.slane %v8258_v7, 1  ;;  %v3738_v9 = vrot.slane %v8258_v7, 2 }
 0x4f7   :  { %v3814_v12 = vrot.slane %v8258_v7, 3 }
 0x4f8   :  { %v3572_v49 = vmax.f32 %v7965_v36, %v3562_v51  ;;  %v8281_v52 = vsel %vm236_vm0, %v3611_v4, %v3613_v17  ;;  %v8284_v60 = vsel %vm1534_vm4, %v3736_v14, %v3738_v9  ;;  %v3449_v0 = vadd.f32 %v3427_v47, %v3392_v44 }
 0x4f9   :  { %5335 = vmatmul.msk.f32.gmra.mxu0 %vm3623_vm7, %v8281_v52  ;;  %5351 = vmatmul.msk.f32.gmra.mxu2 %vm3623_vm7, %v8284_v60  ;;  %v3815_v34 = vsel %vm3810_vm8, %v3812_v28, %v3814_v12  ;;  %v3336_v14 = vadd.f32 %v8159_v48, %v3279_v27  ;;  %v3280_v48 = vadd.f32 %v8165_v50, %v3223_v61 }
 0x4fa   :  { %v3586_v36 = vadd.f32 %v8215_v26, %v3572_v49  ;;  %5359 = vmatmul.msk.f32.gmra.mxu3 %vm3623_vm7, %v3815_v34 }
 0x4fb   :  { %v3484_v4 = vpop.f32.mrf.mxu2  ;;  %v3337_v16 = vadd.f32 %v8167_v55, %v3280_v48  ;;  %v3168_v48 = vadd.f32 %v8185_v40, %v8062_v10 }
 0x4fc   :  { %v8296_v33 = vmax.f32 %v3586_v36, 0.0  ;;  %v3506_v37 = vadd.f32 %v3484_v4, %v3449_v0  ;;  %v3541_v1 = vpop.f32.mrf.mxu3  ;;  %v213_v36 = vld [vmem:[%s8922_s5 + $0xa8] sm:$0xf] }
 0x4fd   :  { %v3373_v46 = vpop.f32.mrf.mxu0  ;;  %v209_v0 = vld [vmem:[%s8922_s5 + $0x88] sm:$0xf]  ;;  %5413 = vmatpush.msk.msra.mxu2 %vm3638_vm6, %v213_v36  ;;  %v9231_v36 = vld [vmem:[#allocation47_spill] sm:$0xff] }
 0x4fe   :  { %v3563_v38 = vadd.f32 %v3541_v1, %v3506_v37  ;;  %v3393_v2 = vadd.f32 %v3373_v46, %v3336_v14  ;;  %5345 = vmatmul.msk.f32.gmra.mxu1 %vm3623_vm7, %v8296_v33  ;;  %v3615_v28 = vrot.slane %v8296_v33, 1  ;;  %v3740_v5 = vrot.slane %v8296_v33, 2  ;;  %5397 = vmatpush.msk.msrb.mxu0 %vm3638_vm6, %v209_v0  ;;  %v211_v14 = vld [vmem:[%s8922_s5 + $0x98] sm:$0xf] }
 0x4ff   :  { %v3816_v47 = vrot.slane %v8296_v33, 3  ;;  %5405 = vmatpush.msk.msrb.mxu1 %vm3638_vm6, %v211_v14  ;;  %v3162_v0 = vadd.f32 %v9231_v36, %v8022_v63  ;;  %v9233_v63 = vld [vmem:[#allocation41_spill] sm:$0xff]  ;;  %v222_v36 = vld [vmem:[%s8922_s5 + $0xf0] sm:$0xff] }
 0x500   :  { %v3573_v15 = vmax.f32 %v7981_v8, %v3563_v38  ;;  %v8307_v11 = vsel %vm236_vm0, %v3613_v17, %v3615_v28  ;;  %v8310_v31 = vsel %vm1534_vm4, %v3738_v9, %v3740_v5  ;;  %v3450_v50 = vadd.f32 %v3430_v18, %v3393_v2  ;;  %v3433_v8 = vpop.f32.mrf.mxu1 }
 0x501   :  { %5336 = vmatmul.msk.f32.gmra.mxu0 %vm3623_vm7, %v8307_v11  ;;  %5352 = vmatmul.msk.f32.gmra.mxu2 %vm3623_vm7, %v8310_v31  ;;  %v3817_v24 = vsel %vm3810_vm8, %v3814_v12, %v3816_v47  ;;  %v3165_v12 = vadd.f32 %v8177_v54, %v8040_v56  ;;  %v215_v54 = vld [vmem:[%s8922_s5 + $0xb8] sm:$0xf] }
 0x502   :  { %v3587_v29 = vadd.f32 %v8215_v26, %v3573_v15  ;;  %5360 = vmatmul.msk.f32.gmra.mxu3 %vm3623_vm7, %v3817_v24 }
 0x503   :  { %v3487_v43 = vpop.f32.mrf.mxu2  ;;  %v3225_v37 = vadd.f32 %v8163_v19, %v3165_v12  ;;  %5421 = vmatpush.msk.msra.mxu3 %vm3638_vm6, %v215_v54 }
 0x504   :  { %v8320_v39 = vmax.f32 %v3587_v29, 0.0  ;;  %v3507_v35 = vadd.f32 %v3487_v43, %v3450_v50  ;;  %v3544_v45 = vpop.f32.mrf.mxu3 }
 0x505   :  { %v3376_v41 = vpop.f32.mrf.mxu0  ;;  %v3282_v2 = vadd.f32 %v8181_v3, %v3225_v37  ;;  %v214_v37 = vld [vmem:[%s8922_s5 + $0xb0] sm:$0xff] }
 0x506   :  { %v3564_v42 = vadd.f32 %v3544_v45, %v3507_v35  ;;  %v3394_v62 = vadd.f32 %v3376_v41, %v3337_v16  ;;  %5346 = vmatmul.msk.f32.gmra.mxu1 %vm3623_vm7, %v8320_v39  ;;  %v3617_v59 = vrot.slane %v8320_v39, 1  ;;  %v3742_v23 = vrot.slane %v8320_v39, 2  ;;  %4324 = vmatpush.msra.mxu3 %v214_v37 }
 0x507   :  { %v3818_v51 = vrot.slane %v8320_v39, 3  ;;  %v3339_v15 = vadd.f32 %v8183_v25, %v3282_v2 }
 0x508   :  { %v3574_v44 = vmax.f32 %v7997_v22, %v3564_v42  ;;  %v8329_v55 = vsel %vm236_vm0, %v3615_v28, %v3617_v59  ;;  %v8332_v17 = vsel %vm1534_vm4, %v3740_v5, %v3742_v23  ;;  %v3451_v22 = vadd.f32 %v3433_v8, %v3394_v62  ;;  %v8351_v4 = vpop.f32.mrf.mxu1 }
 0x509   :  { %5337 = vmatmul.msk.f32.gmra.mxu0 %vm3623_vm7, %v8329_v55  ;;  %5353 = vmatmul.msk.f32.gmra.mxu2 %vm3623_vm7, %v8332_v17  ;;  %v3819_v9 = vsel %vm3810_vm8, %v3816_v47, %v3818_v51  ;;  %v3226_v8 = vadd.f32 %v8171_v57, %v3168_v48 }
 0x50a   :  { %v3588_v27 = vadd.f32 %v8215_v26, %v3574_v44  ;;  %5361 = vmatmul.msk.f32.gmra.mxu3 %vm3623_vm7, %v3819_v9 }
 0x50b   :  { %v3490_v49 = vpop.f32.mrf.mxu2  ;;  %v3283_v35 = vadd.f32 %v8189_v53, %v3226_v8 }
 0x50c   :  { %v8343_v58 = vmax.f32 %v3588_v27, 0.0  ;;  %v3508_v18 = vadd.f32 %v3490_v49, %v3451_v22  ;;  %v3547_v34 = vpop.f32.mrf.mxu3  ;;  %v212_v22 = vld [vmem:[%s8922_s5 + $0xa0] sm:$0xff] }
 0x50d   :  { %v8353_v56 = vpop.f32.mrf.mxu0  ;;  %v3340_v62 = vadd.f32 %v8191_v32, %v3283_v35  ;;  %4270 = vmatpush.msra.mxu2 %v212_v22  ;;  %v4122_v22 = vrot.slane %v8232_v13, 6 }
 0x50e   :  { %v3565_v1 = vadd.f32 %v3547_v34, %v3508_v18  ;;  %5347 = vmatmul.msk.f32.gmra.mxu1 %vm3623_vm7, %v8343_v58  ;;  %v3619_v61 = vrot.slane %v8343_v58, 1  ;;  %v3744_v46 = vrot.slane %v8343_v58, 2  ;;  %v3820_v38 = vrot.slane %v8343_v58, 3 }
 0x510   :  { %v3575_v28 = vmax.f32 %v8013_v21, %v3565_v1  ;;  %v8374_v19 = vsel %vm236_vm0, %v3617_v59, %v3619_v61  ;;  %v8377_v5 = vsel %vm1534_vm4, %v3742_v23, %v3744_v46  ;;  %v3821_v47 = vsel %vm3810_vm8, %v3818_v51, %v3820_v38  ;;  %v3439_v16 = vpop.f32.mrf.mxu1  ;;  %v9232_v1 = vld [vmem:[#allocation46_spill] sm:$0xff] }
 0x511   :  { %5338 = vmatmul.msk.f32.gmra.mxu0 %vm3623_vm7, %v8374_v19  ;;  %5354 = vmatmul.msk.f32.gmra.mxu2 %vm3623_vm7, %v8377_v5 }
 0x512   :  { %v3589_v3 = vadd.f32 %v8215_v26, %v3575_v28  ;;  %5362 = vmatmul.msk.f32.gmra.mxu3 %vm3623_vm7, %v3821_v47  ;;  %v210_v28 = vld [vmem:[%s8922_s5 + $0x90] sm:$0xff] }
 0x513   :  { %v8388_v21 = vpop.f32.mrf.mxu2  ;;  %4220 = vmatpush.msrb.mxu1 %v210_v28  ;;  %v9234_v47 = vld [vmem:[#allocation27_spill] sm:$0xff] }
 0x514   :  { %v8391_v24 = vmax.f32 %v3589_v3, 0.0  ;;  %v8393_v29 = vpop.f32.mrf.mxu3 }
 0x515   :  { %v3382_v50 = vpop.f32.mrf.mxu0 }
 0x516   :  { %v3396_v43 = vadd.f32 %v3382_v50, %v3339_v15  ;;  %5348 = vmatmul.msk.f32.gmra.mxu1 %vm3623_vm7, %v8391_v24  ;;  %v8399_v10 = vrot.slane %v8391_v24, 1  ;;  %v8402_v40 = vrot.slane %v8391_v24, 2  ;;  %v3822_v25 = vrot.slane %v8391_v24, 3 }
 0x518   :  { %v8408_v45 = vsel %vm236_vm0, %v3619_v61, %v8399_v10  ;;  %v8412_v57 = vsel %vm1534_vm4, %v3744_v46, %v8402_v40  ;;  %v3823_v41 = vsel %vm3810_vm8, %v3820_v38, %v3822_v25  ;;  %v3453_v42 = vadd.f32 %v3439_v16, %v3396_v43  ;;  %v3442_v12 = vpop.f32.mrf.mxu1 }
 0x519   :  { %5339 = vmatmul.msk.f32.gmra.mxu0 %vm3623_vm7, %v8408_v45  ;;  %5355 = vmatmul.msk.f32.gmra.mxu2 %vm3623_vm7, %v8412_v57  ;;  %v3224_v46 = vadd.f32 %v9233_v63, %v3162_v0 }
 0x51a   :  { %5363 = vmatmul.msk.f32.gmra.mxu3 %vm3623_vm7, %v3823_v41 }
 0x51b   :  { %v3496_v53 = vpop.f32.mrf.mxu2 }
 0x51c   :  { %v3510_v59 = vadd.f32 %v3496_v53, %v3453_v42  ;;  %v3553_v23 = vpop.f32.mrf.mxu3  ;;  %v223_v53 = vld [vmem:[%s8922_s5 + $0xf8] sm:$0xf] }
 0x51d   :  { %v3385_v51 = vpop.f32.mrf.mxu0 }
 0x51e   :  { %v3567_v44 = vadd.f32 %v3553_v23, %v3510_v59  ;;  %v3397_v9 = vadd.f32 %v3385_v51, %v3340_v62  ;;  %5374 = vmatmul.msk.f32.vlgmr.msra.gmra.mxu1 %vm3623_vm7, %v8232_v13  ;;  %v219_v62 = vld [vmem:[%s8922_s5 + $0xd8] sm:$0xf]  ;;  %v3896_v59 = vrot.slane %v8343_v58, 7  ;;  %v218_v13 = vld [vmem:[%s8922_s5 + $0xd0] sm:$0xff] }
 0x51f   :  { %5437 = vmatpush.msk.msra.mxu1 %vm3638_vm6, %v219_v62 }
 0x520   :  { %v3577_v27 = vmax.f32 %v8047_v30, %v3567_v44  ;;  %v3454_v32 = vadd.f32 %v3442_v12, %v3397_v9  ;;  %v208_v30 = vld [vmem:[%s8922_s5 + $0x80] sm:$0xff] }
 0x521   :  { %5340 = vmatmul.msk.f32.gmra.mxu0 %vm3623_vm7, %v8399_v10  ;;  %5356 = vmatmul.msk.f32.gmra.mxu2 %vm3623_vm7, %v8402_v40 }
 0x522   :  { %5364 = vmatmul.msk.f32.gmra.mxu3 %vm3623_vm7, %v3822_v25  ;;  %v3591_v54 = vadd.f32 %v8215_v26, %v3577_v27  ;;  %4167 = vmatpush.msrb.mxu0 %v208_v30  ;;  %v3892_v25 = vrot.slane %v8296_v33, 7  ;;  %v4127_v30 = vrot.slane %v8320_v39, 6 }
 0x523   :  { %v3499_v49 = vpop.f32.mrf.mxu2  ;;  %4454 = vmatpush.msra.mxu1 %v218_v13 }
 0x524   :  { %v3511_v18 = vadd.f32 %v3499_v49, %v3454_v32  ;;  %v3556_v34 = vpop.f32.mrf.mxu3  ;;  %v8449_v38 = vmax.f32 %v3591_v54, 0.0  ;;  %v220_v49 = vld [vmem:[%s8922_s5 + $0xe0] sm:$0xff]  ;;  %v4125_v54 = vrot.slane %v8296_v33, 6 }
 0x526   :  { %v3568_v14 = vadd.f32 %v3556_v34, %v3511_v18  ;;  %5375 = vmatmul.msk.f32.gmra.mxu1 %vm3623_vm7, %v8258_v7  ;;  %v4198_v3 = vrot.slane %v8449_v38, 7  ;;  %v216_v18 = vld [vmem:[%s8922_s5 + $0xc0] sm:$0xff]  ;;  %v4300_v62 = vrot.slane %v8449_v38, 1 }
 0x528   :  { %v3578_v61 = vmax.f32 %v9232_v1, %v3568_v14  ;;  %v8610_v1 = vsel %vm1852_vm5, %v4125_v54, %v4127_v30 }
 0x529   :  { %5366 = vmatmul.msk.f32.vlgmr.msra.gmra.mxu0 %vm3623_vm7, %v8253_v6  ;;  %5382 = vmatmul.msk.f32.vlgmr.msrb.gmra.mxu2 %vm3623_vm7, %v8281_v52  ;;  %v3281_v6 = vadd.f32 %v9234_v47, %v3224_v46  ;;  %v3890_v52 = vrot.slane %v8258_v7, 7  ;;  %v4129_v46 = vrot.slane %v8343_v58, 6 }
 0x52a   :  { %v8452_v2 = vadd.f32 %v8215_v26, %v3578_v61  ;;  %5390 = vmatmul.msk.f32.vlgmr.msrb.gmra.mxu3 %vm3623_vm7, %v8284_v60  ;;  %v9235_v60 = vld [vmem:[#allocation5_spill] sm:$0xff] }
 0x52b   :  { %v3338_v50 = vadd.f32 %v9235_v60, %v3281_v6  ;;  %v3891_v8 = vsel %vm416_vm2, %v3888_v20, %v3890_v52  ;;  %v8488_v41 = vsel %vm416_vm2, %v3890_v52, %v3892_v25  ;;  %5453 = vmatpush.msk.msrb.mxu3 %vm3638_vm6, %v223_v53 }
 0x52c   :  { %v3602_v48 = vmax.f32 %v8452_v2, 0.0 }
 0x52d   :  { %v3395_v16 = vadd.f32 %v8353_v56, %v3338_v50  ;;  %v9236_v56 = vld [vmem:[#allocation44_spill] sm:$0xff]  ;;  %4557 = vmatpush.msrb.mxu3 %v222_v36  ;;  %v4356_v36 = vrot.slane %v8296_v33, 5 }
 0x52e   :  { %5376 = vmatmul.msk.f32.gmra.mxu1 %vm3623_vm7, %v8296_v33  ;;  %v4485_v15 = vrot.slane %v3602_v48, 7 }
 0x52f   :  { %v3452_v35 = vadd.f32 %v8351_v4, %v3395_v16  ;;  %v3894_v4 = vrot.slane %v8320_v39, 7 }
 0x530   :  { %v8474_v43 = vsel %vm416_vm2, %v4198_v3, %v4485_v15  ;;  %v8624_v15 = vsel %vm1852_vm5, %v4127_v30, %v4129_v46 }
 0x531   :  { %5367 = vmatmul.msk.f32.gmra.mxu0 %vm3623_vm7, %v3891_v8  ;;  %5383 = vmatmul.msk.f32.gmra.mxu2 %vm3623_vm7, %v8307_v11  ;;  %v3509_v20 = vadd.f32 %v8388_v21, %v3452_v35  ;;  %v8502_v42 = vsel %vm416_vm2, %v3892_v25, %v3894_v4  ;;  %v8533_v51 = vsel %vm416_vm2, %v3894_v4, %v3896_v59 }
 0x532   :  { %5391 = vmatmul.msk.f32.gmra.mxu3 %vm3623_vm7, %v8310_v31 }
 0x533   :  { %v3566_v31 = vadd.f32 %v8393_v29, %v3509_v20  ;;  %v217_v29 = vld [vmem:[%s8922_s5 + $0xc8] sm:$0xf] }
 0x534   :  { %5429 = vmatpush.msk.msra.mxu0 %vm3638_vm6, %v217_v29 }
 0x535   :  { %v3576_v21 = vmax.f32 %v9236_v56, %v3566_v31 }
 0x536   :  { %5377 = vmatmul.msk.f32.gmra.mxu1 %vm3623_vm7, %v8320_v39  ;;  %4400 = vmatpush.msra.mxu0 %v216_v18 }
 0x539   :  { %5368 = vmatmul.msk.f32.gmra.mxu0 %vm3623_vm7, %v8488_v41  ;;  %5384 = vmatmul.msk.f32.gmra.mxu2 %vm3623_vm7, %v8329_v55 }
 0x53a   :  { %5392 = vmatmul.msk.f32.gmra.mxu3 %vm3623_vm7, %v8332_v17  ;;  %v221_v17 = vld [vmem:[%s8922_s5 + $0xe8] sm:$0xf] }
 0x53b   :  { %5445 = vmatpush.msk.msrb.mxu2 %vm3638_vm6, %v221_v17 }
 0x53d   :  { %4507 = vmatpush.msrb.mxu2 %v220_v49 }
 0x53e   :  { %5378 = vmatmul.msk.f32.gmra.mxu1 %vm3623_vm7, %v8343_v58 }
 0x541   :  { %5369 = vmatmul.msk.f32.gmra.mxu0 %vm3623_vm7, %v8502_v42  ;;  %5385 = vmatmul.msk.f32.gmra.mxu2 %vm3623_vm7, %v8374_v19 }
 0x542   :  { %5393 = vmatmul.msk.f32.gmra.mxu3 %vm3623_vm7, %v8377_v5  ;;  %v3590_v5 = vadd.f32 %v8215_v26, %v3576_v21  ;;  %v3898_v26 = vrot.slane %v8391_v24, 7 }
 0x544   :  { %v8530_v23 = vmax.f32 %v3590_v5, 0.0  ;;  %v8549_v12 = vsel %vm416_vm2, %v3896_v59, %v3898_v26 }
 0x546   :  { %5379 = vmatmul.msk.f32.gmra.mxu1 %vm3623_vm7, %v8391_v24  ;;  %v8543_v44 = vrot.slane %v8530_v23, 1  ;;  %v4068_v9 = vrot.slane %v8530_v23, 2  ;;  %v3900_v32 = vrot.slane %v8530_v23, 7  ;;  %v8647_v21 = vrot.slane %v8530_v23, 6 }
 0x548   :  { %v8554_v27 = vsel %vm236_vm0, %v8399_v10, %v8543_v44  ;;  %v8568_v10 = vsel %vm416_vm2, %v3898_v26, %v3900_v32  ;;  %v8654_v53 = vsel %vm416_vm2, %v3900_v32, %v4198_v3  ;;  %v4301_v3 = vsel %vm236_vm0, %v8543_v44, %v4300_v62 }
 0x549   :  { %5370 = vmatmul.msk.f32.gmra.mxu0 %vm3623_vm7, %v8533_v51  ;;  %5386 = vmatmul.msk.f32.gmra.mxu2 %vm3623_vm7, %v8408_v45 }
 0x54a   :  { %5394 = vmatmul.msk.f32.gmra.mxu3 %vm3623_vm7, %v8412_v57  ;;  %v4069_v57 = vsel %vm1534_vm4, %v8402_v40, %v4068_v9  ;;  %v4123_v40 = vrot.slane %v8258_v7, 6 }
 0x54c   :  { %v4124_v34 = vsel %vm1852_vm5, %v4122_v22, %v4123_v40  ;;  %v4126_v14 = vsel %vm1852_vm5, %v4123_v40, %v4125_v54 }
 0x54e   :  { %5380 = vmatmul.msk.f32.gmra.mxu1 %vm3623_vm7, %v8530_v23 }
 0x551   :  { %5371 = vmatmul.msk.f32.gmra.mxu0 %vm3623_vm7, %v8549_v12  ;;  %5387 = vmatmul.msk.f32.gmra.mxu2 %vm3623_vm7, %v8554_v27 }
 0x552   :  { %5395 = vmatmul.msk.f32.gmra.mxu3 %vm3623_vm7, %v4069_v57 }
 0x556   :  { %5406 = vmatmul.msk.f32.vlgmr.msrb.gmra.mxu1 %vm3623_vm7, %v3891_v8  ;;  %v4131_v8 = vrot.slane %v8391_v24, 6 }
 0x558   :  { %v8638_v31 = vsel %vm1852_vm5, %v4129_v46, %v4131_v8  ;;  %v8663_v26 = vsel %vm1852_vm5, %v4131_v8, %v8647_v21 }
 0x559   :  { %5372 = vmatmul.msk.f32.gmra.mxu0 %vm3623_vm7, %v8568_v10  ;;  %5388 = vmatmul.msk.f32.gmra.mxu2 %vm3623_vm7, %v8543_v44 }
 0x55a   :  { %5396 = vmatmul.msk.f32.gmra.mxu3 %vm3623_vm7, %v4068_v9 }
 0x55e   :  { %5407 = vmatmul.msk.f32.gmra.mxu1 %vm3623_vm7, %v8488_v41 }
 0x561   :  { %5398 = vmatmul.msk.f32.vlgmr.msrb.gmra.mxu0 %vm3623_vm7, %v4124_v34  ;;  %5414 = vmatmul.msk.f32.vlgmr.msra.gmra.mxu2 %vm3623_vm7, %v8258_v7 }
 0x562   :  { %5422 = vmatmul.msk.f32.vlgmr.msra.gmra.mxu3 %vm3623_vm7, %v8307_v11 }
 0x563   :  { %v3714_v0 = vpop.f32.mrf.mxu1 }
 0x566   :  { %5408 = vmatmul.msk.f32.gmra.mxu1 %vm3623_vm7, %v8502_v42 }
 0x569   :  { %5399 = vmatmul.msk.f32.gmra.mxu0 %vm3623_vm7, %v4126_v14  ;;  %5415 = vmatmul.msk.f32.gmra.mxu2 %vm3623_vm7, %v8296_v33 }
 0x56a   :  { %5423 = vmatmul.msk.f32.gmra.mxu3 %vm3623_vm7, %v8329_v55 }
 0x56b   :  { %v3717_v11 = vpop.f32.mrf.mxu1 }
 0x56e   :  { %v3659_v37 = vpop.f32.mrf.mxu0  ;;  %5409 = vmatmul.msk.f32.gmra.mxu1 %vm3623_vm7, %v8533_v51 }
 0x56f   :  { %v3715_v55 = vadd.f32 %v3714_v0, %v3659_v37 }
 0x571   :  { %5400 = vmatmul.msk.f32.gmra.mxu0 %vm3623_vm7, %v8610_v1  ;;  %5416 = vmatmul.msk.f32.gmra.mxu2 %vm3623_vm7, %v8320_v39 }
 0x572   :  { %5424 = vmatmul.msk.f32.gmra.mxu3 %vm3623_vm7, %v8374_v19 }
 0x573   :  { %v3720_v61 = vpop.f32.mrf.mxu1 }
 0x574   :  { %v3782_v63 = vpop.f32.mrf.mxu2 }
 0x575   :  { %v3803_v28 = vadd.f32 %v3782_v63, %v3715_v55  ;;  %v3858_v47 = vpop.f32.mrf.mxu3  ;;  %v4358_v63 = vrot.slane %v8320_v39, 5 }
 0x576   :  { %v3662_v6 = vpop.f32.mrf.mxu0  ;;  %5410 = vmatmul.msk.f32.gmra.mxu1 %vm3623_vm7, %v8549_v12 }
 0x577   :  { %v8621_v52 = vadd.f32 %v3858_v47, %v3803_v28  ;;  %v3718_v19 = vadd.f32 %v3717_v11, %v3662_v6  ;;  %v4359_v47 = vsel %vm4354_vm9, %v4356_v36, %v4358_v63 }
 0x579   :  { %5401 = vmatmul.msk.f32.gmra.mxu0 %vm3623_vm7, %v8624_v15  ;;  %5417 = vmatmul.msk.f32.gmra.mxu2 %vm3623_vm7, %v8343_v58 }
 0x57a   :  { %5425 = vmatmul.msk.f32.gmra.mxu3 %vm3623_vm7, %v8408_v45 }
 0x57b   :  { %v3723_v60 = vpop.f32.mrf.mxu1 }
 0x57c   :  { %v3785_v50 = vpop.f32.mrf.mxu2 }
 0x57d   :  { %v3804_v16 = vadd.f32 %v3785_v50, %v3718_v19  ;;  %v3861_v25 = vpop.f32.mrf.mxu3  ;;  %v4360_v19 = vrot.slane %v8343_v58, 5 }
 0x57e   :  { %v3665_v35 = vpop.f32.mrf.mxu0  ;;  %5411 = vmatmul.msk.f32.gmra.mxu1 %vm3623_vm7, %v8568_v10 }
 0x57f   :  { %v8635_v20 = vadd.f32 %v3861_v25, %v3804_v16  ;;  %v3721_v45 = vadd.f32 %v3720_v61, %v3665_v35 }
 0x581   :  { %5402 = vmatmul.msk.f32.gmra.mxu0 %vm3623_vm7, %v8638_v31  ;;  %5418 = vmatmul.msk.f32.gmra.mxu2 %vm3623_vm7, %v8391_v24 }
 0x582   :  { %5426 = vmatmul.msk.f32.gmra.mxu3 %vm3623_vm7, %v8554_v27 }
 0x583   :  { %v3726_v4 = vpop.f32.mrf.mxu1 }
 0x584   :  { %v3788_v56 = vpop.f32.mrf.mxu2 }
 0x585   :  { %v3805_v17 = vadd.f32 %v3788_v56, %v3721_v45  ;;  %v3864_v29 = vpop.f32.mrf.mxu3  ;;  %v4362_v45 = vrot.slane %v8391_v24, 5 }
 0x586   :  { %v3668_v5 = vpop.f32.mrf.mxu0  ;;  %5412 = vmatmul.msk.f32.gmra.mxu1 %vm3623_vm7, %v8654_v53 }
 0x587   :  { %v8659_v59 = vadd.f32 %v3864_v29, %v3805_v17  ;;  %v3724_v9 = vadd.f32 %v3723_v60, %v3668_v5 }
 0x589   :  { %5403 = vmatmul.msk.f32.gmra.mxu0 %vm3623_vm7, %v8663_v26  ;;  %5419 = vmatmul.msk.f32.gmra.mxu2 %vm3623_vm7, %v8530_v23 }
 0x58a   :  { %5427 = vmatmul.msk.f32.gmra.mxu3 %vm3623_vm7, %v4301_v3 }
 0x58b   :  { %v3729_v27 = vpop.f32.mrf.mxu1 }
 0x58c   :  { %v3791_v57 = vpop.f32.mrf.mxu2 }
 0x58d   :  { %v3806_v32 = vadd.f32 %v3791_v57, %v3724_v9  ;;  %v3867_v40 = vpop.f32.mrf.mxu3 }
 0x58e   :  { %v3671_v22 = vpop.f32.mrf.mxu0  ;;  %5438 = vmatmul.msk.f32.vlgmr.msra.gmra.mxu1 %vm3623_vm7, %v4126_v14  ;;  %v4355_v14 = vrot.slane %v8258_v7, 5 }
 0x58f   :  { %v8673_v49 = vadd.f32 %v3867_v40, %v3806_v32  ;;  %v3727_v44 = vadd.f32 %v3726_v4, %v3671_v22  ;;  %v4366_v22 = vrot.slane %v8449_v38, 5 }
 0x590   :  { %v4357_v30 = vsel %vm4354_vm9, %v4355_v14, %v4356_v36 }
 0x591   :  { %5404 = vmatmul.msk.f32.gmra.mxu0 %vm3623_vm7, %v8647_v21  ;;  %5420 = vmatmul.msk.f32.gmra.mxu2 %vm3623_vm7, %v8449_v38 }
 0x592   :  { %5428 = vmatmul.msk.f32.gmra.mxu3 %vm3623_vm7, %v4300_v62 }
 0x593   :  { %v3732_v18 = vpop.f32.mrf.mxu1 }
 0x594   :  { %v3794_v34 = vpop.f32.mrf.mxu2 }
 0x595   :  { %v3807_v13 = vadd.f32 %v3794_v34, %v3727_v44  ;;  %v3870_v0 = vpop.f32.mrf.mxu3 }
 0x596   :  { %v3674_v54 = vpop.f32.mrf.mxu0  ;;  %5439 = vmatmul.msk.f32.gmra.mxu1 %vm3623_vm7, %v8610_v1 }
 0x597   :  { %v8684_v11 = vadd.f32 %v3870_v0, %v3807_v13  ;;  %v3730_v37 = vadd.f32 %v3729_v27, %v3674_v54 }
 0x599   :  { %5430 = vmatmul.msk.f32.vlgmr.msra.gmra.mxu0 %vm3623_vm7, %v4357_v30  ;;  %5446 = vmatmul.msk.f32.vlgmr.msrb.gmra.mxu2 %vm3623_vm7, %v8488_v41 }
 0x59a   :  { %5454 = vmatmul.msk.f32.vlgmr.msrb.gmra.mxu3 %vm3623_vm7, %v8296_v33 }
 0x59b   :  { %v3986_v55 = vpop.f32.mrf.mxu1 }
 0x59c   :  { %v3797_v61 = vpop.f32.mrf.mxu2 }
 0x59d   :  { %v3808_v1 = vadd.f32 %v3797_v61, %v3730_v37  ;;  %v3873_v46 = vpop.f32.mrf.mxu3 }
 0x59e   :  { %v3677_v7 = vpop.f32.mrf.mxu0  ;;  %5440 = vmatmul.msk.f32.gmra.mxu1 %vm3623_vm7, %v8624_v15 }
 0x59f   :  { %v8695_v28 = vadd.f32 %v3873_v46, %v3808_v1  ;;  %v3733_v33 = vadd.f32 %v3732_v18, %v3677_v7 }
 0x5a1   :  { %5431 = vmatmul.msk.f32.gmra.mxu0 %vm3623_vm7, %v4359_v47  ;;  %5447 = vmatmul.msk.f32.gmra.mxu2 %vm3623_vm7, %v8502_v42  ;;  %v4361_v42 = vsel %vm4354_vm9, %v4358_v63, %v4360_v19 }
 0x5a2   :  { %5455 = vmatmul.msk.f32.gmra.mxu3 %vm3623_vm7, %v8320_v39 }
 0x5a3   :  { %v3989_v41 = vpop.f32.mrf.mxu1 }
 0x5a4   :  { %v3800_v6 = vpop.f32.mrf.mxu2 }
 0x5a5   :  { %v3809_v60 = vadd.f32 %v3800_v6, %v3733_v33  ;;  %v3876_v50 = vpop.f32.mrf.mxu3 }
 0x5a6   :  { %v3936_v15 = vpop.f32.mrf.mxu0  ;;  %5441 = vmatmul.msk.f32.gmra.mxu1 %vm3623_vm7, %v8638_v31 }
 0x5a7   :  { %v8706_v8 = vadd.f32 %v3876_v50, %v3809_v60  ;;  %v3957_v16 = vadd.f32 %v3936_v15, %v8621_v52  ;;  %v4617_v60 = vld [vmem:[%s8924_s7 + $0x60] sm:$0xff]  ;;  %v4616_v50 = vld [vmem:[%s8924_s7 + $0x58] sm:$0xff] }
 0x5a9   :  { %5432 = vmatmul.msk.f32.gmra.mxu0 %vm3623_vm7, %v4361_v42  ;;  %5448 = vmatmul.msk.f32.gmra.mxu2 %vm3623_vm7, %v8533_v51  ;;  %v4007_v25 = vadd.f32 %v3986_v55, %v3957_v16  ;;  %v4363_v51 = vsel %vm4354_vm9, %v4360_v19, %v4362_v45 }
 0x5aa   :  { %5456 = vmatmul.msk.f32.gmra.mxu3 %vm3623_vm7, %v8343_v58  ;;  %v4430_v58 = vrot.slane %v8449_v38, 6 }
 0x5ab   :  { %v3992_v39 = vpop.f32.mrf.mxu1 }
 0x5ac   :  { %v4040_v35 = vpop.f32.mrf.mxu2 }
 0x5ad   :  { %v4061_v31 = vadd.f32 %v4040_v35, %v4007_v25  ;;  %v4094_v4 = vpop.f32.mrf.mxu3 }
 0x5ae   :  { %v3939_v56 = vpop.f32.mrf.mxu0  ;;  %5442 = vmatmul.msk.f32.gmra.mxu1 %vm3623_vm7, %v8663_v26  ;;  %v4364_v26 = vrot.slane %v8530_v23, 5 }
 0x5af   :  { %v8718_v52 = vadd.f32 %v4094_v4, %v4061_v31  ;;  %v3958_v17 = vadd.f32 %v3939_v56, %v8635_v20  ;;  %v4431_v20 = vsel %vm1852_vm5, %v8647_v21, %v4430_v58  ;;  %v4614_v31 = vld [vmem:[%s8924_s7 + $0x48] sm:$0xff] }
 0x5b0   :  { %v4365_v32 = vsel %vm4354_vm9, %v4362_v45, %v4364_v26  ;;  %v4367_v13 = vsel %vm4354_vm9, %v4364_v26, %v4366_v22 }
 0x5b1   :  { %5433 = vmatmul.msk.f32.gmra.mxu0 %vm3623_vm7, %v4363_v51  ;;  %5449 = vmatmul.msk.f32.gmra.mxu2 %vm3623_vm7, %v8549_v12  ;;  %v4008_v62 = vadd.f32 %v3989_v41, %v3958_v17 }
 0x5b2   :  { %5457 = vmatmul.msk.f32.gmra.mxu3 %vm3623_vm7, %v8391_v24 }
 0x5b3   :  { %v3995_v29 = vpop.f32.mrf.mxu1 }
 0x5b4   :  { %v4043_v5 = vpop.f32.mrf.mxu2 }
 0x5b5   :  { %v4062_v3 = vadd.f32 %v4043_v5, %v4008_v62  ;;  %v4097_v9 = vpop.f32.mrf.mxu3  ;;  %v4611_v5 = vld [vmem:[%s8924_s7 + $0x30] sm:$0xff] }
 0x5b6   :  { %v3942_v27 = vpop.f32.mrf.mxu0  ;;  %5443 = vmatmul.msk.f32.gmra.mxu1 %vm3623_vm7, %v4431_v20  ;;  %v4610_v20 = vld [vmem:[%s8924_s7 + $0x28] sm:$0xff] }
 0x5b7   :  { %v8732_v57 = vadd.f32 %v4097_v9, %v4062_v3  ;;  %v3959_v12 = vadd.f32 %v3942_v27, %v8659_v59 }
 0x5b9   :  { %5434 = vmatmul.msk.f32.gmra.mxu0 %vm3623_vm7, %v4365_v32  ;;  %5450 = vmatmul.msk.f32.gmra.mxu2 %vm3623_vm7, %v8568_v10  ;;  %v4009_v40 = vadd.f32 %v3992_v39, %v3959_v12  ;;  %v4609_v12 = vld [vmem:[%s8924_s7 + $0x20] sm:$0xff] }
 0x5ba   :  { %5458 = vmatmul.msk.f32.gmra.mxu3 %vm3623_vm7, %v8530_v23 }
 0x5bb   :  { %v3998_v24 = vpop.f32.mrf.mxu1 }
 0x5bc   :  { %v4046_v21 = vpop.f32.mrf.mxu2 }
 0x5bd   :  { %v4063_v44 = vadd.f32 %v4046_v21, %v4009_v40  ;;  %v4100_v18 = vpop.f32.mrf.mxu3  ;;  %v4608_v21 = vld [vmem:[%s8924_s7 + $0x18] sm:$0xff] }
 0x5be   :  { %v3945_v34 = vpop.f32.mrf.mxu0  ;;  %5444 = vmatmul.msk.f32.gmra.mxu1 %vm3623_vm7, %v4430_v58  ;;  %v4613_v58 = vld [vmem:[%s8924_s7 + $0x40] sm:$0xff] }
 0x5bf   :  { %v8743_v59 = vadd.f32 %v4100_v18, %v4063_v44  ;;  %v3960_v36 = vadd.f32 %v3945_v34, %v8673_v49 }
 0x5c1   :  { %5435 = vmatmul.msk.f32.gmra.mxu0 %vm3623_vm7, %v4367_v13  ;;  %5451 = vmatmul.msk.f32.gmra.mxu2 %vm3623_vm7, %v8654_v53  ;;  %v4010_v10 = vadd.f32 %v3995_v29, %v3960_v36  ;;  %v4612_v29 = vld [vmem:[%s8924_s7 + $0x38] sm:$0xff]  ;;  %v4606_v13 = vld [vmem:[%s8924_s7 + $0x8] sm:$0xff] }
 0x5c2   :  { %5459 = vmatmul.msk.f32.gmra.mxu3 %vm3623_vm7, %v8449_v38 }
 0x5c3   :  { %v4001_v23 = vpop.f32.mrf.mxu1 }
 0x5c4   :  { %v4049_v0 = vpop.f32.mrf.mxu2 }
 0x5c5   :  { %v4064_v54 = vadd.f32 %v4049_v0, %v4010_v10  ;;  %v4103_v14 = vpop.f32.mrf.mxu3 }
 0x5c6   :  { %v3948_v30 = vpop.f32.mrf.mxu0 }
 0x5c7   :  { %v8752_v37 = vadd.f32 %v4103_v14, %v4064_v54  ;;  %v3961_v49 = vadd.f32 %v3948_v30, %v8684_v11  ;;  %v4619_v11 = vld [vmem:[%s8924_s7 + $0x70] sm:$0xff] }
 0x5c8   :  { %4647 = vmatpush.msrb.mxu0 %v4619_v11 }
 0x5c9   :  { %5436 = vmatmul.msk.f32.gmra.mxu0 %vm3623_vm7, %v4366_v22  ;;  %5452 = vmatmul.msk.f32.gmra.mxu2 %vm3623_vm7, %v8474_v43  ;;  %v4011_v55 = vadd.f32 %v3998_v24, %v3961_v49  ;;  %v4618_v43 = vld [vmem:[%s8924_s7 + $0x68] sm:$0xff]  ;;  %v4607_v22 = vld [vmem:[%s8924_s7 + $0x10] sm:$0xff] }
 0x5ca   :  { %5460 = vmatmul.msk.f32.gmra.mxu3 %vm3623_vm7, %v3602_v48  ;;  %4648 = vmatpush.msrb.mxu0 %v4618_v43 }
 0x5cb   :  { %v4004_v38 = vpop.f32.mrf.mxu1 }
 0x5cc   :  { %v4052_v53 = vpop.f32.mrf.mxu2  ;;  %4649 = vmatpush.msrb.mxu0 %v4617_v60 }
 0x5cd   :  { %v4065_v61 = vadd.f32 %v4052_v53, %v4011_v55  ;;  %v4106_v63 = vpop.f32.mrf.mxu3 }
 0x5ce   :  { %v3951_v1 = vpop.f32.mrf.mxu0  ;;  %4650 = vmatpush.msrb.mxu0 %v4616_v50 }
 0x5cf   :  { %v8761_v46 = vadd.f32 %v4106_v63, %v4065_v61  ;;  %v3962_v7 = vadd.f32 %v3951_v1, %v8695_v28 }
 0x5d1   :  { %v4012_v2 = vadd.f32 %v4001_v23, %v3962_v7  ;;  %v4605_v23 = vld [vmem:[%s8924_s7] sm:$0xff] }
 0x5d3   :  { %v8770_v48 = vpop.f32.mrf.mxu1 }
 0x5d4   :  { %v4055_v47 = vpop.f32.mrf.mxu2 }
 0x5d5   :  { %v4066_v33 = vadd.f32 %v4055_v47, %v4012_v2  ;;  %v4109_v41 = vpop.f32.mrf.mxu3 }
 0x5d6   :  { %v3954_v6 = vpop.f32.mrf.mxu0 }
 0x5d7   :  { %v8772_v19 = vadd.f32 %v4109_v41, %v4066_v33  ;;  %v3963_v28 = vadd.f32 %v3954_v6, %v8706_v8  ;;  %v4615_v8 = vld [vmem:[%s8924_s7 + $0x50] sm:$0xff] }
 0x5d8   :  { %4651 = vmatpush.msrb.mxu0 %v4615_v8 }
 0x5d9   :  { %v4013_v15 = vadd.f32 %v4004_v38, %v3963_v28 }
 0x5da   :  { %4652 = vmatpush.msrb.mxu0 %v4614_v31 }
 0x5db   :  { %v4225_v16 = vpop.f32.mrf.mxu1 }
 0x5dc   :  { %v4058_v42 = vpop.f32.mrf.mxu2  ;;  %4653 = vmatpush.msrb.mxu0 %v4613_v58 }
 0x5dd   :  { %v4067_v39 = vadd.f32 %v4058_v42, %v4013_v15  ;;  %v4112_v25 = vpop.f32.mrf.mxu3 }
 0x5de   :  { %v4169_v35 = vpop.f32.mrf.mxu0  ;;  %4654 = vmatpush.msrb.mxu0 %v4612_v29 }
 0x5df   :  { %v8781_v45 = vadd.f32 %v4112_v25, %v4067_v39  ;;  %v4190_v30 = vadd.f32 %v4169_v35, %v8718_v52 }
 0x5e0   :  { %4655 = vmatpush.msrb.mxu0 %v4611_v5 }
 0x5e1   :  { %v4243_v61 = vadd.f32 %v8770_v48, %v4190_v30 }
 0x5e2   :  { %4656 = vmatpush.msrb.mxu0 %v4610_v20 }
 0x5e3   :  { %v4228_v4 = vpop.f32.mrf.mxu1 }
 0x5e4   :  { %v4272_v56 = vpop.f32.mrf.mxu2  ;;  %4657 = vmatpush.msrb.mxu0 %v4609_v12 }
 0x5e5   :  { %v4326_v17 = vpop.f32.mrf.mxu3  ;;  %v4293_v63 = vadd.f32 %v4272_v56, %v4243_v61 }
 0x5e6   :  { %v4172_v51 = vpop.f32.mrf.mxu0  ;;  %4658 = vmatpush.msrb.mxu0 %v4608_v21 }
 0x5e7   :  { %v4191_v1 = vadd.f32 %v4172_v51, %v8732_v57  ;;  %v4347_v11 = vadd.f32 %v4326_v17, %v4293_v63  ;;  %v8845_v57 = vld [vmem:[%s8923_s6] ss:$0 sm:$0xff] }
 0x5e8   :  { %4659 = vmatpush.msrb.mxu0 %v4607_v22 }
 0x5e9   :  { %v4244_v47 = vadd.f32 %v4225_v16, %v4191_v1 }
 0x5ea   :  { %4660 = vmatpush.msrb.mxu0 %v4606_v13 }
 0x5eb   :  { %v8795_v62 = vpop.f32.mrf.mxu1 }
 0x5ec   :  { %v4275_v26 = vpop.f32.mrf.mxu2  ;;  %4661 = vmatpush.msrb.mxu0 %v4605_v23 }
 0x5ed   :  { %v4329_v3 = vpop.f32.mrf.mxu3  ;;  %v4294_v41 = vadd.f32 %v4275_v26, %v4244_v47 }
 0x5ee   :  { %v4175_v9 = vpop.f32.mrf.mxu0 }
 0x5ef   :  { %v4192_v6 = vadd.f32 %v4175_v9, %v8743_v59  ;;  %v4348_v50 = vadd.f32 %v4329_v3, %v4294_v41  ;;  %v4696_v41 = vld [vmem:[%s8926_s9 + $0x28] sm:$0xff] }
 0x5f1   :  { %v4245_v39 = vadd.f32 %v4228_v4, %v4192_v6 }
 0x5f3   :  { %v8803_v27 = vpop.f32.mrf.mxu1 }
 0x5f4   :  { %v4278_v32 = vpop.f32.mrf.mxu2 }
 0x5f5   :  { %v4332_v24 = vpop.f32.mrf.mxu3  ;;  %v4295_v16 = vadd.f32 %v4278_v32, %v4245_v39 }
 0x5f6   :  { %v4178_v40 = vpop.f32.mrf.mxu0 }
 0x5f7   :  { %v4193_v59 = vadd.f32 %v4178_v40, %v8752_v37  ;;  %v4349_v58 = vadd.f32 %v4332_v24, %v4295_v16 }
 0x5f9   :  { %v4246_v4 = vadd.f32 %v8795_v62, %v4193_v59 }
 0x5fb   :  { %v8814_v44 = vpop.f32.mrf.mxu1 }
 0x5fc   :  { %v4281_v18 = vpop.f32.mrf.mxu2 }
 0x5fd   :  { %v4335_v34 = vpop.f32.mrf.mxu3  ;;  %v4296_v20 = vadd.f32 %v4281_v18, %v4246_v4 }
 0x5fe   :  { %v4181_v36 = vpop.f32.mrf.mxu0 }
 0x5ff   :  { %v4194_v32 = vadd.f32 %v4181_v36, %v8761_v46  ;;  %v4350_v13 = vadd.f32 %v4335_v34, %v4296_v20 }
 0x603   :  { %v8822_v10 = vpop.f32.mrf.mxu1 }
 0x604   :  { %v8824_v0 = vpop.f32.mrf.mxu2 }
 0x605   :  { %v8826_v54 = vpop.f32.mrf.mxu3 }
 0x606   :  { %v4184_v14 = vpop.f32.mrf.mxu0 }
 0x607   :  { %v4195_v46 = vadd.f32 %v4184_v14, %v8772_v19 }
 0x609   :  { %v4248_v19 = vadd.f32 %v8814_v44, %v4195_v46 }
 0x60b   :  { %v4456_v38 = vpop.f32.mrf.mxu1 }
 0x60c   :  { %v8829_v49 = vpop.f32.mrf.mxu2 }
 0x60d   :  { %v8831_v55 = vpop.f32.mrf.mxu3  ;;  %v4298_v6 = vadd.f32 %v8829_v49, %v4248_v19 }
 0x60e   :  { %v8833_v53 = vpop.f32.mrf.mxu0 }
 0x60f   :  { %v4352_v49 = vadd.f32 %v8831_v55, %v4298_v6 }
 0x613   :  { %v4459_v33 = vpop.f32.mrf.mxu1 }
 0x614   :  { %v8837_v7 = vpop.f32.mrf.mxu2 }
 0x615   :  { %v8839_v43 = vpop.f32.mrf.mxu3 }
 0x616   :  { %v4402_v2 = vpop.f32.mrf.mxu0 }
 0x617   :  { %v4423_v52 = vadd.f32 %v4402_v2, %v4347_v11 }
 0x619   :  { %v4477_v28 = vadd.f32 %v4456_v38, %v4423_v52  ;;  %v4247_v38 = vadd.f32 %v8803_v27, %v4194_v32  ;;  %v4698_v27 = vld [vmem:[%s8926_s9 + $0x38] sm:$0xf] }
 0x61a   :  { %5468 = vmatpush.msk.msrb.mxu1 %vm3638_vm6, %v4698_v27 }
 0x61b   :  { %v4462_v31 = vpop.f32.mrf.mxu1  ;;  %v4297_v18 = vadd.f32 %v8824_v0, %v4247_v38  ;;  %v4697_v0 = vld [vmem:[%s8926_s9 + $0x30] sm:$0xff] }
 0x61c   :  { %v4509_v60 = vpop.f32.mrf.mxu2  ;;  %4737 = vmatpush.msrb.mxu1 %v4697_v0 }
 0x61d   :  { %v4530_v15 = vadd.f32 %v4509_v60, %v4477_v28  ;;  %v4559_v48 = vpop.f32.mrf.mxu3  ;;  %v4351_v34 = vadd.f32 %v8826_v54, %v4297_v18  ;;  %v4695_v60 = vld [vmem:[%s8926_s9 + $0x20] sm:$0xff] }
 0x61e   :  { %v4405_v42 = vpop.f32.mrf.mxu0  ;;  %4738 = vmatpush.msrb.mxu1 %v4696_v41 }
 0x61f   :  { %v4580_v25 = vadd.f32 %v4559_v48, %v4530_v15  ;;  %v4424_v35 = vadd.f32 %v4405_v42, %v4348_v50  ;;  %v4196_v50 = vadd.f32 %v8833_v53, %v8781_v45  ;;  %v4694_v48 = vld [vmem:[%s8926_s9 + $0x18] sm:$0xff] }
 0x620   :  { %4739 = vmatpush.msrb.mxu1 %v4695_v60 }
 0x621   :  { %v4591_v8 = vadd.f32 %v8845_v57, %v4580_v25  ;;  %v4478_v17 = vadd.f32 %v4459_v33, %v4424_v35  ;;  %v4693_v35 = vld [vmem:[%s8926_s9 + $0x10] sm:$0xff]  ;;  %v4249_v45 = vadd.f32 %v8822_v10, %v4196_v50 }
 0x622   :  { %4740 = vmatpush.msrb.mxu1 %v4694_v48 }
 0x623   :  { %v4598_v56 = vmax.f32 %v4591_v8, 0.0  ;;  %v4465_v40 = vpop.f32.mrf.mxu1  ;;  %v4299_v55 = vadd.f32 %v8837_v7, %v4249_v45 }
 0x624   :  { %v4512_v51 = vpop.f32.mrf.mxu2  ;;  %4741 = vmatpush.msrb.mxu1 %v4693_v35 }
 0x625   :  { %v4531_v29 = vadd.f32 %v4512_v51, %v4478_v17  ;;  %v4562_v5 = vpop.f32.mrf.mxu3  ;;  %5461 = vmatmul.msk.f32.vlgmr.msrb.gmra.mxu0 %vm4624_vm10, %v4598_v56  ;;  %v4691_v17 = vld [vmem:[%s8926_s9] sm:$0xff] }
 0x626   :  { %v4408_v26 = vpop.f32.mrf.mxu0 }
 0x627   :  { %v4581_v3 = vadd.f32 %v4562_v5, %v4531_v29  ;;  %v4425_v9 = vadd.f32 %v4408_v26, %v4349_v58  ;;  %v4353_v29 = vadd.f32 %v8839_v43, %v4299_v55 }
 0x629   :  { %v4592_v12 = vadd.f32 %v8845_v57, %v4581_v3  ;;  %v4479_v37 = vadd.f32 %v4462_v31, %v4425_v9  ;;  %v4692_v31 = vld [vmem:[%s8926_s9 + $0x8] sm:$0xff] }
 0x62a   :  { %4742 = vmatpush.msrb.mxu1 %v4692_v31 }
 0x62b   :  { %v4599_v21 = vmax.f32 %v4592_v12, 0.0  ;;  %v4468_v52 = vpop.f32.mrf.mxu1 }
 0x62c   :  { %v4515_v22 = vpop.f32.mrf.mxu2  ;;  %4743 = vmatpush.msrb.mxu1 %v4691_v17 }
 0x62d   :  { %v4532_v24 = vadd.f32 %v4515_v22, %v4479_v37  ;;  %v4565_v23 = vpop.f32.mrf.mxu3  ;;  %5462 = vmatmul.msk.f32.gmra.mxu0 %vm4624_vm10, %v4599_v21 }
 0x62e   :  { %v4411_v30 = vpop.f32.mrf.mxu0 }
 0x62f   :  { %v4582_v62 = vadd.f32 %v4565_v23, %v4532_v24  ;;  %v4426_v61 = vadd.f32 %v4411_v30, %v4350_v13  ;;  %v5484_v24 = vld [vmem:[%s8925_s8] ss:$0 sm:$0xff] }
 0x631   :  { %v4593_v63 = vadd.f32 %v8845_v57, %v4582_v62  ;;  %v4480_v1 = vadd.f32 %v4465_v40, %v4426_v61 }
 0x633   :  { %v4600_v36 = vmax.f32 %v4593_v63, 0.0  ;;  %v4471_v59 = vpop.f32.mrf.mxu1 }
 0x634   :  { %v4518_v11 = vpop.f32.mrf.mxu2 }
 0x635   :  { %v4533_v2 = vadd.f32 %v4518_v11, %v4480_v1  ;;  %v4568_v47 = vpop.f32.mrf.mxu3  ;;  %5463 = vmatmul.msk.f32.gmra.mxu0 %vm4624_vm10, %v4600_v36 }
 0x636   :  { %v4414_v33 = vpop.f32.mrf.mxu0 }
 0x637   :  { %v4583_v14 = vadd.f32 %v4568_v47, %v4533_v2  ;;  %v4427_v54 = vadd.f32 %v4414_v33, %v4351_v34 }
 0x639   :  { %v4594_v28 = vadd.f32 %v8845_v57, %v4583_v14  ;;  %v4481_v15 = vadd.f32 %v4468_v52, %v4427_v54  ;;  %v5485_v54 = vld [vmem:[%s8927_s10] ss:$0 sm:$0xff] }
 0x63b   :  { %v4601_v44 = vmax.f32 %v4594_v28, 0.0  ;;  %v4474_v20 = vpop.f32.mrf.mxu1 }
 0x63c   :  { %v4521_v42 = vpop.f32.mrf.mxu2 }
 0x63d   :  { %v4534_v39 = vadd.f32 %v4521_v42, %v4481_v15  ;;  %v4571_v25 = vpop.f32.mrf.mxu3  ;;  %5464 = vmatmul.msk.f32.gmra.mxu0 %vm4624_vm10, %v4601_v44 }
 0x63e   :  { %v4417_v16 = vpop.f32.mrf.mxu0 }
 0x63f   :  { %v4584_v53 = vadd.f32 %v4571_v25, %v4534_v39  ;;  %v4428_v8 = vadd.f32 %v4417_v16, %v4352_v49 }
 0x641   :  { %v4595_v56 = vadd.f32 %v8845_v57, %v4584_v53  ;;  %v4482_v58 = vadd.f32 %v4471_v59, %v4428_v8 }
 0x643   :  { %v4602_v51 = vmax.f32 %v4595_v56, 0.0 }
 0x644   :  { %v4524_v10 = vpop.f32.mrf.mxu2 }
 0x645   :  { %v4535_v5 = vadd.f32 %v4524_v10, %v4482_v58  ;;  %v4574_v26 = vpop.f32.mrf.mxu3  ;;  %5465 = vmatmul.msk.f32.gmra.mxu0 %vm4624_vm10, %v4602_v51 }
 0x646   :  { %v4420_v4 = vpop.f32.mrf.mxu0 }
 0x647   :  { %v4585_v3 = vadd.f32 %v4574_v26, %v4535_v5  ;;  %v4429_v7 = vadd.f32 %v4420_v4, %v4353_v29 }
 0x649   :  { %v4596_v9 = vadd.f32 %v8845_v57, %v4585_v3  ;;  %v4483_v32 = vadd.f32 %v4474_v20, %v4429_v7 }
 0x64b   :  { %v4603_v12 = vmax.f32 %v4596_v9, 0.0 }
 0x64c   :  { %v4527_v21 = vpop.f32.mrf.mxu2 }
 0x64d   :  { %v4536_v37 = vadd.f32 %v4527_v21, %v4483_v32  ;;  %5466 = vmatmul.msk.f32.gmra.mxu0 %vm4624_vm10, %v4603_v12  ;;  %v4577_v40 = vpop.f32.mrf.mxu3 }
 0x64f   :  { %v4586_v22 = vadd.f32 %v4577_v40, %v4536_v37 }
 0x651   :  { %v4597_v43 = vadd.f32 %v8845_v57, %v4586_v22 }
 0x653   :  { %v4604_v13 = vmax.f32 %v4597_v43, 0.0 }
 0x655   :  { %5467 = vmatmul.msk.f32.gmra.mxu0 %vm4624_vm10, %v4604_v13 }
 0x6a2   :  { %v4663_v23 = vpop.f32.mrf.mxu0 }
 0x6a3   :  { %v4664_v30 = vadd.f32 %v5484_v24, %v4663_v23 }
 0x6a5   :  { %v4684_v38 = vmax.f32 %v4664_v30, 0.0 }
 0x6a7   :  { %5469 = vmatmul.msk.f32.vlgmr.msrb.gmra.mxu1 %vm4703_vm11, %v4684_v38 }
 0x6aa   :  { %v4666_v62 = vpop.f32.mrf.mxu0 }
 0x6ab   :  { %v4667_v61 = vadd.f32 %v5484_v24, %v4666_v62 }
 0x6ad   :  { %v4685_v18 = vmax.f32 %v4667_v61, 0.0 }
 0x6af   :  { %5470 = vmatmul.msk.f32.gmra.mxu1 %vm4703_vm11, %v4685_v18 }
 0x6b2   :  { %v4669_v63 = vpop.f32.mrf.mxu0 }
 0x6b3   :  { %v4670_v57 = vadd.f32 %v5484_v24, %v4669_v63 }
 0x6b5   :  { %v4686_v46 = vmax.f32 %v4670_v57, 0.0 }
 0x6b7   :  { %5471 = vmatmul.msk.f32.gmra.mxu1 %vm4703_vm11, %v4686_v46 }
 0x6ba   :  { %v4672_v36 = vpop.f32.mrf.mxu0 }
 0x6bb   :  { %v4673_v1 = vadd.f32 %v5484_v24, %v4672_v36 }
 0x6bd   :  { %v4687_v11 = vmax.f32 %v4673_v1, 0.0 }
 0x6bf   :  { %5472 = vmatmul.msk.f32.gmra.mxu1 %vm4703_vm11, %v4687_v11 }
 0x6c2   :  { %v4675_v34 = vpop.f32.mrf.mxu0 }
 0x6c3   :  { %v4676_v2 = vadd.f32 %v5484_v24, %v4675_v34 }
 0x6c5   :  { %v4688_v47 = vmax.f32 %v4676_v2, 0.0 }
 0x6c7   :  { %5473 = vmatmul.msk.f32.gmra.mxu1 %vm4703_vm11, %v4688_v47 }
 0x6ca   :  { %v4678_v27 = vpop.f32.mrf.mxu0 }
 0x6cb   :  { %v4679_v0 = vadd.f32 %v5484_v24, %v4678_v27 }
 0x6cd   :  { %v4689_v52 = vmax.f32 %v4679_v0, 0.0 }
 0x6cf   :  { %5474 = vmatmul.msk.f32.gmra.mxu1 %vm4703_vm11, %v4689_v52 }
 0x6d2   :  { %v4681_v33 = vpop.f32.mrf.mxu0 }
 0x6d3   :  { %v4682_v19 = vadd.f32 %v5484_v24, %v4681_v33 }
 0x6d5   :  { %v4690_v14 = vmax.f32 %v4682_v19, 0.0 }
 0x6d7   :  { %5475 = vmatmul.msk.f32.gmra.mxu1 %vm4703_vm11, %v4690_v14 }
 0x724   :  { %v4745_v41 = vpop.f32.mrf.mxu1 }
 0x725   :  { %v4746_v6 = vadd.f32 %v5485_v54, %v4745_v41 }
 0x727   :  { %4762 = vst.msk [vmem:[#allocation2] sm:$0x1] %vm4761_vm12, %v4746_v6 }
 0x72c   :  { %v4748_v28 = vpop.f32.mrf.mxu1 }
 0x734   :  { %v4750_v60 = vpop.f32.mrf.mxu1 }
 0x73c   :  { %v4752_v50 = vpop.f32.mrf.mxu1 }
 0x744   :  { %v4754_v44 = vpop.f32.mrf.mxu1 }
 0x74c   :  { %v4756_v15 = vpop.f32.mrf.mxu1 }
 0x754   :  { %v4758_v48 = vpop.f32.mrf.mxu1 }
 0x755   :  { %v4759_v42 = vadd.f32 %v5485_v54, %v4758_v48 }
 0x757   :  { %4764 = vst.msk [vmem:[#allocation2] sm:$0x2] %vm4763_vm13, %v4759_v42 }
 0x758   :  { %4775 = dma.vmem_to_hbm [thread:$0]  %s4771_s1, 32, %s4773_s0, [#allocation3]  }
 0x759   :  { %5513 = dma.done.wait [#allocation3], 32  }
 0x75a   :  { %5514 = vsyncadd [#allocation3], 4294967264 }
 0x75b   :  { %4780 = vsyncpa [#allocation3], 1 }

</bundles_post_ra>
